<compile_context>
chip_gen: v6e
topology: v6e:2x2x1
jax: 0.10.0
libtpu: 0.0.40
codegen_flags: <defaults>
</compile_context>

<pallas_src>
import functools
import math

import jax
import jax.numpy as jnp
from jax.experimental import pallas as pl
from jax.experimental.pallas import tpu as pltpu  # noqa: F401  (TPU backend assumed)


# -----------------------------------------------------------------------------
# In-kernel helpers (traced inside the Pallas kernel body)
# -----------------------------------------------------------------------------

def _softmax_lastdim(s):
    m = jnp.max(s, axis=-1, keepdims=True)
    p = jnp.exp(s - m)
    denom = jnp.sum(p, axis=-1, keepdims=True)
    return p * pl.reciprocal(denom, approx=True)


def _layernorm(x, g, b, eps=1e-5):
    mean = jnp.mean(x, axis=-1, keepdims=True)
    xc = x - mean
    var = jnp.mean(xc * xc, axis=-1, keepdims=True)
    return xc * jax.lax.rsqrt(var + eps) * g + b


def _mha(q3, k3, v3, out_w, n_heads):
    """Multi-head attention over a leading batch axis.

    q3,k3,v3: (N, L, D).  Returns concat-heads @ out_w as a 2D (N*L, Dout)
    array; per-head out-projection slices are accumulated so no lane-axis
    concatenate is needed.
    """
    N, L, D = q3.shape
    hd = D // n_heads
    scale = 1.0 / math.sqrt(hd)
    acc = jnp.zeros((N * L, out_w.shape[1]), jnp.float32)
    for h in range(n_heads):                      # static unroll, n_heads small
        sl = slice(h * hd, (h + 1) * hd)
        s = jnp.einsum("bqd,bkd->bqk", q3[:, :, sl], k3[:, :, sl],
                       preferred_element_type=jnp.float32) * scale
        p = _softmax_lastdim(s)
        oh = jnp.einsum("bqk,bkd->bqd", p, v3[:, :, sl],
                        preferred_element_type=jnp.float32)
        acc = acc + jnp.dot(oh.reshape(N * L, hd), out_w[sl, :],
                            preferred_element_type=jnp.float32)
    return acc


# -----------------------------------------------------------------------------
# Fused whole-forward Pallas kernel
# -----------------------------------------------------------------------------

def _forward_kernel(feat_ref, embed_w_ref,
                    g_in_w, g_in_b, g_out_w, g_out_b,
                    g_f1w, g_f1b, g_f2w, g_f2b,
                    e_qkv_w, e_qkv_b, e_o_w, e_o_b,
                    e_f1w, e_f1b, e_f2w, e_f2b,
                    ln1_g, ln1_b, ln2_g, ln2_b,
                    tw, tb, sw, sb, fw1t, fw1s, fb1, fw2, fb2,
                    o_ref, *, n_heads, num_groups, e_layers, seq_len):
    rows, fin = feat_ref.shape                  # rows = 2B * L
    D = embed_w_ref.shape[1]
    L = seq_len
    NB = rows // L                              # 2B (trend|seasonal batched)
    G = num_groups
    Lg = L // G
    BL = rows // 2                              # B * L

    # ---- DataEmbedding_wo_pos: circular k=3 conv (unfold) + timeF linear ----
    x2 = jnp.dot(feat_ref[...], embed_w_ref[...],
                 preferred_element_type=jnp.float32)            # (2B*L, D)

    for l in range(e_layers):                   # static unroll over layers
        # ---------------- GroupPolicyLayer ----------------
        qkv = jnp.dot(x2, g_in_w[l], preferred_element_type=jnp.float32) + g_in_b[l]
        qkv3 = qkv.reshape(NB * G, Lg, 3 * D)   # groups are contiguous seq chunks
        attn = _mha(qkv3[:, :, 0:D], qkv3[:, :, D:2 * D], qkv3[:, :, 2 * D:3 * D],
                    g_out_w[l], n_heads) + g_out_b[l]
        # value_net / advantage_net outputs are discarded by TimeGRPO.forward.
        h = jnp.maximum(
            jnp.dot(attn, g_f1w[l], preferred_element_type=jnp.float32) + g_f1b[l],
            0.0)
        x2 = x2 + jnp.dot(h, g_f2w[l], preferred_element_type=jnp.float32) + g_f2b[l]

        # ---------------- EncoderLayer ----------------
        qkv = jnp.dot(x2, e_qkv_w[l], preferred_element_type=jnp.float32) + e_qkv_b[l]
        qkv3 = qkv.reshape(NB, L, 3 * D)
        attn = _mha(qkv3[:, :, 0:D], qkv3[:, :, D:2 * D], qkv3[:, :, 2 * D:3 * D],
                    e_o_w[l], n_heads) + e_o_b[l]
        x2 = _layernorm(x2 + attn, ln1_g[l], ln1_b[l])
        h = jnp.maximum(
            jnp.dot(x2, e_f1w[l], preferred_element_type=jnp.float32) + e_f1b[l],
            0.0)
        y = jnp.dot(h, e_f2w[l], preferred_element_type=jnp.float32) + e_f2b[l]
        x2 = _layernorm(x2 + y, ln2_g[l], ln2_b[l])

    # ---- head: trend/seasonal projections + fusion MLP ----
    t_enc = x2[0:BL, :]                          # trend half (8-aligned slice)
    s_enc = x2[BL:2 * BL, :]                     # seasonal half
    t = jnp.dot(t_enc, tw[...], preferred_element_type=jnp.float32) + tb[...]
    s = jnp.dot(s_enc, sw[...], preferred_element_type=jnp.float32) + sb[...]
    # concat([t, s]) @ fusion_w1 == t @ w1_t + s @ w1_s  (avoids lane concat)
    h = jnp.maximum(
        jnp.dot(t, fw1t[...], preferred_element_type=jnp.float32)
        + jnp.dot(s, fw1s[...], preferred_element_type=jnp.float32)
        + fb1[...], 0.0)
    o_ref[...] = jnp.dot(h, fw2[...], preferred_element_type=jnp.float32) + fb2[...]


# -----------------------------------------------------------------------------
# jnp glue (tiny XLA ops) + forward wrapper
# -----------------------------------------------------------------------------

def series_decomp(x, kernel_size):
    # moving average (trend) + residual (seasonal); tiny lane width -> plain jnp
    pad = (kernel_size - 1) // 2
    front = jnp.repeat(x[:, :1, :], pad, axis=1)
    end = jnp.repeat(x[:, -1:, :], pad, axis=1)
    xpad = jnp.concatenate([front, x, end], axis=1)
    L = x.shape[1]
    trend = sum(xpad[:, j:j + L, :] for j in range(kernel_size)) * (1.0 / kernel_size)
    return x - trend, trend


def time_grpo_forward(params, cfg, x_enc, x_mark_enc, x_dec, x_mark_dec):
    B, L, _ = x_enc.shape
    assert L % cfg["num_groups"] == 0 and cfg["d_model"] % cfg["n_heads"] == 0

    seasonal_init, trend_init = series_decomp(x_enc, cfg["moving_avg"])

    # Batch trend + seasonal: they share all layer weights and every layer is
    # batch-independent, so results are identical per-element.
    x_both = jnp.concatenate([trend_init, seasonal_init], axis=0)      # (2B, L, C)
    mark_both = jnp.concatenate([x_mark_enc, x_mark_enc], axis=0)      # (2B, L, Fd)

    # circular k=3 unfold for the token Conv1d, fused with the timeF features
    xpad = jnp.concatenate([x_both[:, -1:, :], x_both, x_both[:, :1, :]], axis=1)
    xu = jnp.concatenate([xpad[:, j:j + L, :] for j in range(3)], axis=-1)
    feat = jnp.concatenate([xu, mark_both], axis=-1).reshape(2 * B * L, -1)

    g, e = params["grpo"], params["enc"]
    out2 = pl.pallas_call(
        functools.partial(_forward_kernel,
                          n_heads=cfg["n_heads"],
                          num_groups=cfg["num_groups"],
                          e_layers=cfg["e_layers"],
                          seq_len=L),
        out_shape=jax.ShapeDtypeStruct((B * L, cfg["c_out"]), jnp.float32),
    )(feat, params["embed_w"],
      g["in_proj_w"], g["in_proj_b"], g["out_proj_w"], g["out_proj_b"],
      g["gf_w1"], g["gf_b1"], g["gf_w2"], g["gf_b2"],
      e["qkv_w"], e["qkv_b"], e["o_w"], e["o_b"],
      e["ff_w1"], e["ff_b1"], e["ff_w2"], e["ff_b2"],
      e["ln1_g"], e["ln1_b"], e["ln2_g"], e["ln2_b"],
      params["trend_w"], params["trend_b"],
      params["seasonal_w"], params["seasonal_b"],
      params["fusion_w1_t"], params["fusion_w1_s"], params["fusion_b1"],
      params["fusion_w2"], params["fusion_b2"])

    dec_out = out2.reshape(B, L, -1)
    return dec_out[:, -cfg["pred_len"]:, :]


# -----------------------------------------------------------------------------
# Deterministic parameter init (pre-packed for the fused kernel)
# -----------------------------------------------------------------------------

class KeyGen:
    def __init__(self, key):
        self.key = key

    def __call__(self):
        self.key, sub = jax.random.split(self.key)
        return sub


def _dense(kg, din, dout, scale=0.02):
    return scale * jax.random.normal(kg(), (din, dout), jnp.float32)


def _bias(kg, d, scale=0.02):
    return scale * jax.random.normal(kg(), (1, d), jnp.float32)


def init_params(key, cfg):
    kg = KeyGen(key)
    D, Dff = cfg["d_model"], cfg["d_ff"]
    Cin, Cout, Fd = cfg["enc_in"], cfg["c_out"], cfg["freq_dim"]

    token_conv_w = _dense(kg, 3 * Cin, D)    # Conv1d(enc_in, d_model, k=3), no bias
    temporal_w = _dense(kg, Fd, D)           # TimeFeatureEmbedding linear, no bias
    p = {"embed_w": jnp.concatenate([token_conv_w, temporal_w], axis=0)}

    grpo_layers, enc_layers = [], []
    for _ in range(cfg["e_layers"]):
        grpo_layers.append(dict(
            in_proj_w=_dense(kg, D, 3 * D), in_proj_b=_bias(kg, 3 * D),
            out_proj_w=_dense(kg, D, D), out_proj_b=_bias(kg, D),
            gf_w1=_dense(kg, D, 2 * D), gf_b1=_bias(kg, 2 * D),
            gf_w2=_dense(kg, 2 * D, D), gf_b2=_bias(kg, D),
        ))
        enc_layers.append(dict(
            qkv_w=_dense(kg, D, 3 * D), qkv_b=_bias(kg, 3 * D),   # fused Q/K/V
            o_w=_dense(kg, D, D), o_b=_bias(kg, D),
            ff_w1=_dense(kg, D, Dff), ff_b1=_bias(kg, Dff),
            ff_w2=_dense(kg, Dff, D), ff_b2=_bias(kg, D),
            ln1_g=jnp.ones((1, D), jnp.float32), ln1_b=jnp.zeros((1, D), jnp.float32),
            ln2_g=jnp.ones((1, D), jnp.float32), ln2_b=jnp.zeros((1, D), jnp.float32),
        ))

    def stack(layers):
        return {k: jnp.stack([d[k] for d in layers]) for k in layers[0]}

    p["grpo"] = stack(grpo_layers)   # each leaf: (e_layers, ...) -> single ref/DMA
    p["enc"] = stack(enc_layers)

    p["trend_w"] = _dense(kg, D, Cout); p["trend_b"] = _bias(kg, Cout)
    p["seasonal_w"] = _dense(kg, D, Cout); p["seasonal_b"] = _bias(kg, Cout)
    fusion_w1 = _dense(kg, 2 * Cout, D)
    p["fusion_w1_t"] = fusion_w1[:Cout]          # pre-split so the kernel avoids
    p["fusion_w1_s"] = fusion_w1[Cout:]          # an in-kernel lane concatenate
    p["fusion_b1"] = _bias(kg, D)
    p["fusion_w2"] = _dense(kg, D, Cout); p["fusion_b2"] = _bias(kg, Cout)
    return p


# -----------------------------------------------------------------------------
# Main
# -----------------------------------------------------------------------------

if __name__ == "__main__":
    cfg = dict(
        seq_len=16, pred_len=8, enc_in=4, c_out=4,
        d_model=32, n_heads=4, d_ff=64, e_layers=2,
        moving_avg=5, num_groups=2, freq_dim=4,   # freq='h' -> 4 time features
    )
    B = 2

    key = jax.random.PRNGKey(0)
    kp, k1, k2, k3, k4 = jax.random.split(key, 5)
    params = init_params(kp, cfg)

    x_enc = jax.random.normal(k1, (B, cfg["seq_len"], cfg["enc_in"]), jnp.float32)
    x_mark_enc = jax.random.normal(k2, (B, cfg["seq_len"], cfg["freq_dim"]), jnp.float32)
    x_dec = jax.random.normal(k3, (B, cfg["pred_len"], cfg["enc_in"]), jnp.float32)         # unused by forward
    x_mark_dec = jax.random.normal(k4, (B, cfg["pred_len"], cfg["freq_dim"]), jnp.float32)  # unused by forward

    fwd = jax.jit(lambda p, a, b, c, d: time_grpo_forward(p, cfg, a, b, c, d))
    out = fwd(params, x_enc, x_mark_enc, x_dec, x_mark_dec)
    jax.block_until_ready(out)
    assert out.shape == (B, cfg["pred_len"], cfg["c_out"])
    print("KERNEL_OK")
</pallas_src>

<mosaic_0001>
module attributes {stable_mosaic.version = 11 : i64} {
  func.func @_forward_kernel(%arg0: memref<64x16xf32, #tpu.memory_space<vmem>>, %arg1: memref<16x32xf32, #tpu.memory_space<vmem>>, %arg2: memref<2x32x96xf32, #tpu.memory_space<vmem>>, %arg3: memref<2x1x96xf32, #tpu.memory_space<vmem>>, %arg4: memref<2x32x32xf32, #tpu.memory_space<vmem>>, %arg5: memref<2x1x32xf32, #tpu.memory_space<vmem>>, %arg6: memref<2x32x64xf32, #tpu.memory_space<vmem>>, %arg7: memref<2x1x64xf32, #tpu.memory_space<vmem>>, %arg8: memref<2x64x32xf32, #tpu.memory_space<vmem>>, %arg9: memref<2x1x32xf32, #tpu.memory_space<vmem>>, %arg10: memref<2x32x96xf32, #tpu.memory_space<vmem>>, %arg11: memref<2x1x96xf32, #tpu.memory_space<vmem>>, %arg12: memref<2x32x32xf32, #tpu.memory_space<vmem>>, %arg13: memref<2x1x32xf32, #tpu.memory_space<vmem>>, %arg14: memref<2x32x64xf32, #tpu.memory_space<vmem>>, %arg15: memref<2x1x64xf32, #tpu.memory_space<vmem>>, %arg16: memref<2x64x32xf32, #tpu.memory_space<vmem>>, %arg17: memref<2x1x32xf32, #tpu.memory_space<vmem>>, %arg18: memref<2x1x32xf32, #tpu.memory_space<vmem>>, %arg19: memref<2x1x32xf32, #tpu.memory_space<vmem>>, %arg20: memref<2x1x32xf32, #tpu.memory_space<vmem>>, %arg21: memref<2x1x32xf32, #tpu.memory_space<vmem>>, %arg22: memref<32x4xf32, #tpu.memory_space<vmem>>, %arg23: memref<1x4xf32, #tpu.memory_space<vmem>>, %arg24: memref<32x4xf32, #tpu.memory_space<vmem>>, %arg25: memref<1x4xf32, #tpu.memory_space<vmem>>, %arg26: memref<4x32xf32, #tpu.memory_space<vmem>>, %arg27: memref<4x32xf32, #tpu.memory_space<vmem>>, %arg28: memref<1x32xf32, #tpu.memory_space<vmem>>, %arg29: memref<32x4xf32, #tpu.memory_space<vmem>>, %arg30: memref<1x4xf32, #tpu.memory_space<vmem>>, %arg31: memref<32x4xf32, #tpu.memory_space<vmem>>) attributes {dimension_semantics = [], scalar_prefetch = 0 : i64, scratch_operands = 0 : i64, tpu.core_type = #tpu.core_type<tc>} {
    %c0 = arith.constant 0 : index
    %c0_0 = arith.constant 0 : index
    %0 = vector.load %arg0[%c0, %c0_0] : memref<64x16xf32, #tpu.memory_space<vmem>>, vector<64x16xf32>
    %c0_1 = arith.constant 0 : index
    %c0_2 = arith.constant 0 : index
    %1 = vector.load %arg1[%c0_1, %c0_2] : memref<16x32xf32, #tpu.memory_space<vmem>>, vector<16x32xf32>
    %cst = arith.constant dense<0.000000e+00> : vector<64x32xf32>
    %2 = tpu.matmul %0, %1, %cst {dimension_numbers = #tpu.dot_dimension_numbers<[1], [0], [0], [1], [0, 0, 1, 1], [], []>} : vector<64x16xf32>, vector<16x32xf32>, vector<64x32xf32> -> vector<64x32xf32>
    %c0_3 = arith.constant 0 : index
    %c0_4 = arith.constant 0 : index
    %c0_5 = arith.constant 0 : index
    %3 = vector.load %arg2[%c0_3, %c0_4, %c0_5] : memref<2x32x96xf32, #tpu.memory_space<vmem>>, vector<1x32x96xf32>
    %4 = vector.shape_cast %3 : vector<1x32x96xf32> to vector<32x96xf32>
    %cst_6 = arith.constant dense<0.000000e+00> : vector<64x96xf32>
    %5 = tpu.matmul %2, %4, %cst_6 {dimension_numbers = #tpu.dot_dimension_numbers<[1], [0], [0], [1], [0, 0, 1, 1], [], []>} : vector<64x32xf32>, vector<32x96xf32>, vector<64x96xf32> -> vector<64x96xf32>
    %c0_7 = arith.constant 0 : index
    %c0_8 = arith.constant 0 : index
    %c0_9 = arith.constant 0 : index
    %6 = vector.load %arg3[%c0_7, %c0_8, %c0_9] : memref<2x1x96xf32, #tpu.memory_space<vmem>>, vector<1x1x96xf32>
    %7 = vector.shape_cast %6 : vector<1x1x96xf32> to vector<1x96xf32>
    %8 = vector.broadcast %7 : vector<1x96xf32> to vector<64x96xf32>
    %9 = arith.addf %5, %8 : vector<64x96xf32>
    %10 = vector.shape_cast %9 : vector<64x96xf32> to vector<8x8x96xf32>
    %11 = vector.extract_strided_slice %10 {offsets = [0, 0, 0], sizes = [8, 8, 32], strides = [1, 1, 1]} : vector<8x8x96xf32> to vector<8x8x32xf32>
    %12 = vector.extract_strided_slice %10 {offsets = [0, 0, 32], sizes = [8, 8, 32], strides = [1, 1, 1]} : vector<8x8x96xf32> to vector<8x8x32xf32>
    %13 = vector.extract_strided_slice %10 {offsets = [0, 0, 64], sizes = [8, 8, 32], strides = [1, 1, 1]} : vector<8x8x96xf32> to vector<8x8x32xf32>
    %c0_10 = arith.constant 0 : index
    %c0_11 = arith.constant 0 : index
    %c0_12 = arith.constant 0 : index
    %14 = vector.load %arg4[%c0_10, %c0_11, %c0_12] : memref<2x32x32xf32, #tpu.memory_space<vmem>>, vector<1x32x32xf32>
    %15 = vector.shape_cast %14 : vector<1x32x32xf32> to vector<32x32xf32>
    %cst_13 = arith.constant 0.000000e+00 : f32
    %16 = vector.broadcast %cst_13 : f32 to vector<64x32xf32>
    %17 = vector.extract_strided_slice %11 {offsets = [0, 0, 0], sizes = [8, 8, 8], strides = [1, 1, 1]} : vector<8x8x32xf32> to vector<8x8x8xf32>
    %18 = vector.extract_strided_slice %12 {offsets = [0, 0, 0], sizes = [8, 8, 8], strides = [1, 1, 1]} : vector<8x8x32xf32> to vector<8x8x8xf32>
    "tpu.trace_start"() <{level = 10 : i32, message = "bqd,bkd->bqk"}> : () -> ()
    %cst_14 = arith.constant dense<0.000000e+00> : vector<8x8x8xf32>
    %19 = tpu.matmul %17, %18, %cst_14 {dimension_numbers = #tpu.dot_dimension_numbers<[2], [2], [1], [1], [0, 0, 0, 1, 1, 1], [0], [0]>} : vector<8x8x8xf32>, vector<8x8x8xf32>, vector<8x8x8xf32> -> vector<8x8x8xf32>
    "tpu.trace_stop"() : () -> ()
    %cst_15 = arith.constant 0.353553385 : f32
    %20 = vector.broadcast %cst_15 : f32 to vector<8x8x8xf32>
    %21 = arith.mulf %19, %20 : vector<8x8x8xf32>
    %cst_16 = arith.constant dense<0xFF800000> : vector<8x8xf32>
    %22 = vector.multi_reduction <maximumf>, %21, %cst_16 [2] : vector<8x8x8xf32> to vector<8x8xf32>
    %23 = vector.shape_cast %22 : vector<8x8xf32> to vector<8x8x1xf32>
    %24 = vector.broadcast %23 : vector<8x8x1xf32> to vector<8x8x8xf32>
    %25 = arith.subf %21, %24 : vector<8x8x8xf32>
    %26 = math.exp %25 : vector<8x8x8xf32>
    %cst_17 = arith.constant dense<0.000000e+00> : vector<8x8xf32>
    %27 = vector.multi_reduction <add>, %26, %cst_17 [2] : vector<8x8x8xf32> to vector<8x8xf32>
    %28 = vector.shape_cast %27 : vector<8x8xf32> to vector<8x8x1xf32>
    %29 = tpu.reciprocal %28 {approx = true} : vector<8x8x1xf32> -> vector<8x8x1xf32>
    %30 = vector.broadcast %29 : vector<8x8x1xf32> to vector<8x8x8xf32>
    %31 = arith.mulf %26, %30 : vector<8x8x8xf32>
    %32 = vector.extract_strided_slice %13 {offsets = [0, 0, 0], sizes = [8, 8, 8], strides = [1, 1, 1]} : vector<8x8x32xf32> to vector<8x8x8xf32>
    "tpu.trace_start"() <{level = 10 : i32, message = "bqk,bkd->bqd"}> : () -> ()
    %cst_18 = arith.constant dense<0.000000e+00> : vector<8x8x8xf32>
    %33 = tpu.matmul %31, %32, %cst_18 {dimension_numbers = #tpu.dot_dimension_numbers<[2], [1], [1], [2], [0, 0, 0, 1, 1, 2], [0], [0]>} : vector<8x8x8xf32>, vector<8x8x8xf32>, vector<8x8x8xf32> -> vector<8x8x8xf32>
    "tpu.trace_stop"() : () -> ()
    %34 = vector.shape_cast %33 : vector<8x8x8xf32> to vector<64x8xf32>
    %35 = vector.extract_strided_slice %15 {offsets = [0, 0], sizes = [8, 32], strides = [1, 1]} : vector<32x32xf32> to vector<8x32xf32>
    %cst_19 = arith.constant dense<0.000000e+00> : vector<64x32xf32>
    %36 = tpu.matmul %34, %35, %cst_19 {dimension_numbers = #tpu.dot_dimension_numbers<[1], [0], [0], [1], [0, 0, 1, 1], [], []>} : vector<64x8xf32>, vector<8x32xf32>, vector<64x32xf32> -> vector<64x32xf32>
    %37 = arith.addf %16, %36 : vector<64x32xf32>
    %38 = vector.extract_strided_slice %11 {offsets = [0, 0, 8], sizes = [8, 8, 8], strides = [1, 1, 1]} : vector<8x8x32xf32> to vector<8x8x8xf32>
    %39 = vector.extract_strided_slice %12 {offsets = [0, 0, 8], sizes = [8, 8, 8], strides = [1, 1, 1]} : vector<8x8x32xf32> to vector<8x8x8xf32>
    "tpu.trace_start"() <{level = 10 : i32, message = "bqd,bkd->bqk"}> : () -> ()
    %cst_20 = arith.constant dense<0.000000e+00> : vector<8x8x8xf32>
    %40 = tpu.matmul %38, %39, %cst_20 {dimension_numbers = #tpu.dot_dimension_numbers<[2], [2], [1], [1], [0, 0, 0, 1, 1, 1], [0], [0]>} : vector<8x8x8xf32>, vector<8x8x8xf32>, vector<8x8x8xf32> -> vector<8x8x8xf32>
    "tpu.trace_stop"() : () -> ()
    %cst_21 = arith.constant 0.353553385 : f32
    %41 = vector.broadcast %cst_21 : f32 to vector<8x8x8xf32>
    %42 = arith.mulf %40, %41 : vector<8x8x8xf32>
    %cst_22 = arith.constant dense<0xFF800000> : vector<8x8xf32>
    %43 = vector.multi_reduction <maximumf>, %42, %cst_22 [2] : vector<8x8x8xf32> to vector<8x8xf32>
    %44 = vector.shape_cast %43 : vector<8x8xf32> to vector<8x8x1xf32>
    %45 = vector.broadcast %44 : vector<8x8x1xf32> to vector<8x8x8xf32>
    %46 = arith.subf %42, %45 : vector<8x8x8xf32>
    %47 = math.exp %46 : vector<8x8x8xf32>
    %cst_23 = arith.constant dense<0.000000e+00> : vector<8x8xf32>
    %48 = vector.multi_reduction <add>, %47, %cst_23 [2] : vector<8x8x8xf32> to vector<8x8xf32>
    %49 = vector.shape_cast %48 : vector<8x8xf32> to vector<8x8x1xf32>
    %50 = tpu.reciprocal %49 {approx = true} : vector<8x8x1xf32> -> vector<8x8x1xf32>
    %51 = vector.broadcast %50 : vector<8x8x1xf32> to vector<8x8x8xf32>
    %52 = arith.mulf %47, %51 : vector<8x8x8xf32>
    %53 = vector.extract_strided_slice %13 {offsets = [0, 0, 8], sizes = [8, 8, 8], strides = [1, 1, 1]} : vector<8x8x32xf32> to vector<8x8x8xf32>
    "tpu.trace_start"() <{level = 10 : i32, message = "bqk,bkd->bqd"}> : () -> ()
    %cst_24 = arith.constant dense<0.000000e+00> : vector<8x8x8xf32>
    %54 = tpu.matmul %52, %53, %cst_24 {dimension_numbers = #tpu.dot_dimension_numbers<[2], [1], [1], [2], [0, 0, 0, 1, 1, 2], [0], [0]>} : vector<8x8x8xf32>, vector<8x8x8xf32>, vector<8x8x8xf32> -> vector<8x8x8xf32>
    "tpu.trace_stop"() : () -> ()
    %55 = vector.shape_cast %54 : vector<8x8x8xf32> to vector<64x8xf32>
    %56 = vector.extract_strided_slice %15 {offsets = [8, 0], sizes = [8, 32], strides = [1, 1]} : vector<32x32xf32> to vector<8x32xf32>
    %cst_25 = arith.constant dense<0.000000e+00> : vector<64x32xf32>
    %57 = tpu.matmul %55, %56, %cst_25 {dimension_numbers = #tpu.dot_dimension_numbers<[1], [0], [0], [1], [0, 0, 1, 1], [], []>} : vector<64x8xf32>, vector<8x32xf32>, vector<64x32xf32> -> vector<64x32xf32>
    %58 = arith.addf %37, %57 : vector<64x32xf32>
    %59 = vector.extract_strided_slice %11 {offsets = [0, 0, 16], sizes = [8, 8, 8], strides = [1, 1, 1]} : vector<8x8x32xf32> to vector<8x8x8xf32>
    %60 = vector.extract_strided_slice %12 {offsets = [0, 0, 16], sizes = [8, 8, 8], strides = [1, 1, 1]} : vector<8x8x32xf32> to vector<8x8x8xf32>
    "tpu.trace_start"() <{level = 10 : i32, message = "bqd,bkd->bqk"}> : () -> ()
    %cst_26 = arith.constant dense<0.000000e+00> : vector<8x8x8xf32>
    %61 = tpu.matmul %59, %60, %cst_26 {dimension_numbers = #tpu.dot_dimension_numbers<[2], [2], [1], [1], [0, 0, 0, 1, 1, 1], [0], [0]>} : vector<8x8x8xf32>, vector<8x8x8xf32>, vector<8x8x8xf32> -> vector<8x8x8xf32>
    "tpu.trace_stop"() : () -> ()
    %cst_27 = arith.constant 0.353553385 : f32
    %62 = vector.broadcast %cst_27 : f32 to vector<8x8x8xf32>
    %63 = arith.mulf %61, %62 : vector<8x8x8xf32>
    %cst_28 = arith.constant dense<0xFF800000> : vector<8x8xf32>
    %64 = vector.multi_reduction <maximumf>, %63, %cst_28 [2] : vector<8x8x8xf32> to vector<8x8xf32>
    %65 = vector.shape_cast %64 : vector<8x8xf32> to vector<8x8x1xf32>
    %66 = vector.broadcast %65 : vector<8x8x1xf32> to vector<8x8x8xf32>
    %67 = arith.subf %63, %66 : vector<8x8x8xf32>
    %68 = math.exp %67 : vector<8x8x8xf32>
    %cst_29 = arith.constant dense<0.000000e+00> : vector<8x8xf32>
    %69 = vector.multi_reduction <add>, %68, %cst_29 [2] : vector<8x8x8xf32> to vector<8x8xf32>
    %70 = vector.shape_cast %69 : vector<8x8xf32> to vector<8x8x1xf32>
    %71 = tpu.reciprocal %70 {approx = true} : vector<8x8x1xf32> -> vector<8x8x1xf32>
    %72 = vector.broadcast %71 : vector<8x8x1xf32> to vector<8x8x8xf32>
    %73 = arith.mulf %68, %72 : vector<8x8x8xf32>
    %74 = vector.extract_strided_slice %13 {offsets = [0, 0, 16], sizes = [8, 8, 8], strides = [1, 1, 1]} : vector<8x8x32xf32> to vector<8x8x8xf32>
    "tpu.trace_start"() <{level = 10 : i32, message = "bqk,bkd->bqd"}> : () -> ()
    %cst_30 = arith.constant dense<0.000000e+00> : vector<8x8x8xf32>
    %75 = tpu.matmul %73, %74, %cst_30 {dimension_numbers = #tpu.dot_dimension_numbers<[2], [1], [1], [2], [0, 0, 0, 1, 1, 2], [0], [0]>} : vector<8x8x8xf32>, vector<8x8x8xf32>, vector<8x8x8xf32> -> vector<8x8x8xf32>
    "tpu.trace_stop"() : () -> ()
    %76 = vector.shape_cast %75 : vector<8x8x8xf32> to vector<64x8xf32>
    %77 = vector.extract_strided_slice %15 {offsets = [16, 0], sizes = [8, 32], strides = [1, 1]} : vector<32x32xf32> to vector<8x32xf32>
    %cst_31 = arith.constant dense<0.000000e+00> : vector<64x32xf32>
    %78 = tpu.matmul %76, %77, %cst_31 {dimension_numbers = #tpu.dot_dimension_numbers<[1], [0], [0], [1], [0, 0, 1, 1], [], []>} : vector<64x8xf32>, vector<8x32xf32>, vector<64x32xf32> -> vector<64x32xf32>
    %79 = arith.addf %58, %78 : vector<64x32xf32>
    %80 = vector.extract_strided_slice %11 {offsets = [0, 0, 24], sizes = [8, 8, 8], strides = [1, 1, 1]} : vector<8x8x32xf32> to vector<8x8x8xf32>
    %81 = vector.extract_strided_slice %12 {offsets = [0, 0, 24], sizes = [8, 8, 8], strides = [1, 1, 1]} : vector<8x8x32xf32> to vector<8x8x8xf32>
    "tpu.trace_start"() <{level = 10 : i32, message = "bqd,bkd->bqk"}> : () -> ()
    %cst_32 = arith.constant dense<0.000000e+00> : vector<8x8x8xf32>
    %82 = tpu.matmul %80, %81, %cst_32 {dimension_numbers = #tpu.dot_dimension_numbers<[2], [2], [1], [1], [0, 0, 0, 1, 1, 1], [0], [0]>} : vector<8x8x8xf32>, vector<8x8x8xf32>, vector<8x8x8xf32> -> vector<8x8x8xf32>
    "tpu.trace_stop"() : () -> ()
    %cst_33 = arith.constant 0.353553385 : f32
    %83 = vector.broadcast %cst_33 : f32 to vector<8x8x8xf32>
    %84 = arith.mulf %82, %83 : vector<8x8x8xf32>
    %cst_34 = arith.constant dense<0xFF800000> : vector<8x8xf32>
    %85 = vector.multi_reduction <maximumf>, %84, %cst_34 [2] : vector<8x8x8xf32> to vector<8x8xf32>
    %86 = vector.shape_cast %85 : vector<8x8xf32> to vector<8x8x1xf32>
    %87 = vector.broadcast %86 : vector<8x8x1xf32> to vector<8x8x8xf32>
    %88 = arith.subf %84, %87 : vector<8x8x8xf32>
    %89 = math.exp %88 : vector<8x8x8xf32>
    %cst_35 = arith.constant dense<0.000000e+00> : vector<8x8xf32>
    %90 = vector.multi_reduction <add>, %89, %cst_35 [2] : vector<8x8x8xf32> to vector<8x8xf32>
    %91 = vector.shape_cast %90 : vector<8x8xf32> to vector<8x8x1xf32>
    %92 = tpu.reciprocal %91 {approx = true} : vector<8x8x1xf32> -> vector<8x8x1xf32>
    %93 = vector.broadcast %92 : vector<8x8x1xf32> to vector<8x8x8xf32>
    %94 = arith.mulf %89, %93 : vector<8x8x8xf32>
    %95 = vector.extract_strided_slice %13 {offsets = [0, 0, 24], sizes = [8, 8, 8], strides = [1, 1, 1]} : vector<8x8x32xf32> to vector<8x8x8xf32>
    "tpu.trace_start"() <{level = 10 : i32, message = "bqk,bkd->bqd"}> : () -> ()
    %cst_36 = arith.constant dense<0.000000e+00> : vector<8x8x8xf32>
    %96 = tpu.matmul %94, %95, %cst_36 {dimension_numbers = #tpu.dot_dimension_numbers<[2], [1], [1], [2], [0, 0, 0, 1, 1, 2], [0], [0]>} : vector<8x8x8xf32>, vector<8x8x8xf32>, vector<8x8x8xf32> -> vector<8x8x8xf32>
    "tpu.trace_stop"() : () -> ()
    %97 = vector.shape_cast %96 : vector<8x8x8xf32> to vector<64x8xf32>
    %98 = vector.extract_strided_slice %15 {offsets = [24, 0], sizes = [8, 32], strides = [1, 1]} : vector<32x32xf32> to vector<8x32xf32>
    %cst_37 = arith.constant dense<0.000000e+00> : vector<64x32xf32>
    %99 = tpu.matmul %97, %98, %cst_37 {dimension_numbers = #tpu.dot_dimension_numbers<[1], [0], [0], [1], [0, 0, 1, 1], [], []>} : vector<64x8xf32>, vector<8x32xf32>, vector<64x32xf32> -> vector<64x32xf32>
    %100 = arith.addf %79, %99 : vector<64x32xf32>
    %c0_38 = arith.constant 0 : index
    %c0_39 = arith.constant 0 : index
    %c0_40 = arith.constant 0 : index
    %101 = vector.load %arg5[%c0_38, %c0_39, %c0_40] : memref<2x1x32xf32, #tpu.memory_space<vmem>>, vector<1x1x32xf32>
    %102 = vector.shape_cast %101 : vector<1x1x32xf32> to vector<1x32xf32>
    %103 = vector.broadcast %102 : vector<1x32xf32> to vector<64x32xf32>
    %104 = arith.addf %100, %103 : vector<64x32xf32>
    %c0_41 = arith.constant 0 : index
    %c0_42 = arith.constant 0 : index
    %c0_43 = arith.constant 0 : index
    %105 = vector.load %arg6[%c0_41, %c0_42, %c0_43] : memref<2x32x64xf32, #tpu.memory_space<vmem>>, vector<1x32x64xf32>
    %106 = vector.shape_cast %105 : vector<1x32x64xf32> to vector<32x64xf32>
    %cst_44 = arith.constant dense<0.000000e+00> : vector<64x64xf32>
    %107 = tpu.matmul %104, %106, %cst_44 {dimension_numbers = #tpu.dot_dimension_numbers<[1], [0], [0], [1], [0, 0, 1, 1], [], []>} : vector<64x32xf32>, vector<32x64xf32>, vector<64x64xf32> -> vector<64x64xf32>
    %c0_45 = arith.constant 0 : index
    %c0_46 = arith.constant 0 : index
    %c0_47 = arith.constant 0 : index
    %108 = vector.load %arg7[%c0_45, %c0_46, %c0_47] : memref<2x1x64xf32, #tpu.memory_space<vmem>>, vector<1x1x64xf32>
    %109 = vector.shape_cast %108 : vector<1x1x64xf32> to vector<1x64xf32>
    %110 = vector.broadcast %109 : vector<1x64xf32> to vector<64x64xf32>
    %111 = arith.addf %107, %110 : vector<64x64xf32>
    %cst_48 = arith.constant 0.000000e+00 : f32
    %112 = vector.broadcast %cst_48 : f32 to vector<64x64xf32>
    %113 = arith.maximumf %111, %112 : vector<64x64xf32>
    %c0_49 = arith.constant 0 : index
    %c0_50 = arith.constant 0 : index
    %c0_51 = arith.constant 0 : index
    %114 = vector.load %arg8[%c0_49, %c0_50, %c0_51] : memref<2x64x32xf32, #tpu.memory_space<vmem>>, vector<1x64x32xf32>
    %115 = vector.shape_cast %114 : vector<1x64x32xf32> to vector<64x32xf32>
    %cst_52 = arith.constant dense<0.000000e+00> : vector<64x32xf32>
    %116 = tpu.matmul %113, %115, %cst_52 {dimension_numbers = #tpu.dot_dimension_numbers<[1], [0], [0], [1], [0, 0, 1, 1], [], []>} : vector<64x64xf32>, vector<64x32xf32>, vector<64x32xf32> -> vector<64x32xf32>
    %117 = arith.addf %2, %116 : vector<64x32xf32>
    %c0_53 = arith.constant 0 : index
    %c0_54 = arith.constant 0 : index
    %c0_55 = arith.constant 0 : index
    %118 = vector.load %arg9[%c0_53, %c0_54, %c0_55] : memref<2x1x32xf32, #tpu.memory_space<vmem>>, vector<1x1x32xf32>
    %119 = vector.shape_cast %118 : vector<1x1x32xf32> to vector<1x32xf32>
    %120 = vector.broadcast %119 : vector<1x32xf32> to vector<64x32xf32>
    %121 = arith.addf %117, %120 : vector<64x32xf32>
    %c0_56 = arith.constant 0 : index
    %c0_57 = arith.constant 0 : index
    %c0_58 = arith.constant 0 : index
    %122 = vector.load %arg10[%c0_56, %c0_57, %c0_58] : memref<2x32x96xf32, #tpu.memory_space<vmem>>, vector<1x32x96xf32>
    %123 = vector.shape_cast %122 : vector<1x32x96xf32> to vector<32x96xf32>
    %cst_59 = arith.constant dense<0.000000e+00> : vector<64x96xf32>
    %124 = tpu.matmul %121, %123, %cst_59 {dimension_numbers = #tpu.dot_dimension_numbers<[1], [0], [0], [1], [0, 0, 1, 1], [], []>} : vector<64x32xf32>, vector<32x96xf32>, vector<64x96xf32> -> vector<64x96xf32>
    %c0_60 = arith.constant 0 : index
    %c0_61 = arith.constant 0 : index
    %c0_62 = arith.constant 0 : index
    %125 = vector.load %arg11[%c0_60, %c0_61, %c0_62] : memref<2x1x96xf32, #tpu.memory_space<vmem>>, vector<1x1x96xf32>
    %126 = vector.shape_cast %125 : vector<1x1x96xf32> to vector<1x96xf32>
    %127 = vector.broadcast %126 : vector<1x96xf32> to vector<64x96xf32>
    %128 = arith.addf %124, %127 : vector<64x96xf32>
    %129 = vector.shape_cast %128 : vector<64x96xf32> to vector<4x16x96xf32>
    %130 = vector.extract_strided_slice %129 {offsets = [0, 0, 0], sizes = [4, 16, 32], strides = [1, 1, 1]} : vector<4x16x96xf32> to vector<4x16x32xf32>
    %131 = vector.extract_strided_slice %129 {offsets = [0, 0, 32], sizes = [4, 16, 32], strides = [1, 1, 1]} : vector<4x16x96xf32> to vector<4x16x32xf32>
    %132 = vector.extract_strided_slice %129 {offsets = [0, 0, 64], sizes = [4, 16, 32], strides = [1, 1, 1]} : vector<4x16x96xf32> to vector<4x16x32xf32>
    %c0_63 = arith.constant 0 : index
    %c0_64 = arith.constant 0 : index
    %c0_65 = arith.constant 0 : index
    %133 = vector.load %arg12[%c0_63, %c0_64, %c0_65] : memref<2x32x32xf32, #tpu.memory_space<vmem>>, vector<1x32x32xf32>
    %134 = vector.shape_cast %133 : vector<1x32x32xf32> to vector<32x32xf32>
    %cst_66 = arith.constant 0.000000e+00 : f32
    %135 = vector.broadcast %cst_66 : f32 to vector<64x32xf32>
    %136 = vector.extract_strided_slice %130 {offsets = [0, 0, 0], sizes = [4, 16, 8], strides = [1, 1, 1]} : vector<4x16x32xf32> to vector<4x16x8xf32>
    %137 = vector.extract_strided_slice %131 {offsets = [0, 0, 0], sizes = [4, 16, 8], strides = [1, 1, 1]} : vector<4x16x32xf32> to vector<4x16x8xf32>
    "tpu.trace_start"() <{level = 10 : i32, message = "bqd,bkd->bqk"}> : () -> ()
    %cst_67 = arith.constant dense<0.000000e+00> : vector<4x16x16xf32>
    %138 = tpu.matmul %136, %137, %cst_67 {dimension_numbers = #tpu.dot_dimension_numbers<[2], [2], [1], [1], [0, 0, 0, 1, 1, 1], [0], [0]>} : vector<4x16x8xf32>, vector<4x16x8xf32>, vector<4x16x16xf32> -> vector<4x16x16xf32>
    "tpu.trace_stop"() : () -> ()
    %cst_68 = arith.constant 0.353553385 : f32
    %139 = vector.broadcast %cst_68 : f32 to vector<4x16x16xf32>
    %140 = arith.mulf %138, %139 : vector<4x16x16xf32>
    %cst_69 = arith.constant dense<0xFF800000> : vector<4x16xf32>
    %141 = vector.multi_reduction <maximumf>, %140, %cst_69 [2] : vector<4x16x16xf32> to vector<4x16xf32>
    %142 = vector.shape_cast %141 : vector<4x16xf32> to vector<4x16x1xf32>
    %143 = vector.broadcast %142 : vector<4x16x1xf32> to vector<4x16x16xf32>
    %144 = arith.subf %140, %143 : vector<4x16x16xf32>
    %145 = math.exp %144 : vector<4x16x16xf32>
    %cst_70 = arith.constant dense<0.000000e+00> : vector<4x16xf32>
    %146 = vector.multi_reduction <add>, %145, %cst_70 [2] : vector<4x16x16xf32> to vector<4x16xf32>
    %147 = vector.shape_cast %146 : vector<4x16xf32> to vector<4x16x1xf32>
    %148 = tpu.reciprocal %147 {approx = true} : vector<4x16x1xf32> -> vector<4x16x1xf32>
    %149 = vector.broadcast %148 : vector<4x16x1xf32> to vector<4x16x16xf32>
    %150 = arith.mulf %145, %149 : vector<4x16x16xf32>
    %151 = vector.extract_strided_slice %132 {offsets = [0, 0, 0], sizes = [4, 16, 8], strides = [1, 1, 1]} : vector<4x16x32xf32> to vector<4x16x8xf32>
    "tpu.trace_start"() <{level = 10 : i32, message = "bqk,bkd->bqd"}> : () -> ()
    %cst_71 = arith.constant dense<0.000000e+00> : vector<4x16x8xf32>
    %152 = tpu.matmul %150, %151, %cst_71 {dimension_numbers = #tpu.dot_dimension_numbers<[2], [1], [1], [2], [0, 0, 0, 1, 1, 2], [0], [0]>} : vector<4x16x16xf32>, vector<4x16x8xf32>, vector<4x16x8xf32> -> vector<4x16x8xf32>
    "tpu.trace_stop"() : () -> ()
    %153 = vector.shape_cast %152 : vector<4x16x8xf32> to vector<64x8xf32>
    %154 = vector.extract_strided_slice %134 {offsets = [0, 0], sizes = [8, 32], strides = [1, 1]} : vector<32x32xf32> to vector<8x32xf32>
    %cst_72 = arith.constant dense<0.000000e+00> : vector<64x32xf32>
    %155 = tpu.matmul %153, %154, %cst_72 {dimension_numbers = #tpu.dot_dimension_numbers<[1], [0], [0], [1], [0, 0, 1, 1], [], []>} : vector<64x8xf32>, vector<8x32xf32>, vector<64x32xf32> -> vector<64x32xf32>
    %156 = arith.addf %135, %155 : vector<64x32xf32>
    %157 = vector.extract_strided_slice %130 {offsets = [0, 0, 8], sizes = [4, 16, 8], strides = [1, 1, 1]} : vector<4x16x32xf32> to vector<4x16x8xf32>
    %158 = vector.extract_strided_slice %131 {offsets = [0, 0, 8], sizes = [4, 16, 8], strides = [1, 1, 1]} : vector<4x16x32xf32> to vector<4x16x8xf32>
    "tpu.trace_start"() <{level = 10 : i32, message = "bqd,bkd->bqk"}> : () -> ()
    %cst_73 = arith.constant dense<0.000000e+00> : vector<4x16x16xf32>
    %159 = tpu.matmul %157, %158, %cst_73 {dimension_numbers = #tpu.dot_dimension_numbers<[2], [2], [1], [1], [0, 0, 0, 1, 1, 1], [0], [0]>} : vector<4x16x8xf32>, vector<4x16x8xf32>, vector<4x16x16xf32> -> vector<4x16x16xf32>
    "tpu.trace_stop"() : () -> ()
    %cst_74 = arith.constant 0.353553385 : f32
    %160 = vector.broadcast %cst_74 : f32 to vector<4x16x16xf32>
    %161 = arith.mulf %159, %160 : vector<4x16x16xf32>
    %cst_75 = arith.constant dense<0xFF800000> : vector<4x16xf32>
    %162 = vector.multi_reduction <maximumf>, %161, %cst_75 [2] : vector<4x16x16xf32> to vector<4x16xf32>
    %163 = vector.shape_cast %162 : vector<4x16xf32> to vector<4x16x1xf32>
    %164 = vector.broadcast %163 : vector<4x16x1xf32> to vector<4x16x16xf32>
    %165 = arith.subf %161, %164 : vector<4x16x16xf32>
    %166 = math.exp %165 : vector<4x16x16xf32>
    %cst_76 = arith.constant dense<0.000000e+00> : vector<4x16xf32>
    %167 = vector.multi_reduction <add>, %166, %cst_76 [2] : vector<4x16x16xf32> to vector<4x16xf32>
    %168 = vector.shape_cast %167 : vector<4x16xf32> to vector<4x16x1xf32>
    %169 = tpu.reciprocal %168 {approx = true} : vector<4x16x1xf32> -> vector<4x16x1xf32>
    %170 = vector.broadcast %169 : vector<4x16x1xf32> to vector<4x16x16xf32>
    %171 = arith.mulf %166, %170 : vector<4x16x16xf32>
    %172 = vector.extract_strided_slice %132 {offsets = [0, 0, 8], sizes = [4, 16, 8], strides = [1, 1, 1]} : vector<4x16x32xf32> to vector<4x16x8xf32>
    "tpu.trace_start"() <{level = 10 : i32, message = "bqk,bkd->bqd"}> : () -> ()
    %cst_77 = arith.constant dense<0.000000e+00> : vector<4x16x8xf32>
    %173 = tpu.matmul %171, %172, %cst_77 {dimension_numbers = #tpu.dot_dimension_numbers<[2], [1], [1], [2], [0, 0, 0, 1, 1, 2], [0], [0]>} : vector<4x16x16xf32>, vector<4x16x8xf32>, vector<4x16x8xf32> -> vector<4x16x8xf32>
    "tpu.trace_stop"() : () -> ()
    %174 = vector.shape_cast %173 : vector<4x16x8xf32> to vector<64x8xf32>
    %175 = vector.extract_strided_slice %134 {offsets = [8, 0], sizes = [8, 32], strides = [1, 1]} : vector<32x32xf32> to vector<8x32xf32>
    %cst_78 = arith.constant dense<0.000000e+00> : vector<64x32xf32>
    %176 = tpu.matmul %174, %175, %cst_78 {dimension_numbers = #tpu.dot_dimension_numbers<[1], [0], [0], [1], [0, 0, 1, 1], [], []>} : vector<64x8xf32>, vector<8x32xf32>, vector<64x32xf32> -> vector<64x32xf32>
    %177 = arith.addf %156, %176 : vector<64x32xf32>
    %178 = vector.extract_strided_slice %130 {offsets = [0, 0, 16], sizes = [4, 16, 8], strides = [1, 1, 1]} : vector<4x16x32xf32> to vector<4x16x8xf32>
    %179 = vector.extract_strided_slice %131 {offsets = [0, 0, 16], sizes = [4, 16, 8], strides = [1, 1, 1]} : vector<4x16x32xf32> to vector<4x16x8xf32>
    "tpu.trace_start"() <{level = 10 : i32, message = "bqd,bkd->bqk"}> : () -> ()
    %cst_79 = arith.constant dense<0.000000e+00> : vector<4x16x16xf32>
    %180 = tpu.matmul %178, %179, %cst_79 {dimension_numbers = #tpu.dot_dimension_numbers<[2], [2], [1], [1], [0, 0, 0, 1, 1, 1], [0], [0]>} : vector<4x16x8xf32>, vector<4x16x8xf32>, vector<4x16x16xf32> -> vector<4x16x16xf32>
    "tpu.trace_stop"() : () -> ()
    %cst_80 = arith.constant 0.353553385 : f32
    %181 = vector.broadcast %cst_80 : f32 to vector<4x16x16xf32>
    %182 = arith.mulf %180, %181 : vector<4x16x16xf32>
    %cst_81 = arith.constant dense<0xFF800000> : vector<4x16xf32>
    %183 = vector.multi_reduction <maximumf>, %182, %cst_81 [2] : vector<4x16x16xf32> to vector<4x16xf32>
    %184 = vector.shape_cast %183 : vector<4x16xf32> to vector<4x16x1xf32>
    %185 = vector.broadcast %184 : vector<4x16x1xf32> to vector<4x16x16xf32>
    %186 = arith.subf %182, %185 : vector<4x16x16xf32>
    %187 = math.exp %186 : vector<4x16x16xf32>
    %cst_82 = arith.constant dense<0.000000e+00> : vector<4x16xf32>
    %188 = vector.multi_reduction <add>, %187, %cst_82 [2] : vector<4x16x16xf32> to vector<4x16xf32>
    %189 = vector.shape_cast %188 : vector<4x16xf32> to vector<4x16x1xf32>
    %190 = tpu.reciprocal %189 {approx = true} : vector<4x16x1xf32> -> vector<4x16x1xf32>
    %191 = vector.broadcast %190 : vector<4x16x1xf32> to vector<4x16x16xf32>
    %192 = arith.mulf %187, %191 : vector<4x16x16xf32>
    %193 = vector.extract_strided_slice %132 {offsets = [0, 0, 16], sizes = [4, 16, 8], strides = [1, 1, 1]} : vector<4x16x32xf32> to vector<4x16x8xf32>
    "tpu.trace_start"() <{level = 10 : i32, message = "bqk,bkd->bqd"}> : () -> ()
    %cst_83 = arith.constant dense<0.000000e+00> : vector<4x16x8xf32>
    %194 = tpu.matmul %192, %193, %cst_83 {dimension_numbers = #tpu.dot_dimension_numbers<[2], [1], [1], [2], [0, 0, 0, 1, 1, 2], [0], [0]>} : vector<4x16x16xf32>, vector<4x16x8xf32>, vector<4x16x8xf32> -> vector<4x16x8xf32>
    "tpu.trace_stop"() : () -> ()
    %195 = vector.shape_cast %194 : vector<4x16x8xf32> to vector<64x8xf32>
    %196 = vector.extract_strided_slice %134 {offsets = [16, 0], sizes = [8, 32], strides = [1, 1]} : vector<32x32xf32> to vector<8x32xf32>
    %cst_84 = arith.constant dense<0.000000e+00> : vector<64x32xf32>
    %197 = tpu.matmul %195, %196, %cst_84 {dimension_numbers = #tpu.dot_dimension_numbers<[1], [0], [0], [1], [0, 0, 1, 1], [], []>} : vector<64x8xf32>, vector<8x32xf32>, vector<64x32xf32> -> vector<64x32xf32>
    %198 = arith.addf %177, %197 : vector<64x32xf32>
    %199 = vector.extract_strided_slice %130 {offsets = [0, 0, 24], sizes = [4, 16, 8], strides = [1, 1, 1]} : vector<4x16x32xf32> to vector<4x16x8xf32>
    %200 = vector.extract_strided_slice %131 {offsets = [0, 0, 24], sizes = [4, 16, 8], strides = [1, 1, 1]} : vector<4x16x32xf32> to vector<4x16x8xf32>
    "tpu.trace_start"() <{level = 10 : i32, message = "bqd,bkd->bqk"}> : () -> ()
    %cst_85 = arith.constant dense<0.000000e+00> : vector<4x16x16xf32>
    %201 = tpu.matmul %199, %200, %cst_85 {dimension_numbers = #tpu.dot_dimension_numbers<[2], [2], [1], [1], [0, 0, 0, 1, 1, 1], [0], [0]>} : vector<4x16x8xf32>, vector<4x16x8xf32>, vector<4x16x16xf32> -> vector<4x16x16xf32>
    "tpu.trace_stop"() : () -> ()
    %cst_86 = arith.constant 0.353553385 : f32
    %202 = vector.broadcast %cst_86 : f32 to vector<4x16x16xf32>
    %203 = arith.mulf %201, %202 : vector<4x16x16xf32>
    %cst_87 = arith.constant dense<0xFF800000> : vector<4x16xf32>
    %204 = vector.multi_reduction <maximumf>, %203, %cst_87 [2] : vector<4x16x16xf32> to vector<4x16xf32>
    %205 = vector.shape_cast %204 : vector<4x16xf32> to vector<4x16x1xf32>
    %206 = vector.broadcast %205 : vector<4x16x1xf32> to vector<4x16x16xf32>
    %207 = arith.subf %203, %206 : vector<4x16x16xf32>
    %208 = math.exp %207 : vector<4x16x16xf32>
    %cst_88 = arith.constant dense<0.000000e+00> : vector<4x16xf32>
    %209 = vector.multi_reduction <add>, %208, %cst_88 [2] : vector<4x16x16xf32> to vector<4x16xf32>
    %210 = vector.shape_cast %209 : vector<4x16xf32> to vector<4x16x1xf32>
    %211 = tpu.reciprocal %210 {approx = true} : vector<4x16x1xf32> -> vector<4x16x1xf32>
    %212 = vector.broadcast %211 : vector<4x16x1xf32> to vector<4x16x16xf32>
    %213 = arith.mulf %208, %212 : vector<4x16x16xf32>
    %214 = vector.extract_strided_slice %132 {offsets = [0, 0, 24], sizes = [4, 16, 8], strides = [1, 1, 1]} : vector<4x16x32xf32> to vector<4x16x8xf32>
    "tpu.trace_start"() <{level = 10 : i32, message = "bqk,bkd->bqd"}> : () -> ()
    %cst_89 = arith.constant dense<0.000000e+00> : vector<4x16x8xf32>
    %215 = tpu.matmul %213, %214, %cst_89 {dimension_numbers = #tpu.dot_dimension_numbers<[2], [1], [1], [2], [0, 0, 0, 1, 1, 2], [0], [0]>} : vector<4x16x16xf32>, vector<4x16x8xf32>, vector<4x16x8xf32> -> vector<4x16x8xf32>
    "tpu.trace_stop"() : () -> ()
    %216 = vector.shape_cast %215 : vector<4x16x8xf32> to vector<64x8xf32>
    %217 = vector.extract_strided_slice %134 {offsets = [24, 0], sizes = [8, 32], strides = [1, 1]} : vector<32x32xf32> to vector<8x32xf32>
    %cst_90 = arith.constant dense<0.000000e+00> : vector<64x32xf32>
    %218 = tpu.matmul %216, %217, %cst_90 {dimension_numbers = #tpu.dot_dimension_numbers<[1], [0], [0], [1], [0, 0, 1, 1], [], []>} : vector<64x8xf32>, vector<8x32xf32>, vector<64x32xf32> -> vector<64x32xf32>
    %219 = arith.addf %198, %218 : vector<64x32xf32>
    %c0_91 = arith.constant 0 : index
    %c0_92 = arith.constant 0 : index
    %c0_93 = arith.constant 0 : index
    %220 = vector.load %arg13[%c0_91, %c0_92, %c0_93] : memref<2x1x32xf32, #tpu.memory_space<vmem>>, vector<1x1x32xf32>
    %221 = vector.shape_cast %220 : vector<1x1x32xf32> to vector<1x32xf32>
    %222 = vector.broadcast %221 : vector<1x32xf32> to vector<64x32xf32>
    %223 = arith.addf %219, %222 : vector<64x32xf32>
    %224 = arith.addf %121, %223 : vector<64x32xf32>
    %c0_94 = arith.constant 0 : index
    %c0_95 = arith.constant 0 : index
    %c0_96 = arith.constant 0 : index
    %225 = vector.load %arg18[%c0_94, %c0_95, %c0_96] : memref<2x1x32xf32, #tpu.memory_space<vmem>>, vector<1x1x32xf32>
    %226 = vector.shape_cast %225 : vector<1x1x32xf32> to vector<1x32xf32>
    %c0_97 = arith.constant 0 : index
    %c0_98 = arith.constant 0 : index
    %c0_99 = arith.constant 0 : index
    %227 = vector.load %arg19[%c0_97, %c0_98, %c0_99] : memref<2x1x32xf32, #tpu.memory_space<vmem>>, vector<1x1x32xf32>
    %228 = vector.shape_cast %227 : vector<1x1x32xf32> to vector<1x32xf32>
    %cst_100 = arith.constant dense<0.000000e+00> : vector<64xf32>
    %229 = vector.multi_reduction <add>, %224, %cst_100 [1] : vector<64x32xf32> to vector<64xf32>
    %230 = vector.shape_cast %229 : vector<64xf32> to vector<64x1xf32>
    %cst_101 = arith.constant 3.200000e+01 : f32
    %231 = vector.broadcast %cst_101 : f32 to vector<64x1xf32>
    %232 = arith.divf %230, %231 : vector<64x1xf32>
    %233 = vector.broadcast %232 : vector<64x1xf32> to vector<64x32xf32>
    %234 = arith.subf %224, %233 : vector<64x32xf32>
    %235 = arith.mulf %234, %234 : vector<64x32xf32>
    %cst_102 = arith.constant dense<0.000000e+00> : vector<64xf32>
    %236 = vector.multi_reduction <add>, %235, %cst_102 [1] : vector<64x32xf32> to vector<64xf32>
    %237 = vector.shape_cast %236 : vector<64xf32> to vector<64x1xf32>
    %cst_103 = arith.constant 3.200000e+01 : f32
    %238 = vector.broadcast %cst_103 : f32 to vector<64x1xf32>
    %239 = arith.divf %237, %238 : vector<64x1xf32>
    %cst_104 = arith.constant 9.99999974E-6 : f32
    %240 = vector.broadcast %cst_104 : f32 to vector<64x1xf32>
    %241 = arith.addf %239, %240 : vector<64x1xf32>
    %242 = math.rsqrt %241 : vector<64x1xf32>
    %243 = vector.broadcast %242 : vector<64x1xf32> to vector<64x32xf32>
    %244 = arith.mulf %234, %243 : vector<64x32xf32>
    %245 = vector.broadcast %226 : vector<1x32xf32> to vector<64x32xf32>
    %246 = arith.mulf %244, %245 : vector<64x32xf32>
    %247 = vector.broadcast %228 : vector<1x32xf32> to vector<64x32xf32>
    %248 = arith.addf %246, %247 : vector<64x32xf32>
    %c0_105 = arith.constant 0 : index
    %c0_106 = arith.constant 0 : index
    %c0_107 = arith.constant 0 : index
    %249 = vector.load %arg14[%c0_105, %c0_106, %c0_107] : memref<2x32x64xf32, #tpu.memory_space<vmem>>, vector<1x32x64xf32>
    %250 = vector.shape_cast %249 : vector<1x32x64xf32> to vector<32x64xf32>
    %cst_108 = arith.constant dense<0.000000e+00> : vector<64x64xf32>
    %251 = tpu.matmul %248, %250, %cst_108 {dimension_numbers = #tpu.dot_dimension_numbers<[1], [0], [0], [1], [0, 0, 1, 1], [], []>} : vector<64x32xf32>, vector<32x64xf32>, vector<64x64xf32> -> vector<64x64xf32>
    %c0_109 = arith.constant 0 : index
    %c0_110 = arith.constant 0 : index
    %c0_111 = arith.constant 0 : index
    %252 = vector.load %arg15[%c0_109, %c0_110, %c0_111] : memref<2x1x64xf32, #tpu.memory_space<vmem>>, vector<1x1x64xf32>
    %253 = vector.shape_cast %252 : vector<1x1x64xf32> to vector<1x64xf32>
    %254 = vector.broadcast %253 : vector<1x64xf32> to vector<64x64xf32>
    %255 = arith.addf %251, %254 : vector<64x64xf32>
    %cst_112 = arith.constant 0.000000e+00 : f32
    %256 = vector.broadcast %cst_112 : f32 to vector<64x64xf32>
    %257 = arith.maximumf %255, %256 : vector<64x64xf32>
    %c0_113 = arith.constant 0 : index
    %c0_114 = arith.constant 0 : index
    %c0_115 = arith.constant 0 : index
    %258 = vector.load %arg16[%c0_113, %c0_114, %c0_115] : memref<2x64x32xf32, #tpu.memory_space<vmem>>, vector<1x64x32xf32>
    %259 = vector.shape_cast %258 : vector<1x64x32xf32> to vector<64x32xf32>
    %cst_116 = arith.constant dense<0.000000e+00> : vector<64x32xf32>
    %260 = tpu.matmul %257, %259, %cst_116 {dimension_numbers = #tpu.dot_dimension_numbers<[1], [0], [0], [1], [0, 0, 1, 1], [], []>} : vector<64x64xf32>, vector<64x32xf32>, vector<64x32xf32> -> vector<64x32xf32>
    %c0_117 = arith.constant 0 : index
    %c0_118 = arith.constant 0 : index
    %c0_119 = arith.constant 0 : index
    %261 = vector.load %arg17[%c0_117, %c0_118, %c0_119] : memref<2x1x32xf32, #tpu.memory_space<vmem>>, vector<1x1x32xf32>
    %262 = vector.shape_cast %261 : vector<1x1x32xf32> to vector<1x32xf32>
    %263 = vector.broadcast %262 : vector<1x32xf32> to vector<64x32xf32>
    %264 = arith.addf %260, %263 : vector<64x32xf32>
    %265 = arith.addf %248, %264 : vector<64x32xf32>
    %c0_120 = arith.constant 0 : index
    %c0_121 = arith.constant 0 : index
    %c0_122 = arith.constant 0 : index
    %266 = vector.load %arg20[%c0_120, %c0_121, %c0_122] : memref<2x1x32xf32, #tpu.memory_space<vmem>>, vector<1x1x32xf32>
    %267 = vector.shape_cast %266 : vector<1x1x32xf32> to vector<1x32xf32>
    %c0_123 = arith.constant 0 : index
    %c0_124 = arith.constant 0 : index
    %c0_125 = arith.constant 0 : index
    %268 = vector.load %arg21[%c0_123, %c0_124, %c0_125] : memref<2x1x32xf32, #tpu.memory_space<vmem>>, vector<1x1x32xf32>
    %269 = vector.shape_cast %268 : vector<1x1x32xf32> to vector<1x32xf32>
    %cst_126 = arith.constant dense<0.000000e+00> : vector<64xf32>
    %270 = vector.multi_reduction <add>, %265, %cst_126 [1] : vector<64x32xf32> to vector<64xf32>
    %271 = vector.shape_cast %270 : vector<64xf32> to vector<64x1xf32>
    %cst_127 = arith.constant 3.200000e+01 : f32
    %272 = vector.broadcast %cst_127 : f32 to vector<64x1xf32>
    %273 = arith.divf %271, %272 : vector<64x1xf32>
    %274 = vector.broadcast %273 : vector<64x1xf32> to vector<64x32xf32>
    %275 = arith.subf %265, %274 : vector<64x32xf32>
    %276 = arith.mulf %275, %275 : vector<64x32xf32>
    %cst_128 = arith.constant dense<0.000000e+00> : vector<64xf32>
    %277 = vector.multi_reduction <add>, %276, %cst_128 [1] : vector<64x32xf32> to vector<64xf32>
    %278 = vector.shape_cast %277 : vector<64xf32> to vector<64x1xf32>
    %cst_129 = arith.constant 3.200000e+01 : f32
    %279 = vector.broadcast %cst_129 : f32 to vector<64x1xf32>
    %280 = arith.divf %278, %279 : vector<64x1xf32>
    %cst_130 = arith.constant 9.99999974E-6 : f32
    %281 = vector.broadcast %cst_130 : f32 to vector<64x1xf32>
    %282 = arith.addf %280, %281 : vector<64x1xf32>
    %283 = math.rsqrt %282 : vector<64x1xf32>
    %284 = vector.broadcast %283 : vector<64x1xf32> to vector<64x32xf32>
    %285 = arith.mulf %275, %284 : vector<64x32xf32>
    %286 = vector.broadcast %267 : vector<1x32xf32> to vector<64x32xf32>
    %287 = arith.mulf %285, %286 : vector<64x32xf32>
    %288 = vector.broadcast %269 : vector<1x32xf32> to vector<64x32xf32>
    %289 = arith.addf %287, %288 : vector<64x32xf32>
    %c1 = arith.constant 1 : index
    %c0_131 = arith.constant 0 : index
    %c0_132 = arith.constant 0 : index
    %290 = vector.load %arg2[%c1, %c0_131, %c0_132] : memref<2x32x96xf32, #tpu.memory_space<vmem>>, vector<1x32x96xf32>
    %291 = vector.shape_cast %290 : vector<1x32x96xf32> to vector<32x96xf32>
    %cst_133 = arith.constant dense<0.000000e+00> : vector<64x96xf32>
    %292 = tpu.matmul %289, %291, %cst_133 {dimension_numbers = #tpu.dot_dimension_numbers<[1], [0], [0], [1], [0, 0, 1, 1], [], []>} : vector<64x32xf32>, vector<32x96xf32>, vector<64x96xf32> -> vector<64x96xf32>
    %c1_134 = arith.constant 1 : index
    %c0_135 = arith.constant 0 : index
    %c0_136 = arith.constant 0 : index
    %293 = vector.load %arg3[%c1_134, %c0_135, %c0_136] : memref<2x1x96xf32, #tpu.memory_space<vmem>>, vector<1x1x96xf32>
    %294 = vector.shape_cast %293 : vector<1x1x96xf32> to vector<1x96xf32>
    %295 = vector.broadcast %294 : vector<1x96xf32> to vector<64x96xf32>
    %296 = arith.addf %292, %295 : vector<64x96xf32>
    %297 = vector.shape_cast %296 : vector<64x96xf32> to vector<8x8x96xf32>
    %298 = vector.extract_strided_slice %297 {offsets = [0, 0, 0], sizes = [8, 8, 32], strides = [1, 1, 1]} : vector<8x8x96xf32> to vector<8x8x32xf32>
    %299 = vector.extract_strided_slice %297 {offsets = [0, 0, 32], sizes = [8, 8, 32], strides = [1, 1, 1]} : vector<8x8x96xf32> to vector<8x8x32xf32>
    %300 = vector.extract_strided_slice %297 {offsets = [0, 0, 64], sizes = [8, 8, 32], strides = [1, 1, 1]} : vector<8x8x96xf32> to vector<8x8x32xf32>
    %c1_137 = arith.constant 1 : index
    %c0_138 = arith.constant 0 : index
    %c0_139 = arith.constant 0 : index
    %301 = vector.load %arg4[%c1_137, %c0_138, %c0_139] : memref<2x32x32xf32, #tpu.memory_space<vmem>>, vector<1x32x32xf32>
    %302 = vector.shape_cast %301 : vector<1x32x32xf32> to vector<32x32xf32>
    %cst_140 = arith.constant 0.000000e+00 : f32
    %303 = vector.broadcast %cst_140 : f32 to vector<64x32xf32>
    %304 = vector.extract_strided_slice %298 {offsets = [0, 0, 0], sizes = [8, 8, 8], strides = [1, 1, 1]} : vector<8x8x32xf32> to vector<8x8x8xf32>
    %305 = vector.extract_strided_slice %299 {offsets = [0, 0, 0], sizes = [8, 8, 8], strides = [1, 1, 1]} : vector<8x8x32xf32> to vector<8x8x8xf32>
    "tpu.trace_start"() <{level = 10 : i32, message = "bqd,bkd->bqk"}> : () -> ()
    %cst_141 = arith.constant dense<0.000000e+00> : vector<8x8x8xf32>
    %306 = tpu.matmul %304, %305, %cst_141 {dimension_numbers = #tpu.dot_dimension_numbers<[2], [2], [1], [1], [0, 0, 0, 1, 1, 1], [0], [0]>} : vector<8x8x8xf32>, vector<8x8x8xf32>, vector<8x8x8xf32> -> vector<8x8x8xf32>
    "tpu.trace_stop"() : () -> ()
    %cst_142 = arith.constant 0.353553385 : f32
    %307 = vector.broadcast %cst_142 : f32 to vector<8x8x8xf32>
    %308 = arith.mulf %306, %307 : vector<8x8x8xf32>
    %cst_143 = arith.constant dense<0xFF800000> : vector<8x8xf32>
    %309 = vector.multi_reduction <maximumf>, %308, %cst_143 [2] : vector<8x8x8xf32> to vector<8x8xf32>
    %310 = vector.shape_cast %309 : vector<8x8xf32> to vector<8x8x1xf32>
    %311 = vector.broadcast %310 : vector<8x8x1xf32> to vector<8x8x8xf32>
    %312 = arith.subf %308, %311 : vector<8x8x8xf32>
    %313 = math.exp %312 : vector<8x8x8xf32>
    %cst_144 = arith.constant dense<0.000000e+00> : vector<8x8xf32>
    %314 = vector.multi_reduction <add>, %313, %cst_144 [2] : vector<8x8x8xf32> to vector<8x8xf32>
    %315 = vector.shape_cast %314 : vector<8x8xf32> to vector<8x8x1xf32>
    %316 = tpu.reciprocal %315 {approx = true} : vector<8x8x1xf32> -> vector<8x8x1xf32>
    %317 = vector.broadcast %316 : vector<8x8x1xf32> to vector<8x8x8xf32>
    %318 = arith.mulf %313, %317 : vector<8x8x8xf32>
    %319 = vector.extract_strided_slice %300 {offsets = [0, 0, 0], sizes = [8, 8, 8], strides = [1, 1, 1]} : vector<8x8x32xf32> to vector<8x8x8xf32>
    "tpu.trace_start"() <{level = 10 : i32, message = "bqk,bkd->bqd"}> : () -> ()
    %cst_145 = arith.constant dense<0.000000e+00> : vector<8x8x8xf32>
    %320 = tpu.matmul %318, %319, %cst_145 {dimension_numbers = #tpu.dot_dimension_numbers<[2], [1], [1], [2], [0, 0, 0, 1, 1, 2], [0], [0]>} : vector<8x8x8xf32>, vector<8x8x8xf32>, vector<8x8x8xf32> -> vector<8x8x8xf32>
    "tpu.trace_stop"() : () -> ()
    %321 = vector.shape_cast %320 : vector<8x8x8xf32> to vector<64x8xf32>
    %322 = vector.extract_strided_slice %302 {offsets = [0, 0], sizes = [8, 32], strides = [1, 1]} : vector<32x32xf32> to vector<8x32xf32>
    %cst_146 = arith.constant dense<0.000000e+00> : vector<64x32xf32>
    %323 = tpu.matmul %321, %322, %cst_146 {dimension_numbers = #tpu.dot_dimension_numbers<[1], [0], [0], [1], [0, 0, 1, 1], [], []>} : vector<64x8xf32>, vector<8x32xf32>, vector<64x32xf32> -> vector<64x32xf32>
    %324 = arith.addf %303, %323 : vector<64x32xf32>
    %325 = vector.extract_strided_slice %298 {offsets = [0, 0, 8], sizes = [8, 8, 8], strides = [1, 1, 1]} : vector<8x8x32xf32> to vector<8x8x8xf32>
    %326 = vector.extract_strided_slice %299 {offsets = [0, 0, 8], sizes = [8, 8, 8], strides = [1, 1, 1]} : vector<8x8x32xf32> to vector<8x8x8xf32>
    "tpu.trace_start"() <{level = 10 : i32, message = "bqd,bkd->bqk"}> : () -> ()
    %cst_147 = arith.constant dense<0.000000e+00> : vector<8x8x8xf32>
    %327 = tpu.matmul %325, %326, %cst_147 {dimension_numbers = #tpu.dot_dimension_numbers<[2], [2], [1], [1], [0, 0, 0, 1, 1, 1], [0], [0]>} : vector<8x8x8xf32>, vector<8x8x8xf32>, vector<8x8x8xf32> -> vector<8x8x8xf32>
    "tpu.trace_stop"() : () -> ()
    %cst_148 = arith.constant 0.353553385 : f32
    %328 = vector.broadcast %cst_148 : f32 to vector<8x8x8xf32>
    %329 = arith.mulf %327, %328 : vector<8x8x8xf32>
    %cst_149 = arith.constant dense<0xFF800000> : vector<8x8xf32>
    %330 = vector.multi_reduction <maximumf>, %329, %cst_149 [2] : vector<8x8x8xf32> to vector<8x8xf32>
    %331 = vector.shape_cast %330 : vector<8x8xf32> to vector<8x8x1xf32>
    %332 = vector.broadcast %331 : vector<8x8x1xf32> to vector<8x8x8xf32>
    %333 = arith.subf %329, %332 : vector<8x8x8xf32>
    %334 = math.exp %333 : vector<8x8x8xf32>
    %cst_150 = arith.constant dense<0.000000e+00> : vector<8x8xf32>
    %335 = vector.multi_reduction <add>, %334, %cst_150 [2] : vector<8x8x8xf32> to vector<8x8xf32>
    %336 = vector.shape_cast %335 : vector<8x8xf32> to vector<8x8x1xf32>
    %337 = tpu.reciprocal %336 {approx = true} : vector<8x8x1xf32> -> vector<8x8x1xf32>
    %338 = vector.broadcast %337 : vector<8x8x1xf32> to vector<8x8x8xf32>
    %339 = arith.mulf %334, %338 : vector<8x8x8xf32>
    %340 = vector.extract_strided_slice %300 {offsets = [0, 0, 8], sizes = [8, 8, 8], strides = [1, 1, 1]} : vector<8x8x32xf32> to vector<8x8x8xf32>
    "tpu.trace_start"() <{level = 10 : i32, message = "bqk,bkd->bqd"}> : () -> ()
    %cst_151 = arith.constant dense<0.000000e+00> : vector<8x8x8xf32>
    %341 = tpu.matmul %339, %340, %cst_151 {dimension_numbers = #tpu.dot_dimension_numbers<[2], [1], [1], [2], [0, 0, 0, 1, 1, 2], [0], [0]>} : vector<8x8x8xf32>, vector<8x8x8xf32>, vector<8x8x8xf32> -> vector<8x8x8xf32>
    "tpu.trace_stop"() : () -> ()
    %342 = vector.shape_cast %341 : vector<8x8x8xf32> to vector<64x8xf32>
    %343 = vector.extract_strided_slice %302 {offsets = [8, 0], sizes = [8, 32], strides = [1, 1]} : vector<32x32xf32> to vector<8x32xf32>
    %cst_152 = arith.constant dense<0.000000e+00> : vector<64x32xf32>
    %344 = tpu.matmul %342, %343, %cst_152 {dimension_numbers = #tpu.dot_dimension_numbers<[1], [0], [0], [1], [0, 0, 1, 1], [], []>} : vector<64x8xf32>, vector<8x32xf32>, vector<64x32xf32> -> vector<64x32xf32>
    %345 = arith.addf %324, %344 : vector<64x32xf32>
    %346 = vector.extract_strided_slice %298 {offsets = [0, 0, 16], sizes = [8, 8, 8], strides = [1, 1, 1]} : vector<8x8x32xf32> to vector<8x8x8xf32>
    %347 = vector.extract_strided_slice %299 {offsets = [0, 0, 16], sizes = [8, 8, 8], strides = [1, 1, 1]} : vector<8x8x32xf32> to vector<8x8x8xf32>
    "tpu.trace_start"() <{level = 10 : i32, message = "bqd,bkd->bqk"}> : () -> ()
    %cst_153 = arith.constant dense<0.000000e+00> : vector<8x8x8xf32>
    %348 = tpu.matmul %346, %347, %cst_153 {dimension_numbers = #tpu.dot_dimension_numbers<[2], [2], [1], [1], [0, 0, 0, 1, 1, 1], [0], [0]>} : vector<8x8x8xf32>, vector<8x8x8xf32>, vector<8x8x8xf32> -> vector<8x8x8xf32>
    "tpu.trace_stop"() : () -> ()
    %cst_154 = arith.constant 0.353553385 : f32
    %349 = vector.broadcast %cst_154 : f32 to vector<8x8x8xf32>
    %350 = arith.mulf %348, %349 : vector<8x8x8xf32>
    %cst_155 = arith.constant dense<0xFF800000> : vector<8x8xf32>
    %351 = vector.multi_reduction <maximumf>, %350, %cst_155 [2] : vector<8x8x8xf32> to vector<8x8xf32>
    %352 = vector.shape_cast %351 : vector<8x8xf32> to vector<8x8x1xf32>
    %353 = vector.broadcast %352 : vector<8x8x1xf32> to vector<8x8x8xf32>
    %354 = arith.subf %350, %353 : vector<8x8x8xf32>
    %355 = math.exp %354 : vector<8x8x8xf32>
    %cst_156 = arith.constant dense<0.000000e+00> : vector<8x8xf32>
    %356 = vector.multi_reduction <add>, %355, %cst_156 [2] : vector<8x8x8xf32> to vector<8x8xf32>
    %357 = vector.shape_cast %356 : vector<8x8xf32> to vector<8x8x1xf32>
    %358 = tpu.reciprocal %357 {approx = true} : vector<8x8x1xf32> -> vector<8x8x1xf32>
    %359 = vector.broadcast %358 : vector<8x8x1xf32> to vector<8x8x8xf32>
    %360 = arith.mulf %355, %359 : vector<8x8x8xf32>
    %361 = vector.extract_strided_slice %300 {offsets = [0, 0, 16], sizes = [8, 8, 8], strides = [1, 1, 1]} : vector<8x8x32xf32> to vector<8x8x8xf32>
    "tpu.trace_start"() <{level = 10 : i32, message = "bqk,bkd->bqd"}> : () -> ()
    %cst_157 = arith.constant dense<0.000000e+00> : vector<8x8x8xf32>
    %362 = tpu.matmul %360, %361, %cst_157 {dimension_numbers = #tpu.dot_dimension_numbers<[2], [1], [1], [2], [0, 0, 0, 1, 1, 2], [0], [0]>} : vector<8x8x8xf32>, vector<8x8x8xf32>, vector<8x8x8xf32> -> vector<8x8x8xf32>
    "tpu.trace_stop"() : () -> ()
    %363 = vector.shape_cast %362 : vector<8x8x8xf32> to vector<64x8xf32>
    %364 = vector.extract_strided_slice %302 {offsets = [16, 0], sizes = [8, 32], strides = [1, 1]} : vector<32x32xf32> to vector<8x32xf32>
    %cst_158 = arith.constant dense<0.000000e+00> : vector<64x32xf32>
    %365 = tpu.matmul %363, %364, %cst_158 {dimension_numbers = #tpu.dot_dimension_numbers<[1], [0], [0], [1], [0, 0, 1, 1], [], []>} : vector<64x8xf32>, vector<8x32xf32>, vector<64x32xf32> -> vector<64x32xf32>
    %366 = arith.addf %345, %365 : vector<64x32xf32>
    %367 = vector.extract_strided_slice %298 {offsets = [0, 0, 24], sizes = [8, 8, 8], strides = [1, 1, 1]} : vector<8x8x32xf32> to vector<8x8x8xf32>
    %368 = vector.extract_strided_slice %299 {offsets = [0, 0, 24], sizes = [8, 8, 8], strides = [1, 1, 1]} : vector<8x8x32xf32> to vector<8x8x8xf32>
    "tpu.trace_start"() <{level = 10 : i32, message = "bqd,bkd->bqk"}> : () -> ()
    %cst_159 = arith.constant dense<0.000000e+00> : vector<8x8x8xf32>
    %369 = tpu.matmul %367, %368, %cst_159 {dimension_numbers = #tpu.dot_dimension_numbers<[2], [2], [1], [1], [0, 0, 0, 1, 1, 1], [0], [0]>} : vector<8x8x8xf32>, vector<8x8x8xf32>, vector<8x8x8xf32> -> vector<8x8x8xf32>
    "tpu.trace_stop"() : () -> ()
    %cst_160 = arith.constant 0.353553385 : f32
    %370 = vector.broadcast %cst_160 : f32 to vector<8x8x8xf32>
    %371 = arith.mulf %369, %370 : vector<8x8x8xf32>
    %cst_161 = arith.constant dense<0xFF800000> : vector<8x8xf32>
    %372 = vector.multi_reduction <maximumf>, %371, %cst_161 [2] : vector<8x8x8xf32> to vector<8x8xf32>
    %373 = vector.shape_cast %372 : vector<8x8xf32> to vector<8x8x1xf32>
    %374 = vector.broadcast %373 : vector<8x8x1xf32> to vector<8x8x8xf32>
    %375 = arith.subf %371, %374 : vector<8x8x8xf32>
    %376 = math.exp %375 : vector<8x8x8xf32>
    %cst_162 = arith.constant dense<0.000000e+00> : vector<8x8xf32>
    %377 = vector.multi_reduction <add>, %376, %cst_162 [2] : vector<8x8x8xf32> to vector<8x8xf32>
    %378 = vector.shape_cast %377 : vector<8x8xf32> to vector<8x8x1xf32>
    %379 = tpu.reciprocal %378 {approx = true} : vector<8x8x1xf32> -> vector<8x8x1xf32>
    %380 = vector.broadcast %379 : vector<8x8x1xf32> to vector<8x8x8xf32>
    %381 = arith.mulf %376, %380 : vector<8x8x8xf32>
    %382 = vector.extract_strided_slice %300 {offsets = [0, 0, 24], sizes = [8, 8, 8], strides = [1, 1, 1]} : vector<8x8x32xf32> to vector<8x8x8xf32>
    "tpu.trace_start"() <{level = 10 : i32, message = "bqk,bkd->bqd"}> : () -> ()
    %cst_163 = arith.constant dense<0.000000e+00> : vector<8x8x8xf32>
    %383 = tpu.matmul %381, %382, %cst_163 {dimension_numbers = #tpu.dot_dimension_numbers<[2], [1], [1], [2], [0, 0, 0, 1, 1, 2], [0], [0]>} : vector<8x8x8xf32>, vector<8x8x8xf32>, vector<8x8x8xf32> -> vector<8x8x8xf32>
    "tpu.trace_stop"() : () -> ()
    %384 = vector.shape_cast %383 : vector<8x8x8xf32> to vector<64x8xf32>
    %385 = vector.extract_strided_slice %302 {offsets = [24, 0], sizes = [8, 32], strides = [1, 1]} : vector<32x32xf32> to vector<8x32xf32>
    %cst_164 = arith.constant dense<0.000000e+00> : vector<64x32xf32>
    %386 = tpu.matmul %384, %385, %cst_164 {dimension_numbers = #tpu.dot_dimension_numbers<[1], [0], [0], [1], [0, 0, 1, 1], [], []>} : vector<64x8xf32>, vector<8x32xf32>, vector<64x32xf32> -> vector<64x32xf32>
    %387 = arith.addf %366, %386 : vector<64x32xf32>
    %c1_165 = arith.constant 1 : index
    %c0_166 = arith.constant 0 : index
    %c0_167 = arith.constant 0 : index
    %388 = vector.load %arg5[%c1_165, %c0_166, %c0_167] : memref<2x1x32xf32, #tpu.memory_space<vmem>>, vector<1x1x32xf32>
    %389 = vector.shape_cast %388 : vector<1x1x32xf32> to vector<1x32xf32>
    %390 = vector.broadcast %389 : vector<1x32xf32> to vector<64x32xf32>
    %391 = arith.addf %387, %390 : vector<64x32xf32>
    %c1_168 = arith.constant 1 : index
    %c0_169 = arith.constant 0 : index
    %c0_170 = arith.constant 0 : index
    %392 = vector.load %arg6[%c1_168, %c0_169, %c0_170] : memref<2x32x64xf32, #tpu.memory_space<vmem>>, vector<1x32x64xf32>
    %393 = vector.shape_cast %392 : vector<1x32x64xf32> to vector<32x64xf32>
    %cst_171 = arith.constant dense<0.000000e+00> : vector<64x64xf32>
    %394 = tpu.matmul %391, %393, %cst_171 {dimension_numbers = #tpu.dot_dimension_numbers<[1], [0], [0], [1], [0, 0, 1, 1], [], []>} : vector<64x32xf32>, vector<32x64xf32>, vector<64x64xf32> -> vector<64x64xf32>
    %c1_172 = arith.constant 1 : index
    %c0_173 = arith.constant 0 : index
    %c0_174 = arith.constant 0 : index
    %395 = vector.load %arg7[%c1_172, %c0_173, %c0_174] : memref<2x1x64xf32, #tpu.memory_space<vmem>>, vector<1x1x64xf32>
    %396 = vector.shape_cast %395 : vector<1x1x64xf32> to vector<1x64xf32>
    %397 = vector.broadcast %396 : vector<1x64xf32> to vector<64x64xf32>
    %398 = arith.addf %394, %397 : vector<64x64xf32>
    %cst_175 = arith.constant 0.000000e+00 : f32
    %399 = vector.broadcast %cst_175 : f32 to vector<64x64xf32>
    %400 = arith.maximumf %398, %399 : vector<64x64xf32>
    %c1_176 = arith.constant 1 : index
    %c0_177 = arith.constant 0 : index
    %c0_178 = arith.constant 0 : index
    %401 = vector.load %arg8[%c1_176, %c0_177, %c0_178] : memref<2x64x32xf32, #tpu.memory_space<vmem>>, vector<1x64x32xf32>
    %402 = vector.shape_cast %401 : vector<1x64x32xf32> to vector<64x32xf32>
    %cst_179 = arith.constant dense<0.000000e+00> : vector<64x32xf32>
    %403 = tpu.matmul %400, %402, %cst_179 {dimension_numbers = #tpu.dot_dimension_numbers<[1], [0], [0], [1], [0, 0, 1, 1], [], []>} : vector<64x64xf32>, vector<64x32xf32>, vector<64x32xf32> -> vector<64x32xf32>
    %404 = arith.addf %289, %403 : vector<64x32xf32>
    %c1_180 = arith.constant 1 : index
    %c0_181 = arith.constant 0 : index
    %c0_182 = arith.constant 0 : index
    %405 = vector.load %arg9[%c1_180, %c0_181, %c0_182] : memref<2x1x32xf32, #tpu.memory_space<vmem>>, vector<1x1x32xf32>
    %406 = vector.shape_cast %405 : vector<1x1x32xf32> to vector<1x32xf32>
    %407 = vector.broadcast %406 : vector<1x32xf32> to vector<64x32xf32>
    %408 = arith.addf %404, %407 : vector<64x32xf32>
    %c1_183 = arith.constant 1 : index
    %c0_184 = arith.constant 0 : index
    %c0_185 = arith.constant 0 : index
    %409 = vector.load %arg10[%c1_183, %c0_184, %c0_185] : memref<2x32x96xf32, #tpu.memory_space<vmem>>, vector<1x32x96xf32>
    %410 = vector.shape_cast %409 : vector<1x32x96xf32> to vector<32x96xf32>
    %cst_186 = arith.constant dense<0.000000e+00> : vector<64x96xf32>
    %411 = tpu.matmul %408, %410, %cst_186 {dimension_numbers = #tpu.dot_dimension_numbers<[1], [0], [0], [1], [0, 0, 1, 1], [], []>} : vector<64x32xf32>, vector<32x96xf32>, vector<64x96xf32> -> vector<64x96xf32>
    %c1_187 = arith.constant 1 : index
    %c0_188 = arith.constant 0 : index
    %c0_189 = arith.constant 0 : index
    %412 = vector.load %arg11[%c1_187, %c0_188, %c0_189] : memref<2x1x96xf32, #tpu.memory_space<vmem>>, vector<1x1x96xf32>
    %413 = vector.shape_cast %412 : vector<1x1x96xf32> to vector<1x96xf32>
    %414 = vector.broadcast %413 : vector<1x96xf32> to vector<64x96xf32>
    %415 = arith.addf %411, %414 : vector<64x96xf32>
    %416 = vector.shape_cast %415 : vector<64x96xf32> to vector<4x16x96xf32>
    %417 = vector.extract_strided_slice %416 {offsets = [0, 0, 0], sizes = [4, 16, 32], strides = [1, 1, 1]} : vector<4x16x96xf32> to vector<4x16x32xf32>
    %418 = vector.extract_strided_slice %416 {offsets = [0, 0, 32], sizes = [4, 16, 32], strides = [1, 1, 1]} : vector<4x16x96xf32> to vector<4x16x32xf32>
    %419 = vector.extract_strided_slice %416 {offsets = [0, 0, 64], sizes = [4, 16, 32], strides = [1, 1, 1]} : vector<4x16x96xf32> to vector<4x16x32xf32>
    %c1_190 = arith.constant 1 : index
    %c0_191 = arith.constant 0 : index
    %c0_192 = arith.constant 0 : index
    %420 = vector.load %arg12[%c1_190, %c0_191, %c0_192] : memref<2x32x32xf32, #tpu.memory_space<vmem>>, vector<1x32x32xf32>
    %421 = vector.shape_cast %420 : vector<1x32x32xf32> to vector<32x32xf32>
    %cst_193 = arith.constant 0.000000e+00 : f32
    %422 = vector.broadcast %cst_193 : f32 to vector<64x32xf32>
    %423 = vector.extract_strided_slice %417 {offsets = [0, 0, 0], sizes = [4, 16, 8], strides = [1, 1, 1]} : vector<4x16x32xf32> to vector<4x16x8xf32>
    %424 = vector.extract_strided_slice %418 {offsets = [0, 0, 0], sizes = [4, 16, 8], strides = [1, 1, 1]} : vector<4x16x32xf32> to vector<4x16x8xf32>
    "tpu.trace_start"() <{level = 10 : i32, message = "bqd,bkd->bqk"}> : () -> ()
    %cst_194 = arith.constant dense<0.000000e+00> : vector<4x16x16xf32>
    %425 = tpu.matmul %423, %424, %cst_194 {dimension_numbers = #tpu.dot_dimension_numbers<[2], [2], [1], [1], [0, 0, 0, 1, 1, 1], [0], [0]>} : vector<4x16x8xf32>, vector<4x16x8xf32>, vector<4x16x16xf32> -> vector<4x16x16xf32>
    "tpu.trace_stop"() : () -> ()
    %cst_195 = arith.constant 0.353553385 : f32
    %426 = vector.broadcast %cst_195 : f32 to vector<4x16x16xf32>
    %427 = arith.mulf %425, %426 : vector<4x16x16xf32>
    %cst_196 = arith.constant dense<0xFF800000> : vector<4x16xf32>
    %428 = vector.multi_reduction <maximumf>, %427, %cst_196 [2] : vector<4x16x16xf32> to vector<4x16xf32>
    %429 = vector.shape_cast %428 : vector<4x16xf32> to vector<4x16x1xf32>
    %430 = vector.broadcast %429 : vector<4x16x1xf32> to vector<4x16x16xf32>
    %431 = arith.subf %427, %430 : vector<4x16x16xf32>
    %432 = math.exp %431 : vector<4x16x16xf32>
    %cst_197 = arith.constant dense<0.000000e+00> : vector<4x16xf32>
    %433 = vector.multi_reduction <add>, %432, %cst_197 [2] : vector<4x16x16xf32> to vector<4x16xf32>
    %434 = vector.shape_cast %433 : vector<4x16xf32> to vector<4x16x1xf32>
    %435 = tpu.reciprocal %434 {approx = true} : vector<4x16x1xf32> -> vector<4x16x1xf32>
    %436 = vector.broadcast %435 : vector<4x16x1xf32> to vector<4x16x16xf32>
    %437 = arith.mulf %432, %436 : vector<4x16x16xf32>
    %438 = vector.extract_strided_slice %419 {offsets = [0, 0, 0], sizes = [4, 16, 8], strides = [1, 1, 1]} : vector<4x16x32xf32> to vector<4x16x8xf32>
    "tpu.trace_start"() <{level = 10 : i32, message = "bqk,bkd->bqd"}> : () -> ()
    %cst_198 = arith.constant dense<0.000000e+00> : vector<4x16x8xf32>
    %439 = tpu.matmul %437, %438, %cst_198 {dimension_numbers = #tpu.dot_dimension_numbers<[2], [1], [1], [2], [0, 0, 0, 1, 1, 2], [0], [0]>} : vector<4x16x16xf32>, vector<4x16x8xf32>, vector<4x16x8xf32> -> vector<4x16x8xf32>
    "tpu.trace_stop"() : () -> ()
    %440 = vector.shape_cast %439 : vector<4x16x8xf32> to vector<64x8xf32>
    %441 = vector.extract_strided_slice %421 {offsets = [0, 0], sizes = [8, 32], strides = [1, 1]} : vector<32x32xf32> to vector<8x32xf32>
    %cst_199 = arith.constant dense<0.000000e+00> : vector<64x32xf32>
    %442 = tpu.matmul %440, %441, %cst_199 {dimension_numbers = #tpu.dot_dimension_numbers<[1], [0], [0], [1], [0, 0, 1, 1], [], []>} : vector<64x8xf32>, vector<8x32xf32>, vector<64x32xf32> -> vector<64x32xf32>
    %443 = arith.addf %422, %442 : vector<64x32xf32>
    %444 = vector.extract_strided_slice %417 {offsets = [0, 0, 8], sizes = [4, 16, 8], strides = [1, 1, 1]} : vector<4x16x32xf32> to vector<4x16x8xf32>
    %445 = vector.extract_strided_slice %418 {offsets = [0, 0, 8], sizes = [4, 16, 8], strides = [1, 1, 1]} : vector<4x16x32xf32> to vector<4x16x8xf32>
    "tpu.trace_start"() <{level = 10 : i32, message = "bqd,bkd->bqk"}> : () -> ()
    %cst_200 = arith.constant dense<0.000000e+00> : vector<4x16x16xf32>
    %446 = tpu.matmul %444, %445, %cst_200 {dimension_numbers = #tpu.dot_dimension_numbers<[2], [2], [1], [1], [0, 0, 0, 1, 1, 1], [0], [0]>} : vector<4x16x8xf32>, vector<4x16x8xf32>, vector<4x16x16xf32> -> vector<4x16x16xf32>
    "tpu.trace_stop"() : () -> ()
    %cst_201 = arith.constant 0.353553385 : f32
    %447 = vector.broadcast %cst_201 : f32 to vector<4x16x16xf32>
    %448 = arith.mulf %446, %447 : vector<4x16x16xf32>
    %cst_202 = arith.constant dense<0xFF800000> : vector<4x16xf32>
    %449 = vector.multi_reduction <maximumf>, %448, %cst_202 [2] : vector<4x16x16xf32> to vector<4x16xf32>
    %450 = vector.shape_cast %449 : vector<4x16xf32> to vector<4x16x1xf32>
    %451 = vector.broadcast %450 : vector<4x16x1xf32> to vector<4x16x16xf32>
    %452 = arith.subf %448, %451 : vector<4x16x16xf32>
    %453 = math.exp %452 : vector<4x16x16xf32>
    %cst_203 = arith.constant dense<0.000000e+00> : vector<4x16xf32>
    %454 = vector.multi_reduction <add>, %453, %cst_203 [2] : vector<4x16x16xf32> to vector<4x16xf32>
    %455 = vector.shape_cast %454 : vector<4x16xf32> to vector<4x16x1xf32>
    %456 = tpu.reciprocal %455 {approx = true} : vector<4x16x1xf32> -> vector<4x16x1xf32>
    %457 = vector.broadcast %456 : vector<4x16x1xf32> to vector<4x16x16xf32>
    %458 = arith.mulf %453, %457 : vector<4x16x16xf32>
    %459 = vector.extract_strided_slice %419 {offsets = [0, 0, 8], sizes = [4, 16, 8], strides = [1, 1, 1]} : vector<4x16x32xf32> to vector<4x16x8xf32>
    "tpu.trace_start"() <{level = 10 : i32, message = "bqk,bkd->bqd"}> : () -> ()
    %cst_204 = arith.constant dense<0.000000e+00> : vector<4x16x8xf32>
    %460 = tpu.matmul %458, %459, %cst_204 {dimension_numbers = #tpu.dot_dimension_numbers<[2], [1], [1], [2], [0, 0, 0, 1, 1, 2], [0], [0]>} : vector<4x16x16xf32>, vector<4x16x8xf32>, vector<4x16x8xf32> -> vector<4x16x8xf32>
    "tpu.trace_stop"() : () -> ()
    %461 = vector.shape_cast %460 : vector<4x16x8xf32> to vector<64x8xf32>
    %462 = vector.extract_strided_slice %421 {offsets = [8, 0], sizes = [8, 32], strides = [1, 1]} : vector<32x32xf32> to vector<8x32xf32>
    %cst_205 = arith.constant dense<0.000000e+00> : vector<64x32xf32>
    %463 = tpu.matmul %461, %462, %cst_205 {dimension_numbers = #tpu.dot_dimension_numbers<[1], [0], [0], [1], [0, 0, 1, 1], [], []>} : vector<64x8xf32>, vector<8x32xf32>, vector<64x32xf32> -> vector<64x32xf32>
    %464 = arith.addf %443, %463 : vector<64x32xf32>
    %465 = vector.extract_strided_slice %417 {offsets = [0, 0, 16], sizes = [4, 16, 8], strides = [1, 1, 1]} : vector<4x16x32xf32> to vector<4x16x8xf32>
    %466 = vector.extract_strided_slice %418 {offsets = [0, 0, 16], sizes = [4, 16, 8], strides = [1, 1, 1]} : vector<4x16x32xf32> to vector<4x16x8xf32>
    "tpu.trace_start"() <{level = 10 : i32, message = "bqd,bkd->bqk"}> : () -> ()
    %cst_206 = arith.constant dense<0.000000e+00> : vector<4x16x16xf32>
    %467 = tpu.matmul %465, %466, %cst_206 {dimension_numbers = #tpu.dot_dimension_numbers<[2], [2], [1], [1], [0, 0, 0, 1, 1, 1], [0], [0]>} : vector<4x16x8xf32>, vector<4x16x8xf32>, vector<4x16x16xf32> -> vector<4x16x16xf32>
    "tpu.trace_stop"() : () -> ()
    %cst_207 = arith.constant 0.353553385 : f32
    %468 = vector.broadcast %cst_207 : f32 to vector<4x16x16xf32>
    %469 = arith.mulf %467, %468 : vector<4x16x16xf32>
    %cst_208 = arith.constant dense<0xFF800000> : vector<4x16xf32>
    %470 = vector.multi_reduction <maximumf>, %469, %cst_208 [2] : vector<4x16x16xf32> to vector<4x16xf32>
    %471 = vector.shape_cast %470 : vector<4x16xf32> to vector<4x16x1xf32>
    %472 = vector.broadcast %471 : vector<4x16x1xf32> to vector<4x16x16xf32>
    %473 = arith.subf %469, %472 : vector<4x16x16xf32>
    %474 = math.exp %473 : vector<4x16x16xf32>
    %cst_209 = arith.constant dense<0.000000e+00> : vector<4x16xf32>
    %475 = vector.multi_reduction <add>, %474, %cst_209 [2] : vector<4x16x16xf32> to vector<4x16xf32>
    %476 = vector.shape_cast %475 : vector<4x16xf32> to vector<4x16x1xf32>
    %477 = tpu.reciprocal %476 {approx = true} : vector<4x16x1xf32> -> vector<4x16x1xf32>
    %478 = vector.broadcast %477 : vector<4x16x1xf32> to vector<4x16x16xf32>
    %479 = arith.mulf %474, %478 : vector<4x16x16xf32>
    %480 = vector.extract_strided_slice %419 {offsets = [0, 0, 16], sizes = [4, 16, 8], strides = [1, 1, 1]} : vector<4x16x32xf32> to vector<4x16x8xf32>
    "tpu.trace_start"() <{level = 10 : i32, message = "bqk,bkd->bqd"}> : () -> ()
    %cst_210 = arith.constant dense<0.000000e+00> : vector<4x16x8xf32>
    %481 = tpu.matmul %479, %480, %cst_210 {dimension_numbers = #tpu.dot_dimension_numbers<[2], [1], [1], [2], [0, 0, 0, 1, 1, 2], [0], [0]>} : vector<4x16x16xf32>, vector<4x16x8xf32>, vector<4x16x8xf32> -> vector<4x16x8xf32>
    "tpu.trace_stop"() : () -> ()
    %482 = vector.shape_cast %481 : vector<4x16x8xf32> to vector<64x8xf32>
    %483 = vector.extract_strided_slice %421 {offsets = [16, 0], sizes = [8, 32], strides = [1, 1]} : vector<32x32xf32> to vector<8x32xf32>
    %cst_211 = arith.constant dense<0.000000e+00> : vector<64x32xf32>
    %484 = tpu.matmul %482, %483, %cst_211 {dimension_numbers = #tpu.dot_dimension_numbers<[1], [0], [0], [1], [0, 0, 1, 1], [], []>} : vector<64x8xf32>, vector<8x32xf32>, vector<64x32xf32> -> vector<64x32xf32>
    %485 = arith.addf %464, %484 : vector<64x32xf32>
    %486 = vector.extract_strided_slice %417 {offsets = [0, 0, 24], sizes = [4, 16, 8], strides = [1, 1, 1]} : vector<4x16x32xf32> to vector<4x16x8xf32>
    %487 = vector.extract_strided_slice %418 {offsets = [0, 0, 24], sizes = [4, 16, 8], strides = [1, 1, 1]} : vector<4x16x32xf32> to vector<4x16x8xf32>
    "tpu.trace_start"() <{level = 10 : i32, message = "bqd,bkd->bqk"}> : () -> ()
    %cst_212 = arith.constant dense<0.000000e+00> : vector<4x16x16xf32>
    %488 = tpu.matmul %486, %487, %cst_212 {dimension_numbers = #tpu.dot_dimension_numbers<[2], [2], [1], [1], [0, 0, 0, 1, 1, 1], [0], [0]>} : vector<4x16x8xf32>, vector<4x16x8xf32>, vector<4x16x16xf32> -> vector<4x16x16xf32>
    "tpu.trace_stop"() : () -> ()
    %cst_213 = arith.constant 0.353553385 : f32
    %489 = vector.broadcast %cst_213 : f32 to vector<4x16x16xf32>
    %490 = arith.mulf %488, %489 : vector<4x16x16xf32>
    %cst_214 = arith.constant dense<0xFF800000> : vector<4x16xf32>
    %491 = vector.multi_reduction <maximumf>, %490, %cst_214 [2] : vector<4x16x16xf32> to vector<4x16xf32>
    %492 = vector.shape_cast %491 : vector<4x16xf32> to vector<4x16x1xf32>
    %493 = vector.broadcast %492 : vector<4x16x1xf32> to vector<4x16x16xf32>
    %494 = arith.subf %490, %493 : vector<4x16x16xf32>
    %495 = math.exp %494 : vector<4x16x16xf32>
    %cst_215 = arith.constant dense<0.000000e+00> : vector<4x16xf32>
    %496 = vector.multi_reduction <add>, %495, %cst_215 [2] : vector<4x16x16xf32> to vector<4x16xf32>
    %497 = vector.shape_cast %496 : vector<4x16xf32> to vector<4x16x1xf32>
    %498 = tpu.reciprocal %497 {approx = true} : vector<4x16x1xf32> -> vector<4x16x1xf32>
    %499 = vector.broadcast %498 : vector<4x16x1xf32> to vector<4x16x16xf32>
    %500 = arith.mulf %495, %499 : vector<4x16x16xf32>
    %501 = vector.extract_strided_slice %419 {offsets = [0, 0, 24], sizes = [4, 16, 8], strides = [1, 1, 1]} : vector<4x16x32xf32> to vector<4x16x8xf32>
    "tpu.trace_start"() <{level = 10 : i32, message = "bqk,bkd->bqd"}> : () -> ()
    %cst_216 = arith.constant dense<0.000000e+00> : vector<4x16x8xf32>
    %502 = tpu.matmul %500, %501, %cst_216 {dimension_numbers = #tpu.dot_dimension_numbers<[2], [1], [1], [2], [0, 0, 0, 1, 1, 2], [0], [0]>} : vector<4x16x16xf32>, vector<4x16x8xf32>, vector<4x16x8xf32> -> vector<4x16x8xf32>
    "tpu.trace_stop"() : () -> ()
    %503 = vector.shape_cast %502 : vector<4x16x8xf32> to vector<64x8xf32>
    %504 = vector.extract_strided_slice %421 {offsets = [24, 0], sizes = [8, 32], strides = [1, 1]} : vector<32x32xf32> to vector<8x32xf32>
    %cst_217 = arith.constant dense<0.000000e+00> : vector<64x32xf32>
    %505 = tpu.matmul %503, %504, %cst_217 {dimension_numbers = #tpu.dot_dimension_numbers<[1], [0], [0], [1], [0, 0, 1, 1], [], []>} : vector<64x8xf32>, vector<8x32xf32>, vector<64x32xf32> -> vector<64x32xf32>
    %506 = arith.addf %485, %505 : vector<64x32xf32>
    %c1_218 = arith.constant 1 : index
    %c0_219 = arith.constant 0 : index
    %c0_220 = arith.constant 0 : index
    %507 = vector.load %arg13[%c1_218, %c0_219, %c0_220] : memref<2x1x32xf32, #tpu.memory_space<vmem>>, vector<1x1x32xf32>
    %508 = vector.shape_cast %507 : vector<1x1x32xf32> to vector<1x32xf32>
    %509 = vector.broadcast %508 : vector<1x32xf32> to vector<64x32xf32>
    %510 = arith.addf %506, %509 : vector<64x32xf32>
    %511 = arith.addf %408, %510 : vector<64x32xf32>
    %c1_221 = arith.constant 1 : index
    %c0_222 = arith.constant 0 : index
    %c0_223 = arith.constant 0 : index
    %512 = vector.load %arg18[%c1_221, %c0_222, %c0_223] : memref<2x1x32xf32, #tpu.memory_space<vmem>>, vector<1x1x32xf32>
    %513 = vector.shape_cast %512 : vector<1x1x32xf32> to vector<1x32xf32>
    %c1_224 = arith.constant 1 : index
    %c0_225 = arith.constant 0 : index
    %c0_226 = arith.constant 0 : index
    %514 = vector.load %arg19[%c1_224, %c0_225, %c0_226] : memref<2x1x32xf32, #tpu.memory_space<vmem>>, vector<1x1x32xf32>
    %515 = vector.shape_cast %514 : vector<1x1x32xf32> to vector<1x32xf32>
    %cst_227 = arith.constant dense<0.000000e+00> : vector<64xf32>
    %516 = vector.multi_reduction <add>, %511, %cst_227 [1] : vector<64x32xf32> to vector<64xf32>
    %517 = vector.shape_cast %516 : vector<64xf32> to vector<64x1xf32>
    %cst_228 = arith.constant 3.200000e+01 : f32
    %518 = vector.broadcast %cst_228 : f32 to vector<64x1xf32>
    %519 = arith.divf %517, %518 : vector<64x1xf32>
    %520 = vector.broadcast %519 : vector<64x1xf32> to vector<64x32xf32>
    %521 = arith.subf %511, %520 : vector<64x32xf32>
    %522 = arith.mulf %521, %521 : vector<64x32xf32>
    %cst_229 = arith.constant dense<0.000000e+00> : vector<64xf32>
    %523 = vector.multi_reduction <add>, %522, %cst_229 [1] : vector<64x32xf32> to vector<64xf32>
    %524 = vector.shape_cast %523 : vector<64xf32> to vector<64x1xf32>
    %cst_230 = arith.constant 3.200000e+01 : f32
    %525 = vector.broadcast %cst_230 : f32 to vector<64x1xf32>
    %526 = arith.divf %524, %525 : vector<64x1xf32>
    %cst_231 = arith.constant 9.99999974E-6 : f32
    %527 = vector.broadcast %cst_231 : f32 to vector<64x1xf32>
    %528 = arith.addf %526, %527 : vector<64x1xf32>
    %529 = math.rsqrt %528 : vector<64x1xf32>
    %530 = vector.broadcast %529 : vector<64x1xf32> to vector<64x32xf32>
    %531 = arith.mulf %521, %530 : vector<64x32xf32>
    %532 = vector.broadcast %513 : vector<1x32xf32> to vector<64x32xf32>
    %533 = arith.mulf %531, %532 : vector<64x32xf32>
    %534 = vector.broadcast %515 : vector<1x32xf32> to vector<64x32xf32>
    %535 = arith.addf %533, %534 : vector<64x32xf32>
    %c1_232 = arith.constant 1 : index
    %c0_233 = arith.constant 0 : index
    %c0_234 = arith.constant 0 : index
    %536 = vector.load %arg14[%c1_232, %c0_233, %c0_234] : memref<2x32x64xf32, #tpu.memory_space<vmem>>, vector<1x32x64xf32>
    %537 = vector.shape_cast %536 : vector<1x32x64xf32> to vector<32x64xf32>
    %cst_235 = arith.constant dense<0.000000e+00> : vector<64x64xf32>
    %538 = tpu.matmul %535, %537, %cst_235 {dimension_numbers = #tpu.dot_dimension_numbers<[1], [0], [0], [1], [0, 0, 1, 1], [], []>} : vector<64x32xf32>, vector<32x64xf32>, vector<64x64xf32> -> vector<64x64xf32>
    %c1_236 = arith.constant 1 : index
    %c0_237 = arith.constant 0 : index
    %c0_238 = arith.constant 0 : index
    %539 = vector.load %arg15[%c1_236, %c0_237, %c0_238] : memref<2x1x64xf32, #tpu.memory_space<vmem>>, vector<1x1x64xf32>
    %540 = vector.shape_cast %539 : vector<1x1x64xf32> to vector<1x64xf32>
    %541 = vector.broadcast %540 : vector<1x64xf32> to vector<64x64xf32>
    %542 = arith.addf %538, %541 : vector<64x64xf32>
    %cst_239 = arith.constant 0.000000e+00 : f32
    %543 = vector.broadcast %cst_239 : f32 to vector<64x64xf32>
    %544 = arith.maximumf %542, %543 : vector<64x64xf32>
    %c1_240 = arith.constant 1 : index
    %c0_241 = arith.constant 0 : index
    %c0_242 = arith.constant 0 : index
    %545 = vector.load %arg16[%c1_240, %c0_241, %c0_242] : memref<2x64x32xf32, #tpu.memory_space<vmem>>, vector<1x64x32xf32>
    %546 = vector.shape_cast %545 : vector<1x64x32xf32> to vector<64x32xf32>
    %cst_243 = arith.constant dense<0.000000e+00> : vector<64x32xf32>
    %547 = tpu.matmul %544, %546, %cst_243 {dimension_numbers = #tpu.dot_dimension_numbers<[1], [0], [0], [1], [0, 0, 1, 1], [], []>} : vector<64x64xf32>, vector<64x32xf32>, vector<64x32xf32> -> vector<64x32xf32>
    %c1_244 = arith.constant 1 : index
    %c0_245 = arith.constant 0 : index
    %c0_246 = arith.constant 0 : index
    %548 = vector.load %arg17[%c1_244, %c0_245, %c0_246] : memref<2x1x32xf32, #tpu.memory_space<vmem>>, vector<1x1x32xf32>
    %549 = vector.shape_cast %548 : vector<1x1x32xf32> to vector<1x32xf32>
    %550 = vector.broadcast %549 : vector<1x32xf32> to vector<64x32xf32>
    %551 = arith.addf %547, %550 : vector<64x32xf32>
    %552 = arith.addf %535, %551 : vector<64x32xf32>
    %c1_247 = arith.constant 1 : index
    %c0_248 = arith.constant 0 : index
    %c0_249 = arith.constant 0 : index
    %553 = vector.load %arg20[%c1_247, %c0_248, %c0_249] : memref<2x1x32xf32, #tpu.memory_space<vmem>>, vector<1x1x32xf32>
    %554 = vector.shape_cast %553 : vector<1x1x32xf32> to vector<1x32xf32>
    %c1_250 = arith.constant 1 : index
    %c0_251 = arith.constant 0 : index
    %c0_252 = arith.constant 0 : index
    %555 = vector.load %arg21[%c1_250, %c0_251, %c0_252] : memref<2x1x32xf32, #tpu.memory_space<vmem>>, vector<1x1x32xf32>
    %556 = vector.shape_cast %555 : vector<1x1x32xf32> to vector<1x32xf32>
    %cst_253 = arith.constant dense<0.000000e+00> : vector<64xf32>
    %557 = vector.multi_reduction <add>, %552, %cst_253 [1] : vector<64x32xf32> to vector<64xf32>
    %558 = vector.shape_cast %557 : vector<64xf32> to vector<64x1xf32>
    %cst_254 = arith.constant 3.200000e+01 : f32
    %559 = vector.broadcast %cst_254 : f32 to vector<64x1xf32>
    %560 = arith.divf %558, %559 : vector<64x1xf32>
    %561 = vector.broadcast %560 : vector<64x1xf32> to vector<64x32xf32>
    %562 = arith.subf %552, %561 : vector<64x32xf32>
    %563 = arith.mulf %562, %562 : vector<64x32xf32>
    %cst_255 = arith.constant dense<0.000000e+00> : vector<64xf32>
    %564 = vector.multi_reduction <add>, %563, %cst_255 [1] : vector<64x32xf32> to vector<64xf32>
    %565 = vector.shape_cast %564 : vector<64xf32> to vector<64x1xf32>
    %cst_256 = arith.constant 3.200000e+01 : f32
    %566 = vector.broadcast %cst_256 : f32 to vector<64x1xf32>
    %567 = arith.divf %565, %566 : vector<64x1xf32>
    %cst_257 = arith.constant 9.99999974E-6 : f32
    %568 = vector.broadcast %cst_257 : f32 to vector<64x1xf32>
    %569 = arith.addf %567, %568 : vector<64x1xf32>
    %570 = math.rsqrt %569 : vector<64x1xf32>
    %571 = vector.broadcast %570 : vector<64x1xf32> to vector<64x32xf32>
    %572 = arith.mulf %562, %571 : vector<64x32xf32>
    %573 = vector.broadcast %554 : vector<1x32xf32> to vector<64x32xf32>
    %574 = arith.mulf %572, %573 : vector<64x32xf32>
    %575 = vector.broadcast %556 : vector<1x32xf32> to vector<64x32xf32>
    %576 = arith.addf %574, %575 : vector<64x32xf32>
    %577 = vector.extract_strided_slice %576 {offsets = [0, 0], sizes = [32, 32], strides = [1, 1]} : vector<64x32xf32> to vector<32x32xf32>
    %578 = vector.extract_strided_slice %576 {offsets = [32, 0], sizes = [32, 32], strides = [1, 1]} : vector<64x32xf32> to vector<32x32xf32>
    %c0_258 = arith.constant 0 : index
    %c0_259 = arith.constant 0 : index
    %579 = vector.load %arg22[%c0_258, %c0_259] : memref<32x4xf32, #tpu.memory_space<vmem>>, vector<32x4xf32>
    %cst_260 = arith.constant dense<0.000000e+00> : vector<32x4xf32>
    %580 = tpu.matmul %577, %579, %cst_260 {dimension_numbers = #tpu.dot_dimension_numbers<[1], [0], [0], [1], [0, 0, 1, 1], [], []>} : vector<32x32xf32>, vector<32x4xf32>, vector<32x4xf32> -> vector<32x4xf32>
    %c0_261 = arith.constant 0 : index
    %c0_262 = arith.constant 0 : index
    %581 = vector.load %arg23[%c0_261, %c0_262] : memref<1x4xf32, #tpu.memory_space<vmem>>, vector<1x4xf32>
    %582 = vector.broadcast %581 : vector<1x4xf32> to vector<32x4xf32>
    %583 = arith.addf %580, %582 : vector<32x4xf32>
    %c0_263 = arith.constant 0 : index
    %c0_264 = arith.constant 0 : index
    %584 = vector.load %arg24[%c0_263, %c0_264] : memref<32x4xf32, #tpu.memory_space<vmem>>, vector<32x4xf32>
    %cst_265 = arith.constant dense<0.000000e+00> : vector<32x4xf32>
    %585 = tpu.matmul %578, %584, %cst_265 {dimension_numbers = #tpu.dot_dimension_numbers<[1], [0], [0], [1], [0, 0, 1, 1], [], []>} : vector<32x32xf32>, vector<32x4xf32>, vector<32x4xf32> -> vector<32x4xf32>
    %c0_266 = arith.constant 0 : index
    %c0_267 = arith.constant 0 : index
    %586 = vector.load %arg25[%c0_266, %c0_267] : memref<1x4xf32, #tpu.memory_space<vmem>>, vector<1x4xf32>
    %587 = vector.broadcast %586 : vector<1x4xf32> to vector<32x4xf32>
    %588 = arith.addf %585, %587 : vector<32x4xf32>
    %c0_268 = arith.constant 0 : index
    %c0_269 = arith.constant 0 : index
    %589 = vector.load %arg26[%c0_268, %c0_269] : memref<4x32xf32, #tpu.memory_space<vmem>>, vector<4x32xf32>
    %cst_270 = arith.constant dense<0.000000e+00> : vector<32x32xf32>
    %590 = tpu.matmul %583, %589, %cst_270 {dimension_numbers = #tpu.dot_dimension_numbers<[1], [0], [0], [1], [0, 0, 1, 1], [], []>} : vector<32x4xf32>, vector<4x32xf32>, vector<32x32xf32> -> vector<32x32xf32>
    %c0_271 = arith.constant 0 : index
    %c0_272 = arith.constant 0 : index
    %591 = vector.load %arg27[%c0_271, %c0_272] : memref<4x32xf32, #tpu.memory_space<vmem>>, vector<4x32xf32>
    %cst_273 = arith.constant dense<0.000000e+00> : vector<32x32xf32>
    %592 = tpu.matmul %588, %591, %cst_273 {dimension_numbers = #tpu.dot_dimension_numbers<[1], [0], [0], [1], [0, 0, 1, 1], [], []>} : vector<32x4xf32>, vector<4x32xf32>, vector<32x32xf32> -> vector<32x32xf32>
    %593 = arith.addf %590, %592 : vector<32x32xf32>
    %c0_274 = arith.constant 0 : index
    %c0_275 = arith.constant 0 : index
    %594 = vector.load %arg28[%c0_274, %c0_275] : memref<1x32xf32, #tpu.memory_space<vmem>>, vector<1x32xf32>
    %595 = vector.broadcast %594 : vector<1x32xf32> to vector<32x32xf32>
    %596 = arith.addf %593, %595 : vector<32x32xf32>
    %cst_276 = arith.constant 0.000000e+00 : f32
    %597 = vector.broadcast %cst_276 : f32 to vector<32x32xf32>
    %598 = arith.maximumf %596, %597 : vector<32x32xf32>
    %c0_277 = arith.constant 0 : index
    %c0_278 = arith.constant 0 : index
    %599 = vector.load %arg29[%c0_277, %c0_278] : memref<32x4xf32, #tpu.memory_space<vmem>>, vector<32x4xf32>
    %cst_279 = arith.constant dense<0.000000e+00> : vector<32x4xf32>
    %600 = tpu.matmul %598, %599, %cst_279 {dimension_numbers = #tpu.dot_dimension_numbers<[1], [0], [0], [1], [0, 0, 1, 1], [], []>} : vector<32x32xf32>, vector<32x4xf32>, vector<32x4xf32> -> vector<32x4xf32>
    %c0_280 = arith.constant 0 : index
    %c0_281 = arith.constant 0 : index
    %601 = vector.load %arg30[%c0_280, %c0_281] : memref<1x4xf32, #tpu.memory_space<vmem>>, vector<1x4xf32>
    %602 = vector.broadcast %601 : vector<1x4xf32> to vector<32x4xf32>
    %603 = arith.addf %600, %602 : vector<32x4xf32>
    %c0_282 = arith.constant 0 : index
    %c0_283 = arith.constant 0 : index
    %604 = vector.load %arg31[%c0_282, %c0_283] : memref<32x4xf32, #tpu.memory_space<vmem>>, vector<32x4xf32>
    tpu.vector_store %arg31[%c0_282, %c0_283], %603 {strides = array<i32>} : memref<32x4xf32, #tpu.memory_space<vmem>>, vector<32x4xf32>,
    return
  }
}

</mosaic_0001>

<bundles_post_ra>
// kernel: _lambda_.1
= control target key start
LH: loop header
LB: loop body
LE: loop exit
PB: predicated region body
PF: predicated region fallthrough
CT: control target
= control target key end

     0   :  { %s26320_s3 = smov 1   ;;  %s26321_s10 = smov 2   ;;  %vm140_vm0 = vcmask 130048   ;;  %vm281_vm1 = vcmask 261120   ;;  %v26322_v22 = vmov 0.0   ;;  %vm26323_vm2 = vmmov 0   ;;  %s30109_s0 = inlined_call_operand.smem [shape: u32[32], index: -1, kind: input, shape index: {}] }
   0x1   :  { %s22433_s6 = sld [smem:[%s30109_s0 + %s26320_s3]]   ;;  %s26324_s14 = smov 3   ;;  %vm418_vm3 = vcmask 64512   ;;  %vm6423_vm4 = vcmask 523264   ;;  %vm22113_vm5 = vcmask 1043456   ;;  %vm22100_vm6 = vcmask 31744  }
   0x2   :  { %s1_s9 = sld [smem:[%s30109_s0]]   ;;  %s26325_s18 = smov 96  }
   0x3   :  { %s26378_s13 = sld [smem:[%s30109_s0 + %s26321_s10]]   ;;  %s26326_s19 = smov 64  }
   0x4   :  { %s26433_s17 = sld [smem:[%s30109_s0 + %s26324_s14]]   ;;  %s26327_s20 = smov 88  }
   0x5   :  { %s26328_s21 = smov 120   ;;  %s26329_s22 = smov 56  }
   0x6   :  { %s30120_s23 = smov 80   ;;  %s30118_s24 = smov 112  }
   0x7   :  { %v139_v0 = vld [vmem:[%s22433_s6 + $0x8] sm:$0xff]  ;;  %v138_v1 = vld [vmem:[%s22433_s6] sm:$0xff]  ;;  %s26332_s25 = smov 4   ;;  %s30116_s29 = smov 48  }
   0x8   :  { %24042 = vmatprep.subr.mxu0 %v139_v0  ;;  %v130_v2 = vld [vmem:[%s1_s9] sm:$0xff]  ;;  %v131_v3 = vld [vmem:[%s1_s9 + $0x8] sm:$0xff]  ;;  %v132_v4 = vld [vmem:[%s1_s9 + $0x10] sm:$0xff]  ;;  %s26826_s28 = sld [smem:[%s30109_s0 + %s26332_s25]]   ;;  %s30114_s30 = smov 104  }
   0x9   :  { %24043 = vmatpush3.msra.mxu0 %v139_v0  ;;  %24046 = vmatprep.mubr.msk.f32.mxu0 %vm140_vm0, %v130_v2  ;;  %v273_v5 = vld [vmem:[%s26378_s13 + $0x18] sm:$0xff]  ;;  %v272_v6 = vld [vmem:[%s26378_s13 + $0x10] sm:$0xff]  ;;  %v134_v8 = vld [vmem:[%s1_s9 + $0x20] sm:$0xff]  ;;  %s30112_s1 = smov 72   ;;  %s30110_s2 = smov 40  }
   0xa   :  { %24044 = vmatprep.subr.mxu0 %v138_v1  ;;  %24058 = vmatprep.subr.mxu1 %v273_v5  ;;  %v133_v7 = vld [vmem:[%s1_s9 + $0x18] sm:$0xff]  ;;  %v135_v9 = vld [vmem:[%s1_s9 + $0x28] sm:$0xff]  ;;  %v136_v10 = vld [vmem:[%s1_s9 + $0x30] sm:$0xff]  ;;  %s26337_s3 = smov 6   ;;  %s26338_s7 = smov 5  }
   0xb   :  { %24045 = vmatpush3.msra.mxu0 %v138_v1  ;;  %24059 = vmatpush3.msra.mxu1 %v273_v5  ;;  %v137_v11 = vld [vmem:[%s1_s9 + $0x38] sm:$0xff]  ;;  %v271_v12 = vld [vmem:[%s26378_s13 + $0x8] sm:$0xff]  ;;  %v270_v13 = vld [vmem:[%s26378_s13] sm:$0xff]  ;;  %s27246_s6 = sld [smem:[%s30109_s0 + %s26337_s3]]   ;;  %s26339_s11 = smov 8  }
   0xc   :  { %24047 = vmatmul.mubr.msk.f32.vlgmr.msra.gmra.mxu0 %vm140_vm0, %v131_v3  ;;  %24060 = vmatprep.subr.mxu1 %v272_v6  ;;  %v22472_v24 = vld [vmem:[%s26433_s17] ss:$0 sm:$0xff]  ;;  %s27259_s10 = sld [smem:[%s30109_s0 + %s26338_s7]]   ;;  %s26340_s16 = smov 7  }
   0xd   :  { %24049 = vmatprep.mubr.msk.f32.mxu0 %vm140_vm0, %v132_v4  ;;  %24061 = vmatpush3.msra.mxu1 %v272_v6  ;;  %s27277_s15 = sld [smem:[%s30109_s0 + %s26339_s11]]   ;;  %s26341_s3 = smov 10  }
   0xe   :  { %24062 = vmatprep.subr.mxu1 %v271_v12  ;;  %24078 = vmatprep.subr.mxu0 %v26322_v22  ;;  %s27302_s27 = sld [smem:[%s30109_s0 + %s26340_s16]]   ;;  %s26342_s8 = smov 9  }
   0xf   :  { %24063 = vmatpush3.msra.mxu1 %v271_v12  ;;  %s27312_s7 = sld [smem:[%s30109_s0 + %s26341_s3]]   ;;  %s26343_s14 = smov 11  }
  0x10   :  { %24050 = vmatmul.mubr.msk.f32.gmra.mxu0 %vm140_vm0, %v133_v7  ;;  %24064 = vmatprep.subr.mxu1 %v270_v13  ;;  %s27325_s12 = sld [smem:[%s30109_s0 + %s26342_s8]]   ;;  %s26344_s3 = smov 12  }
  0x11   :  { %24052 = vmatprep.mubr.msk.f32.mxu0 %vm140_vm0, %v134_v8  ;;  %24065 = vmatpush3.msra.mxu1 %v270_v13  ;;  %s27371_s26 = sld [smem:[%s30109_s0 + %s26343_s14]]   ;;  %s26345_s9 = smov 13  }
  0x12   :  { %24088 = vmatprep.subr.mxu1 %v26322_v22  ;;  %s27669_s8 = sld [smem:[%s30109_s0 + %s26344_s3]]   ;;  %s26346_s25 = smov 14  }
  0x13   :  { %s28009_s16 = sld [smem:[%s30109_s0 + %s26345_s9]]   ;;  %s26347_s9 = smov 16  }
  0x14   :  { %24053 = vmatmul.mubr.msk.f32.gmra.mxu0 %vm140_vm0, %v135_v9  ;;  %s28067_s5 = sld [smem:[%s30109_s0 + %s26346_s25]]   ;;  %s26348_s3 = smov 18  }
  0x15   :  { %24055 = vmatprep.mubr.msk.f32.mxu0 %vm140_vm0, %v136_v10  ;;  %s28096_s25 = sld [smem:[%s30109_s0 + %s26347_s9]]   ;;  %s26349_s14 = smov 19  }
  0x16   :  { %s28105_s11 = sld [smem:[%s30109_s0 + %s26348_s3]]   ;;  %s26351_s9 = smov 17  }
  0x17   :  { %s30126_s3 = smov 72  }
  0x18   :  { %24056 = vmatmul.mubr.msk.f32.gmra.mxu0 %vm140_vm0, %v137_v11 }
  0x19   :  { %24080 = vmatprep.mubr.msk.f32.mxu0 %vm26323_vm2, %v26322_v22 }
  0xcc   :  { %v26392_v14 = vpop.f32.mrf.mxu0 }
  0xce   :  { %v26394_v15 = vpop.f32.mrf.mxu0 }
  0xcf   :  { %24066 = vmatprep.mubr.msk.f32.mxu1 %vm281_vm1, %v26394_v15 }
  0xd0   :  { %v26398_v16 = vpop.f32.mrf.mxu0  ;;  %24067 = vmatmul.mubr.msk.f32.vlgmr.msra.gmra.mxu1 %vm281_vm1, %v26392_v14 }
  0xd2   :  { %v26402_v17 = vpop.f32.mrf.mxu0 }
  0xd3   :  { %24069 = vmatprep.mubr.msk.f32.mxu1 %vm281_vm1, %v26402_v17 }
  0xd4   :  { %v26406_v18 = vpop.f32.mrf.mxu0  ;;  %24070 = vmatmul.mubr.msk.f32.gmra.mxu1 %vm281_vm1, %v26398_v16 }
  0xd6   :  { %v26410_v19 = vpop.f32.mrf.mxu0 }
  0xd7   :  { %24072 = vmatprep.mubr.msk.f32.mxu1 %vm281_vm1, %v26410_v19 }
  0xd8   :  { %v26414_v20 = vpop.f32.mrf.mxu0  ;;  %24073 = vmatmul.mubr.msk.f32.gmra.mxu1 %vm281_vm1, %v26406_v18 }
  0xda   :  { %v26418_v21 = vpop.f32.mrf.mxu0 }
  0xdb   :  { %24075 = vmatprep.mubr.msk.f32.mxu1 %vm281_vm1, %v26418_v21 }
  0xdc   :  { %24076 = vmatmul.mubr.msk.f32.gmra.mxu1 %vm281_vm1, %v26414_v20 }
  0xdd   :  { %24090 = vmatprep.mubr.msk.f32.mxu1 %vm26323_vm2, %v26322_v22 }
 0x190   :  { %v24068_v23 = vpop.f32.mrf.mxu1 }
 0x191   :  { %v26440_v29 = vadd.f32 %v24068_v23, %v22472_v24 }
 0x192   :  { %v372_v25 = vpop.f32.mrf.mxu1 }
 0x193   :  { %v26436_v26 = vadd.f32 %v22472_v24, %v372_v25 }
 0x194   :  { %v24071_v27 = vpop.f32.mrf.mxu1 }
 0x195   :  { %416 = vrot.lane.b32.xlu0 %v26436_v26, %s26325_s18  ;;  %v26448_v33 = vadd.f32 %v24071_v27, %v22472_v24 }
 0x196   :  { %v382_v28 = vpop.f32.mrf.mxu1 }
 0x197   :  { %v26442_v30 = vadd.f32 %v22472_v24, %v382_v28 }
 0x198   :  { %v24074_v31 = vpop.f32.mrf.mxu1 }
 0x199   :  { %494 = vrot.lane.b32.xlu0 %v26440_v29, %s26325_s18  ;;  %571 = vrot.lane.b32.xlu1 %v26442_v30, %s26325_s18  ;;  %v26456_v37 = vadd.f32 %v24074_v31, %v22472_v24 }
 0x19a   :  { %v392_v32 = vpop.f32.mrf.mxu1 }
 0x19b   :  { %v26450_v34 = vadd.f32 %v22472_v24, %v392_v32 }
 0x19c   :  { %v24077_v35 = vpop.f32.mrf.mxu1 }
 0x19d   :  { %648 = vrot.lane.b32.xlu1 %v26448_v33, %s26325_s18  ;;  %725 = vrot.lane.b32.xlu0 %v26450_v34, %s26325_s18  ;;  %v26464_v39 = vadd.f32 %v24077_v35, %v22472_v24 }
 0x19e   :  { %v402_v36 = vpop.f32.mrf.mxu1 }
 0x19f   :  { %v26458_v38 = vadd.f32 %v22472_v24, %v402_v36 }
 0x1a1   :  { %802 = vrot.lane.b32.xlu1 %v26456_v37, %s26325_s18  ;;  %879 = vrot.lane.b32.xlu0 %v26458_v38, %s26325_s18 }
 0x1a5   :  { %956 = vrot.lane.b32.xlu1 %v26464_v39, %s26325_s18 }
 0x1a9   :  { %1128 = vrot.lane.b32.xlu1 %v26436_v26, %s26326_s19 }
 0x207   :  { %v417_v40 = vpop.permute.xlu0 %416 }
 0x208   :  { %24079 = vmatpush3.xpose.msk.msra.mxu0 %vm418_vm3, %v417_v40 }
 0x209   :  { %24083 = vmatprep.subr.mxu0 %v26322_v22 }
 0x20b   :  { %24081 = vmatmul.mubr.msk.f32.vlgmr.msra.gmra.mxu0 %vm418_vm3, %v26436_v26  ;;  %v495_v41 = vpop.permute.xlu0 %494  ;;  %v572_v42 = vpop.permute.xlu1 %571 }
 0x20c   :  { %24084 = vmatpush3.xpose.msk.msra.mxu0 %vm418_vm3, %v495_v41  ;;  %24089 = vmatpush3.xpose.msk.msra.mxu1 %vm418_vm3, %v572_v42 }
 0x20d   :  { %24085 = vmatprep.mubr.msk.f32.mxu0 %vm26323_vm2, %v26322_v22  ;;  %24093 = vmatprep.subr.mxu0 %v26322_v22 }
 0x20e   :  { %24098 = vmatprep.subr.mxu1 %v26322_v22 }
 0x20f   :  { %24086 = vmatmul.mubr.msk.f32.vlgmr.msra.gmra.mxu0 %vm418_vm3, %v26440_v29  ;;  %v649_v43 = vpop.permute.xlu1 %648  ;;  %v726_v44 = vpop.permute.xlu0 %725  ;;  %24091 = vmatmul.mubr.msk.f32.vlgmr.msra.gmra.mxu1 %vm418_vm3, %v26442_v30 }
 0x210   :  { %24094 = vmatpush3.xpose.msk.msra.mxu0 %vm418_vm3, %v649_v43  ;;  %24099 = vmatpush3.xpose.msk.msra.mxu1 %vm418_vm3, %v726_v44 }
 0x211   :  { %24095 = vmatprep.mubr.msk.f32.mxu0 %vm26323_vm2, %v26322_v22  ;;  %24100 = vmatprep.mubr.msk.f32.mxu1 %vm26323_vm2, %v26322_v22 }
 0x212   :  { %24103 = vmatprep.subr.mxu0 %v26322_v22  ;;  %24108 = vmatprep.subr.mxu1 %v26322_v22 }
 0x213   :  { %24096 = vmatmul.mubr.msk.f32.vlgmr.msra.gmra.mxu0 %vm418_vm3, %v26448_v33  ;;  %v803_v45 = vpop.permute.xlu1 %802  ;;  %24101 = vmatmul.mubr.msk.f32.vlgmr.msra.gmra.mxu1 %vm418_vm3, %v26450_v34  ;;  %v880_v46 = vpop.permute.xlu0 %879 }
 0x214   :  { %24104 = vmatpush3.xpose.msk.msra.mxu0 %vm418_vm3, %v803_v45  ;;  %24109 = vmatpush3.xpose.msk.msra.mxu1 %vm418_vm3, %v880_v46 }
 0x215   :  { %24105 = vmatprep.mubr.msk.f32.mxu0 %vm26323_vm2, %v26322_v22  ;;  %24110 = vmatprep.mubr.msk.f32.mxu1 %vm26323_vm2, %v26322_v22 }
 0x216   :  { %24113 = vmatprep.subr.mxu0 %v26322_v22  ;;  %24118 = vmatprep.subr.mxu1 %v26322_v22 }
 0x217   :  { %24106 = vmatmul.mubr.msk.f32.vlgmr.msra.gmra.mxu0 %vm418_vm3, %v26456_v37  ;;  %v957_v47 = vpop.permute.xlu1 %956  ;;  %24111 = vmatmul.mubr.msk.f32.vlgmr.msra.gmra.mxu1 %vm418_vm3, %v26458_v38 }
 0x218   :  { %24114 = vmatpush3.xpose.msk.msra.mxu0 %vm418_vm3, %v957_v47  ;;  %24115 = vmatprep.mubr.msk.f32.mxu0 %vm26323_vm2, %v26322_v22 }
 0x219   :  { %24123 = vmatprep.subr.mxu0 %v26322_v22  ;;  %24120 = vmatprep.mubr.msk.f32.mxu1 %vm26323_vm2, %v26322_v22 }
 0x21b   :  { %24116 = vmatmul.mubr.msk.f32.vlgmr.msra.gmra.mxu0 %vm418_vm3, %v26464_v39  ;;  %v1129_v48 = vpop.permute.xlu1 %1128 }
 0x21c   :  { %24119 = vmatpush3.msra.mxu1 %v1129_v48  ;;  %24125 = vmatprep.mubr.msk.f32.mxu0 %vm26323_vm2, %v26322_v22 }
 0x21d   :  { %24128 = vmatprep.subr.mxu1 %v26322_v22 }
 0x2cb   :  { %v489_v49 = vpop.f32.mrf.mxu0 }
 0x2cc   :  { %v1032_v50 = vmul.f32 0.35355338, %v489_v49 }
 0x2cd   :  { %v24082_v51 = vpop.f32.mrf.mxu0 }
 0x2ce   :  { %v1040_v52 = vsel %vm418_vm3, %v1032_v50, -inf }
 0x2cf   :  { %v566_v53 = vpop.f32.mrf.mxu0  ;;  %v643_v54 = vpop.f32.mrf.mxu1  ;;  %1041 = vmax.xlane.f32.xlu0 %v1040_v52 }
 0x2d0   :  { %v1033_v55 = vmul.f32 0.35355338, %v566_v53  ;;  %v1034_v56 = vmul.f32 0.35355338, %v643_v54 }
 0x2d1   :  { %v24087_v57 = vpop.f32.mrf.mxu0  ;;  %v24092_v58 = vpop.f32.mrf.mxu1 }
 0x2d2   :  { %v1043_v59 = vsel %vm418_vm3, %v1033_v55, -inf  ;;  %v1046_v60 = vsel %vm418_vm3, %v1034_v56, -inf }
 0x2d3   :  { %v720_v61 = vpop.f32.mrf.mxu0  ;;  %1044 = vmax.xlane.f32.xlu1 %v1043_v59  ;;  %v797_v62 = vpop.f32.mrf.mxu1  ;;  %1047 = vmax.xlane.f32.xlu0 %v1046_v60 }
 0x2d4   :  { %v1035_v63 = vmul.f32 0.35355338, %v720_v61  ;;  %v1036_v0 = vmul.f32 0.35355338, %v797_v62 }
 0x2d5   :  { %v24097_v1 = vpop.f32.mrf.mxu0  ;;  %v24102_v2 = vpop.f32.mrf.mxu1 }
 0x2d6   :  { %v1052_v3 = vsel %vm418_vm3, %v1036_v0, -inf  ;;  %v1049_v4 = vsel %vm418_vm3, %v1035_v63, -inf }
 0x2d7   :  { %v874_v5 = vpop.f32.mrf.mxu0  ;;  %1053 = vmax.xlane.f32.xlu1 %v1052_v3  ;;  %1050 = vmax.xlane.f32.xlu0 %v1049_v4  ;;  %v951_v6 = vpop.f32.mrf.mxu1 }
 0x2d8   :  { %v1037_v7 = vmul.f32 0.35355338, %v874_v5  ;;  %v1038_v8 = vmul.f32 0.35355338, %v951_v6 }
 0x2d9   :  { %v24107_v9 = vpop.f32.mrf.mxu0  ;;  %v24112_v10 = vpop.f32.mrf.mxu1 }
 0x2da   :  { %v1055_v11 = vsel %vm418_vm3, %v1037_v7, -inf  ;;  %v1058_v12 = vsel %vm418_vm3, %v1038_v8, -inf }
 0x2db   :  { %v1028_v13 = vpop.f32.mrf.mxu0  ;;  %1056 = vmax.xlane.f32.xlu0 %v1055_v11  ;;  %1059 = vmax.xlane.f32.xlu1 %v1058_v12 }
 0x2dc   :  { %v1039_v23 = vmul.f32 0.35355338, %v1028_v13 }
 0x2dd   :  { %v24117_v24 = vpop.f32.mrf.mxu0 }
 0x2de   :  { %v1061_v25 = vsel %vm418_vm3, %v1039_v23, -inf }
 0x2df   :  { %1062 = vmax.xlane.f32.xlu0 %v1061_v25 }
 0x2ec   :  { %1280 = vrot.lane.b32.xlu1 %v26442_v30, %s26326_s19 }
 0x2f0   :  { %1356 = vrot.lane.b32.xlu1 %v26448_v33, %s26326_s19 }
 0x2f4   :  { %1508 = vrot.lane.b32.xlu1 %v26456_v37, %s26326_s19 }
 0x2f5   :  { %1204 = vrot.lane.b32.xlu0 %v26440_v29, %s26326_s19 }
 0x2f8   :  { %1660 = vrot.lane.b32.xlu1 %v26464_v39, %s26326_s19 }
 0x2f9   :  { %1432 = vrot.lane.b32.xlu0 %v26450_v34, %s26326_s19 }
 0x2fc   :  { %1816 = vrot.lane.b32.xlu1 %v26440_v29, %s26327_s20 }
 0x2fd   :  { %1584 = vrot.lane.b32.xlu0 %v26458_v38, %s26326_s19 }
 0x300   :  { %1814 = vrot.lane.b32.xlu1 %v26440_v29, %s26328_s21 }
 0x301   :  { %1738 = vrot.lane.b32.xlu0 %v26436_v26, %s26327_s20 }
 0x304   :  { %1972 = vrot.lane.b32.xlu1 %v26448_v33, %s26327_s20 }
 0x305   :  { %1736 = vrot.lane.b32.xlu0 %v26436_v26, %s26328_s21 }
 0x308   :  { %1970 = vrot.lane.b32.xlu1 %v26448_v33, %s26328_s21 }
 0x309   :  { %1894 = vrot.lane.b32.xlu0 %v26442_v30, %s26327_s20 }
 0x30d   :  { %1892 = vrot.lane.b32.xlu0 %v26442_v30, %s26328_s21 }
 0x358   :  { %v1042_v27 = vpop.xlane.xlu0 %1041 }
 0x359   :  { %v1064_v28 = vsub.f32 %v1032_v50, %v1042_v27 }
 0x35b   :  { %v1072_v31 = vmul.f32 1.442695, %v1064_v28 }
 0x35c   :  { %v1045_v32 = vpop.xlane.xlu1 %1044  ;;  %v1048_v35 = vpop.xlane.xlu0 %1047 }
 0x35d   :  { %25744 = vpow2.f32 %v1072_v31  ;;  %v1065_v36 = vsub.f32 %v1033_v55, %v1045_v32  ;;  %v1066_v40 = vsub.f32 %v1034_v56, %v1048_v35 }
 0x35f   :  { %v1074_v41 = vmul.f32 1.442695, %v1065_v36  ;;  %v1076_v42 = vmul.f32 1.442695, %v1066_v40 }
 0x360   :  { %v1054_v43 = vpop.xlane.xlu1 %1053  ;;  %v1051_v44 = vpop.xlane.xlu0 %1050 }
 0x361   :  { %25746 = vpow2.f32 %v1074_v41  ;;  %v1068_v45 = vsub.f32 %v1036_v0, %v1054_v43  ;;  %v1067_v46 = vsub.f32 %v1035_v63, %v1051_v44 }
 0x362   :  { %25748 = vpow2.f32 %v1076_v42 }
 0x363   :  { %v1080_v47 = vmul.f32 1.442695, %v1068_v45  ;;  %v1078_v48 = vmul.f32 1.442695, %v1067_v46 }
 0x364   :  { %v1060_v49 = vpop.xlane.xlu1 %1059  ;;  %v1057_v51 = vpop.xlane.xlu0 %1056 }
 0x365   :  { %25750 = vpow2.f32 %v1080_v47  ;;  %v1070_v50 = vsub.f32 %v1038_v8, %v1060_v49  ;;  %v1069_v52 = vsub.f32 %v1037_v7, %v1057_v51 }
 0x366   :  { %25752 = vpow2.f32 %v1078_v48 }
 0x367   :  { %v1084_v53 = vmul.f32 1.442695, %v1070_v50  ;;  %v1082_v54 = vmul.f32 1.442695, %v1069_v52 }
 0x368   :  { %v1063_v55 = vpop.xlane.xlu0 %1062  ;;  %v1281_v11 = vpop.permute.xlu1 %1280 }
 0x369   :  { %25754 = vpow2.f32 %v1084_v53  ;;  %v1071_v56 = vsub.f32 %v1039_v23, %v1063_v55 }
 0x36a   :  { %v26557_v57 = vpop.eup %25744  ;;  %25756 = vpow2.f32 %v1082_v54 }
 0x36b   :  { %v1086_v58 = vmul.f32 1.442695, %v1071_v56  ;;  %v1088_v59 = vsel %vm418_vm3, %v26557_v57, 0.0 }
 0x36c   :  { %1089 = vadd.xlane.f32.xlu1 %v1088_v59  ;;  %v1205_v60 = vpop.permute.xlu0 %1204  ;;  %v1357_v12 = vpop.permute.xlu1 %1356 }
 0x36d   :  { %25758 = vpow2.f32 %v1086_v58  ;;  %24124 = vmatpush3.msra.mxu0 %v1205_v60 }
 0x36e   :  { %v26561_v61 = vpop.eup %25746  ;;  %24133 = vmatprep.subr.mxu0 %v26322_v22 }
 0x36f   :  { %v26564_v62 = vpop.eup %25748  ;;  %v1091_v63 = vsel %vm418_vm3, %v26561_v61, 0.0 }
 0x370   :  { %1092 = vadd.xlane.f32.xlu0 %v1091_v63  ;;  %v1094_v0 = vsel %vm418_vm3, %v26564_v62, 0.0  ;;  %v1509_v13 = vpop.permute.xlu1 %1508  ;;  %v1433_v23 = vpop.permute.xlu0 %1432 }
 0x371   :  { %1095 = vadd.xlane.f32.xlu1 %v1094_v0 }
 0x372   :  { %v26570_v1 = vpop.eup %25750 }
 0x373   :  { %v26572_v2 = vpop.eup %25752  ;;  %v1100_v3 = vsel %vm418_vm3, %v26570_v1, 0.0 }
 0x374   :  { %v1097_v4 = vsel %vm418_vm3, %v26572_v2, 0.0  ;;  %v26606_v24 = vpop.permute.xlu1 %1660  ;;  %v1585_v25 = vpop.permute.xlu0 %1584 }
 0x375   :  { %1101 = vadd.xlane.f32.xlu1 %v1100_v3  ;;  %1098 = vadd.xlane.f32.xlu0 %v1097_v4 }
 0x376   :  { %v26578_v5 = vpop.eup %25754 }
 0x377   :  { %v26580_v6 = vpop.eup %25756  ;;  %v1106_v7 = vsel %vm418_vm3, %v26578_v5, 0.0 }
 0x378   :  { %v1103_v8 = vsel %vm418_vm3, %v26580_v6, 0.0  ;;  %v26608_v27 = vpop.permute.xlu1 %1816  ;;  %v1739_v28 = vpop.permute.xlu0 %1738 }
 0x379   :  { %1107 = vadd.xlane.f32.xlu1 %v1106_v7  ;;  %1104 = vadd.xlane.f32.xlu0 %v1103_v8 }
 0x37a   :  { %v26586_v9 = vpop.eup %25758 }
 0x37b   :  { %v1109_v10 = vsel %vm418_vm3, %v26586_v9, 0.0 }
 0x37c   :  { %v26610_v31 = vpop.permute.xlu1 %1814  ;;  %v26612_v32 = vpop.permute.xlu0 %1736 }
 0x37d   :  { %1110 = vadd.xlane.f32.xlu0 %v1109_v10 }
 0x380   :  { %v26614_v35 = vpop.permute.xlu1 %1972  ;;  %v26616_v36 = vpop.permute.xlu0 %1894 }
 0x384   :  { %v26618_v40 = vpop.permute.xlu1 %1970  ;;  %v26620_v41 = vpop.permute.xlu0 %1892 }
 0x38a   :  { %2128 = vrot.lane.b32.xlu1 %v26456_v37, %s26327_s20 }
 0x38e   :  { %2126 = vrot.lane.b32.xlu1 %v26456_v37, %s26328_s21 }
 0x392   :  { %2284 = vrot.lane.b32.xlu1 %v26464_v39, %s26327_s20 }
 0x393   :  { %2050 = vrot.lane.b32.xlu0 %v26450_v34, %s26327_s20 }
 0x396   :  { %2282 = vrot.lane.b32.xlu1 %v26464_v39, %s26328_s21 }
 0x397   :  { %2048 = vrot.lane.b32.xlu0 %v26450_v34, %s26328_s21 }
 0x39b   :  { %2206 = vrot.lane.b32.xlu0 %v26458_v38, %s26327_s20 }
 0x39f   :  { %2204 = vrot.lane.b32.xlu0 %v26458_v38, %s26328_s21 }
 0x3f5   :  { %v1090_v42 = vpop.xlane.xlu1 %1089 }
 0x3f6   :  { %25760 = vrcp.f32 %v1090_v42 }
 0x3f9   :  { %v1093_v43 = vpop.xlane.xlu0 %1092 }
 0x3fa   :  { %v1096_v44 = vpop.xlane.xlu1 %1095  ;;  %25762 = vrcp.f32 %v1093_v43 }
 0x3fb   :  { %25764 = vrcp.f32 %v1096_v44 }
 0x3fe   :  { %v1102_v45 = vpop.xlane.xlu1 %1101  ;;  %v1099_v46 = vpop.xlane.xlu0 %1098 }
 0x3ff   :  { %25766 = vrcp.f32 %v1102_v45 }
 0x400   :  { %25768 = vrcp.f32 %v1099_v46 }
 0x402   :  { %v1108_v47 = vpop.xlane.xlu1 %1107  ;;  %v1105_v48 = vpop.xlane.xlu0 %1104 }
 0x403   :  { %v25761_v49 = vpop.eup %25760  ;;  %25770 = vrcp.f32 %v1108_v47 }
 0x404   :  { %25772 = vrcp.f32 %v1105_v48  ;;  %v1120_v51 = vmul.f32 %v25761_v49, %v26557_v57 }
 0x406   :  { %v1111_v50 = vpop.xlane.xlu0 %1110  ;;  %24121 = vmatmul.mubr.msk.f32.vlgmr.msra.gmra.mxu1 %vm418_vm3, %v1120_v51 }
 0x407   :  { %v25763_v52 = vpop.eup %25762  ;;  %25774 = vrcp.f32 %v1111_v50  ;;  %24129 = vmatpush3.msra.mxu1 %v1281_v11  ;;  %24130 = vmatprep.mubr.msk.f32.mxu1 %vm26323_vm2, %v26322_v22 }
 0x408   :  { %v25765_v53 = vpop.eup %25764  ;;  %24138 = vmatprep.subr.mxu1 %v26322_v22  ;;  %v1121_v54 = vmul.f32 %v25763_v52, %v26561_v61 }
 0x409   :  { %v1122_v55 = vmul.f32 %v25765_v53, %v26564_v62 }
 0x40a   :  { %24126 = vmatmul.mubr.msk.f32.vlgmr.msra.gmra.mxu0 %vm418_vm3, %v1121_v54  ;;  %v2051_v61 = vpop.permute.xlu0 %2050 }
 0x40b   :  { %24131 = vmatmul.mubr.msk.f32.vlgmr.msra.gmra.mxu1 %vm418_vm3, %v1122_v55  ;;  %24134 = vmatpush3.msra.mxu0 %v1357_v12 }
 0x40c   :  { %v25767_v56 = vpop.eup %25766  ;;  %24139 = vmatpush3.msra.mxu1 %v1433_v23  ;;  %24140 = vmatprep.mubr.msk.f32.mxu1 %vm26323_vm2, %v26322_v22 }
 0x40d   :  { %v25769_v57 = vpop.eup %25768  ;;  %24135 = vmatprep.mubr.msk.f32.mxu0 %vm26323_vm2, %v26322_v22  ;;  %24143 = vmatprep.subr.mxu0 %v26322_v22  ;;  %v1124_v58 = vmul.f32 %v25767_v56, %v26570_v1 }
 0x40e   :  { %24148 = vmatprep.subr.mxu1 %v26322_v22  ;;  %v1123_v59 = vmul.f32 %v25769_v57, %v26572_v2  ;;  %v2129_v2 = vpop.permute.xlu1 %2128  ;;  %v2049_v4 = vpop.permute.xlu0 %2048 }
 0x40f   :  { %24141 = vmatmul.mubr.msk.f32.vlgmr.msra.gmra.mxu1 %vm418_vm3, %v1124_v58 }
 0x410   :  { %v25771_v60 = vpop.eup %25770  ;;  %24136 = vmatmul.mubr.msk.f32.vlgmr.msra.gmra.mxu0 %vm418_vm3, %v1123_v59  ;;  %24149 = vmatpush3.msra.mxu1 %v1585_v25 }
 0x411   :  { %v25773_v62 = vpop.eup %25772  ;;  %24144 = vmatpush3.msra.mxu0 %v1509_v13  ;;  %24145 = vmatprep.mubr.msk.f32.mxu0 %vm26323_vm2, %v26322_v22  ;;  %v1126_v63 = vmul.f32 %v25771_v60, %v26578_v5 }
 0x412   :  { %24150 = vmatprep.mubr.msk.f32.mxu1 %vm26323_vm2, %v26322_v22  ;;  %24153 = vmatprep.subr.mxu0 %v26322_v22  ;;  %v1125_v0 = vmul.f32 %v25773_v62, %v26580_v6  ;;  %v2127_v5 = vpop.permute.xlu1 %2126  ;;  %v2207_v6 = vpop.permute.xlu0 %2206 }
 0x413   :  { %24158 = vmatprep.subr.mxu1 %v26322_v22  ;;  %24151 = vmatmul.mubr.msk.f32.vlgmr.msra.gmra.mxu1 %vm418_vm3, %v1126_v63 }
 0x414   :  { %v25775_v1 = vpop.eup %25774  ;;  %24146 = vmatmul.mubr.msk.f32.vlgmr.msra.gmra.mxu0 %vm418_vm3, %v1125_v0  ;;  %24159 = vmatpush3.xpose.msk.msra.mxu1 %vm418_vm3, %v1739_v28 }
 0x415   :  { %24154 = vmatpush3.msra.mxu0 %v26606_v24  ;;  %24155 = vmatprep.mubr.msk.f32.mxu0 %vm26323_vm2, %v26322_v22  ;;  %v1127_v3 = vmul.f32 %v25775_v1, %v26586_v9 }
 0x416   :  { %24160 = vmatprep.mubr.msk.f32.mxu1 %vm26323_vm2, %v26322_v22  ;;  %24163 = vmatprep.subr.mxu0 %v26322_v22  ;;  %v2285_v7 = vpop.permute.xlu1 %2284  ;;  %v2205_v8 = vpop.permute.xlu0 %2204 }
 0x417   :  { %24168 = vmatprep.subr.mxu1 %v26322_v22  ;;  %24161 = vmatmul.mubr.msk.f32.vlgmr.msra.gmra.mxu1 %vm418_vm3, %v26612_v32 }
 0x418   :  { %24156 = vmatmul.mubr.msk.f32.vlgmr.msra.gmra.mxu0 %vm418_vm3, %v1127_v3  ;;  %24169 = vmatpush3.xpose.msk.msra.mxu1 %vm418_vm3, %v26616_v36 }
 0x419   :  { %24164 = vmatpush3.xpose.msk.msra.mxu0 %vm418_vm3, %v26608_v27  ;;  %24165 = vmatprep.mubr.msk.f32.mxu0 %vm26323_vm2, %v26322_v22 }
 0x41a   :  { %24170 = vmatprep.mubr.msk.f32.mxu1 %vm26323_vm2, %v26322_v22  ;;  %24173 = vmatprep.subr.mxu0 %v26322_v22  ;;  %v2283_v9 = vpop.permute.xlu1 %2282 }
 0x41b   :  { %24178 = vmatprep.subr.mxu1 %v26322_v22  ;;  %24171 = vmatmul.mubr.msk.f32.vlgmr.msra.gmra.mxu1 %vm418_vm3, %v26620_v41 }
 0x41c   :  { %24166 = vmatmul.mubr.msk.f32.vlgmr.msra.gmra.mxu0 %vm418_vm3, %v26610_v31  ;;  %24179 = vmatpush3.xpose.msk.msra.mxu1 %vm418_vm3, %v2051_v61 }
 0x41d   :  { %24174 = vmatpush3.xpose.msk.msra.mxu0 %vm418_vm3, %v26614_v35  ;;  %24175 = vmatprep.mubr.msk.f32.mxu0 %vm26323_vm2, %v26322_v22 }
 0x41e   :  { %24180 = vmatprep.mubr.msk.f32.mxu1 %vm26323_vm2, %v26322_v22  ;;  %24183 = vmatprep.subr.mxu0 %v26322_v22 }
 0x41f   :  { %24188 = vmatprep.subr.mxu1 %v26322_v22  ;;  %24181 = vmatmul.mubr.msk.f32.vlgmr.msra.gmra.mxu1 %vm418_vm3, %v2049_v4 }
 0x420   :  { %24176 = vmatmul.mubr.msk.f32.vlgmr.msra.gmra.mxu0 %vm418_vm3, %v26618_v40  ;;  %24189 = vmatpush3.xpose.msk.msra.mxu1 %vm418_vm3, %v2207_v6 }
 0x421   :  { %24184 = vmatpush3.xpose.msk.msra.mxu0 %vm418_vm3, %v2129_v2  ;;  %24185 = vmatprep.mubr.msk.f32.mxu0 %vm26323_vm2, %v26322_v22 }
 0x422   :  { %24190 = vmatprep.mubr.msk.f32.mxu1 %vm26323_vm2, %v26322_v22  ;;  %24193 = vmatprep.subr.mxu0 %v26322_v22 }
 0x423   :  { %24191 = vmatmul.mubr.msk.f32.vlgmr.msra.gmra.mxu1 %vm418_vm3, %v2205_v8  ;;  %24198 = vmatprep.subr.mxu1 %v26322_v22 }
 0x424   :  { %24186 = vmatmul.mubr.msk.f32.vlgmr.msra.gmra.mxu0 %vm418_vm3, %v2127_v5  ;;  %24200 = vmatprep.mubr.msk.f32.mxu1 %vm26323_vm2, %v26322_v22 }
 0x425   :  { %24194 = vmatpush3.xpose.msk.msra.mxu0 %vm418_vm3, %v2285_v7  ;;  %24195 = vmatprep.mubr.msk.f32.mxu0 %vm26323_vm2, %v26322_v22 }
 0x426   :  { %24203 = vmatprep.subr.mxu0 %v26322_v22 }
 0x428   :  { %24196 = vmatmul.mubr.msk.f32.vlgmr.msra.gmra.mxu0 %vm418_vm3, %v2283_v9 }
 0x429   :  { %24205 = vmatprep.mubr.msk.f32.mxu0 %vm26323_vm2, %v26322_v22 }
 0x4c6   :  { %v26708_v10 = vpop.f32.mrf.mxu1 }
 0x4c8   :  { %v24122_v11 = vpop.f32.mrf.mxu1 }
 0x4ca   :  { %v26710_v12 = vpop.f32.mrf.mxu0 }
 0x4cb   :  { %v26712_v13 = vpop.f32.mrf.mxu1 }
 0x4cc   :  { %v24127_v23 = vpop.f32.mrf.mxu0 }
 0x4cd   :  { %v24132_v24 = vpop.f32.mrf.mxu1 }
 0x4cf   :  { %v26714_v25 = vpop.f32.mrf.mxu1 }
 0x4d0   :  { %v26716_v27 = vpop.f32.mrf.mxu0 }
 0x4d1   :  { %v24142_v28 = vpop.f32.mrf.mxu1 }
 0x4d2   :  { %v24137_v31 = vpop.f32.mrf.mxu0 }
 0x4d3   :  { %v26718_v32 = vpop.f32.mrf.mxu1 }
 0x4d4   :  { %v26720_v35 = vpop.f32.mrf.mxu0 }
 0x4d5   :  { %v24152_v36 = vpop.f32.mrf.mxu1 }
 0x4d6   :  { %v24147_v40 = vpop.f32.mrf.mxu0 }
 0x4d7   :  { %v1810_v41 = vpop.f32.mrf.mxu1 }
 0x4d8   :  { %v26722_v42 = vpop.f32.mrf.mxu0  ;;  %v2360_v43 = vmul.f32 0.35355338, %v1810_v41 }
 0x4d9   :  { %v24162_v44 = vpop.f32.mrf.mxu1 }
 0x4da   :  { %v24157_v45 = vpop.f32.mrf.mxu0  ;;  %v2368_v46 = vsel %vm418_vm3, %v2360_v43, -inf }
 0x4db   :  { %2369 = vmax.xlane.f32.xlu0 %v2368_v46  ;;  %v1966_v47 = vpop.f32.mrf.mxu1 }
 0x4dc   :  { %v1888_v48 = vpop.f32.mrf.mxu0  ;;  %v2362_v49 = vmul.f32 0.35355338, %v1966_v47 }
 0x4dd   :  { %v2361_v51 = vmul.f32 0.35355338, %v1888_v48  ;;  %v24172_v50 = vpop.f32.mrf.mxu1 }
 0x4de   :  { %v24167_v52 = vpop.f32.mrf.mxu0  ;;  %v2374_v53 = vsel %vm418_vm3, %v2362_v49, -inf }
 0x4df   :  { %2375 = vmax.xlane.f32.xlu0 %v2374_v53  ;;  %v2371_v54 = vsel %vm418_vm3, %v2361_v51, -inf  ;;  %v2122_v55 = vpop.f32.mrf.mxu1 }
 0x4e0   :  { %2372 = vmax.xlane.f32.xlu1 %v2371_v54  ;;  %v2044_v56 = vpop.f32.mrf.mxu0  ;;  %v2364_v57 = vmul.f32 0.35355338, %v2122_v55 }
 0x4e1   :  { %v2363_v58 = vmul.f32 0.35355338, %v2044_v56  ;;  %v24182_v59 = vpop.f32.mrf.mxu1 }
 0x4e2   :  { %v24177_v60 = vpop.f32.mrf.mxu0  ;;  %v2380_v61 = vsel %vm418_vm3, %v2364_v57, -inf }
 0x4e3   :  { %v2377_v62 = vsel %vm418_vm3, %v2363_v58, -inf  ;;  %v2278_v63 = vpop.f32.mrf.mxu1 }
 0x4e4   :  { %2378 = vmax.xlane.f32.xlu0 %v2377_v62  ;;  %v2200_v0 = vpop.f32.mrf.mxu0  ;;  %2381 = vmax.xlane.f32.xlu1 %v2380_v61  ;;  %v2366_v1 = vmul.f32 0.35355338, %v2278_v63 }
 0x4e5   :  { %v2365_v2 = vmul.f32 0.35355338, %v2200_v0  ;;  %v24192_v3 = vpop.f32.mrf.mxu1 }
 0x4e6   :  { %v24187_v4 = vpop.f32.mrf.mxu0  ;;  %v2386_v5 = vsel %vm418_vm3, %v2366_v1, -inf }
 0x4e7   :  { %v2383_v6 = vsel %vm418_vm3, %v2365_v2, -inf }
 0x4e8   :  { %2384 = vmax.xlane.f32.xlu0 %v2383_v6  ;;  %v2356_v7 = vpop.f32.mrf.mxu0  ;;  %2387 = vmax.xlane.f32.xlu1 %v2386_v5 }
 0x4e9   :  { %v2367_v8 = vmul.f32 0.35355338, %v2356_v7 }
 0x4ea   :  { %v24197_v9 = vpop.f32.mrf.mxu0 }
 0x4eb   :  { %v2389_v11 = vsel %vm418_vm3, %v2367_v8, -inf }
 0x4ec   :  { %2390 = vmax.xlane.f32.xlu0 %v2389_v11 }
 0x4f9   :  { %2456 = vrot.lane.b32.xlu1 %v26436_v26, %s26329_s22 }
 0x4fd   :  { %2608 = vrot.lane.b32.xlu1 %v26442_v30, %s26329_s22 }
 0x501   :  { %2684 = vrot.lane.b32.xlu1 %v26448_v33, %s26329_s22 }
 0x502   :  { %2532 = vrot.lane.b32.xlu0 %v26440_v29, %s26329_s22 }
 0x505   :  { %2836 = vrot.lane.b32.xlu1 %v26456_v37, %s26329_s22 }
 0x506   :  { %2760 = vrot.lane.b32.xlu0 %v26450_v34, %s26329_s22 }
 0x564   :  { %v2370_v23 = vpop.xlane.xlu0 %2369 }
 0x565   :  { %v2392_v24 = vsub.f32 %v2360_v43, %v2370_v23 }
 0x567   :  { %v2400_v28 = vmul.f32 1.442695, %v2392_v24 }
 0x568   :  { %v2376_v31 = vpop.xlane.xlu0 %2375 }
 0x569   :  { %25776 = vpow2.f32 %v2400_v28  ;;  %v2373_v36 = vpop.xlane.xlu1 %2372  ;;  %v2394_v40 = vsub.f32 %v2362_v49, %v2376_v31 }
 0x56a   :  { %v2393_v41 = vsub.f32 %v2361_v51, %v2373_v36 }
 0x56b   :  { %v2404_v44 = vmul.f32 1.442695, %v2394_v40 }
 0x56c   :  { %v2402_v45 = vmul.f32 1.442695, %v2393_v41 }
 0x56d   :  { %25778 = vpow2.f32 %v2404_v44  ;;  %v2382_v46 = vpop.xlane.xlu1 %2381  ;;  %v2379_v47 = vpop.xlane.xlu0 %2378 }
 0x56e   :  { %25780 = vpow2.f32 %v2402_v45  ;;  %v2396_v48 = vsub.f32 %v2364_v57, %v2382_v46  ;;  %v2395_v50 = vsub.f32 %v2363_v58, %v2379_v47 }
 0x570   :  { %v2408_v52 = vmul.f32 1.442695, %v2396_v48  ;;  %v2406_v53 = vmul.f32 1.442695, %v2395_v50 }
 0x571   :  { %v2388_v54 = vpop.xlane.xlu1 %2387  ;;  %v2385_v55 = vpop.xlane.xlu0 %2384 }
 0x572   :  { %25782 = vpow2.f32 %v2408_v52  ;;  %v2398_v43 = vsub.f32 %v2366_v1, %v2388_v54  ;;  %v2397_v56 = vsub.f32 %v2365_v2, %v2385_v55 }
 0x573   :  { %25784 = vpow2.f32 %v2406_v53 }
 0x574   :  { %v2412_v59 = vmul.f32 1.442695, %v2398_v43  ;;  %v2410_v60 = vmul.f32 1.442695, %v2397_v56 }
 0x575   :  { %v2457_v49 = vpop.permute.xlu1 %2456  ;;  %v2391_v51 = vpop.xlane.xlu0 %2390 }
 0x576   :  { %v26744_v61 = vpop.eup %25776  ;;  %25786 = vpow2.f32 %v2412_v59  ;;  %v2399_v62 = vsub.f32 %v2367_v8, %v2391_v51  ;;  %24199 = vmatpush3.msra.mxu1 %v2457_v49 }
 0x577   :  { %25788 = vpow2.f32 %v2410_v60  ;;  %v2416_v57 = vsel %vm418_vm3, %v26744_v61, 0.0  ;;  %24208 = vmatprep.subr.mxu1 %v26322_v22 }
 0x578   :  { %v2414_v58 = vmul.f32 1.442695, %v2399_v62  ;;  %2417 = vadd.xlane.f32.xlu1 %v2416_v57 }
 0x579   :  { %v2533_v63 = vpop.permute.xlu0 %2532  ;;  %v2609_v31 = vpop.permute.xlu1 %2608 }
 0x57a   :  { %v26749_v0 = vpop.eup %25778  ;;  %25790 = vpow2.f32 %v2414_v58  ;;  %24204 = vmatpush3.msra.mxu0 %v2533_v63 }
 0x57b   :  { %v26751_v1 = vpop.eup %25780  ;;  %v2422_v2 = vsel %vm418_vm3, %v26749_v0, 0.0  ;;  %24213 = vmatprep.subr.mxu0 %v26322_v22 }
 0x57c   :  { %v2419_v3 = vsel %vm418_vm3, %v26751_v1, 0.0  ;;  %2423 = vadd.xlane.f32.xlu1 %v2422_v2 }
 0x57d   :  { %2420 = vadd.xlane.f32.xlu0 %v2419_v3  ;;  %v2685_v36 = vpop.permute.xlu1 %2684  ;;  %v2761_v44 = vpop.permute.xlu0 %2760 }
 0x57f   :  { %v26758_v4 = vpop.eup %25782 }
 0x580   :  { %v26760_v5 = vpop.eup %25784  ;;  %v2428_v6 = vsel %vm418_vm3, %v26758_v4, 0.0 }
 0x581   :  { %2429 = vadd.xlane.f32.xlu1 %v2428_v6  ;;  %v2425_v7 = vsel %vm418_vm3, %v26760_v5, 0.0  ;;  %v2837_v40 = vpop.permute.xlu1 %2836 }
 0x582   :  { %2426 = vadd.xlane.f32.xlu0 %v2425_v7 }
 0x583   :  { %v26766_v8 = vpop.eup %25786 }
 0x584   :  { %v26768_v9 = vpop.eup %25788  ;;  %v2434_v11 = vsel %vm418_vm3, %v26766_v8, 0.0 }
 0x585   :  { %2435 = vadd.xlane.f32.xlu1 %v2434_v11  ;;  %v2431_v23 = vsel %vm418_vm3, %v26768_v9, 0.0 }
 0x586   :  { %2432 = vadd.xlane.f32.xlu0 %v2431_v23 }
 0x587   :  { %v26774_v24 = vpop.eup %25790 }
 0x588   :  { %v2437_v28 = vsel %vm418_vm3, %v26774_v24, 0.0 }
 0x58a   :  { %2438 = vadd.xlane.f32.xlu0 %v2437_v28 }
 0x596   :  { %2988 = vrot.lane.b32.xlu1 %v26464_v39, %s26329_s22 }
 0x59a   :  { %3402 = vrot.lane.b32.xlu1 %v26440_v29, %s30120_s23 }
 0x59e   :  { %3400 = vrot.lane.b32.xlu1 %v26440_v29, %s30118_s24 }
 0x5a0   :  { %2912 = vrot.lane.b32.xlu0 %v26458_v38, %s26329_s22 }
 0x5a2   :  { %3558 = vrot.lane.b32.xlu1 %v26448_v33, %s30120_s23 }
 0x5a4   :  { %3324 = vrot.lane.b32.xlu0 %v26436_v26, %s30120_s23 }
 0x5a6   :  { %3556 = vrot.lane.b32.xlu1 %v26448_v33, %s30118_s24 }
 0x5a8   :  { %3322 = vrot.lane.b32.xlu0 %v26436_v26, %s30118_s24 }
 0x5aa   :  { %3714 = vrot.lane.b32.xlu1 %v26456_v37, %s30120_s23 }
 0x5ac   :  { %3480 = vrot.lane.b32.xlu0 %v26442_v30, %s30120_s23 }
 0x5ae   :  { %3712 = vrot.lane.b32.xlu1 %v26456_v37, %s30118_s24 }
 0x5b0   :  { %3478 = vrot.lane.b32.xlu0 %v26442_v30, %s30118_s24 }
 0x5b2   :  { %3870 = vrot.lane.b32.xlu1 %v26464_v39, %s30120_s23 }
 0x5b4   :  { %3636 = vrot.lane.b32.xlu0 %v26450_v34, %s30120_s23 }
 0x5b6   :  { %3868 = vrot.lane.b32.xlu1 %v26464_v39, %s30118_s24 }
 0x5b8   :  { %3634 = vrot.lane.b32.xlu0 %v26450_v34, %s30118_s24 }
 0x5bc   :  { %3792 = vrot.lane.b32.xlu0 %v26458_v38, %s30120_s23 }
 0x5c0   :  { %3790 = vrot.lane.b32.xlu0 %v26458_v38, %s30118_s24 }
 0x601   :  { %v2418_v41 = vpop.xlane.xlu1 %2417 }
 0x602   :  { %25792 = vrcp.f32 %v2418_v41 }
 0x605   :  { %v2424_v45 = vpop.xlane.xlu1 %2423 }
 0x606   :  { %25794 = vrcp.f32 %v2424_v45  ;;  %v2421_v46 = vpop.xlane.xlu0 %2420 }
 0x607   :  { %25796 = vrcp.f32 %v2421_v46 }
 0x60a   :  { %v2430_v47 = vpop.xlane.xlu1 %2429 }
 0x60b   :  { %25798 = vrcp.f32 %v2430_v47  ;;  %v2427_v48 = vpop.xlane.xlu0 %2426 }
 0x60c   :  { %25800 = vrcp.f32 %v2427_v48 }
 0x60e   :  { %v2436_v50 = vpop.xlane.xlu1 %2435 }
 0x60f   :  { %v25793_v52 = vpop.eup %25792  ;;  %25802 = vrcp.f32 %v2436_v50  ;;  %v2433_v53 = vpop.xlane.xlu0 %2432 }
 0x610   :  { %25804 = vrcp.f32 %v2433_v53  ;;  %v2448_v54 = vmul.f32 %v25793_v52, %v26744_v61 }
 0x612   :  { %24201 = vmatmul.mubr.msk.f32.vlgmr.msra.gmra.mxu1 %vm418_vm3, %v2448_v54  ;;  %v2989_v43 = vpop.permute.xlu1 %2988 }
 0x613   :  { %v25795_v55 = vpop.eup %25794  ;;  %v2439_v56 = vpop.xlane.xlu0 %2438  ;;  %24209 = vmatpush3.msra.mxu1 %v2609_v31  ;;  %24210 = vmatprep.mubr.msk.f32.mxu1 %vm26323_vm2, %v26322_v22 }
 0x614   :  { %v25797_v59 = vpop.eup %25796  ;;  %25806 = vrcp.f32 %v2439_v56  ;;  %24218 = vmatprep.subr.mxu1 %v26322_v22  ;;  %v2450_v60 = vmul.f32 %v25795_v55, %v26749_v0 }
 0x615   :  { %v2449_v49 = vmul.f32 %v25797_v59, %v26751_v1 }
 0x616   :  { %24211 = vmatmul.mubr.msk.f32.vlgmr.msra.gmra.mxu1 %vm418_vm3, %v2450_v60  ;;  %v3403_v62 = vpop.permute.xlu1 %3402 }
 0x617   :  { %24206 = vmatmul.mubr.msk.f32.vlgmr.msra.gmra.mxu0 %vm418_vm3, %v2449_v49  ;;  %24219 = vmatpush3.msra.mxu1 %v2761_v44  ;;  %v2913_v63 = vpop.permute.xlu0 %2912 }
 0x618   :  { %v25799_v51 = vpop.eup %25798  ;;  %24214 = vmatpush3.msra.mxu0 %v2685_v36  ;;  %24220 = vmatprep.mubr.msk.f32.mxu1 %vm26323_vm2, %v26322_v22 }
 0x619   :  { %v25801_v61 = vpop.eup %25800  ;;  %24215 = vmatprep.mubr.msk.f32.mxu0 %vm26323_vm2, %v26322_v22  ;;  %24223 = vmatprep.subr.mxu0 %v26322_v22  ;;  %v2452_v57 = vmul.f32 %v25799_v51, %v26758_v4 }
 0x61a   :  { %24228 = vmatprep.subr.mxu1 %v26322_v22  ;;  %v2451_v58 = vmul.f32 %v25801_v61, %v26760_v5  ;;  %v3401_v4 = vpop.permute.xlu1 %3400  ;;  %v411_v5 = vld [vmem:[%s26826_s28] sm:$0xff] }
 0x61b   :  { %24221 = vmatmul.mubr.msk.f32.vlgmr.msra.gmra.mxu1 %vm418_vm3, %v2452_v57 }
 0x61c   :  { %v25803_v0 = vpop.eup %25802  ;;  %24216 = vmatmul.mubr.msk.f32.vlgmr.msra.gmra.mxu0 %vm418_vm3, %v2451_v58  ;;  %24229 = vmatpush3.msra.mxu1 %v2913_v63 }
 0x61d   :  { %v25805_v1 = vpop.eup %25804  ;;  %24224 = vmatpush3.msra.mxu0 %v2837_v40  ;;  %24225 = vmatprep.mubr.msk.f32.mxu0 %vm26323_vm2, %v26322_v22  ;;  %v2454_v2 = vmul.f32 %v25803_v0, %v26766_v8 }
 0x61e   :  { %24230 = vmatprep.mubr.msk.f32.mxu1 %vm26323_vm2, %v26322_v22  ;;  %24233 = vmatprep.subr.mxu0 %v26322_v22  ;;  %v2453_v3 = vmul.f32 %v25805_v1, %v26768_v9  ;;  %v3559_v8 = vpop.permute.xlu1 %3558 }
 0x61f   :  { %24231 = vmatmul.mubr.msk.f32.vlgmr.msra.gmra.mxu1 %vm418_vm3, %v2454_v2 }
 0x620   :  { %24226 = vmatmul.mubr.msk.f32.vlgmr.msra.gmra.mxu0 %vm418_vm3, %v2453_v3 }
 0x621   :  { %v25807_v6 = vpop.eup %25806  ;;  %24234 = vmatpush3.msra.mxu0 %v2989_v43  ;;  %24235 = vmatprep.mubr.msk.f32.mxu0 %vm26323_vm2, %v26322_v22 }
 0x622   :  { %v2455_v7 = vmul.f32 %v25807_v6, %v26774_v24  ;;  %24252 = vmatprep.subr.mxu0 %v411_v5  ;;  %v3557_v9 = vpop.permute.xlu1 %3556 }
 0x624   :  { %24236 = vmatmul.mubr.msk.f32.vlgmr.msra.gmra.mxu0 %vm418_vm3, %v2455_v7 }
 0x625   :  { %24254 = vmatprep.mubr.msk.f32.mxu0 %vm418_vm3, %v26708_v10  ;;  %24253 = vmatpush3.msra.mxu0 %v411_v5 }
 0x626   :  { %24271 = vmatprep.subr.mxu0 %v26322_v22  ;;  %v3715_v10 = vpop.permute.xlu1 %3714 }
 0x628   :  { %24255 = vmatmul.mubr.msk.f32.vlgmr.msra.gmra.mxu0 %vm418_vm3, %v26710_v12 }
 0x629   :  { %24272 = vmatpush3.xpose.msk.msra.mxu0 %vm418_vm3, %v3403_v62  ;;  %24257 = vmatprep.mubr.msk.f32.mxu0 %vm418_vm3, %v26712_v13 }
 0x62a   :  { %24281 = vmatprep.subr.mxu0 %v26322_v22  ;;  %v3713_v12 = vpop.permute.xlu1 %3712 }
 0x62c   :  { %24258 = vmatmul.mubr.msk.f32.gmra.mxu0 %vm418_vm3, %v26716_v27  ;;  %v412_v27 = vld [vmem:[%s26826_s28 + $0x8] sm:$0xff] }
 0x62d   :  { %24260 = vmatprep.mubr.msk.f32.mxu0 %vm418_vm3, %v26714_v25  ;;  %24238 = vmatprep.subr.mxu1 %v412_v27 }
 0x62e   :  { %v3871_v13 = vpop.permute.xlu1 %3870  ;;  %24239 = vmatpush3.msra.mxu1 %v412_v27 }
 0x62f   :  { %24266 = vmatprep.subr.mxu1 %v26322_v22 }
 0x630   :  { %24261 = vmatmul.mubr.msk.f32.gmra.mxu0 %vm418_vm3, %v26720_v35 }
 0x631   :  { %24263 = vmatprep.mubr.msk.f32.mxu0 %vm418_vm3, %v26718_v32  ;;  %v3325_v32 = vpop.permute.xlu0 %3324 }
 0x632   :  { %v3869_v25 = vpop.permute.xlu1 %3868 }
 0x634   :  { %24264 = vmatmul.mubr.msk.f32.gmra.mxu0 %vm418_vm3, %v26722_v42 }
 0x635   :  { %24273 = vmatprep.mubr.msk.f32.mxu0 %vm26323_vm2, %v26322_v22  ;;  %v3323_v35 = vpop.permute.xlu0 %3322 }
 0x638   :  { %24274 = vmatmul.mubr.msk.f32.vlgmr.msra.gmra.mxu0 %vm418_vm3, %v3401_v4 }
 0x639   :  { %24282 = vmatpush3.xpose.msk.msra.mxu0 %vm418_vm3, %v3559_v8  ;;  %24283 = vmatprep.mubr.msk.f32.mxu0 %vm26323_vm2, %v26322_v22  ;;  %v3481_v23 = vpop.permute.xlu0 %3480 }
 0x63a   :  { %24291 = vmatprep.subr.mxu0 %v26322_v22 }
 0x63c   :  { %24284 = vmatmul.mubr.msk.f32.vlgmr.msra.gmra.mxu0 %vm418_vm3, %v3557_v9 }
 0x63d   :  { %24292 = vmatpush3.xpose.msk.msra.mxu0 %vm418_vm3, %v3715_v10  ;;  %24293 = vmatprep.mubr.msk.f32.mxu0 %vm26323_vm2, %v26322_v22  ;;  %v3479_v41 = vpop.permute.xlu0 %3478 }
 0x63e   :  { %24301 = vmatprep.subr.mxu0 %v26322_v22 }
 0x640   :  { %24294 = vmatmul.mubr.msk.f32.vlgmr.msra.gmra.mxu0 %vm418_vm3, %v3713_v12 }
 0x641   :  { %24302 = vmatpush3.xpose.msk.msra.mxu0 %vm418_vm3, %v3871_v13  ;;  %24303 = vmatprep.mubr.msk.f32.mxu0 %vm26323_vm2, %v26322_v22  ;;  %v3637_v52 = vpop.permute.xlu0 %3636 }
 0x642   :  { %24311 = vmatprep.subr.mxu0 %v26322_v22 }
 0x644   :  { %24304 = vmatmul.mubr.msk.f32.vlgmr.msra.gmra.mxu0 %vm418_vm3, %v3869_v25 }
 0x645   :  { %24313 = vmatprep.mubr.msk.f32.mxu0 %vm26323_vm2, %v26322_v22  ;;  %v3635_v43 = vpop.permute.xlu0 %3634 }
 0x649   :  { %v3793_v49 = vpop.permute.xlu0 %3792 }
 0x64d   :  { %v3791_v57 = vpop.permute.xlu0 %3790 }
 0x6d2   :  { %v2528_v42 = vpop.f32.mrf.mxu1 }
 0x6d3   :  { %24240 = vmatprep.mubr.msk.f32.mxu1 %vm418_vm3, %v2528_v42 }
 0x6d4   :  { %v24202_v11 = vpop.f32.mrf.mxu1 }
 0x6d6   :  { %v2680_v24 = vpop.f32.mrf.mxu1 }
 0x6d7   :  { %v2604_v28 = vpop.f32.mrf.mxu0 }
 0x6d8   :  { %24241 = vmatmul.mubr.msk.f32.vlgmr.msra.gmra.mxu1 %vm418_vm3, %v2604_v28  ;;  %v24212_v31 = vpop.f32.mrf.mxu1 }
 0x6d9   :  { %24267 = vmatpush3.xpose.msk.msra.mxu1 %vm418_vm3, %v3325_v32  ;;  %v24207_v36 = vpop.f32.mrf.mxu0  ;;  %24243 = vmatprep.mubr.msk.f32.mxu1 %vm418_vm3, %v2680_v24 }
 0x6da   :  { %24276 = vmatprep.subr.mxu1 %v26322_v22 }
 0x6db   :  { %v2832_v40 = vpop.f32.mrf.mxu1 }
 0x6dc   :  { %v2756_v44 = vpop.f32.mrf.mxu0 }
 0x6dd   :  { %24244 = vmatmul.mubr.msk.f32.gmra.mxu1 %vm418_vm3, %v2756_v44  ;;  %v24222_v45 = vpop.f32.mrf.mxu1 }
 0x6de   :  { %v24217_v46 = vpop.f32.mrf.mxu0  ;;  %24246 = vmatprep.mubr.msk.f32.mxu1 %vm418_vm3, %v2832_v40 }
 0x6df   :  { %v2984_v47 = vpop.f32.mrf.mxu1 }
 0x6e0   :  { %v2908_v48 = vpop.f32.mrf.mxu0 }
 0x6e1   :  { %24247 = vmatmul.mubr.msk.f32.gmra.mxu1 %vm418_vm3, %v2908_v48  ;;  %v24232_v50 = vpop.f32.mrf.mxu1 }
 0x6e2   :  { %v24227_v53 = vpop.f32.mrf.mxu0  ;;  %24249 = vmatprep.mubr.msk.f32.mxu1 %vm418_vm3, %v2984_v47 }
 0x6e4   :  { %v3060_v54 = vpop.f32.mrf.mxu0 }
 0x6e5   :  { %24250 = vmatmul.mubr.msk.f32.gmra.mxu1 %vm418_vm3, %v3060_v54 }
 0x6e6   :  { %v24237_v55 = vpop.f32.mrf.mxu0  ;;  %24268 = vmatprep.mubr.msk.f32.mxu1 %vm26323_vm2, %v26322_v22 }
 0x6e8   :  { %v26905_v56 = vpop.f32.mrf.mxu0 }
 0x6e9   :  { %24269 = vmatmul.mubr.msk.f32.vlgmr.msra.gmra.mxu1 %vm418_vm3, %v3323_v35 }
 0x6ea   :  { %24277 = vmatpush3.xpose.msk.msra.mxu1 %vm418_vm3, %v3481_v23  ;;  %v26909_v59 = vpop.f32.mrf.mxu0  ;;  %24278 = vmatprep.mubr.msk.f32.mxu1 %vm26323_vm2, %v26322_v22 }
 0x6eb   :  { %24286 = vmatprep.subr.mxu1 %v26322_v22 }
 0x6ec   :  { %v26914_v60 = vpop.f32.mrf.mxu0 }
 0x6ed   :  { %24279 = vmatmul.mubr.msk.f32.vlgmr.msra.gmra.mxu1 %vm418_vm3, %v3479_v41 }
 0x6ee   :  { %24287 = vmatpush3.xpose.msk.msra.mxu1 %vm418_vm3, %v3637_v52  ;;  %v26918_v51 = vpop.f32.mrf.mxu0  ;;  %24288 = vmatprep.mubr.msk.f32.mxu1 %vm26323_vm2, %v26322_v22 }
 0x6ef   :  { %24296 = vmatprep.subr.mxu1 %v26322_v22 }
 0x6f0   :  { %v26923_v61 = vpop.f32.mrf.mxu0 }
 0x6f1   :  { %24289 = vmatmul.mubr.msk.f32.vlgmr.msra.gmra.mxu1 %vm418_vm3, %v3635_v43 }
 0x6f2   :  { %24297 = vmatpush3.xpose.msk.msra.mxu1 %vm418_vm3, %v3793_v49  ;;  %v26927_v62 = vpop.f32.mrf.mxu0  ;;  %24298 = vmatprep.mubr.msk.f32.mxu1 %vm26323_vm2, %v26322_v22 }
 0x6f3   :  { %24306 = vmatprep.subr.mxu1 %v26322_v22 }
 0x6f4   :  { %v26932_v58 = vpop.f32.mrf.mxu0 }
 0x6f5   :  { %24299 = vmatmul.mubr.msk.f32.vlgmr.msra.gmra.mxu1 %vm418_vm3, %v3791_v57 }
 0x6f6   :  { %v26935_v63 = vpop.f32.mrf.mxu0  ;;  %24308 = vmatprep.mubr.msk.f32.mxu1 %vm26323_vm2, %v26322_v22 }
 0x6f8   :  { %v3474_v0 = vpop.f32.mrf.mxu0 }
 0x6f9   :  { %v3947_v1 = vmul.f32 0.35355338, %v3474_v0 }
 0x6fa   :  { %v24275_v2 = vpop.f32.mrf.mxu0 }
 0x6fb   :  { %v3957_v3 = vsel %vm418_vm3, %v3947_v1, -inf }
 0x6fc   :  { %3958 = vmax.xlane.f32.xlu1 %v3957_v3  ;;  %v3630_v4 = vpop.f32.mrf.mxu0 }
 0x6fd   :  { %v3949_v46 = vmul.f32 0.35355338, %v3630_v4 }
 0x6fe   :  { %v24285_v5 = vpop.f32.mrf.mxu0 }
 0x6ff   :  { %v3963_v54 = vsel %vm418_vm3, %v3949_v46, -inf }
 0x700   :  { %v3786_v6 = vpop.f32.mrf.mxu0 }
 0x701   :  { %v3951_v53 = vmul.f32 0.35355338, %v3786_v6 }
 0x702   :  { %v24295_v7 = vpop.f32.mrf.mxu0 }
 0x704   :  { %v3942_v8 = vpop.f32.mrf.mxu0 }
 0x705   :  { %v3953_v0 = vmul.f32 0.35355338, %v3942_v8 }
 0x706   :  { %v24305_v9 = vpop.f32.mrf.mxu0 }
 0x707   :  { %v3975_v3 = vsel %vm418_vm3, %v3953_v0, -inf }
 0x785   :  { %v3959_v35 = vpop.xlane.xlu1 %3958 }
 0x786   :  { %v3979_v23 = vsub.f32 %v3947_v1, %v3959_v35  ;;  %v3969_v1 = vsel %vm418_vm3, %v3951_v53, -inf }
 0x788   :  { %v3988_v36 = vmul.f32 1.442695, %v3979_v23 }
 0x78a   :  { %25808 = vpow2.f32 %v3988_v36 }
 0x797   :  { %v26963_v4 = vpop.eup %25808 }
 0x798   :  { %v26940_v10 = vpop.f32.mrf.mxu1  ;;  %v4005_v5 = vsel %vm418_vm3, %v26963_v4, 0.0 }
 0x79a   :  { %v26942_v12 = vpop.f32.mrf.mxu1 }
 0x79d   :  { %v26944_v13 = vpop.f32.mrf.mxu1 }
 0x79f   :  { %v26946_v25 = vpop.f32.mrf.mxu1 }
 0x7a1   :  { %v26948_v27 = vpop.f32.mrf.mxu1 }
 0x7a3   :  { %v26950_v32 = vpop.f32.mrf.mxu1 }
 0x7a5   :  { %v26952_v42 = vpop.f32.mrf.mxu1 }
 0x7a7   :  { %v26954_v11 = vpop.f32.mrf.mxu1 }
 0x7a9   :  { %v3396_v24 = vpop.f32.mrf.mxu1 }
 0x7aa   :  { %v3946_v28 = vmul.f32 0.35355338, %v3396_v24 }
 0x7ab   :  { %v24270_v31 = vpop.f32.mrf.mxu1 }
 0x7ac   :  { %v3954_v40 = vsel %vm418_vm3, %v3946_v28, -inf }
 0x7ad   :  { %3955 = vmax.xlane.f32.xlu0 %v3954_v40  ;;  %v3552_v41 = vpop.f32.mrf.mxu1 }
 0x7ae   :  { %v3948_v44 = vmul.f32 0.35355338, %v3552_v41 }
 0x7af   :  { %v24280_v45 = vpop.f32.mrf.mxu1 }
 0x7b0   :  { %v3960_v47 = vsel %vm418_vm3, %v3948_v44, -inf }
 0x7b1   :  { %3961 = vmax.xlane.f32.xlu0 %v3960_v47  ;;  %v3708_v48 = vpop.f32.mrf.mxu1 }
 0x7b2   :  { %v3950_v50 = vmul.f32 0.35355338, %v3708_v48 }
 0x7b3   :  { %v24290_v52 = vpop.f32.mrf.mxu1 }
 0x7b4   :  { %v3966_v55 = vsel %vm418_vm3, %v3950_v50, -inf }
 0x7b5   :  { %3964 = vmax.xlane.f32.xlu0 %v3963_v54  ;;  %3967 = vmax.xlane.f32.xlu1 %v3966_v55  ;;  %v3864_v43 = vpop.f32.mrf.mxu1 }
 0x7b6   :  { %v3952_v49 = vmul.f32 0.35355338, %v3864_v43 }
 0x7b7   :  { %v24300_v57 = vpop.f32.mrf.mxu1 }
 0x7b8   :  { %v3972_v2 = vsel %vm418_vm3, %v3952_v49, -inf }
 0x7b9   :  { %3970 = vmax.xlane.f32.xlu0 %v3969_v1  ;;  %3973 = vmax.xlane.f32.xlu1 %v3972_v2 }
 0x7bd   :  { %3976 = vmax.xlane.f32.xlu0 %v3975_v3 }
 0x7c1   :  { %4006 = vadd.xlane.f32.xlu0 %v4005_v5 }
 0x7ca   :  { %4042 = vrot.lane.b32.xlu1 %v26436_v26, %s30116_s29 }
 0x7ce   :  { %4194 = vrot.lane.b32.xlu1 %v26442_v30, %s30116_s29 }
 0x7d2   :  { %4270 = vrot.lane.b32.xlu1 %v26448_v33, %s30116_s29 }
 0x7d6   :  { %4422 = vrot.lane.b32.xlu1 %v26456_v37, %s30116_s29 }
 0x836   :  { %v3956_v6 = vpop.xlane.xlu0 %3955 }
 0x837   :  { %v3978_v7 = vsub.f32 %v3946_v28, %v3956_v6 }
 0x839   :  { %v3986_v8 = vmul.f32 1.442695, %v3978_v7 }
 0x83a   :  { %v3962_v9 = vpop.xlane.xlu0 %3961 }
 0x83b   :  { %25810 = vpow2.f32 %v3986_v8  ;;  %v3980_v35 = vsub.f32 %v3948_v44, %v3962_v9 }
 0x83d   :  { %v3990_v23 = vmul.f32 1.442695, %v3980_v35 }
 0x83e   :  { %v3968_v24 = vpop.xlane.xlu1 %3967  ;;  %v3965_v31 = vpop.xlane.xlu0 %3964 }
 0x83f   :  { %25812 = vpow2.f32 %v3990_v23  ;;  %v3982_v36 = vsub.f32 %v3950_v50, %v3968_v24  ;;  %v3981_v40 = vsub.f32 %v3949_v46, %v3965_v31 }
 0x841   :  { %v3994_v41 = vmul.f32 1.442695, %v3982_v36  ;;  %v3992_v45 = vmul.f32 1.442695, %v3981_v40 }
 0x842   :  { %v3974_v47 = vpop.xlane.xlu1 %3973  ;;  %v3971_v48 = vpop.xlane.xlu0 %3970 }
 0x843   :  { %25814 = vpow2.f32 %v3994_v41  ;;  %v3984_v52 = vsub.f32 %v3952_v49, %v3974_v47  ;;  %v3983_v54 = vsub.f32 %v3951_v53, %v3971_v48 }
 0x844   :  { %25816 = vpow2.f32 %v3992_v45 }
 0x845   :  { %v3998_v55 = vmul.f32 1.442695, %v3984_v52  ;;  %v3996_v28 = vmul.f32 1.442695, %v3983_v54 }
 0x846   :  { %v4043_v43 = vpop.permute.xlu1 %4042  ;;  %v3977_v57 = vpop.xlane.xlu0 %3976 }
 0x847   :  { %25818 = vpow2.f32 %v3998_v55  ;;  %v3985_v44 = vsub.f32 %v3953_v0, %v3977_v57  ;;  %24307 = vmatpush3.msra.mxu1 %v4043_v43 }
 0x848   :  { %v26975_v1 = vpop.eup %25810  ;;  %25820 = vpow2.f32 %v3996_v28  ;;  %24316 = vmatprep.subr.mxu1 %v26322_v22 }
 0x849   :  { %v4000_v46 = vmul.f32 1.442695, %v3985_v44  ;;  %v4002_v50 = vsel %vm418_vm3, %v26975_v1, 0.0 }
 0x84a   :  { %4003 = vadd.xlane.f32.xlu1 %v4002_v50  ;;  %v4195_v24 = vpop.permute.xlu1 %4194  ;;  %v4007_v41 = vpop.xlane.xlu0 %4006 }
 0x84b   :  { %25822 = vpow2.f32 %v4000_v46 }
 0x84c   :  { %v26980_v53 = vpop.eup %25812 }
 0x84d   :  { %v4008_v49 = vsel %vm418_vm3, %v26980_v53, 0.0 }
 0x84e   :  { %4009 = vadd.xlane.f32.xlu1 %v4008_v49  ;;  %v4271_v31 = vpop.permute.xlu1 %4270 }
 0x850   :  { %v26984_v2 = vpop.eup %25814 }
 0x851   :  { %v26986_v0 = vpop.eup %25816  ;;  %v4014_v3 = vsel %vm418_vm3, %v26984_v2, 0.0 }
 0x852   :  { %4015 = vadd.xlane.f32.xlu1 %v4014_v3  ;;  %v4011_v5 = vsel %vm418_vm3, %v26986_v0, 0.0  ;;  %v4423_v36 = vpop.permute.xlu1 %4422 }
 0x853   :  { %4012 = vadd.xlane.f32.xlu0 %v4011_v5 }
 0x854   :  { %v26992_v6 = vpop.eup %25818 }
 0x855   :  { %v26994_v7 = vpop.eup %25820  ;;  %v4020_v8 = vsel %vm418_vm3, %v26992_v6, 0.0 }
 0x856   :  { %4021 = vadd.xlane.f32.xlu1 %v4020_v8  ;;  %v4017_v9 = vsel %vm418_vm3, %v26994_v7, 0.0 }
 0x857   :  { %4018 = vadd.xlane.f32.xlu0 %v4017_v9 }
 0x858   :  { %v27000_v35 = vpop.eup %25822 }
 0x859   :  { %v4023_v23 = vsel %vm418_vm3, %v27000_v35, 0.0 }
 0x85b   :  { %4024 = vadd.xlane.f32.xlu0 %v4023_v23 }
 0x867   :  { %4574 = vrot.lane.b32.xlu1 %v26464_v39, %s30116_s29 }
 0x86b   :  { %4787 = vrot.lane.b32.xlu1 %v26436_v26, %s30114_s30 }
 0x86f   :  { %4865 = vrot.lane.b32.xlu1 %v26440_v29, %s30114_s30 }
 0x871   :  { %4118 = vrot.lane.b32.xlu0 %v26440_v29, %s30116_s29 }
 0x873   :  { %4943 = vrot.lane.b32.xlu1 %v26442_v30, %s30114_s30 }
 0x875   :  { %4346 = vrot.lane.b32.xlu0 %v26450_v34, %s30116_s29 }
 0x877   :  { %5021 = vrot.lane.b32.xlu1 %v26448_v33, %s30114_s30 }
 0x879   :  { %4498 = vrot.lane.b32.xlu0 %v26458_v38, %s30116_s29 }
 0x87b   :  { %5179 = vrot.lane.b32.xlu1 %v26456_v37, %s30112_s1 }
 0x87d   :  { %4789 = vrot.lane.b32.xlu0 %v26436_v26, %s30112_s1 }
 0x87f   :  { %5177 = vrot.lane.b32.xlu1 %v26456_v37, %s30114_s30 }
 0x881   :  { %4867 = vrot.lane.b32.xlu0 %v26440_v29, %s30112_s1 }
 0x883   :  { %5335 = vrot.lane.b32.xlu1 %v26464_v39, %s30112_s1 }
 0x885   :  { %4945 = vrot.lane.b32.xlu0 %v26442_v30, %s30112_s1 }
 0x887   :  { %5333 = vrot.lane.b32.xlu1 %v26464_v39, %s30114_s30 }
 0x889   :  { %5023 = vrot.lane.b32.xlu0 %v26448_v33, %s30112_s1 }
 0x88d   :  { %5101 = vrot.lane.b32.xlu0 %v26450_v34, %s30112_s1 }
 0x891   :  { %5099 = vrot.lane.b32.xlu0 %v26450_v34, %s30114_s30 }
 0x895   :  { %5257 = vrot.lane.b32.xlu0 %v26458_v38, %s30112_s1 }
 0x899   :  { %5255 = vrot.lane.b32.xlu0 %v26458_v38, %s30114_s30 }
 0x8d3   :  { %v4004_v40 = vpop.xlane.xlu1 %4003 }
 0x8d4   :  { %25824 = vrcp.f32 %v4004_v40 }
 0x8d5   :  { %25826 = vrcp.f32 %v4007_v41 }
 0x8d7   :  { %v4010_v45 = vpop.xlane.xlu1 %4009 }
 0x8d8   :  { %25828 = vrcp.f32 %v4010_v45 }
 0x8db   :  { %v4016_v47 = vpop.xlane.xlu1 %4015 }
 0x8dc   :  { %25830 = vrcp.f32 %v4016_v47  ;;  %v4013_v48 = vpop.xlane.xlu0 %4012 }
 0x8dd   :  { %25832 = vrcp.f32 %v4013_v48 }
 0x8df   :  { %v4022_v52 = vpop.xlane.xlu1 %4021 }
 0x8e0   :  { %25834 = vrcp.f32 %v4022_v52  ;;  %v4019_v54 = vpop.xlane.xlu0 %4018 }
 0x8e1   :  { %v25825_v55 = vpop.eup %25824  ;;  %25836 = vrcp.f32 %v4019_v54 }
 0x8e2   :  { %v4034_v28 = vmul.f32 %v25825_v55, %v26975_v1  ;;  %v25827_v57 = vpop.eup %25826 }
 0x8e3   :  { %v4575_v43 = vpop.permute.xlu1 %4574  ;;  %v4035_v1 = vmul.f32 %v25827_v57, %v26963_v4 }
 0x8e4   :  { %v4025_v44 = vpop.xlane.xlu0 %4024  ;;  %24309 = vmatmul.mubr.msk.f32.vlgmr.msra.gmra.mxu1 %vm418_vm3, %v4034_v28 }
 0x8e5   :  { %v25829_v46 = vpop.eup %25828  ;;  %25838 = vrcp.f32 %v4025_v44  ;;  %24317 = vmatpush3.msra.mxu1 %v4195_v24  ;;  %24318 = vmatprep.mubr.msk.f32.mxu1 %vm26323_vm2, %v26322_v22 }
 0x8e6   :  { %v4036_v50 = vmul.f32 %v25829_v46, %v26980_v53  ;;  %24326 = vmatprep.subr.mxu1 %v26322_v22 }
 0x8e7   :  { %v4788_v49 = vpop.permute.xlu1 %4787 }
 0x8e8   :  { %v4119_v3 = vpop.permute.xlu0 %4118  ;;  %24319 = vmatmul.mubr.msk.f32.vlgmr.msra.gmra.mxu1 %vm418_vm3, %v4036_v50 }
 0x8e9   :  { %v25831_v5 = vpop.eup %25830  ;;  %24312 = vmatpush3.msra.mxu0 %v4119_v3  ;;  %24328 = vmatprep.mubr.msk.f32.mxu1 %vm26323_vm2, %v26322_v22 }
 0x8ea   :  { %v25833_v8 = vpop.eup %25832  ;;  %24314 = vmatmul.mubr.msk.f32.vlgmr.msra.gmra.mxu0 %vm418_vm3, %v4035_v1  ;;  %24321 = vmatprep.subr.mxu0 %v26322_v22  ;;  %v4038_v53 = vmul.f32 %v25831_v5, %v26984_v2 }
 0x8eb   :  { %24322 = vmatpush3.msra.mxu0 %v4271_v31  ;;  %v4866_v9 = vpop.permute.xlu1 %4865  ;;  %24323 = vmatprep.mubr.msk.f32.mxu0 %vm26323_vm2, %v26322_v22  ;;  %v4037_v23 = vmul.f32 %v25833_v8, %v26986_v0 }
 0x8ec   :  { %v4347_v4 = vpop.permute.xlu0 %4346  ;;  %24331 = vmatprep.subr.mxu0 %v26322_v22 }
 0x8ed   :  { %v25835_v24 = vpop.eup %25834  ;;  %24327 = vmatpush3.msra.mxu1 %v4347_v4 }
 0x8ee   :  { %v25837_v40 = vpop.eup %25836  ;;  %24324 = vmatmul.mubr.msk.f32.vlgmr.msra.gmra.mxu0 %vm418_vm3, %v4037_v23  ;;  %24329 = vmatmul.mubr.msk.f32.vlgmr.msra.gmra.mxu1 %vm418_vm3, %v4038_v53  ;;  %v4040_v41 = vmul.f32 %v25835_v24, %v26992_v6 }
 0x8ef   :  { %24332 = vmatpush3.msra.mxu0 %v4423_v36  ;;  %v4944_v2 = vpop.permute.xlu1 %4943  ;;  %24336 = vmatprep.subr.mxu1 %v26322_v22  ;;  %v4039_v31 = vmul.f32 %v25837_v40, %v26994_v7 }
 0x8f0   :  { %v4499_v45 = vpop.permute.xlu0 %4498  ;;  %24333 = vmatprep.mubr.msk.f32.mxu0 %vm26323_vm2, %v26322_v22  ;;  %24338 = vmatprep.mubr.msk.f32.mxu1 %vm26323_vm2, %v26322_v22 }
 0x8f1   :  { %24337 = vmatpush3.msra.mxu1 %v4499_v45  ;;  %24341 = vmatprep.subr.mxu0 %v26322_v22 }
 0x8f2   :  { %v25839_v0 = vpop.eup %25838  ;;  %24334 = vmatmul.mubr.msk.f32.vlgmr.msra.gmra.mxu0 %vm418_vm3, %v4039_v31  ;;  %24339 = vmatmul.mubr.msk.f32.vlgmr.msra.gmra.mxu1 %vm418_vm3, %v4040_v41 }
 0x8f3   :  { %24342 = vmatpush3.msra.mxu0 %v4575_v43  ;;  %24343 = vmatprep.mubr.msk.f32.mxu0 %vm26323_vm2, %v26322_v22  ;;  %v4041_v6 = vmul.f32 %v25839_v0, %v27000_v35  ;;  %v5022_v36 = vpop.permute.xlu1 %5021  ;;  %v413_v43 = vld [vmem:[%s26826_s28 + $0x10] sm:$0xff] }
 0x8f4   :  { %v4790_v7 = vpop.permute.xlu0 %4789  ;;  %24360 = vmatprep.subr.mxu0 %v26322_v22  ;;  %24346 = vmatprep.subr.mxu1 %v413_v43 }
 0x8f5   :  { %24347 = vmatpush3.msra.mxu1 %v413_v43 }
 0x8f6   :  { %24344 = vmatmul.mubr.msk.f32.vlgmr.msra.gmra.mxu0 %vm418_vm3, %v4041_v6  ;;  %24380 = vmatprep.subr.mxu1 %v26322_v22 }
 0x8f7   :  { %24361 = vmatpush3.xpose.msk.msra.mxu0 %vm418_vm3, %v4790_v7  ;;  %24362 = vmatprep.mubr.msk.f32.mxu0 %vm26323_vm2, %v26322_v22  ;;  %v5180_v48 = vpop.permute.xlu1 %5179 }
 0x8f8   :  { %v4868_v47 = vpop.permute.xlu0 %4867  ;;  %24365 = vmatprep.subr.mxu0 %v26322_v22 }
 0x8fa   :  { %24363 = vmatmul.mubr.msk.f32.vlgmr.msra.gmra.mxu0 %vm418_vm3, %v4788_v49 }
 0x8fb   :  { %24366 = vmatpush3.xpose.msk.msra.mxu0 %vm418_vm3, %v4868_v47  ;;  %24367 = vmatprep.mubr.msk.f32.mxu0 %vm26323_vm2, %v26322_v22  ;;  %v5178_v54 = vpop.permute.xlu1 %5177 }
 0x8fc   :  { %v4946_v35 = vpop.permute.xlu0 %4945  ;;  %24370 = vmatprep.subr.mxu0 %v26322_v22 }
 0x8fe   :  { %24368 = vmatmul.mubr.msk.f32.vlgmr.msra.gmra.mxu0 %vm418_vm3, %v4866_v9 }
 0x8ff   :  { %24371 = vmatpush3.xpose.msk.msra.mxu0 %vm418_vm3, %v4946_v35  ;;  %24372 = vmatprep.mubr.msk.f32.mxu0 %vm26323_vm2, %v26322_v22  ;;  %v5336_v55 = vpop.permute.xlu1 %5335 }
 0x900   :  { %v5024_v52 = vpop.permute.xlu0 %5023  ;;  %24375 = vmatprep.subr.mxu0 %v26322_v22 }
 0x902   :  { %24373 = vmatmul.mubr.msk.f32.vlgmr.msra.gmra.mxu0 %vm418_vm3, %v4944_v2 }
 0x903   :  { %24376 = vmatpush3.xpose.msk.msra.mxu0 %vm418_vm3, %v5024_v52  ;;  %24377 = vmatprep.mubr.msk.f32.mxu0 %vm26323_vm2, %v26322_v22  ;;  %v5334_v28 = vpop.permute.xlu1 %5333 }
 0x904   :  { %24385 = vmatprep.subr.mxu0 %v26322_v22  ;;  %v5102_v3 = vpop.permute.xlu0 %5101 }
 0x906   :  { %24378 = vmatmul.mubr.msk.f32.vlgmr.msra.gmra.mxu0 %vm418_vm3, %v5022_v36 }
 0x907   :  { %24386 = vmatpush3.xpose.msk.msra.mxu0 %vm418_vm3, %v5180_v48  ;;  %24387 = vmatprep.mubr.msk.f32.mxu0 %vm26323_vm2, %v26322_v22 }
 0x908   :  { %24395 = vmatprep.subr.mxu0 %v26322_v22  ;;  %v5100_v23 = vpop.permute.xlu0 %5099 }
 0x90a   :  { %24388 = vmatmul.mubr.msk.f32.vlgmr.msra.gmra.mxu0 %vm418_vm3, %v5178_v54 }
 0x90b   :  { %24396 = vmatpush3.xpose.msk.msra.mxu0 %vm418_vm3, %v5336_v55  ;;  %24397 = vmatprep.mubr.msk.f32.mxu0 %vm26323_vm2, %v26322_v22 }
 0x90c   :  { %24405 = vmatprep.subr.mxu0 %v26322_v22  ;;  %v5258_v31 = vpop.permute.xlu0 %5257 }
 0x90e   :  { %24398 = vmatmul.mubr.msk.f32.vlgmr.msra.gmra.mxu0 %vm418_vm3, %v5334_v28 }
 0x90f   :  { %24407 = vmatprep.mubr.msk.f32.mxu0 %vm26323_vm2, %v26322_v22 }
 0x910   :  { %v5256_v47 = vpop.permute.xlu0 %5255 }
 0x9a4   :  { %v4114_v57 = vpop.f32.mrf.mxu1 }
 0x9a5   :  { %24348 = vmatprep.mubr.msk.f32.mxu1 %vm418_vm3, %v4114_v57 }
 0x9a6   :  { %v24310_v44 = vpop.f32.mrf.mxu1 }
 0x9a8   :  { %v4266_v46 = vpop.f32.mrf.mxu1 }
 0x9aa   :  { %v4190_v50 = vpop.f32.mrf.mxu0  ;;  %v24320_v49 = vpop.f32.mrf.mxu1 }
 0x9ab   :  { %24349 = vmatmul.mubr.msk.f32.vlgmr.msra.gmra.mxu1 %vm418_vm3, %v4190_v50 }
 0x9ac   :  { %24381 = vmatpush3.xpose.msk.msra.mxu1 %vm418_vm3, %v5102_v3  ;;  %v24315_v1 = vpop.f32.mrf.mxu0  ;;  %24351 = vmatprep.mubr.msk.f32.mxu1 %vm418_vm3, %v4266_v46 }
 0x9ad   :  { %24390 = vmatprep.subr.mxu1 %v26322_v22 }
 0x9ae   :  { %v4342_v5 = vpop.f32.mrf.mxu0  ;;  %v4418_v8 = vpop.f32.mrf.mxu1 }
 0x9af   :  { %24352 = vmatmul.mubr.msk.f32.gmra.mxu1 %vm418_vm3, %v4342_v5 }
 0x9b0   :  { %v24325_v53 = vpop.f32.mrf.mxu0  ;;  %v24330_v9 = vpop.f32.mrf.mxu1  ;;  %24354 = vmatprep.mubr.msk.f32.mxu1 %vm418_vm3, %v4418_v8 }
 0x9b2   :  { %v4494_v4 = vpop.f32.mrf.mxu0  ;;  %v4570_v24 = vpop.f32.mrf.mxu1 }
 0x9b3   :  { %24355 = vmatmul.mubr.msk.f32.gmra.mxu1 %vm418_vm3, %v4494_v4 }
 0x9b4   :  { %v24335_v40 = vpop.f32.mrf.mxu0  ;;  %v24340_v41 = vpop.f32.mrf.mxu1  ;;  %24357 = vmatprep.mubr.msk.f32.mxu1 %vm418_vm3, %v4570_v24 }
 0x9b6   :  { %v4646_v2 = vpop.f32.mrf.mxu0 }
 0x9b7   :  { %24358 = vmatmul.mubr.msk.f32.gmra.mxu1 %vm418_vm3, %v4646_v2 }
 0x9b8   :  { %v24345_v45 = vpop.f32.mrf.mxu0  ;;  %24382 = vmatprep.mubr.msk.f32.mxu1 %vm26323_vm2, %v26322_v22 }
 0x9ba   :  { %v4861_v0 = vpop.f32.mrf.mxu0 }
 0x9bb   :  { %v27124_v6 = vmul.f32 0.35355338, %v4861_v0  ;;  %24383 = vmatmul.mubr.msk.f32.vlgmr.msra.gmra.mxu1 %vm418_vm3, %v5100_v23 }
 0x9bc   :  { %24391 = vmatpush3.xpose.msk.msra.mxu1 %vm418_vm3, %v5258_v31  ;;  %v24364_v7 = vpop.f32.mrf.mxu0  ;;  %24392 = vmatprep.mubr.msk.f32.mxu1 %vm26323_vm2, %v26322_v22 }
 0x9bd   :  { %v5419_v36 = vsel %vm418_vm3, %v27124_v6, -inf  ;;  %24400 = vmatprep.subr.mxu1 %v26322_v22 }
 0x9be   :  { %5420 = vmax.xlane.f32.xlu0 %v5419_v36  ;;  %v4939_v48 = vpop.f32.mrf.mxu0 }
 0x9bf   :  { %v5412_v35 = vmul.f32 0.35355338, %v4939_v48  ;;  %24393 = vmatmul.mubr.msk.f32.vlgmr.msra.gmra.mxu1 %vm418_vm3, %v5256_v47 }
 0x9c0   :  { %v24369_v52 = vpop.f32.mrf.mxu0  ;;  %24402 = vmatprep.mubr.msk.f32.mxu1 %vm26323_vm2, %v26322_v22 }
 0x9c1   :  { %v5422_v54 = vsel %vm418_vm3, %v5412_v35, -inf }
 0x9c2   :  { %5423 = vmax.xlane.f32.xlu1 %v5422_v54  ;;  %v5017_v55 = vpop.f32.mrf.mxu0 }
 0x9c3   :  { %v27137_v28 = vmul.f32 0.35355338, %v5017_v55 }
 0x9c4   :  { %v24374_v43 = vpop.f32.mrf.mxu0 }
 0x9c5   :  { %v5425_v57 = vsel %vm418_vm3, %v27137_v28, -inf }
 0x9c6   :  { %5426 = vmax.xlane.f32.xlu0 %v5425_v57  ;;  %v5095_v44 = vpop.f32.mrf.mxu0 }
 0x9c7   :  { %v5414_v46 = vmul.f32 0.35355338, %v5095_v44 }
 0x9c8   :  { %v24379_v50 = vpop.f32.mrf.mxu0 }
 0x9c9   :  { %v5428_v49 = vsel %vm418_vm3, %v5414_v46, -inf  ;;  %v3289_v50 = vadd.f32 %v26905_v56, %v26940_v10 }
 0x9ca   :  { %5429 = vmax.xlane.f32.xlu0 %v5428_v49  ;;  %v5251_v3 = vpop.f32.mrf.mxu0 }
 0x9cb   :  { %v5416_v1 = vmul.f32 0.35355338, %v5251_v3 }
 0x9cc   :  { %v24389_v5 = vpop.f32.mrf.mxu0 }
 0x9cd   :  { %v5434_v8 = vsel %vm418_vm3, %v5416_v1, -inf }
 0x9ce   :  { %5435 = vmax.xlane.f32.xlu0 %v5434_v8  ;;  %v5407_v53 = vpop.f32.mrf.mxu0 }
 0x9cf   :  { %v5418_v9 = vmul.f32 0.35355338, %v5407_v53  ;;  %v3299_v53 = vadd.f32 %v26914_v60, %v26944_v13  ;;  %v3319_v13 = vadd.f32 %v26932_v58, %v26952_v42 }
 0x9d0   :  { %v24399_v23 = vpop.f32.mrf.mxu0 }
 0x9d1   :  { %v5440_v4 = vsel %vm418_vm3, %v5418_v9, -inf }
 0x9d2   :  { %5441 = vmax.xlane.f32.xlu0 %v5440_v4 }
 0xa47   :  { %v5421_v24 = vpop.xlane.xlu0 %5420 }
 0xa4b   :  { %v5424_v40 = vpop.xlane.xlu1 %5423 }
 0xa4c   :  { %v5444_v41 = vsub.f32 %v5412_v35, %v5424_v40  ;;  %v3309_v40 = vadd.f32 %v26923_v61, %v26948_v27 }
 0xa4e   :  { %v5453_v2 = vmul.f32 1.442695, %v5444_v41 }
 0xa4f   :  { %v5427_v31 = vpop.xlane.xlu0 %5426 }
 0xa50   :  { %25840 = vpow2.f32 %v5453_v2  ;;  %v5445_v2 = vsub.f32 %v27137_v28, %v5427_v31 }
 0xa53   :  { %v5430_v45 = vpop.xlane.xlu0 %5429 }
 0xa54   :  { %v5446_v0 = vsub.f32 %v5414_v46, %v5430_v45 }
 0xa56   :  { %v5457_v7 = vmul.f32 1.442695, %v5446_v0 }
 0xa57   :  { %v5436_v36 = vpop.xlane.xlu0 %5435 }
 0xa58   :  { %25842 = vpow2.f32 %v5457_v7  ;;  %v5448_v47 = vsub.f32 %v5416_v1, %v5436_v36 }
 0xa5a   :  { %v5461_v48 = vmul.f32 1.442695, %v5448_v47 }
 0xa5b   :  { %v5442_v52 = vpop.xlane.xlu0 %5441 }
 0xa5c   :  { %25844 = vpow2.f32 %v5461_v48  ;;  %v5450_v54 = vsub.f32 %v5418_v9, %v5442_v52  ;;  %v5443_v9 = vsub.f32 %v27124_v6, %v5421_v24  ;;  %v5455_v6 = vmul.f32 1.442695, %v5445_v2 }
 0xa5d   :  { %v27144_v55 = vpop.eup %25840 }
 0xa5e   :  { %v5465_v43 = vmul.f32 1.442695, %v5450_v54  ;;  %v5470_v57 = vsel %vm418_vm3, %v27144_v55, 0.0  ;;  %v5451_v41 = vmul.f32 1.442695, %v5443_v9 }
 0xa5f   :  { %5471 = vadd.xlane.f32.xlu0 %v5470_v57 }
 0xa60   :  { %25846 = vpow2.f32 %v5465_v43 }
 0xa61   :  { %25848 = vpow2.f32 %v5451_v41 }
 0xa62   :  { %25850 = vpow2.f32 %v5455_v6 }
 0xa65   :  { %v27148_v35 = vpop.eup %25842 }
 0xa66   :  { %v5476_v44 = vsel %vm418_vm3, %v27148_v35, 0.0 }
 0xa67   :  { %5477 = vadd.xlane.f32.xlu0 %v5476_v44 }
 0xa69   :  { %v27152_v46 = vpop.eup %25844 }
 0xa6a   :  { %v5482_v49 = vsel %vm418_vm3, %v27152_v46, 0.0 }
 0xa6b   :  { %v24350_v3 = vpop.f32.mrf.mxu1  ;;  %5483 = vadd.xlane.f32.xlu0 %v5482_v49 }
 0xa6c   :  { %v27158_v1 = vadd.f32 %v24350_v3, %v3289_v50 }
 0xa6d   :  { %v27160_v5 = vpop.eup %25846  ;;  %v27162_v8 = vpop.f32.mrf.mxu1 }
 0xa6e   :  { %v5488_v23 = vsel %vm418_vm3, %v27160_v5, 0.0  ;;  %v25849_v58 = vpop.eup %25848 }
 0xa6f   :  { %v24353_v56 = vpop.f32.mrf.mxu1  ;;  %5489 = vadd.xlane.f32.xlu0 %v5488_v23  ;;  %v5467_v42 = vsel %vm418_vm3, %v25849_v58, 0.0  ;;  %v25851_v43 = vpop.eup %25850 }
 0xa70   :  { %v27169_v10 = vadd.f32 %v24353_v56, %v3299_v53  ;;  %v5473_v57 = vsel %vm418_vm3, %v25851_v43, 0.0 }
 0xa71   :  { %v27171_v4 = vpop.f32.mrf.mxu1 }
 0xa73   :  { %v24356_v45 = vpop.f32.mrf.mxu1 }
 0xa74   :  { %v27176_v0 = vadd.f32 %v24356_v45, %v3309_v40 }
 0xa75   :  { %v27178_v60 = vpop.f32.mrf.mxu1 }
 0xa77   :  { %v24359_v24 = vpop.f32.mrf.mxu1 }
 0xa78   :  { %v27182_v7 = vadd.f32 %v24359_v24, %v3319_v13 }
 0xa79   :  { %v27184_v36 = vpop.f32.mrf.mxu1 }
 0xa7b   :  { %v5173_v61 = vpop.f32.mrf.mxu1 }
 0xa7c   :  { %v5415_v27 = vmul.f32 0.35355338, %v5173_v61 }
 0xa7d   :  { %v24384_v47 = vpop.f32.mrf.mxu1 }
 0xa7e   :  { %v5431_v28 = vsel %vm418_vm3, %v5415_v27, -inf }
 0xa7f   :  { %5432 = vmax.xlane.f32.xlu1 %v5431_v28  ;;  %v5329_v31 = vpop.f32.mrf.mxu1 }
 0xa80   :  { %v5417_v48 = vmul.f32 0.35355338, %v5329_v31 }
 0xa81   :  { %v24394_v52 = vpop.f32.mrf.mxu1 }
 0xa82   :  { %v5437_v54 = vsel %vm418_vm3, %v5417_v48, -inf }
 0xa83   :  { %5438 = vmax.xlane.f32.xlu1 %v5437_v54 }
 0xa85   :  { %5583 = vrot.lane.b32.xlu0 %v26440_v29, %s30110_s2 }
 0xa87   :  { %5468 = vadd.xlane.f32.xlu1 %v5467_v42 }
 0xa89   :  { %5811 = vrot.lane.b32.xlu0 %v26450_v34, %s30110_s2 }
 0xa8b   :  { %5474 = vadd.xlane.f32.xlu1 %v5473_v57 }
 0xa8d   :  { %5963 = vrot.lane.b32.xlu0 %v26458_v38, %s30110_s2 }
 0xa9c   :  { %5507 = vrot.lane.b32.xlu1 %v26436_v26, %s30110_s2 }
 0xaa0   :  { %5659 = vrot.lane.b32.xlu1 %v26442_v30, %s30110_s2 }
 0xaa4   :  { %5735 = vrot.lane.b32.xlu1 %v26448_v33, %s30110_s2 }
 0xaa8   :  { %5887 = vrot.lane.b32.xlu1 %v26456_v37, %s30110_s2 }
 0xae8   :  { %v5472_v29 = vpop.xlane.xlu0 %5471 }
 0xae9   :  { %25852 = vrcp.f32 %v5472_v29 }
 0xaf0   :  { %v5478_v34 = vpop.xlane.xlu0 %5477 }
 0xaf4   :  { %v5484_v44 = vpop.xlane.xlu0 %5483 }
 0xaf6   :  { %v25853_v49 = vpop.eup %25852 }
 0xaf7   :  { %v5500_v38 = vmul.f32 %v25853_v49, %v27144_v55 }
 0xaf8   :  { %v5490_v50 = vpop.xlane.xlu0 %5489 }
 0xafc   :  { %v5584_v3 = vpop.permute.xlu0 %5583 }
 0xafd   :  { %24406 = vmatpush3.msra.mxu0 %v5584_v3 }
 0xafe   :  { %24408 = vmatmul.mubr.msk.f32.vlgmr.msra.gmra.mxu0 %vm418_vm3, %v5500_v38  ;;  %24415 = vmatprep.subr.mxu0 %v26322_v22 }
 0xaff   :  { %24417 = vmatprep.mubr.msk.f32.mxu0 %vm26323_vm2, %v26322_v22 }
 0xb08   :  { %v5433_v26 = vpop.xlane.xlu1 %5432 }
 0xb09   :  { %v5447_v30 = vsub.f32 %v5415_v27, %v5433_v26 }
 0xb0b   :  { %v5459_v33 = vmul.f32 1.442695, %v5447_v30 }
 0xb0c   :  { %v5439_v37 = vpop.xlane.xlu1 %5438 }
 0xb0d   :  { %25854 = vpow2.f32 %v5459_v33  ;;  %v5449_v53 = vsub.f32 %v5417_v48, %v5439_v37 }
 0xb0e   :  { %25856 = vrcp.f32 %v5478_v34 }
 0xb0f   :  { %v5463_v9 = vmul.f32 1.442695, %v5449_v53 }
 0xb10   :  { %v5469_v23 = vpop.xlane.xlu1 %5468 }
 0xb11   :  { %25858 = vpow2.f32 %v5463_v9 }
 0xb12   :  { %25860 = vrcp.f32 %v5469_v23 }
 0xb13   :  { %25862 = vrcp.f32 %v5484_v44  ;;  %v414_v44 = vld [vmem:[%s26826_s28 + $0x18] sm:$0xff] }
 0xb14   :  { %v5475_v55 = vpop.xlane.xlu1 %5474 }
 0xb15   :  { %25864 = vrcp.f32 %v5475_v55  ;;  %v6270_v55 = vld [vmem:[%s27246_s6 + $0x18] sm:$0xff] }
 0xb16   :  { %25866 = vrcp.f32 %v5490_v50 }
 0xb18   :  { %v5508_v56 = vpop.permute.xlu1 %5507 }
 0xb19   :  { %24401 = vmatpush3.msra.mxu1 %v5508_v56  ;;  %v6269_v56 = vld [vmem:[%s27246_s6 + $0x10] sm:$0xff] }
 0xb1a   :  { %v25855_v40 = vpop.eup %25854  ;;  %24410 = vmatprep.subr.mxu1 %v26322_v22 }
 0xb1b   :  { %v5479_v41 = vsel %vm418_vm3, %v25855_v40, 0.0  ;;  %v25857_v45 = vpop.eup %25856 }
 0xb1c   :  { %5480 = vadd.xlane.f32.xlu1 %v5479_v41  ;;  %v5660_v2 = vpop.permute.xlu1 %5659  ;;  %v5502_v47 = vmul.f32 %v25857_v45, %v27148_v35  ;;  %v5812_v35 = vpop.permute.xlu0 %5811  ;;  %v6267_v41 = vld [vmem:[%s27246_s6] sm:$0xff] }
 0xb1e   :  { %v25859_v13 = vpop.eup %25858 }
 0xb1f   :  { %v25861_v6 = vpop.eup %25860  ;;  %v5485_v24 = vsel %vm418_vm3, %v25859_v13, 0.0 }
 0xb20   :  { %5486 = vadd.xlane.f32.xlu1 %v5485_v24  ;;  %v5736_v61 = vpop.permute.xlu1 %5735  ;;  %v5499_v27 = vmul.f32 %v25861_v6, %v25849_v58  ;;  %v25863_v28 = vpop.eup %25862 }
 0xb21   :  { %24416 = vmatpush3.msra.mxu0 %v5736_v61  ;;  %v5504_v54 = vmul.f32 %v25863_v28, %v27152_v46  ;;  %v5964_v49 = vpop.permute.xlu0 %5963 }
 0xb22   :  { %v25865_v31 = vpop.eup %25864  ;;  %24403 = vmatmul.mubr.msk.f32.vlgmr.msra.gmra.mxu1 %vm418_vm3, %v5499_v27  ;;  %24418 = vmatmul.mubr.msk.f32.vlgmr.msra.gmra.mxu0 %vm418_vm3, %v5502_v47  ;;  %v3284_v27 = vadd.f32 %v26909_v59, %v26942_v12 }
 0xb23   :  { %24411 = vmatpush3.msra.mxu1 %v5660_v2  ;;  %24412 = vmatprep.mubr.msk.f32.mxu1 %vm26323_vm2, %v26322_v22  ;;  %v5501_v48 = vmul.f32 %v25865_v31, %v25851_v43  ;;  %v25867_v42 = vpop.eup %25866 }
 0xb24   :  { %24420 = vmatprep.subr.mxu1 %v26322_v22  ;;  %v5888_v52 = vpop.permute.xlu1 %5887  ;;  %24425 = vmatprep.subr.mxu0 %v26322_v22  ;;  %v5506_v57 = vmul.f32 %v25867_v42, %v27160_v5  ;;  %v4779_v28 = vadd.f32 %v27162_v8, %v3284_v27  ;;  %v6420_v8 = vld [vmem:[%s27277_s15 + $0x28] sm:$0xff]  ;;  %v6578_v27 = vld [vmem:[%s27312_s7 + $0x10] sm:$0xff] }
 0xb25   :  { %24426 = vmatpush3.msra.mxu0 %v5888_v52  ;;  %24427 = vmatprep.mubr.msk.f32.mxu0 %vm26323_vm2, %v26322_v22  ;;  %v3294_v52 = vadd.f32 %v26918_v51, %v26946_v25  ;;  %v6422_v51 = vld [vmem:[%s27277_s15 + $0x38] sm:$0xff]  ;;  %v6421_v25 = vld [vmem:[%s27277_s15 + $0x30] sm:$0xff] }
 0xb26   :  { %24413 = vmatmul.mubr.msk.f32.vlgmr.msra.gmra.mxu1 %vm418_vm3, %v5501_v48  ;;  %24428 = vmatmul.mubr.msk.f32.vlgmr.msra.gmra.mxu0 %vm418_vm3, %v5504_v54  ;;  %v22609_v54 = vld [vmem:[%s27259_s10] ss:$0 sm:$0xff] }
 0xb27   :  { %24421 = vmatpush3.msra.mxu1 %v5812_v35  ;;  %24435 = vmatprep.subr.mxu0 %v26322_v22 }
 0xb28   :  { %24437 = vmatprep.mubr.msk.f32.mxu0 %vm26323_vm2, %v26322_v22  ;;  %24422 = vmatprep.mubr.msk.f32.mxu1 %vm26323_vm2, %v26322_v22 }
 0xb29   :  { %24430 = vmatprep.subr.mxu1 %v26322_v22 }
 0xb31   :  { %6039 = vrot.lane.b32.xlu1 %v26464_v39, %s30110_s2 }
 0xba5   :  { %v5481_v46 = vpop.xlane.xlu1 %5480 }
 0xba6   :  { %25868 = vrcp.f32 %v5481_v46 }
 0xba9   :  { %v5487_v58 = vpop.xlane.xlu1 %5486 }
 0xbaa   :  { %25870 = vrcp.f32 %v5487_v58  ;;  %v4781_v58 = vadd.f32 %v27171_v4, %v3294_v52  ;;  %v6418_v4 = vld [vmem:[%s27277_s15 + $0x18] sm:$0xff] }
 0xbad   :  { %v6040_v43 = vpop.permute.xlu1 %6039 }
 0xbae   :  { %24436 = vmatpush3.msra.mxu0 %v6040_v43 }
 0xbaf   :  { %24438 = vmatmul.mubr.msk.f32.vlgmr.msra.gmra.mxu0 %vm418_vm3, %v5506_v57  ;;  %24454 = vmatprep.subr.mxu0 %v6270_v55 }
 0xbb0   :  { %24455 = vmatpush3.msra.mxu0 %v6270_v55 }
 0xbb1   :  { %24456 = vmatprep.subr.mxu0 %v6269_v56 }
 0xbb2   :  { %24457 = vmatpush3.msra.mxu0 %v6269_v56 }
 0xbb3   :  { %v25869_v29 = vpop.eup %25868 }
 0xbb4   :  { %v5503_v34 = vmul.f32 %v25869_v29, %v25855_v40  ;;  %v6268_v40 = vld [vmem:[%s27246_s6 + $0x8] sm:$0xff] }
 0xbb5   :  { %24458 = vmatprep.subr.mxu0 %v6268_v40 }
 0xbb6   :  { %24423 = vmatmul.mubr.msk.f32.vlgmr.msra.gmra.mxu1 %vm418_vm3, %v5503_v34  ;;  %24459 = vmatpush3.msra.mxu0 %v6268_v40  ;;  %v6417_v34 = vld [vmem:[%s27277_s15 + $0x10] sm:$0xff] }
 0xbb7   :  { %v25871_v3 = vpop.eup %25870  ;;  %24431 = vmatpush3.msra.mxu1 %v5964_v49  ;;  %24432 = vmatprep.mubr.msk.f32.mxu1 %vm26323_vm2, %v26322_v22  ;;  %v6415_v49 = vld [vmem:[%s27277_s15] sm:$0xff] }
 0xbb8   :  { %v5505_v39 = vmul.f32 %v25871_v3, %v25859_v13  ;;  %24440 = vmatprep.subr.mxu1 %v414_v44  ;;  %24460 = vmatprep.subr.mxu0 %v6267_v41  ;;  %v3304_v3 = vadd.f32 %v26927_v62, %v26950_v32 }
 0xbb9   :  { %24461 = vmatpush3.msra.mxu0 %v6267_v41 }
 0xbba   :  { %24433 = vmatmul.mubr.msk.f32.vlgmr.msra.gmra.mxu1 %vm418_vm3, %v5505_v39 }
 0xbbb   :  { %24441 = vmatpush3.msra.mxu1 %v414_v44  ;;  %v6416_v44 = vld [vmem:[%s27277_s15 + $0x8] sm:$0xff] }
 0xbbc   :  { %24474 = vmatprep.subr.mxu1 %v6422_v51 }
 0xbbe   :  { %v5655_v5 = vpop.f32.mrf.mxu0 }
 0xbc0   :  { %v24409_v50 = vpop.f32.mrf.mxu0 }
 0xbe2   :  { %v5579_v38 = vpop.f32.mrf.mxu1  ;;  %v5807_v26 = vpop.f32.mrf.mxu0 }
 0xbe3   :  { %24442 = vmatprep.mubr.msk.f32.mxu1 %vm418_vm3, %v5579_v38 }
 0xbe4   :  { %v24404_v30 = vpop.f32.mrf.mxu1  ;;  %24443 = vmatmul.mubr.msk.f32.vlgmr.msra.gmra.mxu1 %vm418_vm3, %v5655_v5  ;;  %v24419_v33 = vpop.f32.mrf.mxu0  ;;  %v4783_v5 = vadd.f32 %v27178_v60, %v3304_v3 }
 0xbe5   :  { %24475 = vmatpush3.msra.mxu1 %v6422_v51 }
 0xbe6   :  { %v5731_v37 = vpop.f32.mrf.mxu1  ;;  %v5959_v53 = vpop.f32.mrf.mxu0  ;;  %24476 = vmatprep.subr.mxu1 %v6421_v25 }
 0xbe7   :  { %24445 = vmatprep.mubr.msk.f32.mxu1 %vm418_vm3, %v5731_v37  ;;  %24477 = vmatpush3.msra.mxu1 %v6421_v25  ;;  %v22627_v25 = vld [vmem:[%s27325_s12] ss:$0 sm:$0xff] }
 0xbe8   :  { %v24414_v9 = vpop.f32.mrf.mxu1  ;;  %24446 = vmatmul.mubr.msk.f32.gmra.mxu1 %vm418_vm3, %v5807_v26  ;;  %v24429_v23 = vpop.f32.mrf.mxu0  ;;  %24478 = vmatprep.subr.mxu1 %v6420_v8  ;;  %v3314_v26 = vadd.f32 %v26935_v63, %v26954_v11  ;;  %v22610_v63 = vld [vmem:[%s27302_s27] ss:$0 sm:$0xff] }
 0xbe9   :  { %24479 = vmatpush3.msra.mxu1 %v6420_v8 }
 0xbea   :  { %v4785_v37 = vadd.f32 %v27184_v36, %v3314_v26 }
 0xc6f   :  { %v6111_v2 = vpop.f32.mrf.mxu0 }
 0xc71   :  { %v24439_v45 = vpop.f32.mrf.mxu0 }
 0xc76   :  { %v5883_v13 = vpop.f32.mrf.mxu1 }
 0xc77   :  { %24448 = vmatprep.mubr.msk.f32.mxu1 %vm418_vm3, %v5883_v13 }
 0xc78   :  { %v24424_v6 = vpop.f32.mrf.mxu1  ;;  %24449 = vmatmul.mubr.msk.f32.gmra.mxu1 %vm418_vm3, %v5959_v53 }
 0xc7a   :  { %v6035_v24 = vpop.f32.mrf.mxu1 }
 0xc7b   :  { %24451 = vmatprep.mubr.msk.f32.mxu1 %vm418_vm3, %v6035_v24 }
 0xc7c   :  { %v24434_v61 = vpop.f32.mrf.mxu1  ;;  %24452 = vmatmul.mubr.msk.f32.gmra.mxu1 %vm418_vm3, %v6111_v2 }
 0xc7d   :  { %v6579_v61 = vld [vmem:[%s27312_s7 + $0x18] sm:$0xff] }
 0xc7e   :  { %24502 = vmatprep.subr.mxu0 %v6579_v61 }
 0xca4   :  { %v24444_v47 = vpop.f32.mrf.mxu1 }
 0xca5   :  { %v6245_v31 = vadd.f32 %v24444_v47, %v27158_v1  ;;  %v6577_v47 = vld [vmem:[%s27312_s7 + $0x8] sm:$0xff] }
 0xca6   :  { %v6205_v48 = vpop.f32.mrf.mxu1 }
 0xca7   :  { %v6244_v35 = vadd.f32 %v6205_v48, %v4779_v28  ;;  %v6260_v43 = vadd.f32 %v22609_v54, %v6245_v31  ;;  %v6576_v28 = vld [vmem:[%s27312_s7] sm:$0xff] }
 0xca8   :  { %v24447_v46 = vpop.f32.mrf.mxu1 }
 0xca9   :  { %v6259_v42 = vadd.f32 %v22609_v54, %v6244_v35  ;;  %v6247_v57 = vadd.f32 %v24447_v46, %v27169_v10  ;;  %v6419_v10 = vld [vmem:[%s27277_s15 + $0x20] sm:$0xff] }
 0xcaa   :  { %v6215_v29 = vpop.f32.mrf.mxu1  ;;  %24480 = vmatprep.subr.mxu1 %v6419_v10 }
 0xcab   :  { %v6246_v59 = vadd.f32 %v6215_v29, %v4781_v58  ;;  %24462 = vmatprep.mubr.msk.f32.mxu0 %vm281_vm1, %v6259_v42  ;;  %v6262_v1 = vadd.f32 %v22609_v54, %v6247_v57  ;;  %24481 = vmatpush3.msra.mxu1 %v6419_v10 }
 0xcac   :  { %24463 = vmatmul.mubr.msk.f32.vlgmr.msra.gmra.mxu0 %vm281_vm1, %v6260_v43  ;;  %24482 = vmatprep.subr.mxu1 %v6418_v4 }
 0xcad   :  { %v6261_v12 = vadd.f32 %v22609_v54, %v6246_v59  ;;  %24483 = vmatpush3.msra.mxu1 %v6418_v4  ;;  %24503 = vmatpush3.msra.mxu0 %v6579_v61 }
 0xcae   :  { %24484 = vmatprep.subr.mxu1 %v6417_v34  ;;  %24504 = vmatprep.subr.mxu0 %v6578_v27 }
 0xcaf   :  { %24465 = vmatprep.mubr.msk.f32.mxu0 %vm281_vm1, %v6261_v12  ;;  %24485 = vmatpush3.msra.mxu1 %v6417_v34 }
 0xcb0   :  { %24466 = vmatmul.mubr.msk.f32.gmra.mxu0 %vm281_vm1, %v6262_v1  ;;  %24486 = vmatprep.subr.mxu1 %v6416_v44 }
 0xcb1   :  { %24487 = vmatpush3.msra.mxu1 %v6416_v44  ;;  %24505 = vmatpush3.msra.mxu0 %v6578_v27 }
 0xcb2   :  { %24488 = vmatprep.subr.mxu1 %v6415_v49  ;;  %24506 = vmatprep.subr.mxu0 %v6577_v47 }
 0xcb3   :  { %24489 = vmatpush3.msra.mxu1 %v6415_v49  ;;  %24507 = vmatpush3.msra.mxu0 %v6577_v47 }
 0xcb4   :  { %24508 = vmatprep.subr.mxu0 %v6576_v28 }
 0xcb5   :  { %24509 = vmatpush3.msra.mxu0 %v6576_v28 }
 0xd38   :  { %v24450_v39 = vpop.f32.mrf.mxu1 }
 0xd39   :  { %v6249_v50 = vadd.f32 %v24450_v39, %v27176_v0 }
 0xd3a   :  { %v6225_v38 = vpop.f32.mrf.mxu1 }
 0xd3b   :  { %v6248_v30 = vadd.f32 %v6225_v38, %v4783_v5  ;;  %v6264_v9 = vadd.f32 %v22609_v54, %v6249_v50 }
 0xd3c   :  { %v24453_v33 = vpop.f32.mrf.mxu1 }
 0xd3d   :  { %v6263_v53 = vadd.f32 %v22609_v54, %v6248_v30  ;;  %v6251_v23 = vadd.f32 %v24453_v33, %v27182_v7 }
 0xd3e   :  { %v6235_v55 = vpop.f32.mrf.mxu1 }
 0xd3f   :  { %v6250_v56 = vadd.f32 %v6235_v55, %v4785_v37  ;;  %24468 = vmatprep.mubr.msk.f32.mxu0 %vm281_vm1, %v6263_v53  ;;  %v6266_v32 = vadd.f32 %v22609_v54, %v6251_v23 }
 0xd40   :  { %24469 = vmatmul.mubr.msk.f32.gmra.mxu0 %vm281_vm1, %v6264_v9 }
 0xd41   :  { %v6265_v62 = vadd.f32 %v22609_v54, %v6250_v56 }
 0xd43   :  { %24471 = vmatprep.mubr.msk.f32.mxu0 %vm281_vm1, %v6265_v62 }
 0xd44   :  { %24472 = vmatmul.mubr.msk.f32.gmra.mxu0 %vm281_vm1, %v6266_v32 }
 0xd6c   :  { %v24464_v11 = vpop.f32.mrf.mxu0 }
 0xd6d   :  { %v6374_v0 = vadd.f32 %v24464_v11, %v22610_v63 }
 0xd6e   :  { %v6368_v60 = vpop.f32.mrf.mxu0 }
 0xd6f   :  { %v6369_v7 = vadd.f32 %v22610_v63, %v6368_v60  ;;  %v6408_v41 = vmax.f32 %v6374_v0, 0.0 }
 0xd70   :  { %v24467_v36 = vpop.f32.mrf.mxu0 }
 0xd71   :  { %v6407_v40 = vmax.f32 %v6369_v7, 0.0  ;;  %v6384_v2 = vadd.f32 %v24467_v36, %v22610_v63 }
 0xd72   :  { %v6378_v45 = vpop.f32.mrf.mxu0 }
 0xd73   :  { %v6379_v13 = vadd.f32 %v22610_v63, %v6378_v45  ;;  %24490 = vmatprep.mubr.msk.f32.mxu1 %vm6423_vm4, %v6407_v40  ;;  %v6410_v24 = vmax.f32 %v6384_v2, 0.0 }
 0xd74   :  { %24491 = vmatmul.mubr.msk.f32.vlgmr.msra.gmra.mxu1 %vm6423_vm4, %v6408_v41 }
 0xd75   :  { %v6409_v6 = vmax.f32 %v6379_v13, 0.0 }
 0xd77   :  { %24493 = vmatprep.mubr.msk.f32.mxu1 %vm6423_vm4, %v6409_v6 }
 0xd78   :  { %24494 = vmatmul.mubr.msk.f32.gmra.mxu1 %vm6423_vm4, %v6410_v24 }
 0xe00   :  { %v24470_v31 = vpop.f32.mrf.mxu0 }
 0xe01   :  { %v6394_v48 = vadd.f32 %v24470_v31, %v22610_v63 }
 0xe02   :  { %v6388_v52 = vpop.f32.mrf.mxu0 }
 0xe03   :  { %v6389_v54 = vadd.f32 %v22610_v63, %v6388_v52  ;;  %v6412_v58 = vmax.f32 %v6394_v48, 0.0 }
 0xe04   :  { %v24473_v35 = vpop.f32.mrf.mxu0 }
 0xe05   :  { %v6411_v46 = vmax.f32 %v6389_v54, 0.0  ;;  %v6404_v42 = vadd.f32 %v24473_v35, %v22610_v63 }
 0xe06   :  { %v6398_v43 = vpop.f32.mrf.mxu0 }
 0xe07   :  { %v6399_v57 = vadd.f32 %v22610_v63, %v6398_v43  ;;  %24496 = vmatprep.mubr.msk.f32.mxu1 %vm6423_vm4, %v6411_v46  ;;  %v6414_v59 = vmax.f32 %v6404_v42, 0.0 }
 0xe08   :  { %24497 = vmatmul.mubr.msk.f32.gmra.mxu1 %vm6423_vm4, %v6412_v58 }
 0xe09   :  { %v6413_v29 = vmax.f32 %v6399_v57, 0.0 }
 0xe0b   :  { %24499 = vmatprep.mubr.msk.f32.mxu1 %vm6423_vm4, %v6413_v29 }
 0xe0c   :  { %24500 = vmatmul.mubr.msk.f32.gmra.mxu1 %vm6423_vm4, %v6414_v59 }
 0xe34   :  { %v24492_v12 = vpop.f32.mrf.mxu1 }
 0xe35   :  { %v6554_v1 = vadd.f32 %v24492_v12, %v26392_v14 }
 0xe36   :  { %v6514_v51 = vpop.f32.mrf.mxu1 }
 0xe37   :  { %v6553_v8 = vadd.f32 %v6514_v51, %v26394_v15  ;;  %v27332_v34 = vadd.f32 %v22627_v25, %v6554_v1 }
 0xe38   :  { %v24495_v10 = vpop.f32.mrf.mxu1 }
 0xe39   :  { %v27330_v4 = vadd.f32 %v22627_v25, %v6553_v8  ;;  %v6556_v44 = vadd.f32 %v24495_v10, %v26398_v16 }
 0xe3a   :  { %v6524_v49 = vpop.f32.mrf.mxu1 }
 0xe3b   :  { %v6555_v3 = vadd.f32 %v6524_v49, %v26402_v17  ;;  %24510 = vmatprep.mubr.msk.f32.mxu0 %vm281_vm1, %v27330_v4  ;;  %v27342_v39 = vadd.f32 %v22627_v25, %v6556_v44 }
 0xe3c   :  { %24511 = vmatmul.mubr.msk.f32.vlgmr.msra.gmra.mxu0 %vm281_vm1, %v27332_v34 }
 0xe3d   :  { %v27340_v14 = vadd.f32 %v22627_v25, %v6555_v3 }
 0xe3f   :  { %24513 = vmatprep.mubr.msk.f32.mxu0 %vm281_vm1, %v27340_v14 }
 0xe40   :  { %24514 = vmatmul.mubr.msk.f32.gmra.mxu0 %vm281_vm1, %v27342_v39 }
 0xec8   :  { %v24498_v15 = vpop.f32.mrf.mxu1 }
 0xec9   :  { %v6558_v16 = vadd.f32 %v24498_v15, %v26406_v18 }
 0xeca   :  { %v6534_v17 = vpop.f32.mrf.mxu1 }
 0xecb   :  { %v6557_v5 = vadd.f32 %v6534_v17, %v26410_v19  ;;  %v27352_v26 = vadd.f32 %v22627_v25, %v6558_v16  ;;  %v22628_v19 = vld [vmem:[%s27371_s26] ss:$0 sm:$0xff] }
 0xecc   :  { %v24501_v50 = vpop.f32.mrf.mxu1 }
 0xecd   :  { %v27350_v38 = vadd.f32 %v22627_v25, %v6557_v5  ;;  %v6560_v30 = vadd.f32 %v24501_v50, %v26414_v20 }
 0xece   :  { %v6544_v33 = vpop.f32.mrf.mxu1 }
 0xecf   :  { %v6559_v37 = vadd.f32 %v6544_v33, %v26418_v21  ;;  %24516 = vmatprep.mubr.msk.f32.mxu0 %vm281_vm1, %v27350_v38  ;;  %v27362_v53 = vadd.f32 %v22627_v25, %v6560_v30 }
 0xed0   :  { %24517 = vmatmul.mubr.msk.f32.gmra.mxu0 %vm281_vm1, %v27352_v26 }
 0xed1   :  { %v27360_v18 = vadd.f32 %v22627_v25, %v6559_v37 }
 0xed3   :  { %24519 = vmatprep.mubr.msk.f32.mxu0 %vm281_vm1, %v27360_v18 }
 0xed4   :  { %24520 = vmatmul.mubr.msk.f32.gmra.mxu0 %vm281_vm1, %v27362_v53 }
 0xefc   :  { %v24512_v20 = vpop.f32.mrf.mxu0 }
 0xefd   :  { %v27374_v21 = vadd.f32 %v24512_v20, %v22628_v19 }
 0xefe   :  { %v6677_v9 = vpop.f32.mrf.mxu0 }
 0xeff   :  { %v27376_v23 = vadd.f32 %v22628_v19, %v6677_v9  ;;  %6724 = vrot.lane.b32.xlu0 %v27374_v21, %s26325_s18 }
 0xf00   :  { %v24515_v55 = vpop.f32.mrf.mxu0 }
 0xf01   :  { %v27380_v56 = vadd.f32 %v24515_v55, %v22628_v19  ;;  %6722 = vrot.lane.b32.xlu1 %v27376_v23, %s26325_s18  ;;  %24526 = vmatprep.mubr.msk.f32.mxu1 %vm418_vm3, %v27376_v23 }
 0xf02   :  { %v6687_v62 = vpop.f32.mrf.mxu0 }
 0xf03   :  { %v27386_v32 = vadd.f32 %v22628_v19, %v6687_v62  ;;  %6813 = vrot.lane.b32.xlu0 %v27380_v56, %s26325_s18 }
 0xf05   :  { %6811 = vrot.lane.b32.xlu1 %v27386_v32, %s26325_s18  ;;  %24533 = vmatprep.mubr.msk.f32.mxu0 %vm418_vm3, %v27386_v32 }
 0xf71   :  { %v6725_v63 = vpop.permute.xlu0 %6724 }
 0xf72   :  { %24522 = vmatprep.subr.msk.mxu1 %vm418_vm3, %v6725_v63 }
 0xf73   :  { %24523 = vmatpush3.xpose.msk.msra.mxu1 %vm418_vm3, %v6725_v63  ;;  %v6723_v11 = vpop.permute.xlu1 %6722 }
 0xf74   :  { %24524 = vmatprep.subr.msk.mxu1 %vm418_vm3, %v6723_v11 }
 0xf75   :  { %v6814_v0 = vpop.permute.xlu0 %6813 }
 0xf76   :  { %24529 = vmatprep.subr.msk.mxu0 %vm418_vm3, %v6814_v0 }
 0xf77   :  { %24525 = vmatpush3.xpose.msk.msra.mxu1 %vm418_vm3, %v6723_v11  ;;  %24530 = vmatpush3.xpose.msk.msra.mxu0 %vm418_vm3, %v6814_v0  ;;  %v6812_v60 = vpop.permute.xlu1 %6811 }
 0xf78   :  { %24531 = vmatprep.subr.msk.mxu0 %vm418_vm3, %v6812_v60 }
 0xf7a   :  { %24527 = vmatmul.mubr.msk.f32.vlgmr.msra.gmra.mxu1 %vm418_vm3, %v27374_v21 }
 0xf7b   :  { %24532 = vmatpush3.xpose.msk.msra.mxu0 %vm418_vm3, %v6812_v60 }
 0xf7e   :  { %24534 = vmatmul.mubr.msk.f32.vlgmr.msra.gmra.mxu0 %vm418_vm3, %v27380_v56 }
 0xf90   :  { %v24518_v7 = vpop.f32.mrf.mxu0 }
 0xf91   :  { %v27406_v36 = vadd.f32 %v24518_v7, %v22628_v19 }
 0xf92   :  { %v6697_v40 = vpop.f32.mrf.mxu0 }
 0xf93   :  { %v27408_v41 = vadd.f32 %v22628_v19, %v6697_v40  ;;  %6902 = vrot.lane.b32.xlu0 %v27406_v36, %s26325_s18 }
 0xf94   :  { %v24521_v2 = vpop.f32.mrf.mxu0 }
 0xf95   :  { %v27412_v45 = vadd.f32 %v24521_v2, %v22628_v19  ;;  %6900 = vrot.lane.b32.xlu1 %v27408_v41, %s26325_s18  ;;  %24540 = vmatprep.mubr.msk.f32.mxu1 %vm418_vm3, %v27408_v41 }
 0xf96   :  { %v6707_v13 = vpop.f32.mrf.mxu0 }
 0xf97   :  { %v27418_v6 = vadd.f32 %v22628_v19, %v6707_v13  ;;  %6991 = vrot.lane.b32.xlu0 %v27412_v45, %s26325_s18 }
 0xf99   :  { %6989 = vrot.lane.b32.xlu1 %v27418_v6, %s26325_s18  ;;  %24547 = vmatprep.mubr.msk.f32.mxu0 %vm418_vm3, %v27418_v6 }
0x1005   :  { %v6903_v24 = vpop.permute.xlu0 %6902 }
0x1006   :  { %24536 = vmatprep.subr.msk.mxu1 %vm418_vm3, %v6903_v24 }
0x1007   :  { %v6901_v61 = vpop.permute.xlu1 %6900  ;;  %24537 = vmatpush3.xpose.msk.msra.mxu1 %vm418_vm3, %v6903_v24 }
0x1008   :  { %24538 = vmatprep.subr.msk.mxu1 %vm418_vm3, %v6901_v61 }
0x1009   :  { %v6992_v27 = vpop.permute.xlu0 %6991 }
0x100a   :  { %24543 = vmatprep.subr.msk.mxu0 %vm418_vm3, %v6992_v27 }
0x100b   :  { %24539 = vmatpush3.xpose.msk.msra.mxu1 %vm418_vm3, %v6901_v61  ;;  %24544 = vmatpush3.xpose.msk.msra.mxu0 %vm418_vm3, %v6992_v27  ;;  %v6990_v47 = vpop.permute.xlu1 %6989 }
0x100c   :  { %24545 = vmatprep.subr.msk.mxu0 %vm418_vm3, %v6990_v47 }
0x100e   :  { %24541 = vmatmul.mubr.msk.f32.vlgmr.msra.gmra.mxu1 %vm418_vm3, %v27406_v36 }
0x100f   :  { %24546 = vmatpush3.xpose.msk.msra.mxu0 %vm418_vm3, %v6990_v47 }
0x1012   :  { %24548 = vmatmul.mubr.msk.f32.vlgmr.msra.gmra.mxu0 %vm418_vm3, %v27412_v45 }
0x103a   :  { %v24528_v28 = vpop.f32.mrf.mxu1 }
0x103b   :  { %v7077_v31 = vmul.f32 0.35355338, %v24528_v28 }
0x103c   :  { %v6800_v48 = vpop.f32.mrf.mxu1 }
0x103d   :  { %v7076_v52 = vmul.f32 0.35355338, %v6800_v48  ;;  %v7087_v54 = vsel %vm140_vm0, %v7077_v31, -inf }
0x103e   :  { %v24535_v35 = vpop.f32.mrf.mxu0  ;;  %7088 = vmax.xlane.f32.xlu1 %v7087_v54 }
0x103f   :  { %v7079_v46 = vmul.f32 0.35355338, %v24535_v35  ;;  %v7084_v58 = vsel %vm140_vm0, %v7076_v52, -inf }
0x1040   :  { %7085 = vmax.xlane.f32.xlu0 %v7084_v58  ;;  %v6889_v42 = vpop.f32.mrf.mxu0 }
0x1041   :  { %v7078_v43 = vmul.f32 0.35355338, %v6889_v42  ;;  %v7093_v57 = vsel %vm140_vm0, %v7079_v46, -inf }
0x1042   :  { %7094 = vmax.xlane.f32.xlu1 %v7093_v57 }
0x1043   :  { %v7090_v29 = vsel %vm140_vm0, %v7078_v43, -inf }
0x1044   :  { %7091 = vmax.xlane.f32.xlu0 %v7090_v29 }
0x10c7   :  { %v7089_v59 = vpop.xlane.xlu1 %7088 }
0x10c8   :  { %v7109_v12 = vsub.f32 %v7077_v31, %v7089_v59 }
0x10c9   :  { %v7086_v1 = vpop.xlane.xlu0 %7085 }
0x10ca   :  { %v7118_v51 = vmul.f32 1.442695, %v7109_v12  ;;  %v7108_v25 = vsub.f32 %v7076_v52, %v7086_v1 }
0x10cb   :  { %v7095_v8 = vpop.xlane.xlu1 %7094 }
0x10cc   :  { %v7116_v10 = vmul.f32 1.442695, %v7108_v25  ;;  %v7111_v44 = vsub.f32 %v7079_v46, %v7095_v8  ;;  %25872 = vpow2.f32 %v7118_v51 }
0x10cd   :  { %v7092_v49 = vpop.xlane.xlu0 %7091 }
0x10ce   :  { %25874 = vpow2.f32 %v7116_v10  ;;  %v7110_v3 = vsub.f32 %v7078_v43, %v7092_v49  ;;  %v24542_v15 = vpop.f32.mrf.mxu1  ;;  %v7122_v17 = vmul.f32 1.442695, %v7111_v44 }
0x10cf   :  { %v7081_v16 = vmul.f32 0.35355338, %v24542_v15 }
0x10d0   :  { %v7120_v5 = vmul.f32 1.442695, %v7110_v3  ;;  %v6978_v50 = vpop.f32.mrf.mxu1 }
0x10d1   :  { %v7080_v30 = vmul.f32 0.35355338, %v6978_v50  ;;  %v7099_v33 = vsel %vm140_vm0, %v7081_v16, -inf }
0x10d2   :  { %25876 = vpow2.f32 %v7120_v5  ;;  %7100 = vmax.xlane.f32.xlu0 %v7099_v33  ;;  %v24549_v37 = vpop.f32.mrf.mxu0 }
0x10d3   :  { %25878 = vpow2.f32 %v7122_v17  ;;  %v7083_v19 = vmul.f32 0.35355338, %v24549_v37  ;;  %v7096_v20 = vsel %vm140_vm0, %v7080_v30, -inf }
0x10d4   :  { %v7067_v40 = vpop.f32.mrf.mxu0 }
0x10d5   :  { %v7105_v9 = vsel %vm140_vm0, %v7083_v19, -inf  ;;  %v7082_v2 = vmul.f32 0.35355338, %v7067_v40 }
0x10d6   :  { %7097 = vmax.xlane.f32.xlu0 %v7096_v20 }
0x10d7   :  { %v7102_v24 = vsel %vm140_vm0, %v7082_v2, -inf }
0x10d9   :  { %v27445_v55 = vpop.eup %25872 }
0x10da   :  { %7106 = vmax.xlane.f32.xlu0 %v7105_v9  ;;  %v7135_v11 = vsel %vm140_vm0, %v27445_v55, 0.0 }
0x10db   :  { %v27447_v62 = vpop.eup %25874 }
0x10dc   :  { %v7132_v63 = vsel %vm140_vm0, %v27447_v62, 0.0 }
0x10dd   :  { %7133 = vadd.xlane.f32.xlu1 %v7132_v63 }
0x10de   :  { %7136 = vadd.xlane.f32.xlu0 %v7135_v11 }
0x10df   :  { %v27453_v0 = vpop.eup %25876 }
0x10e0   :  { %v7138_v60 = vsel %vm140_vm0, %v27453_v0, 0.0  ;;  %v27457_v7 = vpop.eup %25878 }
0x10e1   :  { %7139 = vadd.xlane.f32.xlu1 %v7138_v60  ;;  %v7141_v13 = vsel %vm140_vm0, %v27457_v7, 0.0 }
0x10e5   :  { %7142 = vadd.xlane.f32.xlu1 %v7141_v13 }
0x10e9   :  { %7103 = vmax.xlane.f32.xlu1 %v7102_v24 }
0x10f4   :  { %7172 = vrot.lane.b32.xlu0 %v27376_v23, %s26326_s19 }
0x10f8   :  { %7259 = vrot.lane.b32.xlu0 %v27386_v32, %s26326_s19 }
0x10fa   :  { %7174 = vrot.lane.b32.xlu1 %v27374_v21, %s26326_s19 }
0x10fc   :  { %7435 = vrot.lane.b32.xlu0 %v27412_v45, %s26326_s19 }
0x10fe   :  { %7261 = vrot.lane.b32.xlu1 %v27380_v56, %s26326_s19 }
0x1100   :  { %7433 = vrot.lane.b32.xlu0 %v27418_v6, %s26326_s19 }
0x1102   :  { %7348 = vrot.lane.b32.xlu1 %v27406_v36, %s26326_s19 }
0x1104   :  { %7617 = vrot.lane.b32.xlu0 %v27380_v56, %s26327_s20 }
0x1106   :  { %7346 = vrot.lane.b32.xlu1 %v27408_v41, %s26326_s19 }
0x1108   :  { %7522 = vrot.lane.b32.xlu0 %v27374_v21, %s26328_s21 }
0x110a   :  { %7526 = vrot.lane.b32.xlu1 %v27374_v21, %s26327_s20 }
0x110c   :  { %7708 = vrot.lane.b32.xlu0 %v27406_v36, %s26327_s20 }
0x110e   :  { %7524 = vrot.lane.b32.xlu1 %v27376_v23, %s26327_s20 }
0x1112   :  { %7520 = vrot.lane.b32.xlu1 %v27376_v23, %s26328_s21 }
0x1116   :  { %7615 = vrot.lane.b32.xlu1 %v27386_v32, %s26327_s20 }
0x111a   :  { %7611 = vrot.lane.b32.xlu1 %v27386_v32, %s26328_s21 }
0x111e   :  { %7706 = vrot.lane.b32.xlu1 %v27408_v41, %s26327_s20 }
0x115b   :  { %v7101_v61 = vpop.xlane.xlu0 %7100 }
0x115c   :  { %v7113_v27 = vsub.f32 %v7081_v16, %v7101_v61 }
0x115e   :  { %v7126_v47 = vmul.f32 1.442695, %v7113_v27 }
0x115f   :  { %v7098_v28 = vpop.xlane.xlu0 %7097 }
0x1160   :  { %25880 = vpow2.f32 %v7126_v47  ;;  %v7112_v31 = vsub.f32 %v7080_v30, %v7098_v28 }
0x1162   :  { %v7124_v48 = vmul.f32 1.442695, %v7112_v31 }
0x1163   :  { %v7107_v52 = vpop.xlane.xlu0 %7106 }
0x1164   :  { %25882 = vpow2.f32 %v7124_v48  ;;  %v7115_v54 = vsub.f32 %v7083_v19, %v7107_v52 }
0x1166   :  { %v7130_v35 = vmul.f32 1.442695, %v7115_v54  ;;  %v7134_v46 = vpop.xlane.xlu1 %7133 }
0x1167   :  { %25884 = vrcp.f32 %v7134_v46  ;;  %v7137_v58 = vpop.xlane.xlu0 %7136 }
0x1168   :  { %25886 = vpow2.f32 %v7130_v35 }
0x1169   :  { %25888 = vrcp.f32 %v7137_v58 }
0x116a   :  { %v7140_v42 = vpop.xlane.xlu1 %7139 }
0x116b   :  { %25890 = vrcp.f32 %v7140_v42  ;;  %v7173_v43 = vpop.permute.xlu0 %7172 }
0x116d   :  { %v27496_v57 = vpop.eup %25880 }
0x116e   :  { %v7143_v29 = vpop.xlane.xlu1 %7142  ;;  %v7147_v59 = vsel %vm140_vm0, %v27496_v57, 0.0 }
0x116f   :  { %25892 = vrcp.f32 %v7143_v29  ;;  %7148 = vadd.xlane.f32.xlu0 %v7147_v59  ;;  %v7260_v1 = vpop.permute.xlu0 %7259 }
0x1171   :  { %v27500_v12 = vpop.eup %25882 }
0x1172   :  { %v7104_v51 = vpop.xlane.xlu1 %7103  ;;  %v7144_v25 = vsel %vm140_vm0, %v27500_v12, 0.0 }
0x1173   :  { %v7114_v8 = vsub.f32 %v7082_v2, %v7104_v51  ;;  %7145 = vadd.xlane.f32.xlu0 %v7144_v25  ;;  %v7436_v5 = vpop.permute.xlu0 %7435 }
0x1174   :  { %v25885_v10 = vpop.eup %25884 }
0x1175   :  { %v27504_v44 = vpop.eup %25886  ;;  %v7128_v49 = vmul.f32 1.442695, %v7114_v8  ;;  %v7164_v3 = vmul.f32 %v25885_v10, %v27447_v62 }
0x1176   :  { %v25889_v15 = vpop.eup %25888  ;;  %v7175_v16 = vpop.permute.xlu1 %7174  ;;  %v7153_v17 = vsel %vm140_vm0, %v27504_v44, 0.0 }
0x1177   :  { %25894 = vpow2.f32 %v7128_v49  ;;  %24550 = vmatprep.subr.mxu1 %v7175_v16  ;;  %24554 = vmatprep.mubr.msk.f32.mxu1 %vm140_vm0, %v7164_v3  ;;  %v7165_v30 = vmul.f32 %v25889_v15, %v27445_v55  ;;  %v7434_v20 = vpop.permute.xlu0 %7433 }
0x1178   :  { %v25891_v50 = vpop.eup %25890  ;;  %7154 = vadd.xlane.f32.xlu0 %v7153_v17  ;;  %24551 = vmatpush3.msra.mxu1 %v7175_v16 }
0x1179   :  { %24552 = vmatprep.subr.mxu1 %v7173_v43  ;;  %v7166_v33 = vmul.f32 %v25891_v50, %v27453_v0 }
0x117a   :  { %24553 = vmatpush3.msra.mxu1 %v7173_v43  ;;  %v7262_v37 = vpop.permute.xlu1 %7261 }
0x117b   :  { %24555 = vmatmul.mubr.msk.f32.vlgmr.msra.gmra.mxu1 %vm140_vm0, %v7165_v30  ;;  %24557 = vmatprep.subr.mxu1 %v7262_v37  ;;  %v7618_v63 = vpop.permute.xlu0 %7617 }
0x117c   :  { %v25893_v19 = vpop.eup %25892  ;;  %24558 = vmatpush3.msra.mxu1 %v7262_v37  ;;  %24561 = vmatprep.mubr.msk.f32.mxu1 %vm140_vm0, %v7166_v33 }
0x117d   :  { %24559 = vmatprep.subr.mxu1 %v7260_v1  ;;  %v7167_v9 = vmul.f32 %v25893_v19, %v27457_v7 }
0x117e   :  { %24560 = vmatpush3.msra.mxu1 %v7260_v1  ;;  %v7349_v62 = vpop.permute.xlu1 %7348 }
0x117f   :  { %24562 = vmatmul.mubr.msk.f32.vlgmr.msra.gmra.mxu1 %vm140_vm0, %v7167_v9  ;;  %24564 = vmatprep.subr.mxu0 %v7349_v62  ;;  %v7523_v7 = vpop.permute.xlu0 %7522 }
0x1180   :  { %24571 = vmatprep.subr.mxu1 %v7436_v5  ;;  %24565 = vmatpush3.msra.mxu0 %v7349_v62 }
0x1181   :  { %24572 = vmatpush3.msra.mxu1 %v7436_v5 }
0x1182   :  { %24573 = vmatprep.subr.mxu1 %v7434_v20  ;;  %v7347_v55 = vpop.permute.xlu1 %7346 }
0x1183   :  { %24574 = vmatpush3.msra.mxu1 %v7434_v20  ;;  %24566 = vmatprep.subr.mxu0 %v7347_v55  ;;  %v7709_v2 = vpop.permute.xlu0 %7708 }
0x1184   :  { %v25895_v11 = vpop.eup %25894  ;;  %24585 = vmatprep.subr.msk.mxu1 %vm418_vm3, %v7618_v63  ;;  %24567 = vmatpush3.msra.mxu0 %v7347_v55 }
0x1185   :  { %v7150_v0 = vsel %vm140_vm0, %v25895_v11, 0.0 }
0x1186   :  { %7151 = vadd.xlane.f32.xlu1 %v7150_v0  ;;  %v7527_v60 = vpop.permute.xlu1 %7526 }
0x1187   :  { %24578 = vmatprep.subr.msk.mxu0 %vm418_vm3, %v7527_v60 }
0x118a   :  { %v7525_v40 = vpop.permute.xlu1 %7524 }
0x118e   :  { %7613 = vrot.lane.b32.xlu0 %v27380_v56, %s26328_s21  ;;  %v7521_v24 = vpop.permute.xlu1 %7520 }
0x1192   :  { %7799 = vrot.lane.b32.xlu0 %v27412_v45, %s26327_s20  ;;  %v7616_v27 = vpop.permute.xlu1 %7615 }
0x1196   :  { %7704 = vrot.lane.b32.xlu0 %v27406_v36, %s26328_s21  ;;  %v7612_v47 = vpop.permute.xlu1 %7611 }
0x1197   :  { %7702 = vrot.lane.b32.xlu1 %v27408_v41, %s26328_s21 }
0x119a   :  { %7793 = vrot.lane.b32.xlu0 %v27418_v6, %s26328_s21  ;;  %v7707_v48 = vpop.permute.xlu1 %7706 }
0x119b   :  { %7797 = vrot.lane.b32.xlu1 %v27418_v6, %s26327_s20 }
0x119f   :  { %7795 = vrot.lane.b32.xlu1 %v27412_v45, %s26328_s21 }
0x11f8   :  { %v7149_v13 = vpop.xlane.xlu0 %7148 }
0x11f9   :  { %25896 = vrcp.f32 %v7149_v13 }
0x11fc   :  { %v7146_v61 = vpop.xlane.xlu0 %7145 }
0x11fd   :  { %25898 = vrcp.f32 %v7146_v61 }
0x1201   :  { %v7155_v52 = vpop.xlane.xlu0 %7154 }
0x1202   :  { %25900 = vrcp.f32 %v7155_v52 }
0x1205   :  { %v7614_v58 = vpop.permute.xlu0 %7613 }
0x1206   :  { %v25897_v28 = vpop.eup %25896 }
0x1207   :  { %v7169_v35 = vmul.f32 %v25897_v28, %v27496_v57 }
0x1209   :  { %v7800_v43 = vpop.permute.xlu0 %7799 }
0x120a   :  { %v25899_v31 = vpop.eup %25898 }
0x120b   :  { %v7168_v54 = vmul.f32 %v25899_v31, %v27500_v12 }
0x120d   :  { %24568 = vmatprep.mubr.msk.f32.mxu0 %vm140_vm0, %v7168_v54  ;;  %v7705_v59 = vpop.permute.xlu0 %7704 }
0x120e   :  { %24569 = vmatmul.mubr.msk.f32.vlgmr.msra.gmra.mxu0 %vm140_vm0, %v7169_v35 }
0x120f   :  { %24579 = vmatpush3.xpose.msk.msra.mxu0 %vm418_vm3, %v7527_v60  ;;  %v7152_v46 = vpop.xlane.xlu1 %7151  ;;  %24582 = vmatprep.mubr.msk.f32.mxu0 %vm418_vm3, %v7521_v24  ;;  %v25901_v57 = vpop.eup %25900 }
0x1210   :  { %25902 = vrcp.f32 %v7152_v46  ;;  %24580 = vmatprep.subr.msk.mxu0 %vm418_vm3, %v7525_v40  ;;  %v7171_v1 = vmul.f32 %v25901_v57, %v27504_v44 }
0x1211   :  { %v7794_v51 = vpop.permute.xlu0 %7793 }
0x1213   :  { %24581 = vmatpush3.xpose.msk.msra.mxu0 %vm418_vm3, %v7525_v40  ;;  %v7703_v42 = vpop.permute.xlu1 %7702 }
0x1214   :  { %24592 = vmatprep.subr.msk.mxu0 %vm418_vm3, %v7709_v2 }
0x1216   :  { %24583 = vmatmul.mubr.msk.f32.vlgmr.msra.gmra.mxu0 %vm418_vm3, %v7523_v7 }
0x1217   :  { %24593 = vmatpush3.xpose.msk.msra.mxu0 %vm418_vm3, %v7709_v2  ;;  %24596 = vmatprep.mubr.msk.f32.mxu0 %vm418_vm3, %v7703_v42  ;;  %v7798_v25 = vpop.permute.xlu1 %7797 }
0x1218   :  { %24594 = vmatprep.subr.msk.mxu0 %vm418_vm3, %v7707_v48 }
0x121b   :  { %24595 = vmatpush3.xpose.msk.msra.mxu0 %vm418_vm3, %v7707_v48  ;;  %v7796_v8 = vpop.permute.xlu1 %7795 }
0x121d   :  { %v25903_v29 = vpop.eup %25902 }
0x121e   :  { %24597 = vmatmul.mubr.msk.f32.vlgmr.msra.gmra.mxu0 %vm418_vm3, %v7705_v59  ;;  %v7170_v12 = vmul.f32 %v25903_v29, %v25895_v11 }
0x1220   :  { %24575 = vmatprep.mubr.msk.f32.mxu1 %vm140_vm0, %v7170_v12 }
0x1221   :  { %24576 = vmatmul.mubr.msk.f32.vlgmr.msra.gmra.mxu1 %vm140_vm0, %v7171_v1 }
0x1222   :  { %24586 = vmatpush3.xpose.msk.msra.mxu1 %vm418_vm3, %v7618_v63  ;;  %24589 = vmatprep.mubr.msk.f32.mxu1 %vm418_vm3, %v7612_v47 }
0x1223   :  { %24587 = vmatprep.subr.msk.mxu1 %vm418_vm3, %v7616_v27 }
0x1226   :  { %24588 = vmatpush3.xpose.msk.msra.mxu1 %vm418_vm3, %v7616_v27 }
0x1227   :  { %24599 = vmatprep.subr.msk.mxu1 %vm418_vm3, %v7800_v43 }
0x1229   :  { %24590 = vmatmul.mubr.msk.f32.vlgmr.msra.gmra.mxu1 %vm418_vm3, %v7614_v58 }
0x122a   :  { %24600 = vmatpush3.xpose.msk.msra.mxu1 %vm418_vm3, %v7800_v43  ;;  %24603 = vmatprep.mubr.msk.f32.mxu1 %vm418_vm3, %v7794_v51 }
0x122b   :  { %24601 = vmatprep.subr.msk.mxu1 %vm418_vm3, %v7798_v25 }
0x122e   :  { %24602 = vmatpush3.xpose.msk.msra.mxu1 %vm418_vm3, %v7798_v25 }
0x1231   :  { %24604 = vmatmul.mubr.msk.f32.vlgmr.msra.gmra.mxu1 %vm418_vm3, %v7796_v8 }
0x123b   :  { %v27566_v49 = vpop.f32.mrf.mxu1 }
0x123d   :  { %v27568_v17 = vpop.f32.mrf.mxu1 }
0x123f   :  { %v27572_v33 = vpop.f32.mrf.mxu1 }
0x1241   :  { %v27574_v20 = vpop.f32.mrf.mxu1 }
0x12ce   :  { %v27562_v10 = vpop.f32.mrf.mxu0 }
0x12d0   :  { %v27564_v44 = vpop.f32.mrf.mxu0 }
0x12d6   :  { %v24584_v3 = vpop.f32.mrf.mxu0 }
0x12d7   :  { %v7885_v15 = vmul.f32 0.35355338, %v24584_v3 }
0x12d8   :  { %v7602_v16 = vpop.f32.mrf.mxu0 }
0x12d9   :  { %v7884_v5 = vmul.f32 0.35355338, %v7602_v16  ;;  %v7895_v50 = vsel %vm140_vm0, %v7885_v15, -inf }
0x12da   :  { %7896 = vmax.xlane.f32.xlu1 %v7895_v50 }
0x12db   :  { %v7892_v30 = vsel %vm140_vm0, %v7884_v5, -inf }
0x12dc   :  { %7893 = vmax.xlane.f32.xlu0 %v7892_v30 }
0x12de   :  { %v24598_v37 = vpop.f32.mrf.mxu0 }
0x12df   :  { %v7889_v13 = vmul.f32 0.35355338, %v24598_v37 }
0x12e0   :  { %v7784_v19 = vpop.f32.mrf.mxu0 }
0x12e1   :  { %v7888_v9 = vmul.f32 0.35355338, %v7784_v19  ;;  %v27576_v62 = vpop.f32.mrf.mxu1  ;;  %v7907_v28 = vsel %vm140_vm0, %v7889_v13, -inf }
0x12e3   :  { %v7904_v55 = vsel %vm140_vm0, %v7888_v9, -inf  ;;  %v27579_v63 = vpop.f32.mrf.mxu1 }
0x12e4   :  { %7905 = vmax.xlane.f32.xlu1 %v7904_v55 }
0x12e9   :  { %v24591_v11 = vpop.f32.mrf.mxu1 }
0x12ea   :  { %v7887_v7 = vmul.f32 0.35355338, %v24591_v11 }
0x12eb   :  { %v7693_v0 = vpop.f32.mrf.mxu1 }
0x12ec   :  { %v7886_v60 = vmul.f32 0.35355338, %v7693_v0  ;;  %v7901_v24 = vsel %vm140_vm0, %v7887_v7, -inf }
0x12ee   :  { %v7898_v40 = vsel %vm140_vm0, %v7886_v60, -inf }
0x12ef   :  { %7899 = vmax.xlane.f32.xlu0 %v7898_v40 }
0x12f1   :  { %v24605_v2 = vpop.f32.mrf.mxu1 }
0x12f2   :  { %v7891_v47 = vmul.f32 0.35355338, %v24605_v2 }
0x12f3   :  { %7902 = vmax.xlane.f32.xlu0 %v7901_v24  ;;  %v7875_v61 = vpop.f32.mrf.mxu1 }
0x12f4   :  { %v7890_v27 = vmul.f32 0.35355338, %v7875_v61  ;;  %v7913_v48 = vsel %vm140_vm0, %v7891_v47, -inf }
0x12f6   :  { %v7910_v31 = vsel %vm140_vm0, %v7890_v27, -inf }
0x12f7   :  { %7908 = vmax.xlane.f32.xlu0 %v7907_v28  ;;  %7911 = vmax.xlane.f32.xlu1 %v7910_v31 }
0x12fb   :  { %7914 = vmax.xlane.f32.xlu0 %v7913_v48 }
0x1308   :  { %7982 = vrot.lane.b32.xlu1 %v27374_v21, %s26329_s22 }
0x130c   :  { %8069 = vrot.lane.b32.xlu1 %v27380_v56, %s26329_s22 }
0x1310   :  { %8067 = vrot.lane.b32.xlu1 %v27386_v32, %s26329_s22 }
0x1311   :  { %7980 = vrot.lane.b32.xlu0 %v27376_v23, %s26329_s22 }
0x1314   :  { %8154 = vrot.lane.b32.xlu1 %v27408_v41, %s26329_s22 }
0x1315   :  { %8156 = vrot.lane.b32.xlu0 %v27406_v36, %s26329_s22 }
0x1363   :  { %v7897_v52 = vpop.xlane.xlu1 %7896 }
0x1364   :  { %v7917_v54 = vsub.f32 %v7885_v15, %v7897_v52 }
0x1365   :  { %v7894_v35 = vpop.xlane.xlu0 %7893 }
0x1366   :  { %v7926_v46 = vmul.f32 1.442695, %v7917_v54  ;;  %v7916_v58 = vsub.f32 %v7884_v5, %v7894_v35 }
0x1368   :  { %25904 = vpow2.f32 %v7926_v46  ;;  %v7924_v42 = vmul.f32 1.442695, %v7916_v58 }
0x136a   :  { %25906 = vpow2.f32 %v7924_v42 }
0x136d   :  { %v7906_v43 = vpop.xlane.xlu1 %7905 }
0x136e   :  { %v7920_v12 = vsub.f32 %v7888_v9, %v7906_v43 }
0x1370   :  { %v7932_v8 = vmul.f32 1.442695, %v7920_v12 }
0x1375   :  { %v27598_v57 = vpop.eup %25904 }
0x1376   :  { %v7943_v29 = vsel %vm140_vm0, %v27598_v57, 0.0 }
0x1377   :  { %v27602_v59 = vpop.eup %25906  ;;  %7944 = vadd.xlane.f32.xlu0 %v7943_v29 }
0x1378   :  { %v7900_v1 = vpop.xlane.xlu0 %7899  ;;  %v7940_v51 = vsel %vm140_vm0, %v27602_v59, 0.0 }
0x1379   :  { %v7918_v25 = vsub.f32 %v7886_v60, %v7900_v1  ;;  %7941 = vadd.xlane.f32.xlu1 %v7940_v51 }
0x137b   :  { %v7928_v3 = vmul.f32 1.442695, %v7918_v25 }
0x137c   :  { %v7903_v15 = vpop.xlane.xlu0 %7902 }
0x137d   :  { %25908 = vpow2.f32 %v7928_v3  ;;  %v7919_v16 = vsub.f32 %v7887_v7, %v7903_v15  ;;  %v6717_v15 = vld [vmem:[%s27669_s8 + $0x8] sm:$0xff] }
0x137e   :  { %25910 = vpow2.f32 %v7932_v8 }
0x137f   :  { %v7930_v5 = vmul.f32 1.442695, %v7919_v16 }
0x1380   :  { %v7909_v50 = vpop.xlane.xlu0 %7908  ;;  %v7912_v30 = vpop.xlane.xlu1 %7911 }
0x1381   :  { %25912 = vpow2.f32 %v7930_v5  ;;  %v7921_v37 = vsub.f32 %v7889_v13, %v7909_v50  ;;  %v7922_v19 = vsub.f32 %v7890_v27, %v7912_v30 }
0x1383   :  { %v7934_v9 = vmul.f32 1.442695, %v7921_v37  ;;  %v7936_v55 = vmul.f32 1.442695, %v7922_v19 }
0x1384   :  { %v7915_v11 = vpop.xlane.xlu0 %7914  ;;  %v7983_v0 = vpop.permute.xlu1 %7982 }
0x1385   :  { %25914 = vpow2.f32 %v7934_v9  ;;  %v7923_v40 = vsub.f32 %v7891_v47, %v7915_v11  ;;  %24606 = vmatprep.subr.mxu0 %v7983_v0 }
0x1386   :  { %25916 = vpow2.f32 %v7936_v55  ;;  %24607 = vmatpush3.msra.mxu0 %v7983_v0 }
0x1387   :  { %v7938_v60 = vmul.f32 1.442695, %v7923_v40 }
0x1388   :  { %v7981_v2 = vpop.permute.xlu0 %7980  ;;  %v8070_v24 = vpop.permute.xlu1 %8069 }
0x1389   :  { %25918 = vpow2.f32 %v7938_v60  ;;  %24608 = vmatprep.subr.mxu0 %v7981_v2  ;;  %24613 = vmatprep.subr.mxu1 %v8070_v24 }
0x138a   :  { %v27606_v7 = vpop.eup %25908  ;;  %24609 = vmatpush3.msra.mxu0 %v7981_v2  ;;  %24614 = vmatpush3.msra.mxu1 %v8070_v24 }
0x138b   :  { %v7946_v13 = vsel %vm140_vm0, %v27606_v7, 0.0  ;;  %v27610_v61 = vpop.eup %25910 }
0x138c   :  { %v8157_v27 = vpop.permute.xlu0 %8156  ;;  %7947 = vadd.xlane.f32.xlu1 %v7946_v13  ;;  %v8068_v47 = vpop.permute.xlu1 %8067  ;;  %v7952_v48 = vsel %vm140_vm0, %v27610_v61, 0.0 }
0x138d   :  { %24615 = vmatprep.subr.mxu1 %v8068_v47  ;;  %24620 = vmatprep.subr.mxu0 %v8157_v27 }
0x138e   :  { %v27612_v28 = vpop.eup %25912  ;;  %24616 = vmatpush3.msra.mxu1 %v8068_v47 }
0x138f   :  { %v7949_v31 = vsel %vm140_vm0, %v27612_v28, 0.0 }
0x1390   :  { %7950 = vadd.xlane.f32.xlu0 %v7949_v31  ;;  %7953 = vadd.xlane.f32.xlu1 %v7952_v48  ;;  %v8155_v43 = vpop.permute.xlu1 %8154 }
0x1392   :  { %v27618_v52 = vpop.eup %25914 }
0x1393   :  { %v27620_v54 = vpop.eup %25916  ;;  %v7955_v35 = vsel %vm140_vm0, %v27618_v52, 0.0 }
0x1394   :  { %7956 = vadd.xlane.f32.xlu0 %v7955_v35  ;;  %v7958_v46 = vsel %vm140_vm0, %v27620_v54, 0.0 }
0x1395   :  { %7959 = vadd.xlane.f32.xlu1 %v7958_v46 }
0x1396   :  { %v27626_v58 = vpop.eup %25918 }
0x1397   :  { %v7961_v42 = vsel %vm140_vm0, %v27626_v58, 0.0 }
0x1398   :  { %7962 = vadd.xlane.f32.xlu0 %v7961_v42 }
0x13a6   :  { %8241 = vrot.lane.b32.xlu1 %v27418_v6, %s26329_s22 }
0x13aa   :  { %8590 = vrot.lane.b32.xlu1 %v27376_v23, %s30120_s23 }
0x13ae   :  { %8586 = vrot.lane.b32.xlu1 %v27376_v23, %s30118_s24  ;;  %8243 = vrot.lane.b32.xlu0 %v27412_v45, %s26329_s22 }
0x13b2   :  { %8681 = vrot.lane.b32.xlu1 %v27386_v32, %s30120_s23  ;;  %8592 = vrot.lane.b32.xlu0 %v27374_v21, %s30120_s23 }
0x13b6   :  { %8677 = vrot.lane.b32.xlu1 %v27386_v32, %s30118_s24  ;;  %8683 = vrot.lane.b32.xlu0 %v27380_v56, %s30120_s23 }
0x13ba   :  { %8772 = vrot.lane.b32.xlu1 %v27408_v41, %s30120_s23  ;;  %8588 = vrot.lane.b32.xlu0 %v27374_v21, %s30118_s24 }
0x13be   :  { %8768 = vrot.lane.b32.xlu1 %v27408_v41, %s30118_s24  ;;  %8774 = vrot.lane.b32.xlu0 %v27406_v36, %s30120_s23 }
0x13c2   :  { %8863 = vrot.lane.b32.xlu1 %v27418_v6, %s30120_s23  ;;  %8679 = vrot.lane.b32.xlu0 %v27380_v56, %s30118_s24 }
0x13c6   :  { %8861 = vrot.lane.b32.xlu1 %v27412_v45, %s30118_s24  ;;  %8865 = vrot.lane.b32.xlu0 %v27412_v45, %s30120_s23 }
0x13ca   :  { %8770 = vrot.lane.b32.xlu0 %v27406_v36, %s30118_s24 }
0x13ce   :  { %8859 = vrot.lane.b32.xlu0 %v27418_v6, %s30118_s24  ;;  %s30123_s24 = smov 112  }
0x1400   :  { %v7945_v29 = vpop.xlane.xlu0 %7944 }
0x1401   :  { %25920 = vrcp.f32 %v7945_v29 }
0x1402   :  { %v7942_v12 = vpop.xlane.xlu1 %7941 }
0x1403   :  { %25922 = vrcp.f32 %v7942_v12 }
0x140e   :  { %v25921_v1 = vpop.eup %25920 }
0x140f   :  { %v7973_v8 = vmul.f32 %v25921_v1, %v27598_v57 }
0x1410   :  { %v25923_v51 = vpop.eup %25922 }
0x1411   :  { %v7972_v25 = vmul.f32 %v25923_v51, %v27602_v59 }
0x1413   :  { %24610 = vmatprep.mubr.msk.f32.mxu0 %vm140_vm0, %v7972_v25 }
0x1414   :  { %24611 = vmatmul.mubr.msk.f32.vlgmr.msra.gmra.mxu0 %vm140_vm0, %v7973_v8 }
0x1415   :  { %24621 = vmatpush3.msra.mxu0 %v8157_v27  ;;  %v7948_v3 = vpop.xlane.xlu1 %7947 }
0x1416   :  { %25924 = vrcp.f32 %v7948_v3  ;;  %24622 = vmatprep.subr.mxu0 %v8155_v43 }
0x1417   :  { %24623 = vmatpush3.msra.mxu0 %v8155_v43 }
0x1418   :  { %24634 = vmatprep.subr.mxu0 %v6717_v15 }
0x1419   :  { %v7951_v16 = vpop.xlane.xlu0 %7950  ;;  %v7954_v5 = vpop.xlane.xlu1 %7953 }
0x141a   :  { %25926 = vrcp.f32 %v7951_v16 }
0x141b   :  { %25928 = vrcp.f32 %v7954_v5 }
0x141d   :  { %v7957_v50 = vpop.xlane.xlu0 %7956 }
0x141e   :  { %25930 = vrcp.f32 %v7957_v50  ;;  %v7960_v59 = vpop.xlane.xlu1 %7959 }
0x141f   :  { %25932 = vrcp.f32 %v7960_v59 }
0x1421   :  { %v7963_v57 = vpop.xlane.xlu0 %7962 }
0x1422   :  { %25934 = vrcp.f32 %v7963_v57  ;;  %v8242_v30 = vpop.permute.xlu1 %8241 }
0x1423   :  { %v25925_v37 = vpop.eup %25924 }
0x1424   :  { %v7974_v19 = vmul.f32 %v25925_v37, %v27606_v7  ;;  %v6716_v7 = vld [vmem:[%s27669_s8] sm:$0xff] }
0x1425   :  { %v8244_v9 = vpop.permute.xlu0 %8243 }
0x1426   :  { %v27677_v55 = vpop.permute.xlu1 %8590  ;;  %24617 = vmatprep.mubr.msk.f32.mxu1 %vm140_vm0, %v7974_v19  ;;  %24627 = vmatprep.subr.mxu1 %v8244_v9 }
0x1427   :  { %v25927_v11 = vpop.eup %25926 }
0x1428   :  { %v25929_v0 = vpop.eup %25928  ;;  %v7975_v40 = vmul.f32 %v25927_v11, %v27612_v28 }
0x1429   :  { %v8593_v60 = vpop.permute.xlu0 %8592  ;;  %v7976_v2 = vmul.f32 %v25929_v0, %v27610_v61 }
0x142a   :  { %v27682_v24 = vpop.permute.xlu1 %8586  ;;  %24618 = vmatmul.mubr.msk.f32.vlgmr.msra.gmra.mxu1 %vm140_vm0, %v7975_v40 }
0x142b   :  { %v25931_v13 = vpop.eup %25930  ;;  %24624 = vmatprep.mubr.msk.f32.mxu0 %vm140_vm0, %v7976_v2  ;;  %24628 = vmatpush3.msra.mxu1 %v8244_v9 }
0x142c   :  { %v25933_v27 = vpop.eup %25932  ;;  %v7977_v47 = vmul.f32 %v25931_v13, %v27618_v52  ;;  %24629 = vmatprep.subr.mxu1 %v8242_v30 }
0x142d   :  { %24630 = vmatpush3.msra.mxu1 %v8242_v30  ;;  %v8684_v31 = vpop.permute.xlu0 %8683  ;;  %v7978_v28 = vmul.f32 %v25933_v27, %v27620_v54 }
0x142e   :  { %24625 = vmatmul.mubr.msk.f32.vlgmr.msra.gmra.mxu0 %vm140_vm0, %v7977_v47  ;;  %24648 = vmatprep.subr.mxu1 %v6716_v7  ;;  %v8682_v48 = vpop.permute.xlu1 %8681 }
0x142f   :  { %v25935_v61 = vpop.eup %25934  ;;  %24631 = vmatprep.mubr.msk.f32.mxu1 %vm140_vm0, %v7978_v28  ;;  %24635 = vmatpush3.msra.mxu0 %v6717_v15 }
0x1430   :  { %v7979_v35 = vmul.f32 %v25935_v61, %v27626_v58  ;;  %24662 = vmatprep.subr.msk.mxu0 %vm418_vm3, %v8593_v60 }
0x1431   :  { %v8589_v46 = vpop.permute.xlu0 %8588 }
0x1432   :  { %24632 = vmatmul.mubr.msk.f32.vlgmr.msra.gmra.mxu1 %vm140_vm0, %v7979_v35  ;;  %v8678_v52 = vpop.permute.xlu1 %8677 }
0x1433   :  { %24649 = vmatpush3.msra.mxu1 %v6716_v7  ;;  %24650 = vmatprep.mubr.msk.f32.mxu1 %vm418_vm3, %v27568_v17 }
0x1434   :  { %24669 = vmatprep.subr.msk.mxu1 %vm418_vm3, %v8684_v31 }
0x1435   :  { %v8775_v54 = vpop.permute.xlu0 %8774 }
0x1436   :  { %24651 = vmatmul.mubr.msk.f32.vlgmr.msra.gmra.mxu1 %vm418_vm3, %v27566_v49  ;;  %v8773_v42 = vpop.permute.xlu1 %8772 }
0x1437   :  { %24670 = vmatpush3.xpose.msk.msra.mxu1 %vm418_vm3, %v8684_v31  ;;  %24653 = vmatprep.mubr.msk.f32.mxu1 %vm418_vm3, %v27574_v20 }
0x1438   :  { %24671 = vmatprep.subr.msk.mxu1 %vm418_vm3, %v8682_v48 }
0x1439   :  { %v8680_v58 = vpop.permute.xlu0 %8679 }
0x143a   :  { %24654 = vmatmul.mubr.msk.f32.gmra.mxu1 %vm418_vm3, %v27572_v33  ;;  %v8769_v49 = vpop.permute.xlu1 %8768 }
0x143b   :  { %24672 = vmatpush3.xpose.msk.msra.mxu1 %vm418_vm3, %v8682_v48  ;;  %24656 = vmatprep.mubr.msk.f32.mxu1 %vm418_vm3, %v27564_v44 }
0x143d   :  { %v8866_v17 = vpop.permute.xlu0 %8865 }
0x143e   :  { %24657 = vmatmul.mubr.msk.f32.gmra.mxu1 %vm418_vm3, %v27562_v10  ;;  %24683 = vmatprep.subr.msk.mxu1 %vm418_vm3, %v8866_v17  ;;  %v8864_v44 = vpop.permute.xlu1 %8863 }
0x143f   :  { %24659 = vmatprep.mubr.msk.f32.mxu1 %vm418_vm3, %v27579_v63 }
0x1441   :  { %v8771_v20 = vpop.permute.xlu0 %8770 }
0x1442   :  { %24660 = vmatmul.mubr.msk.f32.gmra.mxu1 %vm418_vm3, %v27576_v62  ;;  %v8862_v10 = vpop.permute.xlu1 %8861 }
0x1443   :  { %24673 = vmatprep.mubr.msk.f32.mxu1 %vm418_vm3, %v8678_v52 }
0x1445   :  { %v8860_v33 = vpop.permute.xlu0 %8859 }
0x1446   :  { %24674 = vmatmul.mubr.msk.f32.vlgmr.msra.gmra.mxu1 %vm418_vm3, %v8680_v58 }
0x1447   :  { %24684 = vmatpush3.xpose.msk.msra.mxu1 %vm418_vm3, %v8866_v17  ;;  %24687 = vmatprep.mubr.msk.f32.mxu1 %vm418_vm3, %v8860_v33 }
0x1448   :  { %24685 = vmatprep.subr.msk.mxu1 %vm418_vm3, %v8864_v44 }
0x144b   :  { %24686 = vmatpush3.xpose.msk.msra.mxu1 %vm418_vm3, %v8864_v44 }
0x144e   :  { %24688 = vmatmul.mubr.msk.f32.vlgmr.msra.gmra.mxu1 %vm418_vm3, %v8862_v10 }
0x14d4   :  { %v24612_v63 = vpop.f32.mrf.mxu0 }
0x14d6   :  { %v8058_v43 = vpop.f32.mrf.mxu0 }
0x14d7   :  { %24636 = vmatprep.mubr.msk.f32.mxu0 %vm418_vm3, %v8058_v43 }
0x14d8   :  { %24637 = vmatmul.mubr.msk.f32.vlgmr.msra.gmra.mxu0 %vm418_vm3, %v24612_v63 }
0x14d9   :  { %24663 = vmatpush3.xpose.msk.msra.mxu0 %vm418_vm3, %v8593_v60 }
0x14da   :  { %24664 = vmatprep.subr.msk.mxu0 %vm418_vm3, %v27677_v55 }
0x14dd   :  { %24665 = vmatpush3.xpose.msk.msra.mxu0 %vm418_vm3, %v27677_v55 }
0x14de   :  { %24676 = vmatprep.subr.msk.mxu0 %vm418_vm3, %v8775_v54 }
0x14ea   :  { %v24619_v62 = vpop.f32.mrf.mxu1 }
0x14ec   :  { %v8145_v29 = vpop.f32.mrf.mxu1 }
0x14ed   :  { %24639 = vmatprep.mubr.msk.f32.mxu0 %vm418_vm3, %v8145_v29 }
0x14ee   :  { %v24626_v12 = vpop.f32.mrf.mxu0  ;;  %24640 = vmatmul.mubr.msk.f32.gmra.mxu0 %vm418_vm3, %v24619_v62 }
0x14f0   :  { %v8232_v1 = vpop.f32.mrf.mxu0 }
0x14f1   :  { %24642 = vmatprep.mubr.msk.f32.mxu0 %vm418_vm3, %v8232_v1 }
0x14f2   :  { %v24633_v51 = vpop.f32.mrf.mxu1  ;;  %24643 = vmatmul.mubr.msk.f32.gmra.mxu0 %vm418_vm3, %v24626_v12 }
0x14f4   :  { %v8319_v25 = vpop.f32.mrf.mxu1 }
0x14f5   :  { %24645 = vmatprep.mubr.msk.f32.mxu0 %vm418_vm3, %v8319_v25 }
0x14f6   :  { %24646 = vmatmul.mubr.msk.f32.gmra.mxu0 %vm418_vm3, %v24633_v51  ;;  %v27736_v8 = vpop.f32.mrf.mxu1 }
0x14f7   :  { %24666 = vmatprep.mubr.msk.f32.mxu0 %vm418_vm3, %v27682_v24 }
0x14f8   :  { %v27740_v3 = vpop.f32.mrf.mxu1 }
0x14fa   :  { %v27742_v15 = vpop.f32.mrf.mxu1  ;;  %24667 = vmatmul.mubr.msk.f32.vlgmr.msra.gmra.mxu0 %vm418_vm3, %v8589_v46 }
0x14fb   :  { %24677 = vmatpush3.xpose.msk.msra.mxu0 %vm418_vm3, %v8775_v54  ;;  %24680 = vmatprep.mubr.msk.f32.mxu0 %vm418_vm3, %v8769_v49 }
0x14fc   :  { %24678 = vmatprep.subr.msk.mxu0 %vm418_vm3, %v8773_v42  ;;  %v27748_v16 = vpop.f32.mrf.mxu1 }
0x14fe   :  { %v27750_v5 = vpop.f32.mrf.mxu1 }
0x14ff   :  { %24679 = vmatpush3.xpose.msk.msra.mxu0 %vm418_vm3, %v8773_v42 }
0x1500   :  { %v27753_v50 = vpop.f32.mrf.mxu1 }
0x1502   :  { %24681 = vmatmul.mubr.msk.f32.vlgmr.msra.gmra.mxu0 %vm418_vm3, %v8771_v20  ;;  %v27756_v59 = vpop.f32.mrf.mxu1 }
0x1504   :  { %v27758_v57 = vpop.f32.mrf.mxu1 }
0x1506   :  { %v24675_v30 = vpop.f32.mrf.mxu1 }
0x1507   :  { %v8953_v9 = vmul.f32 0.35355338, %v24675_v30 }
0x1508   :  { %v8759_v37 = vpop.f32.mrf.mxu1 }
0x1509   :  { %v8952_v19 = vmul.f32 0.35355338, %v8759_v37  ;;  %v8967_v11 = vsel %vm140_vm0, %v8953_v9, -inf }
0x150b   :  { %v8964_v55 = vsel %vm140_vm0, %v8952_v19, -inf }
0x150c   :  { %8965 = vmax.xlane.f32.xlu0 %v8964_v55 }
0x150e   :  { %v24689_v49 = vpop.f32.mrf.mxu1 }
0x150f   :  { %v8957_v63 = vmul.f32 0.35355338, %v24689_v49 }
0x1510   :  { %8968 = vmax.xlane.f32.xlu0 %v8967_v11  ;;  %v8941_v44 = vpop.f32.mrf.mxu1 }
0x1511   :  { %v8956_v29 = vmul.f32 0.35355338, %v8941_v44  ;;  %v8979_v1 = vsel %vm140_vm0, %v8957_v63, -inf }
0x1513   :  { %v8976_v25 = vsel %vm140_vm0, %v8956_v29, -inf }
0x1595   :  { %v8966_v40 = vpop.xlane.xlu0 %8965 }
0x1596   :  { %v8984_v28 = vsub.f32 %v8952_v19, %v8966_v40 }
0x1598   :  { %v27762_v0 = vpop.f32.mrf.mxu0  ;;  %v8994_v46 = vmul.f32 1.442695, %v8984_v28 }
0x1599   :  { %v8969_v13 = vpop.xlane.xlu0 %8968 }
0x159a   :  { %v27764_v60 = vpop.f32.mrf.mxu0  ;;  %v8985_v47 = vsub.f32 %v8953_v9, %v8969_v13 }
0x159c   :  { %v8996_v48 = vmul.f32 1.442695, %v8985_v47 }
0x159e   :  { %25936 = vpow2.f32 %v8996_v48 }
0x159f   :  { %25938 = vpow2.f32 %v8994_v46 }
0x15ab   :  { %v27786_v51 = vpop.eup %25936 }
0x15ac   :  { %v25939_v30 = vpop.eup %25938  ;;  %v9015_v37 = vsel %vm140_vm0, %v27786_v51, 0.0 }
0x15ad   :  { %v9012_v19 = vsel %vm140_vm0, %v25939_v30, 0.0 }
0x15ae   :  { %v27766_v2 = vpop.f32.mrf.mxu0 }
0x15b0   :  { %v27768_v24 = vpop.f32.mrf.mxu0 }
0x15b2   :  { %v27770_v7 = vpop.f32.mrf.mxu0 }
0x15b4   :  { %v27772_v27 = vpop.f32.mrf.mxu0 }
0x15b6   :  { %v27774_v31 = vpop.f32.mrf.mxu0 }
0x15b8   :  { %v27776_v61 = vpop.f32.mrf.mxu0 }
0x15ba   :  { %v24668_v35 = vpop.f32.mrf.mxu0 }
0x15bb   :  { %v8951_v52 = vmul.f32 0.35355338, %v24668_v35 }
0x15bc   :  { %v8668_v54 = vpop.f32.mrf.mxu0 }
0x15bd   :  { %v8950_v58 = vmul.f32 0.35355338, %v8668_v54  ;;  %v8961_v42 = vsel %vm140_vm0, %v8951_v52, -inf }
0x15be   :  { %8962 = vmax.xlane.f32.xlu1 %v8961_v42 }
0x15bf   :  { %v8958_v17 = vsel %vm140_vm0, %v8950_v58, -inf }
0x15c0   :  { %8959 = vmax.xlane.f32.xlu0 %v8958_v17 }
0x15c2   :  { %v24682_v20 = vpop.f32.mrf.mxu0 }
0x15c3   :  { %v27780_v33 = vmul.f32 0.35355338, %v24682_v20 }
0x15c4   :  { %v8850_v10 = vpop.f32.mrf.mxu0 }
0x15c5   :  { %v8954_v43 = vmul.f32 0.35355338, %v8850_v10  ;;  %v8973_v62 = vsel %vm140_vm0, %v27780_v33, -inf }
0x15c6   :  { %8974 = vmax.xlane.f32.xlu0 %v8973_v62 }
0x15c7   :  { %v8970_v12 = vsel %vm140_vm0, %v8954_v43, -inf }
0x15c8   :  { %8971 = vmax.xlane.f32.xlu1 %v8970_v12 }
0x15ca   :  { %8980 = vmax.xlane.f32.xlu0 %v8979_v1 }
0x15cc   :  { %8977 = vmax.xlane.f32.xlu1 %v8976_v25 }
0x15ce   :  { %9016 = vadd.xlane.f32.xlu0 %v9015_v37 }
0x15d0   :  { %9013 = vadd.xlane.f32.xlu1 %v9012_v19 }
0x1647   :  { %v8963_v55 = vpop.xlane.xlu1 %8962 }
0x1649   :  { %v8960_v9 = vpop.xlane.xlu0 %8959 }
0x164f   :  { %v8975_v11 = vpop.xlane.xlu0 %8974 }
0x1651   :  { %v8972_v40 = vpop.xlane.xlu1 %8971 }
0x1652   :  { %v8986_v1 = vsub.f32 %v8954_v43, %v8972_v40  ;;  %v8987_v43 = vsub.f32 %v27780_v33, %v8975_v11 }
0x1653   :  { %v8981_v13 = vpop.xlane.xlu0 %8980 }
0x1654   :  { %v8989_v47 = vsub.f32 %v8957_v63, %v8981_v13  ;;  %v8983_v63 = vsub.f32 %v8951_v52, %v8963_v55 }
0x1655   :  { %v8978_v28 = vpop.xlane.xlu1 %8977 }
0x1656   :  { %v9004_v48 = vmul.f32 1.442695, %v8989_v47  ;;  %v8988_v35 = vsub.f32 %v8956_v29, %v8978_v28  ;;  %v8992_v62 = vmul.f32 1.442695, %v8983_v63  ;;  %v8982_v29 = vsub.f32 %v8950_v58, %v8960_v9 }
0x1657   :  { %v9000_v9 = vmul.f32 1.442695, %v8987_v43  ;;  %v9017_v11 = vpop.xlane.xlu0 %9016 }
0x1658   :  { %25940 = vpow2.f32 %v9004_v48  ;;  %v9002_v46 = vmul.f32 1.442695, %v8988_v35  ;;  %v8990_v12 = vmul.f32 1.442695, %v8982_v29 }
0x1659   :  { %v9014_v54 = vpop.xlane.xlu1 %9013 }
0x165a   :  { %25942 = vpow2.f32 %v9002_v46 }
0x165b   :  { %25944 = vrcp.f32 %v9014_v54 }
0x165c   :  { %25946 = vpow2.f32 %v8992_v62 }
0x165d   :  { %25948 = vpow2.f32 %v8990_v12 }
0x1665   :  { %v27792_v42 = vpop.eup %25940 }
0x1666   :  { %v9027_v17 = vsel %vm140_vm0, %v27792_v42, 0.0 }
0x1667   :  { %v27796_v49 = vpop.eup %25942  ;;  %9028 = vadd.xlane.f32.xlu0 %v9027_v17 }
0x1668   :  { %v25945_v20 = vpop.eup %25944  ;;  %v9024_v44 = vsel %vm140_vm0, %v27796_v49, 0.0 }
0x1669   :  { %9025 = vadd.xlane.f32.xlu1 %v9024_v44  ;;  %v9040_v10 = vmul.f32 %v25945_v20, %v25939_v30  ;;  %v27811_v25 = vpop.eup %25946  ;;  %v8998_v30 = vmul.f32 1.442695, %v8986_v1 }
0x166a   :  { %v9009_v37 = vsel %vm140_vm0, %v27811_v25, 0.0  ;;  %v27815_v19 = vpop.eup %25948 }
0x166b   :  { %24701 = vmatprep.mubr.msk.f32.mxu1 %vm140_vm0, %v9040_v10  ;;  %25950 = vpow2.f32 %v8998_v30  ;;  %v9006_v52 = vsel %vm140_vm0, %v27815_v19, 0.0 }
0x166c   :  { %25952 = vpow2.f32 %v9000_v9 }
0x166d   :  { %25954 = vrcp.f32 %v9017_v11 }
0x1678   :  { %v27819_v55 = vpop.eup %25950 }
0x1679   :  { %v9018_v58 = vsel %vm140_vm0, %v27819_v55, 0.0  ;;  %v27834_v40 = vpop.eup %25952 }
0x167a   :  { %9048 = vrot.lane.b32.xlu1 %v27374_v21, %s30116_s29  ;;  %v9021_v33 = vsel %vm140_vm0, %v27834_v40, 0.0  ;;  %v25955_v46 = vpop.eup %25954 }
0x167b   :  { %v9041_v17 = vmul.f32 %v25955_v46, %v27786_v51 }
0x167d   :  { %9046 = vrot.lane.b32.xlu0 %v27376_v23, %s30116_s29 }
0x167e   :  { %9135 = vrot.lane.b32.xlu1 %v27380_v56, %s30116_s29 }
0x1682   :  { %9133 = vrot.lane.b32.xlu1 %v27386_v32, %s30116_s29 }
0x1686   :  { %9220 = vrot.lane.b32.xlu1 %v27408_v41, %s30116_s29 }
0x169c   :  { %9010 = vadd.xlane.f32.xlu0 %v9009_v37 }
0x16aa   :  { %9007 = vadd.xlane.f32.xlu1 %v9006_v52 }
0x16ae   :  { %9019 = vadd.xlane.f32.xlu1 %v9018_v58  ;;  %v6718_v58 = vld [vmem:[%s27669_s8 + $0x10] sm:$0xff] }
0x16b2   :  { %9222 = vrot.lane.b32.xlu0 %v27406_v36, %s30116_s29 }
0x16bf   :  { %9307 = vrot.lane.b32.xlu1 %v27418_v6, %s30116_s29 }
0x16c3   :  { %9535 = vrot.lane.b32.xlu1 %v27376_v23, %s30112_s1 }
0x16c7   :  { %9628 = vrot.lane.b32.xlu1 %v27380_v56, %s30112_s1 }
0x16cb   :  { %9626 = vrot.lane.b32.xlu1 %v27386_v32, %s30112_s1 }
0x16cf   :  { %9622 = vrot.lane.b32.xlu1 %v27386_v32, %s30114_s30 }
0x16d1   :  { %9022 = vadd.xlane.f32.xlu0 %v9021_v33 }
0x16d3   :  { %9717 = vrot.lane.b32.xlu1 %v27408_v41, %s30112_s1 }
0x16d7   :  { %9713 = vrot.lane.b32.xlu1 %v27408_v41, %s30114_s30 }
0x16db   :  { %9808 = vrot.lane.b32.xlu1 %v27418_v6, %s30112_s1 }
0x16df   :  { %9806 = vrot.lane.b32.xlu1 %v27412_v45, %s30114_s30 }
0x16e7   :  { %9309 = vrot.lane.b32.xlu0 %v27412_v45, %s30116_s29  ;;  %s30124_s29 = smov 48  }
0x16eb   :  { %9537 = vrot.lane.b32.xlu0 %v27374_v21, %s30112_s1 }
0x16ef   :  { %9531 = vrot.lane.b32.xlu0 %v27376_v23, %s30114_s30 }
0x16f0   :  { %v9029_v13 = vpop.xlane.xlu0 %9028 }
0x16f2   :  { %v9026_v47 = vpop.xlane.xlu1 %9025 }
0x16f3   :  { %25956 = vrcp.f32 %v9026_v47  ;;  %9533 = vrot.lane.b32.xlu0 %v27374_v21, %s30114_s30 }
0x16f4   :  { %v9047_v48 = vpop.permute.xlu0 %9046 }
0x16f6   :  { %v9049_v28 = vpop.permute.xlu1 %9048 }
0x16f7   :  { %9719 = vrot.lane.b32.xlu0 %v27406_v36, %s30112_s1  ;;  %24690 = vmatprep.subr.mxu0 %v9049_v28 }
0x16f8   :  { %24691 = vmatpush3.msra.mxu0 %v9049_v28 }
0x16f9   :  { %24692 = vmatprep.subr.mxu0 %v9047_v48 }
0x16fa   :  { %24693 = vmatpush3.msra.mxu0 %v9047_v48  ;;  %v9136_v35 = vpop.permute.xlu1 %9135 }
0x16fb   :  { %9624 = vrot.lane.b32.xlu0 %v27380_v56, %s30114_s30  ;;  %24697 = vmatprep.subr.mxu1 %v9136_v35 }
0x16fc   :  { %24698 = vmatpush3.msra.mxu1 %v9136_v35 }
0x16fe   :  { %v9134_v54 = vpop.permute.xlu1 %9133 }
0x16ff   :  { %9810 = vrot.lane.b32.xlu0 %v27412_v45, %s30112_s1  ;;  %24699 = vmatprep.subr.mxu1 %v9134_v54  ;;  %s26350_s1 = smov 15  }
0x1700   :  { %v25957_v20 = vpop.eup %25956  ;;  %24700 = vmatpush3.msra.mxu1 %v9134_v54  ;;  %s28172_s4 = sld [smem:[%s30109_s0 + %s26350_s1]]   ;;  %s26353_s1 = smov 21  }
0x1701   :  { %24702 = vmatmul.mubr.msk.f32.vlgmr.msra.gmra.mxu1 %vm140_vm0, %v9041_v17  ;;  %v9044_v44 = vmul.f32 %v25957_v20, %v27796_v49  ;;  %s28260_s23 = sld [smem:[%s30109_s0 + %s26353_s1]]  }
0x1702   :  { %v9221_v63 = vpop.permute.xlu1 %9220 }
0x1703   :  { %9715 = vrot.lane.b32.xlu0 %v27406_v36, %s30114_s30  ;;  %24715 = vmatprep.mubr.msk.f32.mxu1 %vm140_vm0, %v9044_v44 }
0x1707   :  { %9804 = vrot.lane.b32.xlu0 %v27418_v6, %s30114_s30  ;;  %s28110_s30 = sld [smem:[%s30109_s0 + %s26349_s14]]  }
0x1725   :  { %v9011_v10 = vpop.xlane.xlu0 %9010 }
0x1726   :  { %25958 = vrcp.f32 %v9011_v10 }
0x1729   :  { %v9223_v51 = vpop.permute.xlu0 %9222 }
0x172a   :  { %24704 = vmatprep.subr.mxu0 %v9223_v51 }
0x1733   :  { %v9008_v62 = vpop.xlane.xlu1 %9007  ;;  %v25959_v12 = vpop.eup %25958 }
0x1734   :  { %25960 = vrcp.f32 %v9008_v62  ;;  %v9039_v30 = vmul.f32 %v25959_v12, %v27811_v25 }
0x1737   :  { %v9020_v29 = vpop.xlane.xlu1 %9019 }
0x1738   :  { %25962 = vrcp.f32 %v9020_v29 }
0x1739   :  { %25964 = vrcp.f32 %v9029_v13 }
0x173b   :  { %v9308_v43 = vpop.permute.xlu1 %9307 }
0x173f   :  { %v9536_v9 = vpop.permute.xlu1 %9535 }
0x1741   :  { %v25961_v49 = vpop.eup %25960 }
0x1742   :  { %v9038_v1 = vmul.f32 %v25961_v49, %v27815_v19 }
0x1743   :  { %v9629_v19 = vpop.permute.xlu1 %9628 }
0x1744   :  { %24694 = vmatprep.mubr.msk.f32.mxu0 %vm140_vm0, %v9038_v1 }
0x1745   :  { %v25963_v37 = vpop.eup %25962  ;;  %24695 = vmatmul.mubr.msk.f32.vlgmr.msra.gmra.mxu0 %vm140_vm0, %v9039_v30 }
0x1746   :  { %24705 = vmatpush3.msra.mxu0 %v9223_v51  ;;  %v9042_v52 = vmul.f32 %v25963_v37, %v27819_v55  ;;  %v25965_v25 = vpop.eup %25964 }
0x1747   :  { %24706 = vmatprep.subr.mxu0 %v9221_v63  ;;  %v9627_v47 = vpop.permute.xlu1 %9626  ;;  %v9045_v28 = vmul.f32 %v25965_v25, %v27792_v42 }
0x1748   :  { %24707 = vmatpush3.msra.mxu0 %v9221_v63  ;;  %24708 = vmatprep.mubr.msk.f32.mxu0 %vm140_vm0, %v9042_v52 }
0x1749   :  { %24718 = vmatprep.subr.mxu0 %v6718_v58 }
0x174b   :  { %v9623_v13 = vpop.permute.xlu1 %9622 }
0x174f   :  { %v9718_v54 = vpop.permute.xlu1 %9717 }
0x175a   :  { %v9023_v33 = vpop.xlane.xlu0 %9022 }
0x175b   :  { %25966 = vrcp.f32 %v9023_v33 }
0x175e   :  { %v9310_v11 = vpop.permute.xlu0 %9309 }
0x175f   :  { %24711 = vmatprep.subr.mxu1 %v9310_v11 }
0x1760   :  { %24712 = vmatpush3.msra.mxu1 %v9310_v11 }
0x1761   :  { %24713 = vmatprep.subr.mxu1 %v9308_v43 }
0x1762   :  { %v9538_v55 = vpop.permute.xlu0 %9537  ;;  %24714 = vmatpush3.msra.mxu1 %v9308_v43 }
0x1763   :  { %24716 = vmatmul.mubr.msk.f32.vlgmr.msra.gmra.mxu1 %vm140_vm0, %v9045_v28  ;;  %24732 = vmatprep.subr.msk.mxu1 %vm418_vm3, %v9538_v55 }
0x1764   :  { %24733 = vmatpush3.xpose.msk.msra.mxu1 %vm418_vm3, %v9538_v55 }
0x1765   :  { %24734 = vmatprep.subr.msk.mxu1 %vm418_vm3, %v9536_v9 }
0x1766   :  { %v9532_v48 = vpop.permute.xlu0 %9531 }
0x1767   :  { %24736 = vmatprep.mubr.msk.f32.mxu1 %vm418_vm3, %v9532_v48 }
0x1768   :  { %v25967_v35 = vpop.eup %25966  ;;  %24735 = vmatpush3.xpose.msk.msra.mxu1 %vm418_vm3, %v9536_v9 }
0x1769   :  { %v9043_v42 = vmul.f32 %v25967_v35, %v27834_v40  ;;  %24739 = vmatprep.subr.msk.mxu1 %vm418_vm3, %v9629_v19  ;;  %v9714_v40 = vpop.permute.xlu1 %9713 }
0x176a   :  { %v9534_v46 = vpop.permute.xlu0 %9533 }
0x176b   :  { %24709 = vmatmul.mubr.msk.f32.vlgmr.msra.gmra.mxu0 %vm140_vm0, %v9043_v42  ;;  %24737 = vmatmul.mubr.msk.f32.vlgmr.msra.gmra.mxu1 %vm418_vm3, %v9534_v46  ;;  %v8553_v42 = vadd.f32 %v27736_v8, %v27762_v0  ;;  %v8573_v8 = vadd.f32 %v27750_v5, %v27770_v7 }
0x176c   :  { %24740 = vmatpush3.xpose.msk.msra.mxu1 %vm418_vm3, %v9629_v19  ;;  %24743 = vmatprep.mubr.msk.f32.mxu1 %vm418_vm3, %v9623_v13 }
0x176d   :  { %24741 = vmatprep.subr.msk.mxu1 %vm418_vm3, %v9627_v47  ;;  %24719 = vmatpush3.msra.mxu0 %v6718_v58  ;;  %v9809_v10 = vpop.permute.xlu1 %9808 }
0x176e   :  { %v9720_v17 = vpop.permute.xlu0 %9719 }
0x176f   :  { %24746 = vmatprep.subr.msk.mxu0 %vm418_vm3, %v9720_v17 }
0x1770   :  { %24742 = vmatpush3.xpose.msk.msra.mxu1 %vm418_vm3, %v9627_v47 }
0x1771   :  { %v9807_v62 = vpop.permute.xlu1 %9806 }
0x1772   :  { %v9625_v20 = vpop.permute.xlu0 %9624 }
0x1773   :  { %24744 = vmatmul.mubr.msk.f32.vlgmr.msra.gmra.mxu1 %vm418_vm3, %v9625_v20 }
0x1776   :  { %v9811_v44 = vpop.permute.xlu0 %9810 }
0x1777   :  { %24753 = vmatprep.subr.msk.mxu1 %vm418_vm3, %v9811_v44 }
0x1778   :  { %24754 = vmatpush3.xpose.msk.msra.mxu1 %vm418_vm3, %v9811_v44 }
0x1779   :  { %24755 = vmatprep.subr.msk.mxu1 %vm418_vm3, %v9809_v10 }
0x177a   :  { %v9716_v51 = vpop.permute.xlu0 %9715 }
0x177c   :  { %24756 = vmatpush3.xpose.msk.msra.mxu1 %vm418_vm3, %v9809_v10 }
0x177e   :  { %v9805_v63 = vpop.permute.xlu0 %9804 }
0x177f   :  { %24757 = vmatprep.mubr.msk.f32.mxu1 %vm418_vm3, %v9805_v63 }
0x1780   :  { %24758 = vmatmul.mubr.msk.f32.vlgmr.msra.gmra.mxu1 %vm418_vm3, %v9807_v62 }
0x17c1   :  { %v24703_v29 = vpop.f32.mrf.mxu1 }
0x17c3   :  { %v9211_v1 = vpop.f32.mrf.mxu1 }
0x1805   :  { %v24696_v12 = vpop.f32.mrf.mxu0 }
0x1807   :  { %v9124_v49 = vpop.f32.mrf.mxu0 }
0x1808   :  { %24720 = vmatprep.mubr.msk.f32.mxu0 %vm418_vm3, %v9124_v49 }
0x1809   :  { %24721 = vmatmul.mubr.msk.f32.vlgmr.msra.gmra.mxu0 %vm418_vm3, %v24696_v12 }
0x180a   :  { %24747 = vmatpush3.xpose.msk.msra.mxu0 %vm418_vm3, %v9720_v17  ;;  %24723 = vmatprep.mubr.msk.f32.mxu0 %vm418_vm3, %v9211_v1 }
0x180b   :  { %24748 = vmatprep.subr.msk.mxu0 %vm418_vm3, %v9718_v54 }
0x180d   :  { %24724 = vmatmul.mubr.msk.f32.gmra.mxu0 %vm418_vm3, %v24703_v29 }
0x180e   :  { %24749 = vmatpush3.xpose.msk.msra.mxu0 %vm418_vm3, %v9718_v54 }
0x1823   :  { %v24717_v30 = vpop.f32.mrf.mxu1 }
0x1825   :  { %v9385_v37 = vpop.f32.mrf.mxu1 }
0x182b   :  { %v24710_v52 = vpop.f32.mrf.mxu0  ;;  %v24738_v58 = vpop.f32.mrf.mxu1 }
0x182c   :  { %v9896_v43 = vmul.f32 0.35355338, %v24738_v58  ;;  %v8583_v58 = vadd.f32 %v27756_v59, %v27774_v31 }
0x182d   :  { %v9298_v9 = vpop.f32.mrf.mxu0  ;;  %v9613_v19 = vpop.f32.mrf.mxu1 }
0x182e   :  { %v9895_v33 = vmul.f32 0.35355338, %v9613_v19  ;;  %24726 = vmatprep.mubr.msk.f32.mxu0 %vm418_vm3, %v9298_v9  ;;  %v9906_v25 = vsel %vm140_vm0, %v9896_v43, -inf }
0x182f   :  { %24727 = vmatmul.mubr.msk.f32.gmra.mxu0 %vm418_vm3, %v24710_v52  ;;  %9907 = vmax.xlane.f32.xlu1 %v9906_v25 }
0x1830   :  { %24729 = vmatprep.mubr.msk.f32.mxu0 %vm418_vm3, %v9385_v37  ;;  %v9903_v11 = vsel %vm140_vm0, %v9895_v33, -inf }
0x1831   :  { %9904 = vmax.xlane.f32.xlu0 %v9903_v11 }
0x1833   :  { %24730 = vmatmul.mubr.msk.f32.gmra.mxu0 %vm418_vm3, %v24717_v30  ;;  %v24745_v47 = vpop.f32.mrf.mxu1 }
0x1834   :  { %24750 = vmatprep.mubr.msk.f32.mxu0 %vm418_vm3, %v9714_v40  ;;  %v9898_v13 = vmul.f32 0.35355338, %v24745_v47  ;;  %v8563_v40 = vadd.f32 %v27742_v15, %v27766_v2 }
0x1835   :  { %v9704_v28 = vpop.f32.mrf.mxu1 }
0x1836   :  { %v9897_v55 = vmul.f32 0.35355338, %v9704_v28  ;;  %v9912_v35 = vsel %vm140_vm0, %v9898_v13, -inf }
0x1837   :  { %24751 = vmatmul.mubr.msk.f32.vlgmr.msra.gmra.mxu0 %vm418_vm3, %v9716_v51 }
0x1838   :  { %v9909_v48 = vsel %vm140_vm0, %v9897_v55, -inf }
0x1839   :  { %9910 = vmax.xlane.f32.xlu0 %v9909_v48 }
0x183d   :  { %9913 = vmax.xlane.f32.xlu0 %v9912_v35 }
0x1840   :  { %v24759_v5 = vpop.f32.mrf.mxu1 }
0x1842   :  { %v9886_v47 = vpop.f32.mrf.mxu1 }
0x1843   :  { %v9901_v31 = vmul.f32 0.35355338, %v9886_v47 }
0x18b8   :  { %v9908_v63 = vpop.xlane.xlu1 %9907 }
0x18b9   :  { %v9928_v62 = vsub.f32 %v9896_v43, %v9908_v63 }
0x18ba   :  { %v9905_v10 = vpop.xlane.xlu0 %9904 }
0x18bb   :  { %v9927_v12 = vsub.f32 %v9895_v33, %v9905_v10  ;;  %v9937_v0 = vmul.f32 1.442695, %v9928_v62 }
0x18bd   :  { %v9935_v37 = vmul.f32 1.442695, %v9927_v12  ;;  %25968 = vpow2.f32 %v9937_v0 }
0x18bf   :  { %25970 = vpow2.f32 %v9935_v37 }
0x18c2   :  { %v9911_v51 = vpop.xlane.xlu0 %9910 }
0x18c3   :  { %v9929_v52 = vsub.f32 %v9897_v55, %v9911_v51  ;;  %v9902_v55 = vmul.f32 0.35355338, %v24759_v5 }
0x18c5   :  { %v9939_v19 = vmul.f32 1.442695, %v9929_v52  ;;  %v9924_v35 = vsel %vm140_vm0, %v9902_v55, -inf }
0x18c6   :  { %v9914_v29 = vpop.xlane.xlu0 %9913 }
0x18c7   :  { %v9930_v1 = vsub.f32 %v9898_v13, %v9914_v29 }
0x18c9   :  { %v24722_v46 = vpop.f32.mrf.mxu0  ;;  %v9941_v43 = vmul.f32 1.442695, %v9930_v1 }
0x18ca   :  { %v27919_v54 = vadd.f32 %v24722_v46, %v8553_v42  ;;  %v27944_v42 = vpop.eup %25968  ;;  %v9921_v46 = vsel %vm140_vm0, %v9901_v31, -inf }
0x18cb   :  { %v27921_v17 = vpop.f32.mrf.mxu0  ;;  %25972 = vpow2.f32 %v9941_v43 }
0x18cc   :  { %25974 = vpow2.f32 %v9939_v19 }
0x18cd   :  { %v24725_v20 = vpop.f32.mrf.mxu0 }
0x18ce   :  { %v27925_v44 = vadd.f32 %v24725_v20, %v8563_v40  ;;  %v25971_v40 = vpop.eup %25970  ;;  %v9954_v20 = vsel %vm140_vm0, %v27944_v42, 0.0 }
0x18cf   :  { %v27927_v49 = vpop.f32.mrf.mxu0  ;;  %v9951_v51 = vsel %vm140_vm0, %v25971_v40, 0.0 }
0x18d8   :  { %v27949_v10 = vpop.eup %25972 }
0x18d9   :  { %v27952_v63 = vpop.eup %25974  ;;  %v9960_v62 = vsel %vm140_vm0, %v27949_v10, 0.0 }
0x18da   :  { %v9957_v29 = vsel %vm140_vm0, %v27952_v63, 0.0 }
0x18ef   :  { %v24728_v30 = vpop.f32.mrf.mxu0 }
0x18f0   :  { %v27931_v15 = vadd.f32 %v24728_v30, %v8573_v8 }
0x18f1   :  { %v27933_v2 = vpop.f32.mrf.mxu0 }
0x18f3   :  { %v24731_v9 = vpop.f32.mrf.mxu0 }
0x18f4   :  { %v27937_v33 = vadd.f32 %v24731_v9, %v8583_v58 }
0x18f5   :  { %v27939_v7 = vpop.f32.mrf.mxu0 }
0x18f7   :  { %v24752_v25 = vpop.f32.mrf.mxu0 }
0x18f8   :  { %v9900_v11 = vmul.f32 0.35355338, %v24752_v25 }
0x18f9   :  { %v9795_v28 = vpop.f32.mrf.mxu0 }
0x18fa   :  { %v9899_v13 = vmul.f32 0.35355338, %v9795_v28  ;;  %v9918_v59 = vsel %vm140_vm0, %v9900_v11, -inf }
0x18fb   :  { %9919 = vmax.xlane.f32.xlu0 %v9918_v59 }
0x18fc   :  { %v9915_v48 = vsel %vm140_vm0, %v9899_v13, -inf }
0x18fd   :  { %9916 = vmax.xlane.f32.xlu1 %v9915_v48 }
0x18ff   :  { %9925 = vmax.xlane.f32.xlu0 %v9924_v35 }
0x1901   :  { %9922 = vmax.xlane.f32.xlu1 %v9921_v46 }
0x1903   :  { %9955 = vadd.xlane.f32.xlu0 %v9954_v20 }
0x1905   :  { %9952 = vadd.xlane.f32.xlu1 %v9951_v51 }
0x1907   :  { %9961 = vadd.xlane.f32.xlu0 %v9960_v62 }
0x1909   :  { %9958 = vadd.xlane.f32.xlu1 %v9957_v29 }
0x1984   :  { %v9920_v12 = vpop.xlane.xlu0 %9919 }
0x1986   :  { %v9917_v8 = vpop.xlane.xlu1 %9916 }
0x1988   :  { %v9926_v0 = vpop.xlane.xlu0 %9925 }
0x1989   :  { %v9934_v1 = vsub.f32 %v9902_v55, %v9926_v0  ;;  %v9932_v55 = vsub.f32 %v9900_v11, %v9920_v12 }
0x198a   :  { %v9923_v30 = vpop.xlane.xlu1 %9922 }
0x198b   :  { %v9949_v37 = vmul.f32 1.442695, %v9934_v1  ;;  %v9933_v52 = vsub.f32 %v9901_v31, %v9923_v30  ;;  %v9945_v59 = vmul.f32 1.442695, %v9932_v55  ;;  %v9931_v31 = vsub.f32 %v9899_v13, %v9917_v8 }
0x198d   :  { %25976 = vpow2.f32 %v9949_v37  ;;  %v9947_v58 = vmul.f32 1.442695, %v9933_v52 }
0x198e   :  { %v9953_v43 = vpop.xlane.xlu1 %9952 }
0x198f   :  { %25978 = vpow2.f32 %v9947_v58 }
0x1990   :  { %25980 = vrcp.f32 %v9953_v43 }
0x1991   :  { %25982 = vpow2.f32 %v9945_v59 }
0x199a   :  { %v27958_v9 = vpop.eup %25976 }
0x199b   :  { %v9972_v19 = vsel %vm140_vm0, %v27958_v9, 0.0 }
0x199c   :  { %v25979_v5 = vpop.eup %25978  ;;  %9973 = vadd.xlane.f32.xlu0 %v9972_v19  ;;  %v6719_v19 = vld [vmem:[%s27669_s8 + $0x18] sm:$0xff] }
0x199d   :  { %v25981_v25 = vpop.eup %25980  ;;  %v9969_v47 = vsel %vm140_vm0, %v25979_v5, 0.0 }
0x199e   :  { %9970 = vadd.xlane.f32.xlu1 %v9969_v47  ;;  %v9983_v28 = vmul.f32 %v25981_v25, %v25971_v40  ;;  %v27976_v48 = vpop.eup %25982 }
0x19a0   :  { %24764 = vmatprep.mubr.msk.f32.mxu0 %vm140_vm0, %v9983_v28 }
0x19af   :  { %9993 = vrot.lane.b32.xlu1 %v27374_v21, %s30110_s2  ;;  %v9943_v21 = vmul.f32 1.442695, %v9931_v31 }
0x19b1   :  { %25984 = vpow2.f32 %v9943_v21 }
0x19b2   :  { %9991 = vrot.lane.b32.xlu0 %v27376_v23, %s30110_s2  ;;  %v9966_v23 = vsel %vm140_vm0, %v27976_v48, 0.0 }
0x19b3   :  { %10080 = vrot.lane.b32.xlu1 %v27380_v56, %s30110_s2 }
0x19b6   :  { %10167 = vrot.lane.b32.xlu0 %v27406_v36, %s30110_s2 }
0x19b7   :  { %10078 = vrot.lane.b32.xlu1 %v27386_v32, %s30110_s2  ;;  %v9956_v32 = vpop.xlane.xlu0 %9955 }
0x19b8   :  { %25986 = vrcp.f32 %v9956_v32 }
0x19bb   :  { %10165 = vrot.lane.b32.xlu1 %v27408_v41, %s30110_s2  ;;  %v9959_v41 = vpop.xlane.xlu1 %9958  ;;  %v9962_v11 = vpop.xlane.xlu0 %9961 }
0x19bc   :  { %25988 = vrcp.f32 %v9959_v41  ;;  %v22765_v41 = vld [vmem:[%s28009_s16] ss:$0 sm:$0xff] }
0x19bd   :  { %25990 = vrcp.f32 %v9962_v11 }
0x19be   :  { %v25985_v56 = vpop.eup %25984 }
0x19bf   :  { %v9963_v36 = vsel %vm140_vm0, %v25985_v56, 0.0 }
0x19c5   :  { %v25987_v40 = vpop.eup %25986 }
0x19c9   :  { %v25989_v51 = vpop.eup %25988 }
0x19ca   :  { %v9985_v29 = vmul.f32 %v25989_v51, %v27952_v63  ;;  %v25991_v12 = vpop.eup %25990 }
0x19cb   :  { %v9986_v0 = vmul.f32 %v25991_v12, %v27949_v10 }
0x19d5   :  { %9967 = vadd.xlane.f32.xlu0 %v9966_v23 }
0x19df   :  { %9964 = vadd.xlane.f32.xlu1 %v9963_v36  ;;  %v8548_v36 = vadd.f32 %v27740_v3, %v27764_v60 }
0x19e1   :  { %v9523_v11 = vadd.f32 %v27921_v17, %v8548_v36 }
0x19eb   :  { %10254 = vrot.lane.b32.xlu0 %v27412_v45, %s30110_s2  ;;  %v9984_v45 = vmul.f32 %v25987_v40, %v27944_v42 }
0x19f0   :  { %10252 = vrot.lane.b32.xlu1 %v27418_v6, %s30110_s2  ;;  %s28188_s2 = sld [smem:[%s30109_s0 + %s26351_s9]]   ;;  %s30127_s9 = smov 40  }
0x1a25   :  { %v9974_v13 = vpop.xlane.xlu0 %9973 }
0x1a27   :  { %v9971_v35 = vpop.xlane.xlu1 %9970 }
0x1a28   :  { %25992 = vrcp.f32 %v9971_v35 }
0x1a29   :  { %v9992_v46 = vpop.permute.xlu0 %9991  ;;  %25994 = vrcp.f32 %v9974_v13 }
0x1a2b   :  { %v9994_v20 = vpop.permute.xlu1 %9993 }
0x1a2c   :  { %24760 = vmatprep.subr.mxu0 %v9994_v20 }
0x1a2d   :  { %v10168_v62 = vpop.permute.xlu0 %10167  ;;  %24761 = vmatpush3.msra.mxu0 %v9994_v20  ;;  %v8558_v20 = vadd.f32 %v27748_v16, %v27768_v24 }
0x1a2e   :  { %24762 = vmatprep.subr.mxu0 %v9992_v46  ;;  %24774 = vmatprep.subr.mxu1 %v10168_v62 }
0x1a2f   :  { %24763 = vmatpush3.msra.mxu0 %v9992_v46  ;;  %24775 = vmatpush3.msra.mxu1 %v10168_v62  ;;  %v10081_v6 = vpop.permute.xlu1 %10080 }
0x1a30   :  { %24765 = vmatmul.mubr.msk.f32.vlgmr.msra.gmra.mxu0 %vm140_vm0, %v9984_v45  ;;  %24767 = vmatprep.subr.mxu0 %v10081_v6 }
0x1a31   :  { %24768 = vmatpush3.msra.mxu0 %v10081_v6  ;;  %24771 = vmatprep.mubr.msk.f32.mxu0 %vm140_vm0, %v9985_v29  ;;  %v9525_v6 = vadd.f32 %v27927_v49, %v8558_v20  ;;  %v10635_v20 = vld [vmem:[%s28067_s5 + $0x8] sm:$0xff] }
0x1a33   :  { %v10079_v8 = vpop.permute.xlu1 %10078 }
0x1a34   :  { %24769 = vmatprep.subr.mxu0 %v10079_v8 }
0x1a35   :  { %v25993_v1 = vpop.eup %25992  ;;  %24770 = vmatpush3.msra.mxu0 %v10079_v8 }
0x1a36   :  { %24772 = vmatmul.mubr.msk.f32.vlgmr.msra.gmra.mxu0 %vm140_vm0, %v9986_v0  ;;  %v9989_v42 = vmul.f32 %v25993_v1, %v25979_v5  ;;  %v25995_v10 = vpop.eup %25994 }
0x1a37   :  { %v10166_v30 = vpop.permute.xlu1 %10165  ;;  %v9990_v43 = vmul.f32 %v25995_v10, %v27958_v9 }
0x1a38   :  { %24776 = vmatprep.subr.mxu1 %v10166_v30  ;;  %24785 = vmatprep.mubr.msk.f32.mxu0 %vm140_vm0, %v9989_v42 }
0x1a39   :  { %24777 = vmatpush3.msra.mxu1 %v10166_v30 }
0x1a3a   :  { %24788 = vmatprep.subr.mxu1 %v6719_v19 }
0x1a5e   :  { %v9968_v63 = vpop.xlane.xlu0 %9967 }
0x1a5f   :  { %25996 = vrcp.f32 %v9968_v63 }
0x1a62   :  { %v10255_v37 = vpop.permute.xlu0 %10254 }
0x1a63   :  { %24781 = vmatprep.subr.mxu0 %v10255_v37 }
0x1a64   :  { %24782 = vmatpush3.msra.mxu0 %v10255_v37 }
0x1a68   :  { %v9965_v52 = vpop.xlane.xlu1 %9964 }
0x1a69   :  { %25998 = vrcp.f32 %v9965_v52 }
0x1a6c   :  { %v10253_v58 = vpop.permute.xlu1 %10252  ;;  %v25997_v5 = vpop.eup %25996 }
0x1a6d   :  { %24783 = vmatprep.subr.mxu0 %v10253_v58  ;;  %v9988_v28 = vmul.f32 %v25997_v5, %v27976_v48 }
0x1a6e   :  { %24784 = vmatpush3.msra.mxu0 %v10253_v58 }
0x1a6f   :  { %24786 = vmatmul.mubr.msk.f32.vlgmr.msra.gmra.mxu0 %vm140_vm0, %v9990_v43 }
0x1a76   :  { %v25999_v25 = vpop.eup %25998 }
0x1a77   :  { %v9987_v47 = vmul.f32 %v25999_v25, %v25985_v56 }
0x1a79   :  { %24778 = vmatprep.mubr.msk.f32.mxu1 %vm140_vm0, %v9987_v47 }
0x1a7a   :  { %24779 = vmatmul.mubr.msk.f32.vlgmr.msra.gmra.mxu1 %vm140_vm0, %v9988_v28 }
0x1a7b   :  { %24789 = vmatpush3.msra.mxu1 %v6719_v19 }
0x1af0   :  { %v24766_v55 = vpop.f32.mrf.mxu0 }
0x1af2   :  { %v10069_v59 = vpop.f32.mrf.mxu0 }
0x1af3   :  { %24790 = vmatprep.mubr.msk.f32.mxu1 %vm418_vm3, %v10069_v59 }
0x1af4   :  { %24791 = vmatmul.mubr.msk.f32.vlgmr.msra.gmra.mxu1 %vm418_vm3, %v24766_v55 }
0x1af6   :  { %v24773_v9 = vpop.f32.mrf.mxu0 }
0x1af8   :  { %v10156_v31 = vpop.f32.mrf.mxu0 }
0x1af9   :  { %24793 = vmatprep.mubr.msk.f32.mxu1 %vm418_vm3, %v10156_v31 }
0x1afa   :  { %24794 = vmatmul.mubr.msk.f32.gmra.mxu1 %vm418_vm3, %v24773_v9 }
0x1b2f   :  { %v24787_v21 = vpop.f32.mrf.mxu0 }
0x1b31   :  { %v10330_v56 = vpop.f32.mrf.mxu0 }
0x1b3a   :  { %v24780_v23 = vpop.f32.mrf.mxu1 }
0x1b3c   :  { %v10243_v48 = vpop.f32.mrf.mxu1 }
0x1b3d   :  { %24796 = vmatprep.mubr.msk.f32.mxu1 %vm418_vm3, %v10243_v48 }
0x1b3e   :  { %24797 = vmatmul.mubr.msk.f32.gmra.mxu1 %vm418_vm3, %v24780_v23 }
0x1b3f   :  { %24799 = vmatprep.mubr.msk.f32.mxu1 %vm418_vm3, %v10330_v56 }
0x1b42   :  { %24800 = vmatmul.mubr.msk.f32.gmra.mxu1 %vm418_vm3, %v24787_v21 }
0x1bb4   :  { %v24792_v32 = vpop.f32.mrf.mxu1 }
0x1bb5   :  { %v10469_v13 = vadd.f32 %v24792_v32, %v27919_v54 }
0x1bb6   :  { %v10429_v35 = vpop.f32.mrf.mxu1 }
0x1bb7   :  { %v10484_v46 = vadd.f32 %v22765_v41, %v10469_v13  ;;  %v10468_v40 = vadd.f32 %v10429_v35, %v9523_v11 }
0x1bb9   :  { %v10483_v51 = vadd.f32 %v22765_v41, %v10468_v40  ;;  %v10492_v62 = vadd.f32 %v10484_v46, %v27332_v34  ;;  %v10637_v46 = vld [vmem:[%s28067_s5 + $0x18] sm:$0xff]  ;;  %v10636_v40 = vld [vmem:[%s28067_s5 + $0x10] sm:$0xff] }
0x1bba   :  { %v24795_v45 = vpop.f32.mrf.mxu1  ;;  %24802 = vmatprep.subr.mxu0 %v10637_v46 }
0x1bbb   :  { %v10471_v3 = vadd.f32 %v24795_v45, %v27925_v44  ;;  %v10504_v60 = vsel %vm281_vm1, %v10492_v62, 0.0  ;;  %v10491_v17 = vadd.f32 %v10483_v51, %v27330_v4  ;;  %v8568_v4 = vadd.f32 %v27753_v50, %v27772_v27  ;;  %24803 = vmatpush3.msra.mxu0 %v10637_v46  ;;  %v10634_v51 = vld [vmem:[%s28067_s5] sm:$0xff] }
0x1bbc   :  { %10505 = vadd.xlane.f32.xlu1 %v10504_v60  ;;  %v10439_v54 = vpop.f32.mrf.mxu1  ;;  %24804 = vmatprep.subr.mxu0 %v10636_v40 }
0x1bbd   :  { %v10470_v29 = vadd.f32 %v10439_v54, %v9525_v6  ;;  %v10501_v12 = vsel %vm281_vm1, %v10491_v17, 0.0  ;;  %v10486_v8 = vadd.f32 %v22765_v41, %v10471_v3  ;;  %v9527_v1 = vadd.f32 %v27933_v2, %v8568_v4  ;;  %24805 = vmatpush3.msra.mxu0 %v10636_v40 }
0x1bbe   :  { %10502 = vadd.xlane.f32.xlu0 %v10501_v12  ;;  %24806 = vmatprep.subr.mxu0 %v10635_v20 }
0x1bbf   :  { %v10485_v16 = vadd.f32 %v22765_v41, %v10470_v29  ;;  %v10494_v49 = vadd.f32 %v10486_v8, %v27342_v39  ;;  %24807 = vmatpush3.msra.mxu0 %v10635_v20 }
0x1bc0   :  { %24808 = vmatprep.subr.mxu0 %v10634_v51 }
0x1bc1   :  { %v10493_v24 = vadd.f32 %v10485_v16, %v27340_v14  ;;  %v10510_v44 = vsel %vm281_vm1, %v10494_v49, 0.0  ;;  %v8578_v14 = vadd.f32 %v27758_v57, %v27776_v61  ;;  %24809 = vmatpush3.msra.mxu0 %v10634_v51 }
0x1bc3   :  { %v10507_v34 = vsel %vm281_vm1, %v10493_v24, 0.0  ;;  %v9529_v39 = vadd.f32 %v27939_v7, %v8578_v14  ;;  %v10789_v14 = vld [vmem:[%s28096_s25 + $0x38] sm:$0xff] }
0x1bc4   :  { %10508 = vadd.xlane.f32.xlu0 %v10507_v34  ;;  %24822 = vmatprep.subr.mxu1 %v10789_v14 }
0x1bc5   :  { %24823 = vmatpush3.msra.mxu1 %v10789_v14 }
0x1bc8   :  { %10511 = vadd.xlane.f32.xlu0 %v10510_v44 }
0x1bfe   :  { %v24798_v0 = vpop.f32.mrf.mxu1 }
0x1bff   :  { %v10473_v42 = vadd.f32 %v24798_v0, %v27931_v15 }
0x1c00   :  { %v10449_v30 = vpop.f32.mrf.mxu1 }
0x1c01   :  { %v10488_v63 = vadd.f32 %v22765_v41, %v10473_v42  ;;  %v10472_v37 = vadd.f32 %v10449_v30, %v9527_v1 }
0x1c02   :  { %v24801_v52 = vpop.f32.mrf.mxu1 }
0x1c03   :  { %v10487_v10 = vadd.f32 %v22765_v41, %v10472_v37  ;;  %v10475_v58 = vadd.f32 %v24801_v52, %v27937_v33  ;;  %v10496_v43 = vadd.f32 %v10488_v63, %v27352_v26  ;;  %v10788_v63 = vld [vmem:[%s28096_s25 + $0x30] sm:$0xff]  ;;  %v10787_v37 = vld [vmem:[%s28096_s25 + $0x28] sm:$0xff]  ;;  %v10786_v52 = vld [vmem:[%s28096_s25 + $0x20] sm:$0xff] }
0x1c04   :  { %v10459_v50 = vpop.f32.mrf.mxu1  ;;  %24824 = vmatprep.subr.mxu1 %v10788_v63 }
0x1c05   :  { %v10490_v27 = vadd.f32 %v22765_v41, %v10475_v58  ;;  %v10474_v19 = vadd.f32 %v10459_v50, %v9529_v39  ;;  %v10516_v2 = vsel %vm281_vm1, %v10496_v43, 0.0  ;;  %v10495_v15 = vadd.f32 %v10487_v10, %v27350_v38  ;;  %24825 = vmatpush3.msra.mxu1 %v10788_v63 }
0x1c06   :  { %10517 = vadd.xlane.f32.xlu0 %v10516_v2  ;;  %24826 = vmatprep.subr.mxu1 %v10787_v37 }
0x1c07   :  { %v10489_v5 = vadd.f32 %v22765_v41, %v10474_v19  ;;  %v10513_v57 = vsel %vm281_vm1, %v10495_v15, 0.0  ;;  %v10498_v61 = vadd.f32 %v10490_v27, %v27362_v53  ;;  %24827 = vmatpush3.msra.mxu1 %v10787_v37 }
0x1c08   :  { %10514 = vadd.xlane.f32.xlu1 %v10513_v57  ;;  %24828 = vmatprep.subr.mxu1 %v10786_v52 }
0x1c09   :  { %v10522_v7 = vsel %vm281_vm1, %v10498_v61, 0.0  ;;  %v10497_v33 = vadd.f32 %v10489_v5, %v27360_v18  ;;  %24829 = vmatpush3.msra.mxu1 %v10786_v52 }
0x1c0a   :  { %10523 = vadd.xlane.f32.xlu0 %v10522_v7 }
0x1c0b   :  { %v10519_v26 = vsel %vm281_vm1, %v10497_v33, 0.0 }
0x1c0c   :  { %10520 = vadd.xlane.f32.xlu1 %v10519_v26 }
0x1c45   :  { %v10506_v25 = vpop.xlane.xlu1 %10505 }
0x1c46   :  { %v10527_v47 = vmul.f32 0.03125, %v10506_v25 }
0x1c47   :  { %v10503_v28 = vpop.xlane.xlu0 %10502 }
0x1c48   :  { %v28044_v55 = vsub.f32 %v10492_v62, %v10527_v47  ;;  %v10526_v38 = vmul.f32 0.03125, %v10503_v28 }
0x1c4a   :  { %v28046_v59 = vsub.f32 %v10491_v17, %v10526_v38  ;;  %v10543_v53 = vmul.f32 %v28044_v55, %v28044_v55  ;;  %v22767_v38 = vld [vmem:[%s28110_s30] ss:$0 sm:$0xff] }
0x1c4c   :  { %v10553_v9 = vsel %vm281_vm1, %v10543_v53, 0.0  ;;  %v10542_v18 = vmul.f32 %v28046_v59, %v28046_v59 }
0x1c4d   :  { %v10509_v31 = vpop.xlane.xlu0 %10508  ;;  %10554 = vadd.xlane.f32.xlu0 %v10553_v9 }
0x1c4e   :  { %v10528_v21 = vmul.f32 0.03125, %v10509_v31  ;;  %v10550_v23 = vsel %vm281_vm1, %v10542_v18, 0.0 }
0x1c4f   :  { %10551 = vadd.xlane.f32.xlu1 %v10550_v23 }
0x1c50   :  { %v28054_v48 = vsub.f32 %v10493_v24, %v10528_v21 }
0x1c51   :  { %v10512_v56 = vpop.xlane.xlu0 %10511 }
0x1c52   :  { %v10529_v36 = vmul.f32 0.03125, %v10512_v56  ;;  %v10544_v32 = vmul.f32 %v28054_v48, %v28054_v48 }
0x1c54   :  { %v28058_v41 = vsub.f32 %v10494_v49, %v10529_v36  ;;  %v10556_v11 = vsel %vm281_vm1, %v10544_v32, 0.0 }
0x1c55   :  { %10557 = vadd.xlane.f32.xlu1 %v10556_v11 }
0x1c56   :  { %v10545_v13 = vmul.f32 %v28058_v41, %v28058_v41 }
0x1c58   :  { %v10559_v35 = vsel %vm281_vm1, %v10545_v13, 0.0 }
0x1c59   :  { %10560 = vadd.xlane.f32.xlu0 %v10559_v35 }
0x1c8f   :  { %v10518_v62 = vpop.xlane.xlu0 %10517 }
0x1c90   :  { %v10531_v45 = vmul.f32 0.03125, %v10518_v62 }
0x1c91   :  { %v10515_v6 = vpop.xlane.xlu1 %10514 }
0x1c92   :  { %v28073_v3 = vsub.f32 %v10496_v43, %v10531_v45  ;;  %v10530_v60 = vmul.f32 0.03125, %v10515_v6 }
0x1c93   :  { %v10524_v17 = vpop.xlane.xlu0 %10523 }
0x1c94   :  { %v28075_v54 = vsub.f32 %v10495_v15, %v10530_v60  ;;  %v10533_v29 = vmul.f32 0.03125, %v10524_v17  ;;  %v10547_v12 = vmul.f32 %v28073_v3, %v28073_v3  ;;  %v10785_v17 = vld [vmem:[%s28096_s25 + $0x18] sm:$0xff] }
0x1c95   :  { %v10521_v8 = vpop.xlane.xlu1 %10520  ;;  %24830 = vmatprep.subr.mxu1 %v10785_v17 }
0x1c96   :  { %v28079_v16 = vsub.f32 %v10498_v61, %v10533_v29  ;;  %v10532_v24 = vmul.f32 0.03125, %v10521_v8  ;;  %v10565_v34 = vsel %vm281_vm1, %v10547_v12, 0.0  ;;  %v10546_v49 = vmul.f32 %v28075_v54, %v28075_v54  ;;  %24831 = vmatpush3.msra.mxu1 %v10785_v17  ;;  %v10784_v8 = vld [vmem:[%s28096_s25 + $0x10] sm:$0xff] }
0x1c97   :  { %10566 = vadd.xlane.f32.xlu0 %v10565_v34  ;;  %24832 = vmatprep.subr.mxu1 %v10784_v8 }
0x1c98   :  { %v28084_v44 = vsub.f32 %v10497_v33, %v10532_v24  ;;  %v10562_v4 = vsel %vm281_vm1, %v10546_v49, 0.0  ;;  %v10549_v0 = vmul.f32 %v28079_v16, %v28079_v16  ;;  %v28113_v33 = vld [vmem:[%s28105_s11] ss:$0 sm:$0xff]  ;;  %24833 = vmatpush3.msra.mxu1 %v10784_v8 }
0x1c99   :  { %10563 = vadd.xlane.f32.xlu1 %v10562_v4  ;;  %v10783_v4 = vld [vmem:[%s28096_s25 + $0x8] sm:$0xff] }
0x1c9a   :  { %v10571_v1 = vsel %vm281_vm1, %v10549_v0, 0.0  ;;  %v10548_v42 = vmul.f32 %v28084_v44, %v28084_v44  ;;  %24834 = vmatprep.subr.mxu1 %v10783_v4 }
0x1c9b   :  { %10572 = vadd.xlane.f32.xlu0 %v10571_v1  ;;  %24835 = vmatpush3.msra.mxu1 %v10783_v4 }
0x1c9c   :  { %v10568_v30 = vsel %vm281_vm1, %v10548_v42, 0.0  ;;  %v10782_v42 = vld [vmem:[%s28096_s25] sm:$0xff] }
0x1c9d   :  { %10569 = vadd.xlane.f32.xlu1 %v10568_v30  ;;  %24836 = vmatprep.subr.mxu1 %v10782_v42 }
0x1c9e   :  { %24837 = vmatpush3.msra.mxu1 %v10782_v42 }
0x1c9f   :  { %24870 = vmatprep.subr.mxu1 %v26322_v22 }
0x1cd6   :  { %v10555_v39 = vpop.xlane.xlu0 %10554 }
0x1cd7   :  { %v10575_v10 = vmul.f32 0.03125, %v10555_v39 }
0x1cd8   :  { %v10552_v58 = vpop.xlane.xlu1 %10551 }
0x1cd9   :  { %v10583_v43 = vadd.f32 1e-05, %v10575_v10  ;;  %v10574_v50 = vmul.f32 0.03125, %v10552_v58 }
0x1cdb   :  { %26000 = vrsqrt.f32 %v10583_v43  ;;  %v10582_v27 = vadd.f32 1e-05, %v10574_v50 }
0x1cdd   :  { %26002 = vrsqrt.f32 %v10582_v27 }
0x1cde   :  { %v10558_v19 = vpop.xlane.xlu1 %10557 }
0x1cdf   :  { %v10576_v2 = vmul.f32 0.03125, %v10558_v19 }
0x1ce1   :  { %v10584_v15 = vadd.f32 1e-05, %v10576_v2 }
0x1ce2   :  { %v10561_v5 = vpop.xlane.xlu0 %10560 }
0x1ce3   :  { %26004 = vrsqrt.f32 %v10584_v15  ;;  %v10577_v57 = vmul.f32 0.03125, %v10561_v5 }
0x1ce5   :  { %v10585_v61 = vadd.f32 1e-05, %v10577_v57 }
0x1ce7   :  { %26006 = vrsqrt.f32 %v10585_v61 }
0x1ce8   :  { %v26001_v7 = vpop.eup %26000 }
0x1ce9   :  { %v10599_v26 = vmul.f32 %v26001_v7, %v28044_v55 }
0x1cea   :  { %v26003_v25 = vpop.eup %26002 }
0x1ceb   :  { %v10598_v47 = vmul.f32 %v26003_v25, %v28046_v59  ;;  %v10613_v28 = vmul.f32 %v28113_v33, %v10599_v26 }
0x1ced   :  { %v10612_v53 = vmul.f32 %v28113_v33, %v10598_v47  ;;  %v28122_v31 = vadd.f32 %v22767_v38, %v10613_v28 }
0x1cef   :  { %v28120_v9 = vadd.f32 %v22767_v38, %v10612_v53 }
0x1cf0   :  { %v26005_v18 = vpop.eup %26004 }
0x1cf1   :  { %24810 = vmatprep.mubr.msk.f32.mxu0 %vm281_vm1, %v28120_v9  ;;  %v10600_v21 = vmul.f32 %v26005_v18, %v28054_v48 }
0x1cf2   :  { %24811 = vmatmul.mubr.msk.f32.vlgmr.msra.gmra.mxu0 %vm281_vm1, %v28122_v31 }
0x1cf3   :  { %v10614_v55 = vmul.f32 %v28113_v33, %v10600_v21 }
0x1cf4   :  { %v26007_v59 = vpop.eup %26006 }
0x1cf5   :  { %v28130_v23 = vadd.f32 %v22767_v38, %v10614_v55  ;;  %v10601_v56 = vmul.f32 %v26007_v59, %v28058_v41 }
0x1cf7   :  { %24813 = vmatprep.mubr.msk.f32.mxu0 %vm281_vm1, %v28130_v23  ;;  %v10615_v36 = vmul.f32 %v28113_v33, %v10601_v56  ;;  %v22777_v56 = vld [vmem:[%s28188_s2] ss:$0 sm:$0xff] }
0x1cf9   :  { %v28136_v32 = vadd.f32 %v22767_v38, %v10615_v36 }
0x1cfb   :  { %24814 = vmatmul.mubr.msk.f32.gmra.mxu0 %vm281_vm1, %v28136_v32 }
0x1d20   :  { %v10567_v48 = vpop.xlane.xlu0 %10566 }
0x1d21   :  { %v10579_v11 = vmul.f32 0.03125, %v10567_v48 }
0x1d22   :  { %v10564_v13 = vpop.xlane.xlu1 %10563 }
0x1d23   :  { %v10587_v35 = vadd.f32 1e-05, %v10579_v11  ;;  %v10578_v46 = vmul.f32 0.03125, %v10564_v13 }
0x1d24   :  { %v10573_v40 = vpop.xlane.xlu0 %10572 }
0x1d25   :  { %26008 = vrsqrt.f32 %v10587_v35  ;;  %v10586_v41 = vadd.f32 1e-05, %v10578_v46  ;;  %v10581_v20 = vmul.f32 0.03125, %v10573_v40 }
0x1d26   :  { %v10570_v51 = vpop.xlane.xlu1 %10569 }
0x1d27   :  { %26010 = vrsqrt.f32 %v10586_v41  ;;  %v10589_v62 = vadd.f32 1e-05, %v10581_v20  ;;  %v10580_v45 = vmul.f32 0.03125, %v10570_v51 }
0x1d29   :  { %26012 = vrsqrt.f32 %v10589_v62  ;;  %v10588_v6 = vadd.f32 1e-05, %v10580_v45 }
0x1d2b   :  { %26014 = vrsqrt.f32 %v10588_v6 }
0x1d32   :  { %v26009_v60 = vpop.eup %26008 }
0x1d33   :  { %v10603_v29 = vmul.f32 %v26009_v60, %v28073_v3 }
0x1d34   :  { %v26011_v12 = vpop.eup %26010 }
0x1d35   :  { %v10602_v24 = vmul.f32 %v26011_v12, %v28075_v54  ;;  %v10617_v49 = vmul.f32 %v28113_v33, %v10603_v29 }
0x1d36   :  { %v26013_v34 = vpop.eup %26012 }
0x1d37   :  { %v10616_v0 = vmul.f32 %v28113_v33, %v10602_v24  ;;  %v10605_v1 = vmul.f32 %v26013_v34, %v28079_v16  ;;  %v28152_v54 = vadd.f32 %v22767_v38, %v10617_v49 }
0x1d38   :  { %v26015_v30 = vpop.eup %26014 }
0x1d39   :  { %v28149_v3 = vadd.f32 %v22767_v38, %v10616_v0  ;;  %v10604_v14 = vmul.f32 %v26015_v30, %v28084_v44  ;;  %v10619_v63 = vmul.f32 %v28113_v33, %v10605_v1  ;;  %v22768_v44 = vld [vmem:[%s28172_s4] ss:$0 sm:$0xff] }
0x1d3b   :  { %24816 = vmatprep.mubr.msk.f32.mxu0 %vm281_vm1, %v28149_v3  ;;  %v10618_v37 = vmul.f32 %v28113_v33, %v10604_v14  ;;  %v28163_v52 = vadd.f32 %v22767_v38, %v10619_v63 }
0x1d3c   :  { %24817 = vmatmul.mubr.msk.f32.gmra.mxu0 %vm281_vm1, %v28152_v54 }
0x1d3d   :  { %v28161_v16 = vadd.f32 %v22767_v38, %v10618_v37 }
0x1d3f   :  { %24819 = vmatprep.mubr.msk.f32.mxu0 %vm281_vm1, %v28161_v16 }
0x1d40   :  { %24820 = vmatmul.mubr.msk.f32.gmra.mxu0 %vm281_vm1, %v28163_v52 }
0x1db2   :  { %v24812_v39 = vpop.f32.mrf.mxu0 }
0x1db3   :  { %v10741_v10 = vadd.f32 %v24812_v39, %v22768_v44 }
0x1db4   :  { %v10735_v58 = vpop.f32.mrf.mxu0 }
0x1db5   :  { %v10736_v43 = vadd.f32 %v22768_v44, %v10735_v58  ;;  %v10775_v27 = vmax.f32 %v10741_v10, 0.0 }
0x1db7   :  { %v10774_v50 = vmax.f32 %v10736_v43, 0.0 }
0x1db9   :  { %24838 = vmatprep.mubr.msk.f32.mxu1 %vm6423_vm4, %v10774_v50 }
0x1dba   :  { %24839 = vmatmul.mubr.msk.f32.vlgmr.msra.gmra.mxu1 %vm6423_vm4, %v10775_v27 }
0x1dbb   :  { %v24815_v19 = vpop.f32.mrf.mxu0 }
0x1dbc   :  { %v10751_v2 = vadd.f32 %v24815_v19, %v22768_v44 }
0x1dbd   :  { %v10745_v15 = vpop.f32.mrf.mxu0 }
0x1dbe   :  { %v10746_v5 = vadd.f32 %v22768_v44, %v10745_v15  ;;  %v10777_v61 = vmax.f32 %v10751_v2, 0.0 }
0x1dc0   :  { %v10776_v57 = vmax.f32 %v10746_v5, 0.0 }
0x1dc2   :  { %24841 = vmatprep.mubr.msk.f32.mxu1 %vm6423_vm4, %v10776_v57 }
0x1dc3   :  { %24842 = vmatmul.mubr.msk.f32.gmra.mxu1 %vm6423_vm4, %v10777_v61 }
0x1dfc   :  { %v24818_v7 = vpop.f32.mrf.mxu0 }
0x1dfd   :  { %v10761_v33 = vadd.f32 %v24818_v7, %v22768_v44 }
0x1dfe   :  { %v10755_v26 = vpop.f32.mrf.mxu0 }
0x1dff   :  { %v10756_v25 = vadd.f32 %v22768_v44, %v10755_v26  ;;  %v10779_v38 = vmax.f32 %v10761_v33, 0.0  ;;  %v22791_v26 = vld [vmem:[%s26378_s13 + $0x38] sm:$0xff] }
0x1e00   :  { %v24821_v47 = vpop.f32.mrf.mxu0  ;;  %24850 = vmatprep.subr.mxu0 %v22791_v26 }
0x1e01   :  { %v10778_v28 = vmax.f32 %v10756_v25, 0.0  ;;  %v10771_v53 = vadd.f32 %v24821_v47, %v22768_v44  ;;  %24851 = vmatpush3.msra.mxu0 %v22791_v26  ;;  %v22790_v25 = vld [vmem:[%s26378_s13 + $0x30] sm:$0xff]  ;;  %v22789_v47 = vld [vmem:[%s26378_s13 + $0x28] sm:$0xff] }
0x1e02   :  { %v10765_v18 = vpop.f32.mrf.mxu0  ;;  %24852 = vmatprep.subr.mxu0 %v22790_v25 }
0x1e03   :  { %v10766_v21 = vadd.f32 %v22768_v44, %v10765_v18  ;;  %24844 = vmatprep.mubr.msk.f32.mxu1 %vm6423_vm4, %v10778_v28  ;;  %v10781_v59 = vmax.f32 %v10771_v53, 0.0  ;;  %24853 = vmatpush3.msra.mxu0 %v22790_v25  ;;  %v22788_v28 = vld [vmem:[%s26378_s13 + $0x20] sm:$0xff]  ;;  %s26352_s13 = smov 20  }
0x1e04   :  { %24845 = vmatmul.mubr.msk.f32.gmra.mxu1 %vm6423_vm4, %v10779_v38  ;;  %24854 = vmatprep.subr.mxu0 %v22789_v47  ;;  %s28255_s14 = sld [smem:[%s30109_s0 + %s26352_s13]]   ;;  %s30125_s13 = smov 104  }
0x1e05   :  { %v10780_v55 = vmax.f32 %v10766_v21, 0.0  ;;  %24855 = vmatpush3.msra.mxu0 %v22789_v47 }
0x1e06   :  { %24856 = vmatprep.subr.mxu0 %v22788_v28 }
0x1e07   :  { %24847 = vmatprep.mubr.msk.f32.mxu1 %vm6423_vm4, %v10780_v55  ;;  %24857 = vmatpush3.msra.mxu0 %v22788_v28 }
0x1e08   :  { %24848 = vmatmul.mubr.msk.f32.gmra.mxu1 %vm6423_vm4, %v10781_v59  ;;  %24880 = vmatprep.subr.mxu0 %v26322_v22 }
0x1e09   :  { %24872 = vmatprep.mubr.msk.f32.mxu1 %vm26323_vm2, %v26322_v22 }
0x1e7a   :  { %v24840_v36 = vpop.f32.mrf.mxu1 }
0x1e7b   :  { %v10893_v48 = vadd.f32 %v24840_v36, %v22777_v56 }
0x1e7c   :  { %v10887_v11 = vpop.f32.mrf.mxu1 }
0x1e7d   :  { %v10927_v13 = vadd.f32 %v10893_v48, %v28122_v31  ;;  %v10888_v35 = vadd.f32 %v22777_v56, %v10887_v11 }
0x1e7f   :  { %v10939_v46 = vsel %vm281_vm1, %v10927_v13, 0.0  ;;  %v10926_v40 = vadd.f32 %v10888_v35, %v28120_v9 }
0x1e80   :  { %10940 = vadd.xlane.f32.xlu0 %v10939_v46 }
0x1e81   :  { %v10936_v41 = vsel %vm281_vm1, %v10926_v40, 0.0 }
0x1e82   :  { %10937 = vadd.xlane.f32.xlu1 %v10936_v41 }
0x1e83   :  { %v24843_v20 = vpop.f32.mrf.mxu1 }
0x1e84   :  { %v10903_v51 = vadd.f32 %v24843_v20, %v22777_v56 }
0x1e85   :  { %v10897_v62 = vpop.f32.mrf.mxu1 }
0x1e86   :  { %v10929_v45 = vadd.f32 %v10903_v51, %v28136_v32  ;;  %v10898_v6 = vadd.f32 %v22777_v56, %v10897_v62 }
0x1e88   :  { %v10945_v60 = vsel %vm281_vm1, %v10929_v45, 0.0  ;;  %v10928_v17 = vadd.f32 %v10898_v6, %v28130_v23 }
0x1e89   :  { %10946 = vadd.xlane.f32.xlu0 %v10945_v60 }
0x1e8a   :  { %v10942_v31 = vsel %vm281_vm1, %v10928_v17, 0.0 }
0x1e8b   :  { %10943 = vadd.xlane.f32.xlu1 %v10942_v31 }
0x1ec4   :  { %v24846_v29 = vpop.f32.mrf.mxu1 }
0x1ec5   :  { %v10913_v9 = vadd.f32 %v24846_v29, %v22777_v56 }
0x1ec6   :  { %v10907_v12 = vpop.f32.mrf.mxu1 }
0x1ec7   :  { %v10931_v8 = vadd.f32 %v10913_v9, %v28152_v54  ;;  %v10908_v24 = vadd.f32 %v22777_v56, %v10907_v12 }
0x1ec8   :  { %v24849_v34 = vpop.f32.mrf.mxu1 }
0x1ec9   :  { %v10923_v49 = vadd.f32 %v24849_v34, %v22777_v56  ;;  %v10951_v4 = vsel %vm281_vm1, %v10931_v8, 0.0  ;;  %v10930_v32 = vadd.f32 %v10908_v24, %v28149_v3 }
0x1eca   :  { %10952 = vadd.xlane.f32.xlu0 %v10951_v4  ;;  %v10917_v0 = vpop.f32.mrf.mxu1 }
0x1ecb   :  { %v10933_v23 = vadd.f32 %v10923_v49, %v28163_v52  ;;  %v10918_v1 = vadd.f32 %v22777_v56, %v10917_v0  ;;  %v10948_v42 = vsel %vm281_vm1, %v10930_v32, 0.0 }
0x1ecc   :  { %10949 = vadd.xlane.f32.xlu1 %v10948_v42 }
0x1ecd   :  { %v10957_v30 = vsel %vm281_vm1, %v10933_v23, 0.0  ;;  %v10932_v14 = vadd.f32 %v10918_v1, %v28161_v16 }
0x1ece   :  { %10958 = vadd.xlane.f32.xlu0 %v10957_v30 }
0x1ecf   :  { %v10954_v54 = vsel %vm281_vm1, %v10932_v14, 0.0 }
0x1ed0   :  { %10955 = vadd.xlane.f32.xlu1 %v10954_v54  ;;  %v22787_v54 = vld [vmem:[%s28260_s23] ss:$0 sm:$0xff] }
0x1f09   :  { %v10941_v63 = vpop.xlane.xlu0 %10940 }
0x1f0a   :  { %v10961_v37 = vmul.f32 0.03125, %v10941_v63 }
0x1f0b   :  { %v10938_v44 = vpop.xlane.xlu1 %10937 }
0x1f0c   :  { %v28207_v3 = vsub.f32 %v10927_v13, %v10961_v37  ;;  %v10960_v39 = vmul.f32 0.03125, %v10938_v44 }
0x1f0e   :  { %v28209_v10 = vsub.f32 %v10926_v40, %v10960_v39  ;;  %v10977_v52 = vmul.f32 %v28207_v3, %v28207_v3 }
0x1f10   :  { %v10987_v58 = vsel %vm281_vm1, %v10977_v52, 0.0  ;;  %v10976_v16 = vmul.f32 %v28209_v10, %v28209_v10 }
0x1f11   :  { %10988 = vadd.xlane.f32.xlu0 %v10987_v58 }
0x1f12   :  { %v10947_v43 = vpop.xlane.xlu0 %10946  ;;  %v10984_v50 = vsel %vm281_vm1, %v10976_v16, 0.0 }
0x1f13   :  { %v10963_v27 = vmul.f32 0.03125, %v10947_v43  ;;  %10985 = vadd.xlane.f32.xlu1 %v10984_v50 }
0x1f14   :  { %v10944_v19 = vpop.xlane.xlu1 %10943 }
0x1f15   :  { %v28217_v2 = vsub.f32 %v10929_v45, %v10963_v27  ;;  %v10962_v15 = vmul.f32 0.03125, %v10944_v19 }
0x1f17   :  { %v28219_v5 = vsub.f32 %v10928_v17, %v10962_v15  ;;  %v10979_v57 = vmul.f32 %v28217_v2, %v28217_v2 }
0x1f19   :  { %v10993_v61 = vsel %vm281_vm1, %v10979_v57, 0.0  ;;  %v10978_v7 = vmul.f32 %v28219_v5, %v28219_v5 }
0x1f1a   :  { %10994 = vadd.xlane.f32.xlu0 %v10993_v61 }
0x1f1b   :  { %v10990_v33 = vsel %vm281_vm1, %v10978_v7, 0.0 }
0x1f1c   :  { %10991 = vadd.xlane.f32.xlu1 %v10990_v33 }
0x1f53   :  { %v10953_v38 = vpop.xlane.xlu0 %10952 }
0x1f54   :  { %v10965_v53 = vmul.f32 0.03125, %v10953_v38 }
0x1f55   :  { %v10950_v18 = vpop.xlane.xlu1 %10949 }
0x1f56   :  { %v28232_v21 = vsub.f32 %v10931_v8, %v10965_v53  ;;  %v10964_v55 = vmul.f32 0.03125, %v10950_v18 }
0x1f57   :  { %v10959_v59 = vpop.xlane.xlu0 %10958 }
0x1f58   :  { %v28234_v56 = vsub.f32 %v10930_v32, %v10964_v55  ;;  %v10967_v36 = vmul.f32 0.03125, %v10959_v59  ;;  %v10981_v48 = vmul.f32 %v28232_v21, %v28232_v21 }
0x1f59   :  { %v10956_v11 = vpop.xlane.xlu1 %10955 }
0x1f5a   :  { %v28238_v13 = vsub.f32 %v10933_v23, %v10967_v36  ;;  %v10966_v35 = vmul.f32 0.03125, %v10956_v11  ;;  %v10999_v46 = vsel %vm281_vm1, %v10981_v48, 0.0  ;;  %v10980_v40 = vmul.f32 %v28234_v56, %v28234_v56  ;;  %v22786_v23 = vld [vmem:[%s28255_s14] ss:$0 sm:$0xff] }
0x1f5b   :  { %11000 = vadd.xlane.f32.xlu0 %v10999_v46 }
0x1f5c   :  { %v28243_v41 = vsub.f32 %v10932_v14, %v10966_v35  ;;  %v10996_v20 = vsel %vm281_vm1, %v10980_v40, 0.0  ;;  %v10983_v51 = vmul.f32 %v28238_v13, %v28238_v13 }
0x1f5d   :  { %10997 = vadd.xlane.f32.xlu1 %v10996_v20 }
0x1f5e   :  { %v11005_v62 = vsel %vm281_vm1, %v10983_v51, 0.0  ;;  %v10982_v45 = vmul.f32 %v28243_v41, %v28243_v41 }
0x1f5f   :  { %11006 = vadd.xlane.f32.xlu0 %v11005_v62 }
0x1f60   :  { %v11002_v6 = vsel %vm281_vm1, %v10982_v45, 0.0 }
0x1f61   :  { %11003 = vadd.xlane.f32.xlu1 %v11002_v6 }
0x1f9a   :  { %v10989_v60 = vpop.xlane.xlu0 %10988 }
0x1f9b   :  { %v11009_v17 = vmul.f32 0.03125, %v10989_v60 }
0x1f9c   :  { %v10986_v31 = vpop.xlane.xlu1 %10985 }
0x1f9d   :  { %v11017_v29 = vadd.f32 1e-05, %v11009_v17  ;;  %v11008_v9 = vmul.f32 0.03125, %v10986_v31 }
0x1f9f   :  { %26016 = vrsqrt.f32 %v11017_v29  ;;  %v11016_v12 = vadd.f32 1e-05, %v11008_v9 }
0x1fa1   :  { %26018 = vrsqrt.f32 %v11016_v12 }
0x1fa3   :  { %v10995_v8 = vpop.xlane.xlu0 %10994 }
0x1fa4   :  { %v11011_v24 = vmul.f32 0.03125, %v10995_v8 }
0x1fa5   :  { %v10992_v34 = vpop.xlane.xlu1 %10991 }
0x1fa6   :  { %v11019_v49 = vadd.f32 1e-05, %v11011_v24  ;;  %v11010_v4 = vmul.f32 0.03125, %v10992_v34 }
0x1fa8   :  { %26020 = vrsqrt.f32 %v11019_v49  ;;  %v11018_v32 = vadd.f32 1e-05, %v11010_v4 }
0x1faa   :  { %26022 = vrsqrt.f32 %v11018_v32 }
0x1fac   :  { %v26017_v0 = vpop.eup %26016 }
0x1fad   :  { %v11033_v1 = vmul.f32 %v26017_v0, %v28207_v3 }
0x1fae   :  { %v26019_v42 = vpop.eup %26018 }
0x1faf   :  { %v11032_v30 = vmul.f32 %v26019_v42, %v28209_v10  ;;  %v11047_v14 = vmul.f32 %v22786_v23, %v11033_v1 }
0x1fb1   :  { %v11046_v63 = vmul.f32 %v22786_v23, %v11032_v30  ;;  %v28268_v44 = vadd.f32 %v22787_v54, %v11047_v14 }
0x1fb3   :  { %v28266_v37 = vadd.f32 %v22787_v54, %v11046_v63 }
0x1fb5   :  { %v26021_v39 = vpop.eup %26020  ;;  %24858 = vmatprep.mubr.msk.f32.mxu0 %vm281_vm1, %v28266_v37 }
0x1fb6   :  { %24859 = vmatmul.mubr.msk.f32.vlgmr.msra.gmra.mxu0 %vm281_vm1, %v28268_v44  ;;  %v11035_v52 = vmul.f32 %v26021_v39, %v28217_v2 }
0x1fb7   :  { %v26023_v3 = vpop.eup %26022 }
0x1fb8   :  { %v11034_v58 = vmul.f32 %v26023_v3, %v28219_v5  ;;  %v11049_v10 = vmul.f32 %v22786_v23, %v11035_v52 }
0x1fba   :  { %v11048_v16 = vmul.f32 %v22786_v23, %v11034_v58  ;;  %v28278_v50 = vadd.f32 %v22787_v54, %v11049_v10 }
0x1fbc   :  { %v28276_v43 = vadd.f32 %v22787_v54, %v11048_v16 }
0x1fbe   :  { %24861 = vmatprep.mubr.msk.f32.mxu0 %vm281_vm1, %v28276_v43 }
0x1fbf   :  { %24862 = vmatmul.mubr.msk.f32.gmra.mxu0 %vm281_vm1, %v28278_v50 }
0x1fe4   :  { %v11001_v27 = vpop.xlane.xlu0 %11000 }
0x1fe5   :  { %v11013_v19 = vmul.f32 0.03125, %v11001_v27 }
0x1fe6   :  { %v10998_v15 = vpop.xlane.xlu1 %10997 }
0x1fe7   :  { %v11021_v57 = vadd.f32 1e-05, %v11013_v19  ;;  %v11012_v2 = vmul.f32 0.03125, %v10998_v15 }
0x1fe8   :  { %v11007_v61 = vpop.xlane.xlu0 %11006 }
0x1fe9   :  { %26024 = vrsqrt.f32 %v11021_v57  ;;  %v11020_v5 = vadd.f32 1e-05, %v11012_v2  ;;  %v11015_v7 = vmul.f32 0.03125, %v11007_v61 }
0x1fea   :  { %v11004_v33 = vpop.xlane.xlu1 %11003 }
0x1feb   :  { %26026 = vrsqrt.f32 %v11020_v5  ;;  %v11023_v26 = vadd.f32 1e-05, %v11015_v7  ;;  %v11014_v25 = vmul.f32 0.03125, %v11004_v33 }
0x1fed   :  { %26028 = vrsqrt.f32 %v11023_v26  ;;  %v11022_v47 = vadd.f32 1e-05, %v11014_v25 }
0x1fef   :  { %26030 = vrsqrt.f32 %v11022_v47 }
0x1ff6   :  { %v26025_v28 = vpop.eup %26024 }
0x1ff7   :  { %v11037_v38 = vmul.f32 %v26025_v28, %v28232_v21 }
0x1ff8   :  { %v26027_v53 = vpop.eup %26026 }
0x1ff9   :  { %v11036_v18 = vmul.f32 %v26027_v53, %v28234_v56  ;;  %v11051_v59 = vmul.f32 %v22786_v23, %v11037_v38 }
0x1ffa   :  { %v26029_v55 = vpop.eup %26028 }
0x1ffb   :  { %v11050_v36 = vmul.f32 %v22786_v23, %v11036_v18  ;;  %v11039_v48 = vmul.f32 %v26029_v55, %v28238_v13  ;;  %v28290_v40 = vadd.f32 %v22787_v54, %v11051_v59  ;;  %v22793_v13 = vld [vmem:[%s26433_s17 + $0x1] ss:$0 sm:$0xff]  ;;  %s30122_s17 = smov 80  }
0x1ffc   :  { %v26031_v11 = vpop.eup %26030 }
0x1ffd   :  { %v28287_v35 = vadd.f32 %v22787_v54, %v11050_v36  ;;  %v11038_v46 = vmul.f32 %v26031_v11, %v28243_v41  ;;  %v11053_v20 = vmul.f32 %v22786_v23, %v11039_v48 }
0x1fff   :  { %24864 = vmatprep.mubr.msk.f32.mxu0 %vm281_vm1, %v28287_v35  ;;  %v11052_v21 = vmul.f32 %v22786_v23, %v11038_v46  ;;  %v28298_v51 = vadd.f32 %v22787_v54, %v11053_v20 }
0x2000   :  { %24865 = vmatmul.mubr.msk.f32.gmra.mxu0 %vm281_vm1, %v28290_v40 }
0x2001   :  { %v28296_v56 = vadd.f32 %v22787_v54, %v11052_v21 }
0x2003   :  { %24867 = vmatprep.mubr.msk.f32.mxu0 %vm281_vm1, %v28296_v56 }
0x2004   :  { %24868 = vmatmul.mubr.msk.f32.gmra.mxu0 %vm281_vm1, %v28298_v51 }
0x2005   :  { %24882 = vmatprep.mubr.msk.f32.mxu0 %vm26323_vm2, %v26322_v22 }
0x2076   :  { %v24860_v41 = vpop.f32.mrf.mxu0 }
0x2077   :  { %v28307_v62 = vadd.f32 %v24860_v41, %v22793_v13 }
0x2078   :  { %v11171_v45 = vpop.f32.mrf.mxu0 }
0x2079   :  { %v28309_v6 = vadd.f32 %v22793_v13, %v11171_v45  ;;  %11293 = vrot.lane.b32.xlu0 %v28307_v62, %s26325_s18 }
0x207b   :  { %11216 = vrot.lane.b32.xlu1 %v28309_v6, %s26325_s18 }
0x207f   :  { %v24863_v60 = vpop.f32.mrf.mxu0 }
0x2080   :  { %v28319_v29 = vadd.f32 %v24863_v60, %v22793_v13 }
0x2081   :  { %v11181_v17 = vpop.f32.mrf.mxu0 }
0x2082   :  { %v28315_v31 = vadd.f32 %v22793_v13, %v11181_v17 }
0x2084   :  { %11370 = vrot.lane.b32.xlu1 %v28315_v31, %s26325_s18 }
0x2088   :  { %11447 = vrot.lane.b32.xlu1 %v28319_v29, %s26325_s18 }
0x20c0   :  { %v24866_v9 = vpop.f32.mrf.mxu0 }
0x20c1   :  { %v28323_v12 = vadd.f32 %v24866_v9, %v22793_v13 }
0x20c2   :  { %v11191_v8 = vpop.f32.mrf.mxu0 }
0x20c3   :  { %v28325_v24 = vadd.f32 %v22793_v13, %v11191_v8  ;;  %11601 = vrot.lane.b32.xlu1 %v28323_v12, %s26325_s18 }
0x20c4   :  { %v24869_v34 = vpop.f32.mrf.mxu0 }
0x20c5   :  { %v28329_v49 = vadd.f32 %v24869_v34, %v22793_v13  ;;  %11524 = vrot.lane.b32.xlu0 %v28325_v24, %s26325_s18 }
0x20c6   :  { %v11201_v4 = vpop.f32.mrf.mxu0 }
0x20c7   :  { %v28333_v32 = vadd.f32 %v22793_v13, %v11201_v4  ;;  %11755 = vrot.lane.b32.xlu1 %v28329_v49, %s26325_s18 }
0x20c9   :  { %11678 = vrot.lane.b32.xlu0 %v28333_v32, %s26325_s18 }
0x20eb   :  { %v11294_v23 = vpop.permute.xlu0 %11293 }
0x20ed   :  { %v11217_v0 = vpop.permute.xlu1 %11216 }
0x20ee   :  { %24871 = vmatpush3.xpose.msk.msra.mxu1 %vm418_vm3, %v11217_v0 }
0x20ef   :  { %24875 = vmatprep.subr.mxu1 %v26322_v22 }
0x20f1   :  { %24873 = vmatmul.mubr.msk.f32.vlgmr.msra.gmra.mxu1 %vm418_vm3, %v28309_v6 }
0x20f2   :  { %24876 = vmatpush3.xpose.msk.msra.mxu1 %vm418_vm3, %v11294_v23  ;;  %24877 = vmatprep.mubr.msk.f32.mxu1 %vm26323_vm2, %v26322_v22 }
0x20f3   :  { %24885 = vmatprep.subr.mxu1 %v26322_v22 }
0x20f5   :  { %24878 = vmatmul.mubr.msk.f32.vlgmr.msra.gmra.mxu1 %vm418_vm3, %v28307_v62 }
0x20f6   :  { %v11371_v1 = vpop.permute.xlu1 %11370  ;;  %24887 = vmatprep.mubr.msk.f32.mxu1 %vm26323_vm2, %v26322_v22 }
0x20f7   :  { %24881 = vmatpush3.xpose.msk.msra.mxu0 %vm418_vm3, %v11371_v1 }
0x20f8   :  { %24890 = vmatprep.subr.mxu0 %v26322_v22 }
0x20fa   :  { %24883 = vmatmul.mubr.msk.f32.vlgmr.msra.gmra.mxu0 %vm418_vm3, %v28315_v31  ;;  %v11448_v42 = vpop.permute.xlu1 %11447 }
0x20fb   :  { %24886 = vmatpush3.xpose.msk.msra.mxu1 %vm418_vm3, %v11448_v42  ;;  %24892 = vmatprep.mubr.msk.f32.mxu0 %vm26323_vm2, %v26322_v22 }
0x20fc   :  { %24895 = vmatprep.subr.mxu1 %v26322_v22 }
0x20fe   :  { %24888 = vmatmul.mubr.msk.f32.vlgmr.msra.gmra.mxu1 %vm418_vm3, %v28319_v29 }
0x20ff   :  { %24897 = vmatprep.mubr.msk.f32.mxu1 %vm26323_vm2, %v26322_v22 }
0x2135   :  { %v11602_v30 = vpop.permute.xlu1 %11601 }
0x2136   :  { %24896 = vmatpush3.xpose.msk.msra.mxu1 %vm418_vm3, %v11602_v30 }
0x2137   :  { %v11525_v14 = vpop.permute.xlu0 %11524  ;;  %24905 = vmatprep.subr.mxu1 %v26322_v22 }
0x2138   :  { %24891 = vmatpush3.xpose.msk.msra.mxu0 %vm418_vm3, %v11525_v14 }
0x2139   :  { %24898 = vmatmul.mubr.msk.f32.vlgmr.msra.gmra.mxu1 %vm418_vm3, %v28323_v12  ;;  %v11756_v54 = vpop.permute.xlu1 %11755  ;;  %24900 = vmatprep.subr.mxu0 %v26322_v22 }
0x213a   :  { %24906 = vmatpush3.xpose.msk.msra.mxu1 %vm418_vm3, %v11756_v54  ;;  %24907 = vmatprep.mubr.msk.f32.mxu1 %vm26323_vm2, %v26322_v22 }
0x213b   :  { %v11679_v63 = vpop.permute.xlu0 %11678  ;;  %24893 = vmatmul.mubr.msk.f32.vlgmr.msra.gmra.mxu0 %vm418_vm3, %v28325_v24  ;;  %24915 = vmatprep.subr.mxu1 %v26322_v22 }
0x213c   :  { %24901 = vmatpush3.xpose.msk.msra.mxu0 %vm418_vm3, %v11679_v63  ;;  %24902 = vmatprep.mubr.msk.f32.mxu0 %vm26323_vm2, %v26322_v22 }
0x213d   :  { %24908 = vmatmul.mubr.msk.f32.vlgmr.msra.gmra.mxu1 %vm418_vm3, %v28329_v49  ;;  %24910 = vmatprep.subr.mxu0 %v26322_v22 }
0x213e   :  { %24917 = vmatprep.mubr.msk.f32.mxu1 %vm26323_vm2, %v26322_v22 }
0x213f   :  { %24903 = vmatmul.mubr.msk.f32.vlgmr.msra.gmra.mxu0 %vm418_vm3, %v28333_v32 }
0x2140   :  { %24912 = vmatprep.mubr.msk.f32.mxu0 %vm26323_vm2, %v26322_v22 }
0x21b1   :  { %v11288_v39 = vpop.f32.mrf.mxu1 }
0x21b2   :  { %v11831_v52 = vmul.f32 0.35355338, %v11288_v39 }
0x21b3   :  { %v24874_v3 = vpop.f32.mrf.mxu1 }
0x21b4   :  { %v11839_v58 = vsel %vm418_vm3, %v11831_v52, -inf }
0x21b5   :  { %11840 = vmax.xlane.f32.xlu0 %v11839_v58  ;;  %v11365_v10 = vpop.f32.mrf.mxu1 }
0x21b6   :  { %v11832_v16 = vmul.f32 0.35355338, %v11365_v10 }
0x21b7   :  { %v24879_v27 = vpop.f32.mrf.mxu1 }
0x21b8   :  { %v11842_v19 = vsel %vm418_vm3, %v11832_v16, -inf }
0x21b9   :  { %11843 = vmax.xlane.f32.xlu1 %v11842_v19 }
0x21ba   :  { %v11442_v15 = vpop.f32.mrf.mxu0 }
0x21bb   :  { %v11833_v57 = vmul.f32 0.35355338, %v11442_v15 }
0x21bc   :  { %v24884_v2 = vpop.f32.mrf.mxu0 }
0x21bd   :  { %v11845_v61 = vsel %vm418_vm3, %v11833_v57, -inf }
0x21be   :  { %11846 = vmax.xlane.f32.xlu0 %v11845_v61  ;;  %v11519_v5 = vpop.f32.mrf.mxu1 }
0x21bf   :  { %v11834_v7 = vmul.f32 0.35355338, %v11519_v5 }
0x21c0   :  { %v24889_v33 = vpop.f32.mrf.mxu1 }
0x21c1   :  { %v11848_v26 = vsel %vm418_vm3, %v11834_v7, -inf }
0x21c2   :  { %11849 = vmax.xlane.f32.xlu0 %v11848_v26 }
0x21f9   :  { %v11673_v25 = vpop.f32.mrf.mxu1 }
0x21fa   :  { %v28391_v47 = vmul.f32 0.35355338, %v11673_v25 }
0x21fb   :  { %v11596_v28 = vpop.f32.mrf.mxu0  ;;  %v24899_v38 = vpop.f32.mrf.mxu1 }
0x21fc   :  { %v11854_v53 = vsel %vm418_vm3, %v28391_v47, -inf  ;;  %v11835_v1 = vmul.f32 0.35355338, %v11596_v28 }
0x21fd   :  { %v24894_v18 = vpop.f32.mrf.mxu0  ;;  %11855 = vmax.xlane.f32.xlu0 %v11854_v53  ;;  %v11827_v55 = vpop.f32.mrf.mxu1 }
0x21fe   :  { %v11838_v59 = vmul.f32 0.35355338, %v11827_v55  ;;  %v11851_v14 = vsel %vm418_vm3, %v11835_v1, -inf }
0x21ff   :  { %v11750_v36 = vpop.f32.mrf.mxu0  ;;  %v24909_v48 = vpop.f32.mrf.mxu1 }
0x2200   :  { %v11860_v11 = vsel %vm418_vm3, %v11838_v59, -inf  ;;  %v11837_v39 = vmul.f32 0.35355338, %v11750_v36 }
0x2201   :  { %v24904_v46 = vpop.f32.mrf.mxu0  ;;  %11861 = vmax.xlane.f32.xlu0 %v11860_v11 }
0x2202   :  { %v11857_v58 = vsel %vm418_vm3, %v11837_v39, -inf }
0x223e   :  { %v11841_v20 = vpop.xlane.xlu0 %11840 }
0x223f   :  { %v11863_v21 = vsub.f32 %v11831_v52, %v11841_v20 }
0x2241   :  { %v11871_v13 = vmul.f32 1.442695, %v11863_v21 }
0x2242   :  { %v11844_v41 = vpop.xlane.xlu1 %11843 }
0x2243   :  { %26032 = vpow2.f32 %v11871_v13  ;;  %v11864_v45 = vsub.f32 %v11832_v16, %v11844_v41 }
0x2245   :  { %v11873_v60 = vmul.f32 1.442695, %v11864_v45 }
0x2247   :  { %26034 = vpow2.f32 %v11873_v60  ;;  %v11847_v17 = vpop.xlane.xlu0 %11846 }
0x2248   :  { %v11865_v9 = vsub.f32 %v11833_v57, %v11847_v17 }
0x224a   :  { %v11875_v8 = vmul.f32 1.442695, %v11865_v9 }
0x224b   :  { %v11850_v34 = vpop.xlane.xlu0 %11849 }
0x224c   :  { %26036 = vpow2.f32 %v11875_v8  ;;  %v11866_v4 = vsub.f32 %v11834_v7, %v11850_v34 }
0x224e   :  { %v11877_v0 = vmul.f32 1.442695, %v11866_v4 }
0x2250   :  { %v28396_v23 = vpop.eup %26032  ;;  %26038 = vpow2.f32 %v11877_v0 }
0x2251   :  { %v11887_v42 = vsel %vm418_vm3, %v28396_v23, 0.0 }
0x2252   :  { %11888 = vadd.xlane.f32.xlu1 %v11887_v42 }
0x2254   :  { %v28400_v30 = vpop.eup %26034 }
0x2255   :  { %v11890_v54 = vsel %vm418_vm3, %v28400_v30, 0.0 }
0x2256   :  { %11852 = vmax.xlane.f32.xlu1 %v11851_v14  ;;  %11891 = vadd.xlane.f32.xlu0 %v11890_v54 }
0x2259   :  { %v28405_v63 = vpop.eup %26036 }
0x225a   :  { %v11893_v52 = vsel %vm418_vm3, %v28405_v63, 0.0 }
0x225b   :  { %11894 = vadd.xlane.f32.xlu1 %v11893_v52 }
0x225d   :  { %v28409_v3 = vpop.eup %26038 }
0x225e   :  { %v11896_v10 = vsel %vm418_vm3, %v28409_v3, 0.0 }
0x225f   :  { %11858 = vmax.xlane.f32.xlu1 %v11857_v58  ;;  %11897 = vadd.xlane.f32.xlu0 %v11896_v10 }
0x2270   :  { %11927 = vrot.lane.b32.xlu1 %v28309_v6, %s26326_s19 }
0x2274   :  { %12079 = vrot.lane.b32.xlu1 %v28315_v31, %s26326_s19 }
0x2275   :  { %12003 = vrot.lane.b32.xlu0 %v28307_v62, %s26326_s19 }
0x2278   :  { %12155 = vrot.lane.b32.xlu1 %v28319_v29, %s26326_s19 }
0x2279   :  { %12231 = vrot.lane.b32.xlu0 %v28325_v24, %s26326_s19 }
0x227c   :  { %12307 = vrot.lane.b32.xlu1 %v28323_v12, %s26326_s19 }
0x227d   :  { %12383 = vrot.lane.b32.xlu0 %v28333_v32, %s26326_s19 }
0x2280   :  { %12459 = vrot.lane.b32.xlu1 %v28329_v49, %s26326_s19 }
0x2281   :  { %12537 = vrot.lane.b32.xlu0 %v28309_v6, %s26327_s20 }
0x2284   :  { %12615 = vrot.lane.b32.xlu1 %v28307_v62, %s26327_s20 }
0x2285   :  { %12535 = vrot.lane.b32.xlu0 %v28309_v6, %s26328_s21 }
0x2286   :  { %v11856_v16 = vpop.xlane.xlu0 %11855 }
0x2287   :  { %v11868_v27 = vsub.f32 %v28391_v47, %v11856_v16 }
0x2288   :  { %12613 = vrot.lane.b32.xlu1 %v28307_v62, %s26328_s21 }
0x2289   :  { %12693 = vrot.lane.b32.xlu0 %v28315_v31, %s26327_s20  ;;  %v11881_v15 = vmul.f32 1.442695, %v11868_v27 }
0x228a   :  { %v11862_v19 = vpop.xlane.xlu0 %11861 }
0x228b   :  { %v11870_v57 = vsub.f32 %v11838_v59, %v11862_v19  ;;  %26040 = vpow2.f32 %v11881_v15 }
0x228c   :  { %12771 = vrot.lane.b32.xlu1 %v28319_v29, %s26327_s20 }
0x228d   :  { %12691 = vrot.lane.b32.xlu0 %v28315_v31, %s26328_s21  ;;  %v11885_v2 = vmul.f32 1.442695, %v11870_v57 }
0x228f   :  { %26042 = vpow2.f32 %v11885_v2 }
0x2290   :  { %12769 = vrot.lane.b32.xlu1 %v28319_v29, %s26328_s21 }
0x2298   :  { %v28447_v61 = vpop.eup %26040 }
0x2299   :  { %v11902_v5 = vsel %vm418_vm3, %v28447_v61, 0.0 }
0x229c   :  { %v28451_v7 = vpop.eup %26042 }
0x229d   :  { %v11908_v33 = vsel %vm418_vm3, %v28451_v7, 0.0 }
0x22ac   :  { %11903 = vadd.xlane.f32.xlu0 %v11902_v5 }
0x22b0   :  { %11909 = vadd.xlane.f32.xlu0 %v11908_v33 }
0x22c6   :  { %12849 = vrot.lane.b32.xlu0 %v28325_v24, %s26327_s20 }
0x22ca   :  { %12847 = vrot.lane.b32.xlu0 %v28325_v24, %s26328_s21 }
0x22ce   :  { %13005 = vrot.lane.b32.xlu0 %v28333_v32, %s26327_s20 }
0x22d2   :  { %13003 = vrot.lane.b32.xlu0 %v28333_v32, %s26328_s21 }
0x22db   :  { %v11889_v26 = vpop.xlane.xlu1 %11888 }
0x22dc   :  { %26044 = vrcp.f32 %v11889_v26 }
0x22df   :  { %v11892_v25 = vpop.xlane.xlu0 %11891  ;;  %v11853_v47 = vpop.xlane.xlu1 %11852 }
0x22e0   :  { %26046 = vrcp.f32 %v11892_v25  ;;  %v11867_v28 = vsub.f32 %v11835_v1, %v11853_v47 }
0x22e2   :  { %v11879_v38 = vmul.f32 1.442695, %v11867_v28 }
0x22e4   :  { %26048 = vpow2.f32 %v11879_v38  ;;  %v11895_v53 = vpop.xlane.xlu1 %11894 }
0x22e5   :  { %26050 = vrcp.f32 %v11895_v53 }
0x22e8   :  { %v11898_v18 = vpop.xlane.xlu0 %11897  ;;  %v11859_v55 = vpop.xlane.xlu1 %11858 }
0x22e9   :  { %v26045_v59 = vpop.eup %26044  ;;  %26052 = vrcp.f32 %v11898_v18  ;;  %v11869_v36 = vsub.f32 %v11837_v39, %v11859_v55 }
0x22ea   :  { %v11919_v11 = vmul.f32 %v26045_v59, %v28396_v23 }
0x22eb   :  { %v11883_v48 = vmul.f32 1.442695, %v11869_v36 }
0x22ec   :  { %v12004_v46 = vpop.permute.xlu0 %12003  ;;  %v11928_v20 = vpop.permute.xlu1 %11927 }
0x22ed   :  { %v26047_v21 = vpop.eup %26046  ;;  %26054 = vpow2.f32 %v11883_v48  ;;  %24911 = vmatpush3.msra.mxu0 %v11928_v20  ;;  %24916 = vmatpush3.msra.mxu1 %v12004_v46 }
0x22ee   :  { %v11920_v13 = vmul.f32 %v26047_v21, %v28400_v30  ;;  %24913 = vmatmul.mubr.msk.f32.vlgmr.msra.gmra.mxu0 %vm418_vm3, %v11919_v11  ;;  %24920 = vmatprep.subr.mxu0 %v26322_v22 }
0x22ef   :  { %24925 = vmatprep.subr.mxu1 %v26322_v22  ;;  %24922 = vmatprep.mubr.msk.f32.mxu0 %vm26323_vm2, %v26322_v22 }
0x22f0   :  { %24918 = vmatmul.mubr.msk.f32.vlgmr.msra.gmra.mxu1 %vm418_vm3, %v11920_v13  ;;  %v12080_v41 = vpop.permute.xlu1 %12079  ;;  %v12232_v34 = vpop.permute.xlu0 %12231 }
0x22f1   :  { %v28471_v45 = vpop.eup %26048  ;;  %24921 = vmatpush3.msra.mxu0 %v12080_v41  ;;  %24927 = vmatprep.mubr.msk.f32.mxu1 %vm26323_vm2, %v26322_v22 }
0x22f2   :  { %v26051_v60 = vpop.eup %26050  ;;  %v11899_v17 = vsel %vm418_vm3, %v28471_v45, 0.0  ;;  %24930 = vmatprep.subr.mxu0 %v26322_v22 }
0x22f3   :  { %v11921_v9 = vmul.f32 %v26051_v60, %v28405_v63  ;;  %11900 = vadd.xlane.f32.xlu1 %v11899_v17 }
0x22f4   :  { %v12156_v8 = vpop.permute.xlu1 %12155  ;;  %v12384_v30 = vpop.permute.xlu0 %12383 }
0x22f5   :  { %24923 = vmatmul.mubr.msk.f32.vlgmr.msra.gmra.mxu0 %vm418_vm3, %v11921_v9  ;;  %24926 = vmatpush3.msra.mxu1 %v12156_v8 }
0x22f6   :  { %v26053_v4 = vpop.eup %26052  ;;  %24931 = vmatpush3.msra.mxu0 %v12232_v34  ;;  %24935 = vmatprep.subr.mxu1 %v26322_v22 }
0x22f7   :  { %v11922_v0 = vmul.f32 %v26053_v4, %v28409_v3  ;;  %24932 = vmatprep.mubr.msk.f32.mxu0 %vm26323_vm2, %v26322_v22  ;;  %24940 = vmatprep.subr.mxu0 %v26322_v22 }
0x22f8   :  { %v12308_v23 = vpop.permute.xlu1 %12307  ;;  %v12538_v14 = vpop.permute.xlu0 %12537 }
0x22f9   :  { %24928 = vmatmul.mubr.msk.f32.vlgmr.msra.gmra.mxu1 %vm418_vm3, %v11922_v0 }
0x22fa   :  { %v28486_v1 = vpop.eup %26054  ;;  %24936 = vmatpush3.msra.mxu1 %v12308_v23  ;;  %24937 = vmatprep.mubr.msk.f32.mxu1 %vm26323_vm2, %v26322_v22 }
0x22fb   :  { %v11905_v42 = vsel %vm418_vm3, %v28486_v1, 0.0  ;;  %24945 = vmatprep.subr.mxu1 %v26322_v22 }
0x22fc   :  { %11906 = vadd.xlane.f32.xlu1 %v11905_v42  ;;  %v12536_v54 = vpop.permute.xlu0 %12535  ;;  %v12460_v3 = vpop.permute.xlu1 %12459 }
0x2300   :  { %v12694_v63 = vpop.permute.xlu0 %12693  ;;  %v12616_v10 = vpop.permute.xlu1 %12615 }
0x2304   :  { %v12692_v39 = vpop.permute.xlu0 %12691  ;;  %v12614_v19 = vpop.permute.xlu1 %12613 }
0x2308   :  { %v12772_v2 = vpop.permute.xlu1 %12771 }
0x230d   :  { %12927 = vrot.lane.b32.xlu1 %v28323_v12, %s26327_s20 }
0x2311   :  { %12925 = vrot.lane.b32.xlu1 %v28323_v12, %s26328_s21 }
0x2315   :  { %13083 = vrot.lane.b32.xlu1 %v28329_v49, %s26327_s20 }
0x2319   :  { %13081 = vrot.lane.b32.xlu1 %v28329_v49, %s26328_s21 }
0x2335   :  { %v11904_v52 = vpop.xlane.xlu0 %11903 }
0x2336   :  { %26056 = vrcp.f32 %v11904_v52 }
0x2339   :  { %v11910_v58 = vpop.xlane.xlu0 %11909 }
0x233a   :  { %26058 = vrcp.f32 %v11910_v58 }
0x233d   :  { %v12850_v53 = vpop.permute.xlu0 %12849 }
0x2341   :  { %v12848_v59 = vpop.permute.xlu0 %12847 }
0x2343   :  { %v26057_v16 = vpop.eup %26056 }
0x2344   :  { %v11924_v27 = vmul.f32 %v26057_v16, %v28447_v61  ;;  %v12770_v61 = vpop.permute.xlu1 %12769 }
0x2345   :  { %v13006_v36 = vpop.permute.xlu0 %13005 }
0x2346   :  { %24938 = vmatmul.mubr.msk.f32.vlgmr.msra.gmra.mxu1 %vm418_vm3, %v11924_v27 }
0x2347   :  { %v26059_v15 = vpop.eup %26058  ;;  %24946 = vmatpush3.msra.mxu1 %v12460_v3  ;;  %24947 = vmatprep.mubr.msk.f32.mxu1 %vm26323_vm2, %v26322_v22 }
0x2348   :  { %v11926_v57 = vmul.f32 %v26059_v15, %v28451_v7  ;;  %24955 = vmatprep.subr.mxu1 %v26322_v22 }
0x2349   :  { %v13004_v48 = vpop.permute.xlu0 %13003 }
0x234a   :  { %24948 = vmatmul.mubr.msk.f32.vlgmr.msra.gmra.mxu1 %vm418_vm3, %v11926_v57 }
0x234b   :  { %24956 = vmatpush3.xpose.msk.msra.mxu1 %vm418_vm3, %v12616_v10  ;;  %24957 = vmatprep.mubr.msk.f32.mxu1 %vm26323_vm2, %v26322_v22 }
0x234c   :  { %24965 = vmatprep.subr.mxu1 %v26322_v22 }
0x234e   :  { %24958 = vmatmul.mubr.msk.f32.vlgmr.msra.gmra.mxu1 %vm418_vm3, %v12614_v19 }
0x234f   :  { %24966 = vmatpush3.xpose.msk.msra.mxu1 %vm418_vm3, %v12772_v2  ;;  %24967 = vmatprep.mubr.msk.f32.mxu1 %vm26323_vm2, %v26322_v22 }
0x2350   :  { %24975 = vmatprep.subr.mxu1 %v26322_v22 }
0x2352   :  { %24968 = vmatmul.mubr.msk.f32.vlgmr.msra.gmra.mxu1 %vm418_vm3, %v12770_v61 }
0x2353   :  { %24977 = vmatprep.mubr.msk.f32.mxu1 %vm26323_vm2, %v26322_v22 }
0x237c   :  { %v11901_v5 = vpop.xlane.xlu1 %11900 }
0x237d   :  { %26060 = vrcp.f32 %v11901_v5 }
0x2385   :  { %v11907_v7 = vpop.xlane.xlu1 %11906 }
0x2386   :  { %26062 = vrcp.f32 %v11907_v7 }
0x2389   :  { %v12928_v33 = vpop.permute.xlu1 %12927 }
0x238a   :  { %v26061_v26 = vpop.eup %26060  ;;  %24976 = vmatpush3.xpose.msk.msra.mxu1 %vm418_vm3, %v12928_v33 }
0x238b   :  { %v11923_v25 = vmul.f32 %v26061_v26, %v28471_v45  ;;  %24985 = vmatprep.subr.mxu1 %v26322_v22 }
0x238d   :  { %24933 = vmatmul.mubr.msk.f32.vlgmr.msra.gmra.mxu0 %vm418_vm3, %v11923_v25  ;;  %v12926_v47 = vpop.permute.xlu1 %12925 }
0x238e   :  { %24941 = vmatpush3.msra.mxu0 %v12384_v30  ;;  %24978 = vmatmul.mubr.msk.f32.vlgmr.msra.gmra.mxu1 %vm418_vm3, %v12926_v47 }
0x238f   :  { %24942 = vmatprep.mubr.msk.f32.mxu0 %vm26323_vm2, %v26322_v22  ;;  %24950 = vmatprep.subr.mxu0 %v26322_v22 }
0x2390   :  { %24987 = vmatprep.mubr.msk.f32.mxu1 %vm26323_vm2, %v26322_v22 }
0x2391   :  { %v13084_v28 = vpop.permute.xlu1 %13083 }
0x2392   :  { %24986 = vmatpush3.xpose.msk.msra.mxu1 %vm418_vm3, %v13084_v28 }
0x2393   :  { %v26063_v38 = vpop.eup %26062  ;;  %24995 = vmatprep.subr.mxu1 %v26322_v22 }
0x2394   :  { %v11925_v18 = vmul.f32 %v26063_v38, %v28486_v1 }
0x2395   :  { %v13082_v55 = vpop.permute.xlu1 %13081 }
0x2396   :  { %24943 = vmatmul.mubr.msk.f32.vlgmr.msra.gmra.mxu0 %vm418_vm3, %v11925_v18  ;;  %24988 = vmatmul.mubr.msk.f32.vlgmr.msra.gmra.mxu1 %vm418_vm3, %v13082_v55 }
0x2397   :  { %24951 = vmatpush3.xpose.msk.msra.mxu0 %vm418_vm3, %v12538_v14  ;;  %24952 = vmatprep.mubr.msk.f32.mxu0 %vm26323_vm2, %v26322_v22 }
0x2398   :  { %24960 = vmatprep.subr.mxu0 %v26322_v22  ;;  %24997 = vmatprep.mubr.msk.f32.mxu1 %vm26323_vm2, %v26322_v22 }
0x239a   :  { %24953 = vmatmul.mubr.msk.f32.vlgmr.msra.gmra.mxu0 %vm418_vm3, %v12536_v54 }
0x239b   :  { %24961 = vmatpush3.xpose.msk.msra.mxu0 %vm418_vm3, %v12694_v63  ;;  %24962 = vmatprep.mubr.msk.f32.mxu0 %vm26323_vm2, %v26322_v22 }
0x239c   :  { %24970 = vmatprep.subr.mxu0 %v26322_v22 }
0x239e   :  { %24963 = vmatmul.mubr.msk.f32.vlgmr.msra.gmra.mxu0 %vm418_vm3, %v12692_v39 }
0x239f   :  { %24971 = vmatpush3.xpose.msk.msra.mxu0 %vm418_vm3, %v12850_v53  ;;  %24972 = vmatprep.mubr.msk.f32.mxu0 %vm26323_vm2, %v26322_v22 }
0x23a0   :  { %24980 = vmatprep.subr.mxu0 %v26322_v22 }
0x23a2   :  { %24973 = vmatmul.mubr.msk.f32.vlgmr.msra.gmra.mxu0 %vm418_vm3, %v12848_v59 }
0x23a3   :  { %24981 = vmatpush3.xpose.msk.msra.mxu0 %vm418_vm3, %v13006_v36  ;;  %24982 = vmatprep.mubr.msk.f32.mxu0 %vm26323_vm2, %v26322_v22 }
0x23a4   :  { %24990 = vmatprep.subr.mxu0 %v26322_v22 }
0x23a6   :  { %24983 = vmatmul.mubr.msk.f32.vlgmr.msra.gmra.mxu0 %vm418_vm3, %v13004_v48 }
0x23a7   :  { %24992 = vmatprep.mubr.msk.f32.mxu0 %vm26323_vm2, %v26322_v22 }
0x23ae   :  { %v28559_v11 = vpop.f32.mrf.mxu0 }
0x23b0   :  { %v24914_v46 = vpop.f32.mrf.mxu0  ;;  %v28561_v20 = vpop.f32.mrf.mxu1 }
0x23b2   :  { %v24919_v21 = vpop.f32.mrf.mxu1 }
0x23b5   :  { %v28563_v13 = vpop.f32.mrf.mxu0 }
0x23b7   :  { %v24924_v41 = vpop.f32.mrf.mxu0 }
0x23b9   :  { %v28565_v45 = vpop.f32.mrf.mxu1 }
0x23bb   :  { %v24929_v60 = vpop.f32.mrf.mxu1 }
0x2406   :  { %v28567_v17 = vpop.f32.mrf.mxu1 }
0x2408   :  { %v24939_v9 = vpop.f32.mrf.mxu1 }
0x240a   :  { %v28569_v8 = vpop.f32.mrf.mxu1 }
0x240c   :  { %v24949_v34 = vpop.f32.mrf.mxu1 }
0x240e   :  { %v12687_v4 = vpop.f32.mrf.mxu1 }
0x240f   :  { %v13160_v0 = vmul.f32 0.35355338, %v12687_v4 }
0x2410   :  { %v24959_v23 = vpop.f32.mrf.mxu1 }
0x2411   :  { %v13170_v1 = vsel %vm418_vm3, %v13160_v0, -inf }
0x2412   :  { %13171 = vmax.xlane.f32.xlu1 %v13170_v1  ;;  %v12843_v42 = vpop.f32.mrf.mxu1 }
0x2413   :  { %v13162_v5 = vmul.f32 0.35355338, %v12843_v42 }
0x2414   :  { %v24969_v30 = vpop.f32.mrf.mxu1 }
0x2415   :  { %v13176_v28 = vsel %vm418_vm3, %v13162_v5, -inf }
0x244d   :  { %v28572_v14 = vpop.f32.mrf.mxu0 }
0x244e   :  { %v12999_v54 = vpop.f32.mrf.mxu1 }
0x244f   :  { %v24934_v63 = vpop.f32.mrf.mxu0  ;;  %v13164_v47 = vmul.f32 0.35355338, %v12999_v54 }
0x2450   :  { %v24979_v39 = vpop.f32.mrf.mxu1 }
0x2451   :  { %v13182_v48 = vsel %vm418_vm3, %v13164_v47, -inf }
0x2456   :  { %v28574_v52 = vpop.f32.mrf.mxu0  ;;  %v13155_v3 = vpop.f32.mrf.mxu1 }
0x2457   :  { %v13166_v59 = vmul.f32 0.35355338, %v13155_v3 }
0x2458   :  { %v24944_v58 = vpop.f32.mrf.mxu0  ;;  %v24989_v10 = vpop.f32.mrf.mxu1 }
0x2459   :  { %v13188_v46 = vsel %vm418_vm3, %v13166_v59, -inf }
0x245a   :  { %v12609_v16 = vpop.f32.mrf.mxu0 }
0x245b   :  { %v13159_v27 = vmul.f32 0.35355338, %v12609_v16 }
0x245c   :  { %v24954_v19 = vpop.f32.mrf.mxu0 }
0x245d   :  { %v13167_v15 = vsel %vm418_vm3, %v13159_v27, -inf }
0x245e   :  { %13168 = vmax.xlane.f32.xlu0 %v13167_v15  ;;  %v12765_v57 = vpop.f32.mrf.mxu0 }
0x245f   :  { %v13161_v2 = vmul.f32 0.35355338, %v12765_v57 }
0x2460   :  { %v24964_v61 = vpop.f32.mrf.mxu0 }
0x2461   :  { %v13173_v7 = vsel %vm418_vm3, %v13161_v2, -inf }
0x2462   :  { %13174 = vmax.xlane.f32.xlu0 %v13173_v7  ;;  %v12921_v33 = vpop.f32.mrf.mxu0 }
0x2463   :  { %v13163_v26 = vmul.f32 0.35355338, %v12921_v33 }
0x2464   :  { %v24974_v25 = vpop.f32.mrf.mxu0 }
0x2465   :  { %v13179_v38 = vsel %vm418_vm3, %v13163_v26, -inf }
0x2466   :  { %13177 = vmax.xlane.f32.xlu0 %v13176_v28  ;;  %13180 = vmax.xlane.f32.xlu1 %v13179_v38  ;;  %v13077_v53 = vpop.f32.mrf.mxu0 }
0x2467   :  { %v13165_v18 = vmul.f32 0.35355338, %v13077_v53 }
0x2468   :  { %v24984_v55 = vpop.f32.mrf.mxu0 }
0x2469   :  { %v13185_v36 = vsel %vm418_vm3, %v13165_v18, -inf }
0x246a   :  { %13186 = vmax.xlane.f32.xlu1 %v13185_v36  ;;  %13183 = vmax.xlane.f32.xlu0 %v13182_v48 }
0x246e   :  { %13189 = vmax.xlane.f32.xlu0 %v13188_v46 }
0x247b   :  { %13255 = vrot.lane.b32.xlu1 %v28309_v6, %s26329_s22 }
0x247f   :  { %13407 = vrot.lane.b32.xlu1 %v28315_v31, %s26329_s22 }
0x2483   :  { %13483 = vrot.lane.b32.xlu1 %v28319_v29, %s26329_s22 }
0x2484   :  { %13331 = vrot.lane.b32.xlu0 %v28307_v62, %s26329_s22 }
0x2487   :  { %13635 = vrot.lane.b32.xlu1 %v28323_v12, %s26329_s22 }
0x2488   :  { %13559 = vrot.lane.b32.xlu0 %v28325_v24, %s26329_s22 }
0x249b   :  { %v13172_v21 = vpop.xlane.xlu1 %13171 }
0x249c   :  { %v13192_v41 = vsub.f32 %v13160_v0, %v13172_v21 }
0x249e   :  { %v13201_v60 = vmul.f32 1.442695, %v13192_v41 }
0x24a0   :  { %26064 = vpow2.f32 %v13201_v60 }
0x24ad   :  { %v28595_v9 = vpop.eup %26064 }
0x24ae   :  { %v13218_v34 = vsel %vm418_vm3, %v28595_v9, 0.0 }
0x24af   :  { %13219 = vadd.xlane.f32.xlu0 %v13218_v34 }
0x24e7   :  { %v13169_v4 = vpop.xlane.xlu0 %13168 }
0x24e8   :  { %v13191_v23 = vsub.f32 %v13159_v27, %v13169_v4 }
0x24ea   :  { %v13199_v1 = vmul.f32 1.442695, %v13191_v23 }
0x24eb   :  { %v13175_v42 = vpop.xlane.xlu0 %13174 }
0x24ec   :  { %26066 = vpow2.f32 %v13199_v1  ;;  %v13193_v30 = vsub.f32 %v13161_v2, %v13175_v42 }
0x24ee   :  { %v13203_v54 = vmul.f32 1.442695, %v13193_v30 }
0x24ef   :  { %v13178_v63 = vpop.xlane.xlu0 %13177  ;;  %v13181_v39 = vpop.xlane.xlu1 %13180 }
0x24f0   :  { %26068 = vpow2.f32 %v13203_v54  ;;  %v13194_v3 = vsub.f32 %v13162_v5, %v13178_v63  ;;  %v13195_v0 = vsub.f32 %v13163_v26, %v13181_v39 }
0x24f2   :  { %v13205_v58 = vmul.f32 1.442695, %v13194_v3  ;;  %v13207_v10 = vmul.f32 1.442695, %v13195_v0 }
0x24f3   :  { %v13184_v16 = vpop.xlane.xlu0 %13183  ;;  %v13187_v19 = vpop.xlane.xlu1 %13186 }
0x24f4   :  { %26070 = vpow2.f32 %v13205_v58  ;;  %v13196_v15 = vsub.f32 %v13164_v47, %v13184_v16  ;;  %v13197_v57 = vsub.f32 %v13165_v18, %v13187_v19 }
0x24f5   :  { %26072 = vpow2.f32 %v13207_v10 }
0x24f6   :  { %v13209_v61 = vmul.f32 1.442695, %v13196_v15  ;;  %v13211_v27 = vmul.f32 1.442695, %v13197_v57 }
0x24f7   :  { %v13190_v7 = vpop.xlane.xlu0 %13189  ;;  %v13256_v33 = vpop.permute.xlu1 %13255 }
0x24f8   :  { %26074 = vpow2.f32 %v13209_v61  ;;  %v13198_v2 = vsub.f32 %v13166_v59, %v13190_v7  ;;  %24991 = vmatpush3.msra.mxu0 %v13256_v33 }
0x24f9   :  { %v28599_v25 = vpop.eup %26066  ;;  %26076 = vpow2.f32 %v13211_v27  ;;  %25000 = vmatprep.subr.mxu0 %v26322_v22 }
0x24fa   :  { %v13213_v5 = vmul.f32 1.442695, %v13198_v2  ;;  %v13215_v26 = vsel %vm418_vm3, %v28599_v25, 0.0 }
0x24fb   :  { %13216 = vadd.xlane.f32.xlu1 %v13215_v26  ;;  %v13332_v47 = vpop.permute.xlu0 %13331  ;;  %v13408_v23 = vpop.permute.xlu1 %13407 }
0x24fc   :  { %26078 = vpow2.f32 %v13213_v5  ;;  %24996 = vmatpush3.msra.mxu1 %v13332_v47  ;;  %v22803_v47 = vld [vmem:[%s26826_s28 + $0x28] sm:$0xff] }
0x24fd   :  { %v28604_v28 = vpop.eup %26068  ;;  %25005 = vmatprep.subr.mxu1 %v26322_v22 }
0x24fe   :  { %v13221_v38 = vsel %vm418_vm3, %v28604_v28, 0.0 }
0x24ff   :  { %13222 = vadd.xlane.f32.xlu1 %v13221_v38  ;;  %v13560_v34 = vpop.permute.xlu0 %13559  ;;  %v13484_v30 = vpop.permute.xlu1 %13483 }
0x2501   :  { %v28609_v53 = vpop.eup %26070 }
0x2502   :  { %v28611_v18 = vpop.eup %26072  ;;  %v13224_v55 = vsel %vm418_vm3, %v28609_v53, 0.0 }
0x2503   :  { %13225 = vadd.xlane.f32.xlu0 %v13224_v55  ;;  %v13227_v59 = vsel %vm418_vm3, %v28611_v18, 0.0  ;;  %v13636_v54 = vpop.permute.xlu1 %13635 }
0x2504   :  { %13228 = vadd.xlane.f32.xlu1 %v13227_v59 }
0x2505   :  { %v28617_v36 = vpop.eup %26074 }
0x2506   :  { %v28619_v48 = vpop.eup %26076  ;;  %v13230_v46 = vsel %vm418_vm3, %v28617_v36, 0.0 }
0x2507   :  { %13231 = vadd.xlane.f32.xlu0 %v13230_v46  ;;  %v13233_v21 = vsel %vm418_vm3, %v28619_v48, 0.0 }
0x2508   :  { %13234 = vadd.xlane.f32.xlu1 %v13233_v21 }
0x2509   :  { %v28625_v41 = vpop.eup %26078 }
0x250a   :  { %v13236_v60 = vsel %vm418_vm3, %v28625_v41, 0.0 }
0x250b   :  { %13237 = vadd.xlane.f32.xlu0 %v13236_v60 }
0x2519   :  { %13787 = vrot.lane.b32.xlu1 %v28329_v49, %s26329_s22 }
0x251d   :  { %14201 = vrot.lane.b32.xlu1 %v28307_v62, %s30122_s17 }
0x2521   :  { %14199 = vrot.lane.b32.xlu1 %v28307_v62, %s30123_s24  ;;  %13711 = vrot.lane.b32.xlu0 %v28333_v32, %s26329_s22 }
0x2525   :  { %14357 = vrot.lane.b32.xlu1 %v28319_v29, %s30122_s17  ;;  %14123 = vrot.lane.b32.xlu0 %v28309_v6, %s30122_s17 }
0x2529   :  { %14355 = vrot.lane.b32.xlu1 %v28319_v29, %s30123_s24  ;;  %14121 = vrot.lane.b32.xlu0 %v28309_v6, %s30123_s24 }
0x252d   :  { %14513 = vrot.lane.b32.xlu1 %v28323_v12, %s30122_s17  ;;  %14279 = vrot.lane.b32.xlu0 %v28315_v31, %s30122_s17 }
0x2531   :  { %14511 = vrot.lane.b32.xlu1 %v28323_v12, %s30123_s24  ;;  %14277 = vrot.lane.b32.xlu0 %v28315_v31, %s30123_s24 }
0x2535   :  { %14669 = vrot.lane.b32.xlu1 %v28329_v49, %s30122_s17  ;;  %14435 = vrot.lane.b32.xlu0 %v28325_v24, %s30122_s17 }
0x2538   :  { %v13220_v4 = vpop.xlane.xlu0 %13219 }
0x2539   :  { %26080 = vrcp.f32 %v13220_v4  ;;  %14667 = vrot.lane.b32.xlu1 %v28329_v49, %s30123_s24  ;;  %14433 = vrot.lane.b32.xlu0 %v28325_v24, %s30123_s24 }
0x253d   :  { %14591 = vrot.lane.b32.xlu0 %v28333_v32, %s30122_s17 }
0x2541   :  { %14589 = vrot.lane.b32.xlu0 %v28333_v32, %s30123_s24 }
0x2546   :  { %v26081_v1 = vpop.eup %26080 }
0x2547   :  { %v13248_v42 = vmul.f32 %v26081_v1, %v28595_v9 }
0x2549   :  { %24998 = vmatmul.mubr.msk.f32.vlgmr.msra.gmra.mxu1 %vm418_vm3, %v13248_v42 }
0x254a   :  { %25006 = vmatpush3.msra.mxu1 %v13484_v30  ;;  %25007 = vmatprep.mubr.msk.f32.mxu1 %vm26323_vm2, %v26322_v22 }
0x254b   :  { %25015 = vmatprep.subr.mxu1 %v26322_v22 }
0x2584   :  { %v13217_v63 = vpop.xlane.xlu1 %13216 }
0x2585   :  { %26082 = vrcp.f32 %v13217_v63 }
0x2588   :  { %v13223_v39 = vpop.xlane.xlu1 %13222 }
0x2589   :  { %26084 = vrcp.f32 %v13223_v39 }
0x258c   :  { %v13226_v3 = vpop.xlane.xlu0 %13225 }
0x258d   :  { %26086 = vrcp.f32 %v13226_v3  ;;  %v13229_v0 = vpop.xlane.xlu1 %13228 }
0x258e   :  { %26088 = vrcp.f32 %v13229_v0 }
0x2590   :  { %v13232_v58 = vpop.xlane.xlu0 %13231 }
0x2591   :  { %26090 = vrcp.f32 %v13232_v58  ;;  %v13235_v9 = vpop.xlane.xlu1 %13234 }
0x2592   :  { %v26083_v10 = vpop.eup %26082  ;;  %26092 = vrcp.f32 %v13235_v9 }
0x2593   :  { %v13247_v16 = vmul.f32 %v26083_v10, %v28599_v25 }
0x2594   :  { %v13238_v19 = vpop.xlane.xlu0 %13237 }
0x2595   :  { %26094 = vrcp.f32 %v13238_v19  ;;  %v13788_v15 = vpop.permute.xlu1 %13787  ;;  %24993 = vmatmul.mubr.msk.f32.vlgmr.msra.gmra.mxu0 %vm418_vm3, %v13247_v16 }
0x2596   :  { %v26085_v57 = vpop.eup %26084  ;;  %25001 = vmatpush3.msra.mxu0 %v13408_v23  ;;  %25002 = vmatprep.mubr.msk.f32.mxu0 %vm26323_vm2, %v26322_v22 }
0x2597   :  { %v13249_v61 = vmul.f32 %v26085_v57, %v28604_v28  ;;  %25010 = vmatprep.subr.mxu0 %v26322_v22 }
0x2598   :  { %v13712_v26 = vpop.permute.xlu0 %13711 }
0x2599   :  { %25003 = vmatmul.mubr.msk.f32.vlgmr.msra.gmra.mxu0 %vm418_vm3, %v13249_v61  ;;  %v14202_v7 = vpop.permute.xlu1 %14201 }
0x259a   :  { %v26087_v27 = vpop.eup %26086  ;;  %25011 = vmatpush3.msra.mxu0 %v13560_v34  ;;  %25012 = vmatprep.mubr.msk.f32.mxu0 %vm26323_vm2, %v26322_v22 }
0x259b   :  { %v26089_v33 = vpop.eup %26088  ;;  %v13250_v2 = vmul.f32 %v26087_v27, %v28609_v53  ;;  %25020 = vmatprep.subr.mxu0 %v26322_v22 }
0x259c   :  { %v13251_v25 = vmul.f32 %v26089_v33, %v28611_v18  ;;  %v22802_v18 = vld [vmem:[%s26826_s28 + $0x20] sm:$0xff] }
0x259d   :  { %25008 = vmatmul.mubr.msk.f32.vlgmr.msra.gmra.mxu1 %vm418_vm3, %v13250_v2  ;;  %v14200_v55 = vpop.permute.xlu1 %14199 }
0x259e   :  { %v26091_v5 = vpop.eup %26090  ;;  %25013 = vmatmul.mubr.msk.f32.vlgmr.msra.gmra.mxu0 %vm418_vm3, %v13251_v25  ;;  %25016 = vmatpush3.msra.mxu1 %v13636_v54 }
0x259f   :  { %v26093_v28 = vpop.eup %26092  ;;  %v13252_v38 = vmul.f32 %v26091_v5, %v28617_v36  ;;  %25021 = vmatpush3.msra.mxu0 %v13712_v26  ;;  %25017 = vmatprep.mubr.msk.f32.mxu1 %vm26323_vm2, %v26322_v22 }
0x25a0   :  { %v13253_v53 = vmul.f32 %v26093_v28, %v28619_v48  ;;  %25022 = vmatprep.mubr.msk.f32.mxu0 %vm26323_vm2, %v26322_v22  ;;  %25025 = vmatprep.subr.mxu1 %v26322_v22 }
0x25a1   :  { %25018 = vmatmul.mubr.msk.f32.vlgmr.msra.gmra.mxu1 %vm418_vm3, %v13252_v38  ;;  %25030 = vmatprep.subr.mxu0 %v22803_v47  ;;  %v14358_v48 = vpop.permute.xlu1 %14357 }
0x25a2   :  { %v26095_v59 = vpop.eup %26094  ;;  %25023 = vmatmul.mubr.msk.f32.vlgmr.msra.gmra.mxu0 %vm418_vm3, %v13253_v53  ;;  %25026 = vmatpush3.msra.mxu1 %v13788_v15 }
0x25a3   :  { %v13254_v36 = vmul.f32 %v26095_v59, %v28625_v41  ;;  %25027 = vmatprep.mubr.msk.f32.mxu1 %vm26323_vm2, %v26322_v22  ;;  %25044 = vmatprep.subr.mxu1 %v22802_v18 }
0x25a4   :  { %25031 = vmatpush3.msra.mxu0 %v22803_v47 }
0x25a5   :  { %25028 = vmatmul.mubr.msk.f32.vlgmr.msra.gmra.mxu1 %vm418_vm3, %v13254_v36  ;;  %25058 = vmatprep.subr.mxu0 %v26322_v22  ;;  %v14356_v46 = vpop.permute.xlu1 %14355 }
0x25a6   :  { %25046 = vmatprep.mubr.msk.f32.mxu1 %vm418_vm3, %v28559_v11  ;;  %25045 = vmatpush3.msra.mxu1 %v22802_v18 }
0x25a7   :  { %25063 = vmatprep.subr.mxu1 %v26322_v22 }
0x25a9   :  { %25047 = vmatmul.mubr.msk.f32.vlgmr.msra.gmra.mxu1 %vm418_vm3, %v28561_v20  ;;  %v14514_v11 = vpop.permute.xlu1 %14513 }
0x25aa   :  { %25064 = vmatpush3.xpose.msk.msra.mxu1 %vm418_vm3, %v14202_v7  ;;  %25049 = vmatprep.mubr.msk.f32.mxu1 %vm418_vm3, %v28563_v13 }
0x25ab   :  { %25073 = vmatprep.subr.mxu1 %v26322_v22 }
0x25ad   :  { %25050 = vmatmul.mubr.msk.f32.gmra.mxu1 %vm418_vm3, %v28565_v45  ;;  %v14512_v20 = vpop.permute.xlu1 %14511 }
0x25ae   :  { %25052 = vmatprep.mubr.msk.f32.mxu1 %vm418_vm3, %v28572_v14  ;;  %v14124_v14 = vpop.permute.xlu0 %14123 }
0x25b1   :  { %25053 = vmatmul.mubr.msk.f32.gmra.mxu1 %vm418_vm3, %v28567_v17  ;;  %v14670_v13 = vpop.permute.xlu1 %14669 }
0x25b2   :  { %25055 = vmatprep.mubr.msk.f32.mxu1 %vm418_vm3, %v28574_v52  ;;  %v14122_v52 = vpop.permute.xlu0 %14121 }
0x25b5   :  { %25056 = vmatmul.mubr.msk.f32.gmra.mxu1 %vm418_vm3, %v28569_v8  ;;  %v14668_v45 = vpop.permute.xlu1 %14667 }
0x25b6   :  { %25065 = vmatprep.mubr.msk.f32.mxu1 %vm26323_vm2, %v26322_v22  ;;  %v14280_v41 = vpop.permute.xlu0 %14279 }
0x25b9   :  { %25066 = vmatmul.mubr.msk.f32.vlgmr.msra.gmra.mxu1 %vm418_vm3, %v14200_v55 }
0x25ba   :  { %25074 = vmatpush3.xpose.msk.msra.mxu1 %vm418_vm3, %v14358_v48  ;;  %25075 = vmatprep.mubr.msk.f32.mxu1 %vm26323_vm2, %v26322_v22  ;;  %v14278_v23 = vpop.permute.xlu0 %14277 }
0x25bb   :  { %25083 = vmatprep.subr.mxu1 %v26322_v22 }
0x25bd   :  { %25076 = vmatmul.mubr.msk.f32.vlgmr.msra.gmra.mxu1 %vm418_vm3, %v14356_v46 }
0x25be   :  { %25084 = vmatpush3.xpose.msk.msra.mxu1 %vm418_vm3, %v14514_v11  ;;  %25085 = vmatprep.mubr.msk.f32.mxu1 %vm26323_vm2, %v26322_v22  ;;  %v14436_v3 = vpop.permute.xlu0 %14435 }
0x25bf   :  { %25093 = vmatprep.subr.mxu1 %v26322_v22 }
0x25c1   :  { %25086 = vmatmul.mubr.msk.f32.vlgmr.msra.gmra.mxu1 %vm418_vm3, %v14512_v20 }
0x25c2   :  { %25094 = vmatpush3.xpose.msk.msra.mxu1 %vm418_vm3, %v14670_v13  ;;  %25095 = vmatprep.mubr.msk.f32.mxu1 %vm26323_vm2, %v26322_v22  ;;  %v14434_v16 = vpop.permute.xlu0 %14433 }
0x25c3   :  { %25103 = vmatprep.subr.mxu1 %v26322_v22 }
0x25c5   :  { %25096 = vmatmul.mubr.msk.f32.vlgmr.msra.gmra.mxu1 %vm418_vm3, %v14668_v45 }
0x25c6   :  { %25105 = vmatprep.mubr.msk.f32.mxu1 %vm26323_vm2, %v26322_v22  ;;  %v14592_v61 = vpop.permute.xlu0 %14591 }
0x25ca   :  { %v14590_v2 = vpop.permute.xlu0 %14589 }
0x2609   :  { %v13403_v17 = vpop.f32.mrf.mxu1 }
0x260b   :  { %v24999_v8 = vpop.f32.mrf.mxu1 }
0x2655   :  { %v13327_v21 = vpop.f32.mrf.mxu0 }
0x2656   :  { %25032 = vmatprep.mubr.msk.f32.mxu0 %vm418_vm3, %v13327_v21 }
0x2657   :  { %v24994_v60 = vpop.f32.mrf.mxu0  ;;  %25033 = vmatmul.mubr.msk.f32.vlgmr.msra.gmra.mxu0 %vm418_vm3, %v13403_v17 }
0x2658   :  { %25059 = vmatpush3.xpose.msk.msra.mxu0 %vm418_vm3, %v14124_v14 }
0x2659   :  { %v13479_v34 = vpop.f32.mrf.mxu0  ;;  %25068 = vmatprep.subr.mxu0 %v26322_v22 }
0x265a   :  { %25035 = vmatprep.mubr.msk.f32.mxu0 %vm418_vm3, %v13479_v34 }
0x265b   :  { %v25004_v4 = vpop.f32.mrf.mxu0 }
0x265d   :  { %v13555_v1 = vpop.f32.mrf.mxu1 }
0x265e   :  { %v13631_v42 = vpop.f32.mrf.mxu0  ;;  %25036 = vmatmul.mubr.msk.f32.gmra.mxu0 %vm418_vm3, %v13555_v1 }
0x265f   :  { %v25009_v30 = vpop.f32.mrf.mxu1  ;;  %25038 = vmatprep.mubr.msk.f32.mxu0 %vm418_vm3, %v13631_v42 }
0x2660   :  { %v25014_v54 = vpop.f32.mrf.mxu0 }
0x2661   :  { %v13707_v63 = vpop.f32.mrf.mxu1 }
0x2662   :  { %v13783_v39 = vpop.f32.mrf.mxu0  ;;  %25039 = vmatmul.mubr.msk.f32.gmra.mxu0 %vm418_vm3, %v13707_v63 }
0x2663   :  { %v25019_v0 = vpop.f32.mrf.mxu1  ;;  %25041 = vmatprep.mubr.msk.f32.mxu0 %vm418_vm3, %v13783_v39 }
0x2664   :  { %v25024_v58 = vpop.f32.mrf.mxu0 }
0x2665   :  { %v13859_v9 = vpop.f32.mrf.mxu1 }
0x2666   :  { %25042 = vmatmul.mubr.msk.f32.gmra.mxu0 %vm418_vm3, %v13859_v9 }
0x2667   :  { %v25029_v10 = vpop.f32.mrf.mxu1  ;;  %25060 = vmatprep.mubr.msk.f32.mxu0 %vm26323_vm2, %v26322_v22 }
0x2669   :  { %v28751_v19 = vpop.f32.mrf.mxu1 }
0x266a   :  { %25061 = vmatmul.mubr.msk.f32.vlgmr.msra.gmra.mxu0 %vm418_vm3, %v14122_v52 }
0x266b   :  { %25069 = vmatpush3.xpose.msk.msra.mxu0 %vm418_vm3, %v14280_v41  ;;  %v28755_v15 = vpop.f32.mrf.mxu1  ;;  %25070 = vmatprep.mubr.msk.f32.mxu0 %vm26323_vm2, %v26322_v22 }
0x266c   :  { %25078 = vmatprep.subr.mxu0 %v26322_v22 }
0x266d   :  { %v28760_v57 = vpop.f32.mrf.mxu1 }
0x266e   :  { %25071 = vmatmul.mubr.msk.f32.vlgmr.msra.gmra.mxu0 %vm418_vm3, %v14278_v23 }
0x266f   :  { %25079 = vmatpush3.xpose.msk.msra.mxu0 %vm418_vm3, %v14436_v3  ;;  %v28764_v27 = vpop.f32.mrf.mxu1  ;;  %25080 = vmatprep.mubr.msk.f32.mxu0 %vm26323_vm2, %v26322_v22 }
0x2670   :  { %25088 = vmatprep.subr.mxu0 %v26322_v22 }
0x2671   :  { %v28769_v7 = vpop.f32.mrf.mxu1 }
0x2672   :  { %25081 = vmatmul.mubr.msk.f32.vlgmr.msra.gmra.mxu0 %vm418_vm3, %v14434_v16 }
0x2673   :  { %25089 = vmatpush3.xpose.msk.msra.mxu0 %vm418_vm3, %v14592_v61  ;;  %v28773_v33 = vpop.f32.mrf.mxu1  ;;  %25090 = vmatprep.mubr.msk.f32.mxu0 %vm26323_vm2, %v26322_v22 }
0x2674   :  { %25098 = vmatprep.subr.mxu0 %v26322_v22 }
0x2675   :  { %v28778_v25 = vpop.f32.mrf.mxu1 }
0x2676   :  { %25091 = vmatmul.mubr.msk.f32.vlgmr.msra.gmra.mxu0 %vm418_vm3, %v14590_v2 }
0x2677   :  { %v28781_v5 = vpop.f32.mrf.mxu1  ;;  %25100 = vmatprep.mubr.msk.f32.mxu0 %vm26323_vm2, %v26322_v22 }
0x2679   :  { %v14273_v26 = vpop.f32.mrf.mxu1 }
0x267a   :  { %v14746_v47 = vmul.f32 0.35355338, %v14273_v26 }
0x267b   :  { %v25067_v28 = vpop.f32.mrf.mxu1 }
0x267c   :  { %v14756_v38 = vsel %vm418_vm3, %v14746_v47, -inf }
0x267d   :  { %14757 = vmax.xlane.f32.xlu1 %v14756_v38  ;;  %v14429_v53 = vpop.f32.mrf.mxu1 }
0x267e   :  { %v14748_v54 = vmul.f32 0.35355338, %v14429_v53 }
0x267f   :  { %v25077_v55 = vpop.f32.mrf.mxu1 }
0x2680   :  { %v14762_v10 = vsel %vm418_vm3, %v14748_v54, -inf }
0x2681   :  { %v14585_v18 = vpop.f32.mrf.mxu1 }
0x2682   :  { %v14750_v58 = vmul.f32 0.35355338, %v14585_v18 }
0x2683   :  { %v25087_v59 = vpop.f32.mrf.mxu1 }
0x2684   :  { %v14768_v28 = vsel %vm418_vm3, %v14750_v58, -inf }
0x2685   :  { %v14741_v36 = vpop.f32.mrf.mxu1 }
0x2686   :  { %v14752_v26 = vmul.f32 0.35355338, %v14741_v36 }
0x2687   :  { %v25097_v48 = vpop.f32.mrf.mxu1 }
0x2688   :  { %v14774_v38 = vsel %vm418_vm3, %v14752_v26, -inf }
0x2706   :  { %v14758_v8 = vpop.xlane.xlu1 %14757 }
0x2707   :  { %v14778_v21 = vsub.f32 %v14746_v47, %v14758_v8 }
0x2709   :  { %v14787_v4 = vmul.f32 1.442695, %v14778_v21 }
0x270b   :  { %26096 = vpow2.f32 %v14787_v4 }
0x2717   :  { %v28786_v46 = vpop.f32.mrf.mxu0 }
0x2718   :  { %v28809_v53 = vpop.eup %26096 }
0x2719   :  { %v28788_v11 = vpop.f32.mrf.mxu0  ;;  %v14804_v55 = vsel %vm418_vm3, %v28809_v53, 0.0 }
0x271e   :  { %v28790_v20 = vpop.f32.mrf.mxu0 }
0x2720   :  { %v28792_v13 = vpop.f32.mrf.mxu0 }
0x2722   :  { %v28794_v45 = vpop.f32.mrf.mxu0 }
0x2724   :  { %v28796_v17 = vpop.f32.mrf.mxu0 }
0x2726   :  { %v28798_v14 = vpop.f32.mrf.mxu0 }
0x2728   :  { %v28800_v52 = vpop.f32.mrf.mxu0 }
0x272a   :  { %v14195_v41 = vpop.f32.mrf.mxu0 }
0x272b   :  { %v14745_v60 = vmul.f32 0.35355338, %v14195_v41 }
0x272c   :  { %v25062_v34 = vpop.f32.mrf.mxu0 }
0x272d   :  { %v14753_v23 = vsel %vm418_vm3, %v14745_v60, -inf }
0x272e   :  { %14754 = vmax.xlane.f32.xlu0 %v14753_v23  ;;  %v14351_v1 = vpop.f32.mrf.mxu0 }
0x272f   :  { %v14747_v42 = vmul.f32 0.35355338, %v14351_v1 }
0x2730   :  { %v25072_v30 = vpop.f32.mrf.mxu0 }
0x2731   :  { %v14759_v63 = vsel %vm418_vm3, %v14747_v42, -inf }
0x2732   :  { %14760 = vmax.xlane.f32.xlu0 %v14759_v63  ;;  %v14507_v39 = vpop.f32.mrf.mxu0 }
0x2733   :  { %v14749_v3 = vmul.f32 0.35355338, %v14507_v39 }
0x2734   :  { %v25082_v0 = vpop.f32.mrf.mxu0 }
0x2735   :  { %v14765_v9 = vsel %vm418_vm3, %v14749_v3, -inf }
0x2736   :  { %v14663_v16 = vpop.f32.mrf.mxu0  ;;  %14766 = vmax.xlane.f32.xlu1 %v14765_v9  ;;  %14763 = vmax.xlane.f32.xlu0 %v14762_v10 }
0x2737   :  { %v14751_v61 = vmul.f32 0.35355338, %v14663_v16 }
0x2738   :  { %v25092_v2 = vpop.f32.mrf.mxu0 }
0x2739   :  { %v14771_v47 = vsel %vm418_vm3, %v14751_v61, -inf }
0x273a   :  { %14772 = vmax.xlane.f32.xlu1 %v14771_v47  ;;  %14769 = vmax.xlane.f32.xlu0 %v14768_v28 }
0x273e   :  { %14775 = vmax.xlane.f32.xlu0 %v14774_v38 }
0x2742   :  { %14805 = vadd.xlane.f32.xlu0 %v14804_v55 }
0x274b   :  { %14841 = vrot.lane.b32.xlu1 %v28309_v6, %s30124_s29 }
0x274f   :  { %14993 = vrot.lane.b32.xlu1 %v28315_v31, %s30124_s29 }
0x2753   :  { %15069 = vrot.lane.b32.xlu1 %v28319_v29, %s30124_s29 }
0x2757   :  { %15221 = vrot.lane.b32.xlu1 %v28323_v12, %s30124_s29 }
0x27b7   :  { %v14755_v18 = vpop.xlane.xlu0 %14754 }
0x27b8   :  { %v14777_v59 = vsub.f32 %v14745_v60, %v14755_v18 }
0x27ba   :  { %v14785_v36 = vmul.f32 1.442695, %v14777_v59 }
0x27bb   :  { %v14761_v48 = vpop.xlane.xlu0 %14760 }
0x27bc   :  { %26098 = vpow2.f32 %v14785_v36  ;;  %v14779_v8 = vsub.f32 %v14747_v42, %v14761_v48 }
0x27be   :  { %v14789_v21 = vmul.f32 1.442695, %v14779_v8 }
0x27bf   :  { %v14764_v41 = vpop.xlane.xlu0 %14763  ;;  %v14767_v34 = vpop.xlane.xlu1 %14766 }
0x27c0   :  { %26100 = vpow2.f32 %v14789_v21  ;;  %v14780_v4 = vsub.f32 %v14748_v54, %v14764_v41  ;;  %v14781_v23 = vsub.f32 %v14749_v3, %v14767_v34 }
0x27c2   :  { %v14791_v1 = vmul.f32 1.442695, %v14780_v4  ;;  %v14793_v30 = vmul.f32 1.442695, %v14781_v23 }
0x27c3   :  { %v14770_v63 = vpop.xlane.xlu0 %14769  ;;  %v14773_v39 = vpop.xlane.xlu1 %14772 }
0x27c4   :  { %26102 = vpow2.f32 %v14791_v1  ;;  %v14782_v0 = vsub.f32 %v14750_v58, %v14770_v63  ;;  %v14783_v9 = vsub.f32 %v14751_v61, %v14773_v39 }
0x27c5   :  { %26104 = vpow2.f32 %v14793_v30 }
0x27c6   :  { %v14795_v10 = vmul.f32 1.442695, %v14782_v0  ;;  %v14797_v60 = vmul.f32 1.442695, %v14783_v9 }
0x27c7   :  { %v14776_v16 = vpop.xlane.xlu0 %14775  ;;  %v14842_v2 = vpop.permute.xlu1 %14841 }
0x27c8   :  { %26106 = vpow2.f32 %v14795_v10  ;;  %v14784_v42 = vsub.f32 %v14752_v26, %v14776_v16  ;;  %25099 = vmatpush3.msra.mxu0 %v14842_v2 }
0x27c9   :  { %v28821_v47 = vpop.eup %26098  ;;  %26108 = vpow2.f32 %v14797_v60  ;;  %25108 = vmatprep.subr.mxu0 %v26322_v22 }
0x27ca   :  { %v14799_v54 = vmul.f32 1.442695, %v14784_v42  ;;  %v14801_v3 = vsel %vm418_vm3, %v28821_v47, 0.0 }
0x27cb   :  { %14802 = vadd.xlane.f32.xlu1 %v14801_v3  ;;  %v14994_v41 = vpop.permute.xlu1 %14993  ;;  %v14806_v1 = vpop.xlane.xlu0 %14805 }
0x27cc   :  { %26110 = vpow2.f32 %v14799_v54 }
0x27cd   :  { %v28826_v58 = vpop.eup %26100 }
0x27ce   :  { %v14807_v61 = vsel %vm418_vm3, %v28826_v58, 0.0 }
0x27cf   :  { %14808 = vadd.xlane.f32.xlu1 %v14807_v61  ;;  %v15070_v34 = vpop.permute.xlu1 %15069 }
0x27d1   :  { %v28830_v28 = vpop.eup %26102 }
0x27d2   :  { %v28832_v26 = vpop.eup %26104  ;;  %v14810_v38 = vsel %vm418_vm3, %v28830_v28, 0.0 }
0x27d3   :  { %14811 = vadd.xlane.f32.xlu0 %v14810_v38  ;;  %v14813_v55 = vsel %vm418_vm3, %v28832_v26, 0.0  ;;  %v15222_v4 = vpop.permute.xlu1 %15221 }
0x27d4   :  { %14814 = vadd.xlane.f32.xlu1 %v14813_v55 }
0x27d5   :  { %v28838_v18 = vpop.eup %26106 }
0x27d6   :  { %v28840_v59 = vpop.eup %26108  ;;  %v14816_v36 = vsel %vm418_vm3, %v28838_v18, 0.0 }
0x27d7   :  { %14817 = vadd.xlane.f32.xlu0 %v14816_v36  ;;  %v14819_v48 = vsel %vm418_vm3, %v28840_v59, 0.0 }
0x27d8   :  { %14820 = vadd.xlane.f32.xlu1 %v14819_v48 }
0x27d9   :  { %v28846_v8 = vpop.eup %26110 }
0x27da   :  { %v14822_v21 = vsel %vm418_vm3, %v28846_v8, 0.0 }
0x27db   :  { %14823 = vadd.xlane.f32.xlu0 %v14822_v21 }
0x27e9   :  { %15373 = vrot.lane.b32.xlu1 %v28329_v49, %s30124_s29 }
0x27ed   :  { %15586 = vrot.lane.b32.xlu1 %v28309_v6, %s30125_s13 }
0x27f1   :  { %15664 = vrot.lane.b32.xlu1 %v28307_v62, %s30125_s13  ;;  %14917 = vrot.lane.b32.xlu0 %v28307_v62, %s30124_s29 }
0x27f5   :  { %15742 = vrot.lane.b32.xlu1 %v28315_v31, %s30125_s13  ;;  %15145 = vrot.lane.b32.xlu0 %v28325_v24, %s30124_s29 }
0x27f9   :  { %15820 = vrot.lane.b32.xlu1 %v28319_v29, %s30125_s13  ;;  %15297 = vrot.lane.b32.xlu0 %v28333_v32, %s30124_s29 }
0x27fd   :  { %15978 = vrot.lane.b32.xlu1 %v28323_v12, %s30126_s3  ;;  %15588 = vrot.lane.b32.xlu0 %v28309_v6, %s30126_s3 }
0x2801   :  { %15976 = vrot.lane.b32.xlu1 %v28323_v12, %s30125_s13  ;;  %15666 = vrot.lane.b32.xlu0 %v28307_v62, %s30126_s3 }
0x2805   :  { %16134 = vrot.lane.b32.xlu1 %v28329_v49, %s30126_s3  ;;  %15744 = vrot.lane.b32.xlu0 %v28315_v31, %s30126_s3 }
0x2809   :  { %16132 = vrot.lane.b32.xlu1 %v28329_v49, %s30125_s13  ;;  %15822 = vrot.lane.b32.xlu0 %v28319_v29, %s30126_s3 }
0x280d   :  { %15900 = vrot.lane.b32.xlu0 %v28325_v24, %s30126_s3 }
0x2811   :  { %15898 = vrot.lane.b32.xlu0 %v28325_v24, %s30125_s13 }
0x2815   :  { %16056 = vrot.lane.b32.xlu0 %v28333_v32, %s30126_s3 }
0x2819   :  { %16054 = vrot.lane.b32.xlu0 %v28333_v32, %s30125_s13 }
0x2854   :  { %v14803_v23 = vpop.xlane.xlu1 %14802 }
0x2855   :  { %26112 = vrcp.f32 %v14803_v23 }
0x2856   :  { %26114 = vrcp.f32 %v14806_v1 }
0x2858   :  { %v14809_v30 = vpop.xlane.xlu1 %14808 }
0x2859   :  { %26116 = vrcp.f32 %v14809_v30 }
0x285c   :  { %v14812_v63 = vpop.xlane.xlu0 %14811 }
0x285d   :  { %26118 = vrcp.f32 %v14812_v63  ;;  %v14815_v39 = vpop.xlane.xlu1 %14814 }
0x285e   :  { %26120 = vrcp.f32 %v14815_v39 }
0x2860   :  { %v14818_v0 = vpop.xlane.xlu0 %14817 }
0x2861   :  { %26122 = vrcp.f32 %v14818_v0  ;;  %v14821_v9 = vpop.xlane.xlu1 %14820 }
0x2862   :  { %v26113_v10 = vpop.eup %26112  ;;  %26124 = vrcp.f32 %v14821_v9 }
0x2863   :  { %v14833_v60 = vmul.f32 %v26113_v10, %v28821_v47  ;;  %v26115_v2 = vpop.eup %26114 }
0x2864   :  { %v14824_v16 = vpop.xlane.xlu0 %14823  ;;  %v14834_v61 = vmul.f32 %v26115_v2, %v28809_v53 }
0x2865   :  { %26126 = vrcp.f32 %v14824_v16  ;;  %v15374_v42 = vpop.permute.xlu1 %15373  ;;  %25101 = vmatmul.mubr.msk.f32.vlgmr.msra.gmra.mxu0 %vm418_vm3, %v14833_v60  ;;  %v22804_v16 = vld [vmem:[%s26826_s28 + $0x30] sm:$0xff] }
0x2866   :  { %v26117_v54 = vpop.eup %26116  ;;  %25109 = vmatpush3.msra.mxu0 %v14994_v41  ;;  %25110 = vmatprep.mubr.msk.f32.mxu0 %vm26323_vm2, %v26322_v22 }
0x2867   :  { %v14835_v3 = vmul.f32 %v26117_v54, %v28826_v58  ;;  %25118 = vmatprep.subr.mxu0 %v26322_v22 }
0x2868   :  { %v14918_v38 = vpop.permute.xlu0 %14917 }
0x2869   :  { %v15587_v55 = vpop.permute.xlu1 %15586  ;;  %25104 = vmatpush3.msra.mxu1 %v14918_v38  ;;  %25111 = vmatmul.mubr.msk.f32.vlgmr.msra.gmra.mxu0 %vm418_vm3, %v14835_v3 }
0x286a   :  { %v26119_v47 = vpop.eup %26118  ;;  %25106 = vmatmul.mubr.msk.f32.vlgmr.msra.gmra.mxu1 %vm418_vm3, %v14834_v61  ;;  %25113 = vmatprep.subr.mxu1 %v26322_v22 }
0x286b   :  { %v26121_v36 = vpop.eup %26120  ;;  %v14836_v48 = vmul.f32 %v26119_v47, %v28830_v28  ;;  %25114 = vmatpush3.msra.mxu1 %v15070_v34  ;;  %25115 = vmatprep.mubr.msk.f32.mxu1 %vm26323_vm2, %v26322_v22 }
0x286c   :  { %v14837_v58 = vmul.f32 %v26121_v36, %v28832_v26  ;;  %v15146_v53 = vpop.permute.xlu0 %15145  ;;  %25120 = vmatprep.mubr.msk.f32.mxu0 %vm26323_vm2, %v26322_v22  ;;  %25123 = vmatprep.subr.mxu1 %v26322_v22 }
0x286d   :  { %v15665_v21 = vpop.permute.xlu1 %15664  ;;  %25119 = vmatpush3.msra.mxu0 %v15146_v53 }
0x286e   :  { %v26123_v41 = vpop.eup %26122  ;;  %25116 = vmatmul.mubr.msk.f32.vlgmr.msra.gmra.mxu1 %vm418_vm3, %v14836_v48  ;;  %25121 = vmatmul.mubr.msk.f32.vlgmr.msra.gmra.mxu0 %vm418_vm3, %v14837_v58 }
0x286f   :  { %v26125_v28 = vpop.eup %26124  ;;  %v14838_v34 = vmul.f32 %v26123_v41, %v28838_v18  ;;  %25124 = vmatpush3.msra.mxu1 %v15222_v4  ;;  %25128 = vmatprep.subr.mxu0 %v26322_v22 }
0x2870   :  { %v14839_v26 = vmul.f32 %v26125_v28, %v28840_v59  ;;  %v15298_v23 = vpop.permute.xlu0 %15297  ;;  %25125 = vmatprep.mubr.msk.f32.mxu1 %vm26323_vm2, %v26322_v22  ;;  %25130 = vmatprep.mubr.msk.f32.mxu0 %vm26323_vm2, %v26322_v22 }
0x2871   :  { %v15743_v1 = vpop.permute.xlu1 %15742  ;;  %25129 = vmatpush3.msra.mxu0 %v15298_v23  ;;  %25133 = vmatprep.subr.mxu1 %v26322_v22 }
0x2872   :  { %v26127_v30 = vpop.eup %26126  ;;  %25126 = vmatmul.mubr.msk.f32.vlgmr.msra.gmra.mxu1 %vm418_vm3, %v14838_v34  ;;  %25131 = vmatmul.mubr.msk.f32.vlgmr.msra.gmra.mxu0 %vm418_vm3, %v14839_v26 }
0x2873   :  { %v14840_v18 = vmul.f32 %v26127_v30, %v28846_v8  ;;  %25134 = vmatpush3.msra.mxu1 %v15374_v42  ;;  %25135 = vmatprep.mubr.msk.f32.mxu1 %vm26323_vm2, %v26322_v22 }
0x2874   :  { %v15589_v59 = vpop.permute.xlu0 %15588  ;;  %25152 = vmatprep.subr.mxu1 %v26322_v22  ;;  %25138 = vmatprep.subr.mxu0 %v22804_v16 }
0x2875   :  { %v15821_v4 = vpop.permute.xlu1 %15820  ;;  %25139 = vmatpush3.msra.mxu0 %v22804_v16 }
0x2876   :  { %25136 = vmatmul.mubr.msk.f32.vlgmr.msra.gmra.mxu1 %vm418_vm3, %v14840_v18  ;;  %25172 = vmatprep.subr.mxu0 %v26322_v22 }
0x2877   :  { %25153 = vmatpush3.xpose.msk.msra.mxu1 %vm418_vm3, %v15589_v59  ;;  %25154 = vmatprep.mubr.msk.f32.mxu1 %vm26323_vm2, %v26322_v22 }
0x2878   :  { %v15667_v63 = vpop.permute.xlu0 %15666  ;;  %25157 = vmatprep.subr.mxu1 %v26322_v22 }
0x2879   :  { %v15979_v8 = vpop.permute.xlu1 %15978 }
0x287a   :  { %25155 = vmatmul.mubr.msk.f32.vlgmr.msra.gmra.mxu1 %vm418_vm3, %v15587_v55 }
0x287b   :  { %25158 = vmatpush3.xpose.msk.msra.mxu1 %vm418_vm3, %v15667_v63  ;;  %25159 = vmatprep.mubr.msk.f32.mxu1 %vm26323_vm2, %v26322_v22 }
0x287c   :  { %v15745_v39 = vpop.permute.xlu0 %15744  ;;  %25162 = vmatprep.subr.mxu1 %v26322_v22 }
0x287d   :  { %v15977_v9 = vpop.permute.xlu1 %15976 }
0x287e   :  { %25160 = vmatmul.mubr.msk.f32.vlgmr.msra.gmra.mxu1 %vm418_vm3, %v15665_v21 }
0x287f   :  { %25163 = vmatpush3.xpose.msk.msra.mxu1 %vm418_vm3, %v15745_v39  ;;  %25164 = vmatprep.mubr.msk.f32.mxu1 %vm26323_vm2, %v26322_v22 }
0x2880   :  { %v15823_v0 = vpop.permute.xlu0 %15822  ;;  %25167 = vmatprep.subr.mxu1 %v26322_v22 }
0x2881   :  { %v16135_v10 = vpop.permute.xlu1 %16134 }
0x2882   :  { %25165 = vmatmul.mubr.msk.f32.vlgmr.msra.gmra.mxu1 %vm418_vm3, %v15743_v1 }
0x2883   :  { %25168 = vmatpush3.xpose.msk.msra.mxu1 %vm418_vm3, %v15823_v0  ;;  %25169 = vmatprep.mubr.msk.f32.mxu1 %vm26323_vm2, %v26322_v22 }
0x2884   :  { %25177 = vmatprep.subr.mxu1 %v26322_v22  ;;  %v15901_v61 = vpop.permute.xlu0 %15900 }
0x2885   :  { %v16133_v60 = vpop.permute.xlu1 %16132 }
0x2886   :  { %25170 = vmatmul.mubr.msk.f32.vlgmr.msra.gmra.mxu1 %vm418_vm3, %v15821_v4 }
0x2887   :  { %25178 = vmatpush3.xpose.msk.msra.mxu1 %vm418_vm3, %v15979_v8  ;;  %25179 = vmatprep.mubr.msk.f32.mxu1 %vm26323_vm2, %v26322_v22 }
0x2888   :  { %25187 = vmatprep.subr.mxu1 %v26322_v22  ;;  %v15899_v53 = vpop.permute.xlu0 %15898 }
0x288a   :  { %25180 = vmatmul.mubr.msk.f32.vlgmr.msra.gmra.mxu1 %vm418_vm3, %v15977_v9 }
0x288b   :  { %25188 = vmatpush3.xpose.msk.msra.mxu1 %vm418_vm3, %v16135_v10  ;;  %25189 = vmatprep.mubr.msk.f32.mxu1 %vm26323_vm2, %v26322_v22 }
0x288c   :  { %25197 = vmatprep.subr.mxu1 %v26322_v22  ;;  %v16057_v23 = vpop.permute.xlu0 %16056 }
0x288e   :  { %25190 = vmatmul.mubr.msk.f32.vlgmr.msra.gmra.mxu1 %vm418_vm3, %v16133_v60 }
0x288f   :  { %25199 = vmatprep.mubr.msk.f32.mxu1 %vm26323_vm2, %v26322_v22 }
0x2890   :  { %v16055_v63 = vpop.permute.xlu0 %16054 }
0x2925   :  { %v14913_v2 = vpop.f32.mrf.mxu0 }
0x2926   :  { %25140 = vmatprep.mubr.msk.f32.mxu0 %vm418_vm3, %v14913_v2 }
0x2927   :  { %v25102_v42 = vpop.f32.mrf.mxu0 }
0x2929   :  { %v15065_v54 = vpop.f32.mrf.mxu0 }
0x292a   :  { %v14989_v3 = vpop.f32.mrf.mxu1 }
0x292b   :  { %v25112_v38 = vpop.f32.mrf.mxu0  ;;  %25141 = vmatmul.mubr.msk.f32.vlgmr.msra.gmra.mxu0 %vm418_vm3, %v14989_v3 }
0x292c   :  { %25173 = vmatpush3.xpose.msk.msra.mxu0 %vm418_vm3, %v15901_v61  ;;  %v25107_v55 = vpop.f32.mrf.mxu1  ;;  %25143 = vmatprep.mubr.msk.f32.mxu0 %vm418_vm3, %v15065_v54 }
0x292d   :  { %25182 = vmatprep.subr.mxu0 %v26322_v22 }
0x292e   :  { %v15141_v47 = vpop.f32.mrf.mxu1  ;;  %v15217_v36 = vpop.f32.mrf.mxu0 }
0x292f   :  { %25144 = vmatmul.mubr.msk.f32.gmra.mxu0 %vm418_vm3, %v15141_v47 }
0x2930   :  { %v25117_v48 = vpop.f32.mrf.mxu1  ;;  %v25122_v58 = vpop.f32.mrf.mxu0  ;;  %25146 = vmatprep.mubr.msk.f32.mxu0 %vm418_vm3, %v15217_v36 }
0x2932   :  { %v15293_v21 = vpop.f32.mrf.mxu1  ;;  %v15369_v41 = vpop.f32.mrf.mxu0 }
0x2933   :  { %25147 = vmatmul.mubr.msk.f32.gmra.mxu0 %vm418_vm3, %v15293_v21 }
0x2934   :  { %v25127_v28 = vpop.f32.mrf.mxu1  ;;  %v25132_v34 = vpop.f32.mrf.mxu0  ;;  %25149 = vmatprep.mubr.msk.f32.mxu0 %vm418_vm3, %v15369_v41 }
0x2936   :  { %v15445_v26 = vpop.f32.mrf.mxu1 }
0x2937   :  { %25150 = vmatmul.mubr.msk.f32.gmra.mxu0 %vm418_vm3, %v15445_v26 }
0x2938   :  { %v25137_v1 = vpop.f32.mrf.mxu1  ;;  %25174 = vmatprep.mubr.msk.f32.mxu0 %vm26323_vm2, %v26322_v22 }
0x293a   :  { %v15660_v30 = vpop.f32.mrf.mxu1 }
0x293b   :  { %v28970_v18 = vmul.f32 0.35355338, %v15660_v30  ;;  %25175 = vmatmul.mubr.msk.f32.vlgmr.msra.gmra.mxu0 %vm418_vm3, %v15899_v53 }
0x293c   :  { %25183 = vmatpush3.xpose.msk.msra.mxu0 %vm418_vm3, %v16057_v23  ;;  %v25156_v59 = vpop.f32.mrf.mxu1  ;;  %25184 = vmatprep.mubr.msk.f32.mxu0 %vm26323_vm2, %v26322_v22 }
0x293d   :  { %v16218_v4 = vsel %vm418_vm3, %v28970_v18, -inf  ;;  %25192 = vmatprep.subr.mxu0 %v26322_v22 }
0x293e   :  { %16219 = vmax.xlane.f32.xlu0 %v16218_v4  ;;  %v15738_v8 = vpop.f32.mrf.mxu1 }
0x293f   :  { %v16211_v39 = vmul.f32 0.35355338, %v15738_v8  ;;  %25185 = vmatmul.mubr.msk.f32.vlgmr.msra.gmra.mxu0 %vm418_vm3, %v16055_v63 }
0x2940   :  { %v25161_v0 = vpop.f32.mrf.mxu1  ;;  %25194 = vmatprep.mubr.msk.f32.mxu0 %vm26323_vm2, %v26322_v22 }
0x2941   :  { %v16221_v9 = vsel %vm418_vm3, %v16211_v39, -inf }
0x2942   :  { %16222 = vmax.xlane.f32.xlu1 %v16221_v9  ;;  %v15816_v10 = vpop.f32.mrf.mxu1 }
0x2943   :  { %v28983_v60 = vmul.f32 0.35355338, %v15816_v10 }
0x2944   :  { %v25166_v16 = vpop.f32.mrf.mxu1 }
0x2945   :  { %v16224_v2 = vsel %vm418_vm3, %v28983_v60, -inf }
0x2946   :  { %16225 = vmax.xlane.f32.xlu0 %v16224_v2  ;;  %v15894_v42 = vpop.f32.mrf.mxu1 }
0x2947   :  { %v16213_v54 = vmul.f32 0.35355338, %v15894_v42 }
0x2948   :  { %v25171_v3 = vpop.f32.mrf.mxu1 }
0x2949   :  { %v16227_v61 = vsel %vm418_vm3, %v16213_v54, -inf  ;;  %v14088_v3 = vadd.f32 %v28751_v19, %v28786_v46 }
0x294a   :  { %16228 = vmax.xlane.f32.xlu0 %v16227_v61  ;;  %v16050_v38 = vpop.f32.mrf.mxu1 }
0x294b   :  { %v16215_v55 = vmul.f32 0.35355338, %v16050_v38 }
0x294c   :  { %v25181_v47 = vpop.f32.mrf.mxu1 }
0x294d   :  { %v16233_v36 = vsel %vm418_vm3, %v16215_v55, -inf }
0x294e   :  { %16234 = vmax.xlane.f32.xlu0 %v16233_v36  ;;  %v16206_v48 = vpop.f32.mrf.mxu1 }
0x294f   :  { %v16217_v58 = vmul.f32 0.35355338, %v16206_v48  ;;  %v14098_v48 = vadd.f32 %v28760_v57, %v28790_v20  ;;  %v14118_v20 = vadd.f32 %v28778_v25, %v28798_v14 }
0x2950   :  { %v25191_v53 = vpop.f32.mrf.mxu1 }
0x2951   :  { %v16239_v21 = vsel %vm418_vm3, %v16217_v58, -inf }
0x2952   :  { %16240 = vmax.xlane.f32.xlu0 %v16239_v21 }
0x29c7   :  { %v16220_v41 = vpop.xlane.xlu0 %16219 }
0x29cb   :  { %v16223_v28 = vpop.xlane.xlu1 %16222 }
0x29cc   :  { %v16243_v34 = vsub.f32 %v16211_v39, %v16223_v28  ;;  %v14108_v28 = vadd.f32 %v28769_v7, %v28794_v45 }
0x29ce   :  { %v16252_v26 = vmul.f32 1.442695, %v16243_v34 }
0x29cf   :  { %v16226_v23 = vpop.xlane.xlu0 %16225 }
0x29d0   :  { %26128 = vpow2.f32 %v16252_v26  ;;  %v16244_v26 = vsub.f32 %v28983_v60, %v16226_v23 }
0x29d3   :  { %v16229_v1 = vpop.xlane.xlu0 %16228 }
0x29d4   :  { %v16245_v30 = vsub.f32 %v16213_v54, %v16229_v1 }
0x29d6   :  { %v16256_v59 = vmul.f32 1.442695, %v16245_v30 }
0x29d7   :  { %v16235_v4 = vpop.xlane.xlu0 %16234 }
0x29d8   :  { %26130 = vpow2.f32 %v16256_v59  ;;  %v16247_v63 = vsub.f32 %v16215_v55, %v16235_v4 }
0x29da   :  { %v16260_v8 = vmul.f32 1.442695, %v16247_v63 }
0x29db   :  { %v16241_v0 = vpop.xlane.xlu0 %16240 }
0x29dc   :  { %26132 = vpow2.f32 %v16260_v8  ;;  %v16249_v9 = vsub.f32 %v16217_v58, %v16241_v0  ;;  %v16242_v58 = vsub.f32 %v28970_v18, %v16220_v41  ;;  %v16254_v18 = vmul.f32 1.442695, %v16244_v26 }
0x29dd   :  { %v28990_v10 = vpop.eup %26128 }
0x29de   :  { %v16264_v16 = vmul.f32 1.442695, %v16249_v9  ;;  %v16269_v2 = vsel %vm418_vm3, %v28990_v10, 0.0  ;;  %v16250_v34 = vmul.f32 1.442695, %v16242_v58 }
0x29df   :  { %16270 = vadd.xlane.f32.xlu0 %v16269_v2 }
0x29e0   :  { %26134 = vpow2.f32 %v16264_v16 }
0x29e1   :  { %26136 = vpow2.f32 %v16250_v34 }
0x29e2   :  { %26138 = vpow2.f32 %v16254_v18 }
0x29e5   :  { %v28994_v39 = vpop.eup %26130 }
0x29e6   :  { %v16275_v42 = vsel %vm418_vm3, %v28994_v39, 0.0 }
0x29e7   :  { %16276 = vadd.xlane.f32.xlu0 %v16275_v42 }
0x29e9   :  { %v28998_v54 = vpop.eup %26132 }
0x29ea   :  { %v16281_v61 = vsel %vm418_vm3, %v28998_v54, 0.0 }
0x29eb   :  { %v25142_v38 = vpop.f32.mrf.mxu0  ;;  %16282 = vadd.xlane.f32.xlu0 %v16281_v61 }
0x29ec   :  { %v29004_v55 = vadd.f32 %v25142_v38, %v14088_v3 }
0x29ed   :  { %v29006_v47 = vpop.eup %26134  ;;  %v29008_v36 = vpop.f32.mrf.mxu0 }
0x29ee   :  { %v16287_v53 = vsel %vm418_vm3, %v29006_v47, 0.0  ;;  %v26137_v25 = vpop.eup %26136 }
0x29ef   :  { %v25145_v19 = vpop.f32.mrf.mxu0  ;;  %16288 = vadd.xlane.f32.xlu0 %v16287_v53  ;;  %v16266_v14 = vsel %vm418_vm3, %v26137_v25, 0.0  ;;  %v26139_v16 = vpop.eup %26138 }
0x29f0   :  { %v29015_v46 = vadd.f32 %v25145_v19, %v14098_v48  ;;  %v16272_v2 = vsel %vm418_vm3, %v26139_v16, 0.0 }
0x29f1   :  { %v29017_v21 = vpop.f32.mrf.mxu0 }
0x29f3   :  { %v25148_v1 = vpop.f32.mrf.mxu0 }
0x29f4   :  { %v29022_v30 = vadd.f32 %v25148_v1, %v14108_v28 }
0x29f5   :  { %v29024_v57 = vpop.f32.mrf.mxu0 }
0x29f7   :  { %v25151_v41 = vpop.f32.mrf.mxu0 }
0x29f8   :  { %v29028_v59 = vadd.f32 %v25151_v41, %v14118_v20 }
0x29f9   :  { %v29030_v4 = vpop.f32.mrf.mxu0 }
0x29fb   :  { %v15972_v7 = vpop.f32.mrf.mxu0 }
0x29fc   :  { %v16214_v45 = vmul.f32 0.35355338, %v15972_v7 }
0x29fd   :  { %v25176_v63 = vpop.f32.mrf.mxu0 }
0x29fe   :  { %v16230_v60 = vsel %vm418_vm3, %v16214_v45, -inf }
0x29ff   :  { %v16128_v23 = vpop.f32.mrf.mxu0  ;;  %16231 = vmax.xlane.f32.xlu1 %v16230_v60 }
0x2a00   :  { %v16216_v8 = vmul.f32 0.35355338, %v16128_v23 }
0x2a01   :  { %v25186_v0 = vpop.f32.mrf.mxu0 }
0x2a02   :  { %v16236_v9 = vsel %vm418_vm3, %v16216_v8, -inf }
0x2a03   :  { %16237 = vmax.xlane.f32.xlu1 %v16236_v9 }
0x2a05   :  { %16382 = vrot.lane.b32.xlu0 %v28307_v62, %s30127_s9 }
0x2a07   :  { %16267 = vadd.xlane.f32.xlu1 %v16266_v14 }
0x2a09   :  { %16610 = vrot.lane.b32.xlu0 %v28325_v24, %s30127_s9 }
0x2a0b   :  { %16273 = vadd.xlane.f32.xlu1 %v16272_v2 }
0x2a0d   :  { %16762 = vrot.lane.b32.xlu0 %v28333_v32, %s30127_s9 }
0x2a1c   :  { %16306 = vrot.lane.b32.xlu1 %v28309_v6, %s30127_s9 }
0x2a20   :  { %16458 = vrot.lane.b32.xlu1 %v28315_v31, %s30127_s9 }
0x2a24   :  { %16534 = vrot.lane.b32.xlu1 %v28319_v29, %s30127_s9 }
0x2a28   :  { %16686 = vrot.lane.b32.xlu1 %v28323_v12, %s30127_s9 }
0x2a68   :  { %v16271_v62 = vpop.xlane.xlu0 %16270 }
0x2a69   :  { %26140 = vrcp.f32 %v16271_v62 }
0x2a70   :  { %v16277_v24 = vpop.xlane.xlu0 %16276 }
0x2a74   :  { %v16283_v42 = vpop.xlane.xlu0 %16282 }
0x2a76   :  { %v26141_v61 = vpop.eup %26140 }
0x2a77   :  { %v16299_v32 = vmul.f32 %v26141_v61, %v28990_v10 }
0x2a78   :  { %v16289_v3 = vpop.xlane.xlu0 %16288 }
0x2a7c   :  { %v16383_v38 = vpop.permute.xlu0 %16382 }
0x2a7d   :  { %25198 = vmatpush3.msra.mxu1 %v16383_v38 }
0x2a7e   :  { %25200 = vmatmul.mubr.msk.f32.vlgmr.msra.gmra.mxu1 %vm418_vm3, %v16299_v32  ;;  %25207 = vmatprep.subr.mxu1 %v26322_v22 }
0x2a7f   :  { %25209 = vmatprep.mubr.msk.f32.mxu1 %vm26323_vm2, %v26322_v22 }
0x2a80   :  { %v16611_v9 = vpop.permute.xlu0 %16610 }
0x2a84   :  { %v16763_v61 = vpop.permute.xlu0 %16762 }
0x2a88   :  { %v16232_v6 = vpop.xlane.xlu1 %16231 }
0x2a89   :  { %v16246_v31 = vsub.f32 %v16214_v45, %v16232_v6 }
0x2a8b   :  { %v16258_v29 = vmul.f32 1.442695, %v16246_v31 }
0x2a8c   :  { %v16238_v12 = vpop.xlane.xlu1 %16237 }
0x2a8d   :  { %26142 = vpow2.f32 %v16258_v29  ;;  %v16248_v48 = vsub.f32 %v16216_v8, %v16238_v12 }
0x2a8e   :  { %26144 = vrcp.f32 %v16277_v24 }
0x2a8f   :  { %v16262_v58 = vmul.f32 1.442695, %v16248_v48 }
0x2a90   :  { %v16268_v53 = vpop.xlane.xlu1 %16267 }
0x2a91   :  { %26146 = vpow2.f32 %v16262_v58 }
0x2a92   :  { %26148 = vrcp.f32 %v16268_v53  ;;  %v22939_v53 = vld [vmem:[%s27246_s6 + $0x38] sm:$0xff] }
0x2a93   :  { %26150 = vrcp.f32 %v16283_v42  ;;  %v22805_v42 = vld [vmem:[%s26826_s28 + $0x38] sm:$0xff] }
0x2a94   :  { %v16274_v10 = vpop.xlane.xlu1 %16273 }
0x2a95   :  { %26152 = vrcp.f32 %v16274_v10  ;;  %v22938_v10 = vld [vmem:[%s27246_s6 + $0x30] sm:$0xff] }
0x2a96   :  { %26154 = vrcp.f32 %v16289_v3 }
0x2a98   :  { %v16307_v19 = vpop.permute.xlu1 %16306 }
0x2a99   :  { %25193 = vmatpush3.msra.mxu0 %v16307_v19  ;;  %v22937_v19 = vld [vmem:[%s27246_s6 + $0x28] sm:$0xff] }
0x2a9a   :  { %v26143_v28 = vpop.eup %26142  ;;  %25202 = vmatprep.subr.mxu0 %v26322_v22 }
0x2a9b   :  { %v16278_v34 = vsel %vm418_vm3, %v26143_v28, 0.0  ;;  %v26145_v1 = vpop.eup %26144 }
0x2a9c   :  { %16279 = vadd.xlane.f32.xlu1 %v16278_v34  ;;  %v16459_v26 = vpop.permute.xlu1 %16458  ;;  %v16301_v7 = vmul.f32 %v26145_v1, %v28994_v39 }
0x2a9e   :  { %v26147_v20 = vpop.eup %26146 }
0x2a9f   :  { %v26149_v18 = vpop.eup %26148  ;;  %v16284_v41 = vsel %vm418_vm3, %v26147_v20, 0.0 }
0x2aa0   :  { %v16298_v45 = vmul.f32 %v26149_v18, %v26137_v25  ;;  %16285 = vadd.xlane.f32.xlu1 %v16284_v41  ;;  %v16535_v63 = vpop.permute.xlu1 %16534  ;;  %v26151_v60 = vpop.eup %26150 }
0x2aa1   :  { %25208 = vmatpush3.msra.mxu1 %v16535_v63  ;;  %v16303_v0 = vmul.f32 %v26151_v60, %v28998_v54 }
0x2aa2   :  { %v26153_v23 = vpop.eup %26152  ;;  %25195 = vmatmul.mubr.msk.f32.vlgmr.msra.gmra.mxu0 %vm418_vm3, %v16298_v45  ;;  %25210 = vmatmul.mubr.msk.f32.vlgmr.msra.gmra.mxu1 %vm418_vm3, %v16301_v7  ;;  %v14083_v7 = vadd.f32 %v28755_v15, %v28788_v11 }
0x2aa3   :  { %v16300_v8 = vmul.f32 %v26153_v23, %v26139_v16  ;;  %25203 = vmatpush3.msra.mxu0 %v16459_v26  ;;  %25204 = vmatprep.mubr.msk.f32.mxu0 %vm26323_vm2, %v26322_v22  ;;  %v26155_v14 = vpop.eup %26154 }
0x2aa4   :  { %25212 = vmatprep.subr.mxu0 %v26322_v22  ;;  %25217 = vmatprep.subr.mxu1 %v26322_v22  ;;  %v16687_v39 = vpop.permute.xlu1 %16686  ;;  %v16305_v16 = vmul.f32 %v26155_v14, %v29006_v47  ;;  %v15578_v63 = vadd.f32 %v29008_v36, %v14083_v7  ;;  %v22969_v7 = vld [vmem:[%s27312_s7 + $0x28] sm:$0xff] }
0x2aa5   :  { %25218 = vmatpush3.msra.mxu1 %v16687_v39  ;;  %25219 = vmatprep.mubr.msk.f32.mxu1 %vm26323_vm2, %v26322_v22 }
0x2aa6   :  { %25205 = vmatmul.mubr.msk.f32.vlgmr.msra.gmra.mxu0 %vm418_vm3, %v16300_v8  ;;  %25220 = vmatmul.mubr.msk.f32.vlgmr.msra.gmra.mxu1 %vm418_vm3, %v16303_v0  ;;  %v14093_v8 = vadd.f32 %v28764_v27, %v28792_v13  ;;  %v22935_v0 = vld [vmem:[%s27259_s10 + $0x1] ss:$0 sm:$0xff] }
0x2aa7   :  { %25213 = vmatpush3.msra.mxu0 %v16611_v9  ;;  %25227 = vmatprep.subr.mxu1 %v26322_v22 }
0x2aa8   :  { %25229 = vmatprep.mubr.msk.f32.mxu1 %vm26323_vm2, %v26322_v22  ;;  %25214 = vmatprep.mubr.msk.f32.mxu0 %vm26323_vm2, %v26322_v22 }
0x2aa9   :  { %25222 = vmatprep.subr.mxu0 %v26322_v22 }
0x2ab1   :  { %16838 = vrot.lane.b32.xlu1 %v28329_v49, %s30127_s9 }
0x2b25   :  { %v16280_v54 = vpop.xlane.xlu1 %16279 }
0x2b26   :  { %26156 = vrcp.f32 %v16280_v54  ;;  %v15580_v54 = vadd.f32 %v29017_v21, %v14093_v8  ;;  %v22956_v21 = vld [vmem:[%s27277_s15 + $0x70] sm:$0xff] }
0x2b29   :  { %v16286_v25 = vpop.xlane.xlu1 %16285 }
0x2b2a   :  { %26158 = vrcp.f32 %v16286_v25 }
0x2b2d   :  { %v16839_v2 = vpop.permute.xlu1 %16838 }
0x2b2e   :  { %25228 = vmatpush3.msra.mxu1 %v16839_v2  ;;  %v22953_v2 = vld [vmem:[%s27277_s15 + $0x58] sm:$0xff] }
0x2b2f   :  { %25230 = vmatmul.mubr.msk.f32.vlgmr.msra.gmra.mxu1 %vm418_vm3, %v16305_v16  ;;  %25246 = vmatprep.subr.mxu1 %v22939_v53  ;;  %v22954_v16 = vld [vmem:[%s27277_s15 + $0x60] sm:$0xff] }
0x2b30   :  { %25247 = vmatpush3.msra.mxu1 %v22939_v53 }
0x2b31   :  { %25248 = vmatprep.subr.mxu1 %v22938_v10 }
0x2b32   :  { %25249 = vmatpush3.msra.mxu1 %v22938_v10 }
0x2b33   :  { %v26157_v62 = vpop.eup %26156  ;;  %25250 = vmatprep.subr.mxu1 %v22937_v19 }
0x2b34   :  { %v16302_v24 = vmul.f32 %v26157_v62, %v26143_v28  ;;  %25251 = vmatpush3.msra.mxu1 %v22937_v19  ;;  %v22936_v28 = vld [vmem:[%s27246_s6 + $0x20] sm:$0xff]  ;;  %v22952_v62 = vld [vmem:[%s27277_s15 + $0x50] sm:$0xff] }
0x2b35   :  { %25252 = vmatprep.subr.mxu1 %v22936_v28 }
0x2b36   :  { %25215 = vmatmul.mubr.msk.f32.vlgmr.msra.gmra.mxu0 %vm418_vm3, %v16302_v24  ;;  %25253 = vmatpush3.msra.mxu1 %v22936_v28  ;;  %v22951_v24 = vld [vmem:[%s27277_s15 + $0x48] sm:$0xff] }
0x2b37   :  { %v26159_v32 = vpop.eup %26158  ;;  %25223 = vmatpush3.msra.mxu0 %v16763_v61  ;;  %25224 = vmatprep.mubr.msk.f32.mxu0 %vm26323_vm2, %v26322_v22  ;;  %v14103_v61 = vadd.f32 %v28773_v33, %v28796_v17 }
0x2b38   :  { %v16304_v49 = vmul.f32 %v26159_v32, %v26147_v20  ;;  %25232 = vmatprep.subr.mxu0 %v22805_v42 }
0x2b3a   :  { %25225 = vmatmul.mubr.msk.f32.vlgmr.msra.gmra.mxu0 %vm418_vm3, %v16304_v49  ;;  %v15582_v49 = vadd.f32 %v29024_v57, %v14103_v61 }
0x2b3b   :  { %25233 = vmatpush3.msra.mxu0 %v22805_v42  ;;  %v22950_v42 = vld [vmem:[%s27277_s15 + $0x40] sm:$0xff] }
0x2b3e   :  { %v16454_v47 = vpop.f32.mrf.mxu1 }
0x2b40   :  { %v25201_v3 = vpop.f32.mrf.mxu1 }
0x2b62   :  { %v16378_v38 = vpop.f32.mrf.mxu0  ;;  %v16606_v6 = vpop.f32.mrf.mxu1 }
0x2b63   :  { %25234 = vmatprep.mubr.msk.f32.mxu0 %vm418_vm3, %v16378_v38  ;;  %v14113_v38 = vadd.f32 %v28781_v5, %v28800_v52  ;;  %v22941_v5 = vld [vmem:[%s27302_s27 + $0x1] ss:$0 sm:$0xff] }
0x2b64   :  { %v25196_v31 = vpop.f32.mrf.mxu0  ;;  %25235 = vmatmul.mubr.msk.f32.vlgmr.msra.gmra.mxu0 %vm418_vm3, %v16454_v47  ;;  %v25211_v29 = vpop.f32.mrf.mxu1 }
0x2b65   :  { %v15584_v29 = vadd.f32 %v29030_v4, %v14113_v38 }
0x2b66   :  { %v16530_v22 = vpop.f32.mrf.mxu0  ;;  %v16758_v12 = vpop.f32.mrf.mxu1 }
0x2b67   :  { %25237 = vmatprep.mubr.msk.f32.mxu0 %vm418_vm3, %v16530_v22 }
0x2b68   :  { %v25206_v48 = vpop.f32.mrf.mxu0  ;;  %25238 = vmatmul.mubr.msk.f32.gmra.mxu0 %vm418_vm3, %v16606_v6  ;;  %v25221_v58 = vpop.f32.mrf.mxu1 }
0x2bef   :  { %v16910_v34 = vpop.f32.mrf.mxu1 }
0x2bf1   :  { %v25231_v26 = vpop.f32.mrf.mxu1 }
0x2bf6   :  { %v16682_v1 = vpop.f32.mrf.mxu0 }
0x2bf7   :  { %25240 = vmatprep.mubr.msk.f32.mxu0 %vm418_vm3, %v16682_v1 }
0x2bf8   :  { %v25216_v20 = vpop.f32.mrf.mxu0  ;;  %25241 = vmatmul.mubr.msk.f32.gmra.mxu0 %vm418_vm3, %v16758_v12 }
0x2bfa   :  { %v16834_v18 = vpop.f32.mrf.mxu0 }
0x2bfb   :  { %25243 = vmatprep.mubr.msk.f32.mxu0 %vm418_vm3, %v16834_v18  ;;  %v22971_v18 = vld [vmem:[%s27312_s7 + $0x38] sm:$0xff] }
0x2bfc   :  { %v25226_v41 = vpop.f32.mrf.mxu0  ;;  %25244 = vmatmul.mubr.msk.f32.gmra.mxu0 %vm418_vm3, %v16910_v34  ;;  %25294 = vmatprep.subr.mxu1 %v22971_v18 }
0x2bfd   :  { %v22970_v41 = vld [vmem:[%s27312_s7 + $0x30] sm:$0xff] }
0x2c24   :  { %v25236_v45 = vpop.f32.mrf.mxu0 }
0x2c25   :  { %v17044_v60 = vadd.f32 %v25236_v45, %v29004_v55  ;;  %v22957_v55 = vld [vmem:[%s27277_s15 + $0x78] sm:$0xff]  ;;  %v22968_v45 = vld [vmem:[%s27312_s7 + $0x20] sm:$0xff]  ;;  %s26357_s7 = smov 27  }
0x2c26   :  { %v17004_v23 = vpop.f32.mrf.mxu0  ;;  %25266 = vmatprep.subr.mxu0 %v22957_v55 }
0x2c27   :  { %v17043_v39 = vadd.f32 %v17004_v23, %v15578_v63  ;;  %v17060_v14 = vadd.f32 %v22935_v0, %v17044_v60  ;;  %25267 = vmatpush3.msra.mxu0 %v22957_v55  ;;  %v22967_v55 = vld [vmem:[%s27325_s12 + $0x1] ss:$0 sm:$0xff] }
0x2c28   :  { %v25239_v9 = vpop.f32.mrf.mxu0  ;;  %25268 = vmatprep.subr.mxu0 %v22956_v21 }
0x2c29   :  { %v17059_v25 = vadd.f32 %v22935_v0, %v17043_v39  ;;  %v17046_v15 = vadd.f32 %v25239_v9, %v29015_v46  ;;  %v22955_v46 = vld [vmem:[%s27277_s15 + $0x68] sm:$0xff]  ;;  %25269 = vmatpush3.msra.mxu0 %v22956_v21 }
0x2c2a   :  { %v17014_v11 = vpop.f32.mrf.mxu0  ;;  %25270 = vmatprep.subr.mxu0 %v22955_v46 }
0x2c2b   :  { %v17045_v36 = vadd.f32 %v17014_v11, %v15580_v54  ;;  %25254 = vmatprep.mubr.msk.f32.mxu1 %vm281_vm1, %v17059_v25  ;;  %v17062_v13 = vadd.f32 %v22935_v0, %v17046_v15  ;;  %25271 = vmatpush3.msra.mxu0 %v22955_v46 }
0x2c2c   :  { %25255 = vmatmul.mubr.msk.f32.vlgmr.msra.gmra.mxu1 %vm281_vm1, %v17060_v14  ;;  %25272 = vmatprep.subr.mxu0 %v22954_v16 }
0x2c2d   :  { %v17061_v27 = vadd.f32 %v22935_v0, %v17045_v36  ;;  %25273 = vmatpush3.msra.mxu0 %v22954_v16  ;;  %25295 = vmatpush3.msra.mxu1 %v22971_v18 }
0x2c2e   :  { %25274 = vmatprep.subr.mxu0 %v22953_v2  ;;  %25296 = vmatprep.subr.mxu1 %v22970_v41 }
0x2c2f   :  { %25257 = vmatprep.mubr.msk.f32.mxu1 %vm281_vm1, %v17061_v27  ;;  %25275 = vmatpush3.msra.mxu0 %v22953_v2 }
0x2c30   :  { %25258 = vmatmul.mubr.msk.f32.gmra.mxu1 %vm281_vm1, %v17062_v13  ;;  %25276 = vmatprep.subr.mxu0 %v22952_v62 }
0x2c31   :  { %25277 = vmatpush3.msra.mxu0 %v22952_v62  ;;  %25297 = vmatpush3.msra.mxu1 %v22970_v41 }
0x2c32   :  { %25278 = vmatprep.subr.mxu0 %v22951_v24  ;;  %25298 = vmatprep.subr.mxu1 %v22969_v7 }
0x2c33   :  { %25279 = vmatpush3.msra.mxu0 %v22951_v24  ;;  %25299 = vmatpush3.msra.mxu1 %v22969_v7 }
0x2c34   :  { %25280 = vmatprep.subr.mxu0 %v22950_v42  ;;  %25300 = vmatprep.subr.mxu1 %v22968_v45 }
0x2c35   :  { %25281 = vmatpush3.msra.mxu0 %v22950_v42  ;;  %25301 = vmatpush3.msra.mxu1 %v22968_v45 }
0x2cb8   :  { %v25242_v32 = vpop.f32.mrf.mxu0 }
0x2cb9   :  { %v17048_v47 = vadd.f32 %v25242_v32, %v29022_v30 }
0x2cba   :  { %v17024_v3 = vpop.f32.mrf.mxu0 }
0x2cbb   :  { %v17047_v6 = vadd.f32 %v17024_v3, %v15582_v49  ;;  %v17064_v12 = vadd.f32 %v22935_v0, %v17048_v47 }
0x2cbc   :  { %v25245_v31 = vpop.f32.mrf.mxu0 }
0x2cbd   :  { %v17063_v22 = vadd.f32 %v22935_v0, %v17047_v6  ;;  %v17050_v48 = vadd.f32 %v25245_v31, %v29028_v59 }
0x2cbe   :  { %v17034_v58 = vpop.f32.mrf.mxu0 }
0x2cbf   :  { %v17049_v33 = vadd.f32 %v17034_v58, %v15584_v29  ;;  %25260 = vmatprep.mubr.msk.f32.mxu1 %vm281_vm1, %v17063_v22  ;;  %v17066_v30 = vadd.f32 %v22935_v0, %v17050_v48 }
0x2cc0   :  { %25261 = vmatmul.mubr.msk.f32.gmra.mxu1 %vm281_vm1, %v17064_v12 }
0x2cc1   :  { %v17065_v17 = vadd.f32 %v22935_v0, %v17049_v33 }
0x2cc3   :  { %25263 = vmatprep.mubr.msk.f32.mxu1 %vm281_vm1, %v17065_v17 }
0x2cc4   :  { %25264 = vmatmul.mubr.msk.f32.gmra.mxu1 %vm281_vm1, %v17066_v30 }
0x2cec   :  { %v25256_v52 = vpop.f32.mrf.mxu1 }
0x2ced   :  { %v17176_v57 = vadd.f32 %v25256_v52, %v22941_v5 }
0x2cee   :  { %v17170_v4 = vpop.f32.mrf.mxu1 }
0x2cef   :  { %v17171_v53 = vadd.f32 %v22941_v5, %v17170_v4  ;;  %v17210_v19 = vmax.f32 %v17176_v57, 0.0 }
0x2cf0   :  { %v25259_v59 = vpop.f32.mrf.mxu1 }
0x2cf1   :  { %v17209_v10 = vmax.f32 %v17171_v53, 0.0  ;;  %v17186_v28 = vadd.f32 %v25259_v59, %v22941_v5 }
0x2cf2   :  { %v17180_v34 = vpop.f32.mrf.mxu1 }
0x2cf3   :  { %v17181_v26 = vadd.f32 %v22941_v5, %v17180_v34  ;;  %25282 = vmatprep.mubr.msk.f32.mxu0 %vm6423_vm4, %v17209_v10  ;;  %v17212_v20 = vmax.f32 %v17186_v28, 0.0 }
0x2cf4   :  { %25283 = vmatmul.mubr.msk.f32.vlgmr.msra.gmra.mxu0 %vm6423_vm4, %v17210_v19 }
0x2cf5   :  { %v17211_v1 = vmax.f32 %v17181_v26, 0.0 }
0x2cf7   :  { %25285 = vmatprep.mubr.msk.f32.mxu0 %vm6423_vm4, %v17211_v1 }
0x2cf8   :  { %25286 = vmatmul.mubr.msk.f32.gmra.mxu0 %vm6423_vm4, %v17212_v20 }
0x2d80   :  { %v25262_v63 = vpop.f32.mrf.mxu1 }
0x2d81   :  { %v17196_v60 = vadd.f32 %v25262_v63, %v22941_v5 }
0x2d82   :  { %v17190_v23 = vpop.f32.mrf.mxu1 }
0x2d83   :  { %v17191_v8 = vadd.f32 %v22941_v5, %v17190_v23  ;;  %v17214_v9 = vmax.f32 %v17196_v60, 0.0 }
0x2d84   :  { %v25265_v0 = vpop.f32.mrf.mxu1 }
0x2d85   :  { %v17213_v39 = vmax.f32 %v17191_v8, 0.0  ;;  %v17206_v54 = vadd.f32 %v25265_v0, %v22941_v5 }
0x2d86   :  { %v17200_v25 = vpop.f32.mrf.mxu1 }
0x2d87   :  { %v17201_v14 = vadd.f32 %v22941_v5, %v17200_v25  ;;  %25288 = vmatprep.mubr.msk.f32.mxu0 %vm6423_vm4, %v17213_v39  ;;  %v17216_v11 = vmax.f32 %v17206_v54, 0.0 }
0x2d88   :  { %25289 = vmatmul.mubr.msk.f32.gmra.mxu0 %vm6423_vm4, %v17214_v9 }
0x2d89   :  { %v17215_v15 = vmax.f32 %v17201_v14, 0.0 }
0x2d8b   :  { %25291 = vmatprep.mubr.msk.f32.mxu0 %vm6423_vm4, %v17215_v15 }
0x2d8c   :  { %25292 = vmatmul.mubr.msk.f32.gmra.mxu0 %vm6423_vm4, %v17216_v11 }
0x2db4   :  { %v25284_v36 = vpop.f32.mrf.mxu0 }
0x2db5   :  { %v17356_v27 = vadd.f32 %v25284_v36, %v28268_v44 }
0x2db6   :  { %v17316_v13 = vpop.f32.mrf.mxu0 }
0x2db7   :  { %v17355_v21 = vadd.f32 %v17316_v13, %v28266_v37  ;;  %v29148_v2 = vadd.f32 %v22967_v55, %v17356_v27 }
0x2db8   :  { %v25287_v46 = vpop.f32.mrf.mxu0 }
0x2db9   :  { %v29146_v16 = vadd.f32 %v22967_v55, %v17355_v21  ;;  %v17358_v62 = vadd.f32 %v25287_v46, %v28278_v50 }
0x2dba   :  { %v17326_v24 = vpop.f32.mrf.mxu0 }
0x2dbb   :  { %v17357_v42 = vadd.f32 %v17326_v24, %v28276_v43  ;;  %25302 = vmatprep.mubr.msk.f32.mxu1 %vm281_vm1, %v29146_v16  ;;  %v29158_v61 = vadd.f32 %v22967_v55, %v17358_v62 }
0x2dbc   :  { %25303 = vmatmul.mubr.msk.f32.vlgmr.msra.gmra.mxu1 %vm281_vm1, %v29148_v2 }
0x2dbd   :  { %v29156_v44 = vadd.f32 %v22967_v55, %v17357_v42 }
0x2dbf   :  { %25305 = vmatprep.mubr.msk.f32.mxu1 %vm281_vm1, %v29156_v44 }
0x2dc0   :  { %25306 = vmatmul.mubr.msk.f32.gmra.mxu1 %vm281_vm1, %v29158_v61 }
0x2e48   :  { %v25290_v37 = vpop.f32.mrf.mxu0 }
0x2e49   :  { %v17360_v43 = vadd.f32 %v25290_v37, %v28290_v40 }
0x2e4a   :  { %v17336_v50 = vpop.f32.mrf.mxu0 }
0x2e4b   :  { %v17359_v32 = vadd.f32 %v17336_v50, %v28287_v35  ;;  %v29168_v3 = vadd.f32 %v22967_v55, %v17360_v43  ;;  %v22973_v35 = vld [vmem:[%s27371_s26 + $0x1] ss:$0 sm:$0xff] }
0x2e4c   :  { %v25293_v49 = vpop.f32.mrf.mxu0 }
0x2e4d   :  { %v29166_v47 = vadd.f32 %v22967_v55, %v17359_v32  ;;  %v17362_v38 = vadd.f32 %v25293_v49, %v28298_v51 }
0x2e4e   :  { %v17346_v6 = vpop.f32.mrf.mxu0 }
0x2e4f   :  { %v17361_v31 = vadd.f32 %v17346_v6, %v28296_v56  ;;  %25308 = vmatprep.mubr.msk.f32.mxu1 %vm281_vm1, %v29166_v47  ;;  %v29178_v29 = vadd.f32 %v22967_v55, %v17362_v38 }
0x2e50   :  { %25309 = vmatmul.mubr.msk.f32.gmra.mxu1 %vm281_vm1, %v29168_v3 }
0x2e51   :  { %v29176_v40 = vadd.f32 %v22967_v55, %v17361_v31 }
0x2e53   :  { %25311 = vmatprep.mubr.msk.f32.mxu1 %vm281_vm1, %v29176_v40 }
0x2e54   :  { %25312 = vmatmul.mubr.msk.f32.gmra.mxu1 %vm281_vm1, %v29178_v29 }
0x2e7c   :  { %v25304_v51 = vpop.f32.mrf.mxu1 }
0x2e7d   :  { %v29185_v22 = vadd.f32 %v25304_v51, %v22973_v35 }
0x2e7e   :  { %v17482_v56 = vpop.f32.mrf.mxu1 }
0x2e7f   :  { %v29187_v12 = vadd.f32 %v22973_v35, %v17482_v56  ;;  %17530 = vrot.lane.b32.xlu0 %v29185_v22, %s26325_s18 }
0x2e80   :  { %v25307_v48 = vpop.f32.mrf.mxu1 }
0x2e81   :  { %v29191_v58 = vadd.f32 %v25307_v48, %v22973_v35  ;;  %17528 = vrot.lane.b32.xlu1 %v29187_v12, %s26325_s18  ;;  %25318 = vmatprep.mubr.msk.f32.mxu0 %vm418_vm3, %v29187_v12 }
0x2e82   :  { %v17492_v33 = vpop.f32.mrf.mxu1 }
0x2e83   :  { %v29197_v17 = vadd.f32 %v22973_v35, %v17492_v33  ;;  %17619 = vrot.lane.b32.xlu0 %v29191_v58, %s26325_s18 }
0x2e85   :  { %17617 = vrot.lane.b32.xlu1 %v29197_v17, %s26325_s18  ;;  %25325 = vmatprep.mubr.msk.f32.mxu1 %vm418_vm3, %v29197_v17 }
0x2ef1   :  { %v17531_v30 = vpop.permute.xlu0 %17530 }
0x2ef2   :  { %25314 = vmatprep.subr.msk.mxu0 %vm418_vm3, %v17531_v30 }
0x2ef3   :  { %25315 = vmatpush3.xpose.msk.msra.mxu0 %vm418_vm3, %v17531_v30  ;;  %v17529_v5 = vpop.permute.xlu1 %17528 }
0x2ef4   :  { %25316 = vmatprep.subr.msk.mxu0 %vm418_vm3, %v17529_v5 }
0x2ef5   :  { %v17620_v52 = vpop.permute.xlu0 %17619 }
0x2ef6   :  { %25321 = vmatprep.subr.msk.mxu1 %vm418_vm3, %v17620_v52 }
0x2ef7   :  { %25317 = vmatpush3.xpose.msk.msra.mxu0 %vm418_vm3, %v17529_v5  ;;  %25322 = vmatpush3.xpose.msk.msra.mxu1 %vm418_vm3, %v17620_v52  ;;  %v17618_v57 = vpop.permute.xlu1 %17617 }
0x2ef8   :  { %25323 = vmatprep.subr.msk.mxu1 %vm418_vm3, %v17618_v57 }
0x2efa   :  { %25319 = vmatmul.mubr.msk.f32.vlgmr.msra.gmra.mxu0 %vm418_vm3, %v29185_v22 }
0x2efb   :  { %25324 = vmatpush3.xpose.msk.msra.mxu1 %vm418_vm3, %v17618_v57 }
0x2efe   :  { %25326 = vmatmul.mubr.msk.f32.vlgmr.msra.gmra.mxu1 %vm418_vm3, %v29191_v58 }
0x2f10   :  { %v25310_v4 = vpop.f32.mrf.mxu1 }
0x2f11   :  { %v29217_v53 = vadd.f32 %v25310_v4, %v22973_v35 }
0x2f12   :  { %v17502_v59 = vpop.f32.mrf.mxu1 }
0x2f13   :  { %v29219_v10 = vadd.f32 %v22973_v35, %v17502_v59  ;;  %17708 = vrot.lane.b32.xlu0 %v29217_v53, %s26325_s18 }
0x2f14   :  { %v25313_v19 = vpop.f32.mrf.mxu1 }
0x2f15   :  { %v29223_v28 = vadd.f32 %v25313_v19, %v22973_v35  ;;  %17706 = vrot.lane.b32.xlu1 %v29219_v10, %s26325_s18  ;;  %25332 = vmatprep.mubr.msk.f32.mxu0 %vm418_vm3, %v29219_v10 }
0x2f16   :  { %v17512_v34 = vpop.f32.mrf.mxu1 }
0x2f17   :  { %v29229_v26 = vadd.f32 %v22973_v35, %v17512_v34  ;;  %17797 = vrot.lane.b32.xlu0 %v29223_v28, %s26325_s18 }
0x2f19   :  { %17795 = vrot.lane.b32.xlu1 %v29229_v26, %s26325_s18  ;;  %25339 = vmatprep.mubr.msk.f32.mxu1 %vm418_vm3, %v29229_v26  ;;  %s26354_s18 = smov 22  }
0x2f85   :  { %v17709_v1 = vpop.permute.xlu0 %17708 }
0x2f86   :  { %25328 = vmatprep.subr.msk.mxu0 %vm418_vm3, %v17709_v1 }
0x2f87   :  { %25329 = vmatpush3.xpose.msk.msra.mxu0 %vm418_vm3, %v17709_v1  ;;  %v17707_v20 = vpop.permute.xlu1 %17706 }
0x2f88   :  { %25330 = vmatprep.subr.msk.mxu0 %vm418_vm3, %v17707_v20 }
0x2f89   :  { %v17798_v18 = vpop.permute.xlu0 %17797 }
0x2f8a   :  { %25335 = vmatprep.subr.msk.mxu1 %vm418_vm3, %v17798_v18 }
0x2f8b   :  { %25331 = vmatpush3.xpose.msk.msra.mxu0 %vm418_vm3, %v17707_v20  ;;  %25336 = vmatpush3.xpose.msk.msra.mxu1 %vm418_vm3, %v17798_v18  ;;  %v17796_v41 = vpop.permute.xlu1 %17795 }
0x2f8c   :  { %25337 = vmatprep.subr.msk.mxu1 %vm418_vm3, %v17796_v41 }
0x2f8e   :  { %25333 = vmatmul.mubr.msk.f32.vlgmr.msra.gmra.mxu0 %vm418_vm3, %v29217_v53 }
0x2f8f   :  { %25338 = vmatpush3.xpose.msk.msra.mxu1 %vm418_vm3, %v17796_v41 }
0x2f92   :  { %25340 = vmatmul.mubr.msk.f32.vlgmr.msra.gmra.mxu1 %vm418_vm3, %v29223_v28 }
0x2fba   :  { %v25320_v7 = vpop.f32.mrf.mxu0 }
0x2fbb   :  { %v17883_v45 = vmul.f32 0.35355338, %v25320_v7 }
0x2fbc   :  { %v17606_v63 = vpop.f32.mrf.mxu0 }
0x2fbd   :  { %v17882_v60 = vmul.f32 0.35355338, %v17606_v63  ;;  %v17893_v23 = vsel %vm140_vm0, %v17883_v45, -inf }
0x2fbe   :  { %v25327_v8 = vpop.f32.mrf.mxu1  ;;  %17894 = vmax.xlane.f32.xlu1 %v17893_v23 }
0x2fbf   :  { %v17885_v0 = vmul.f32 0.35355338, %v25327_v8  ;;  %v17890_v39 = vsel %vm140_vm0, %v17882_v60, -inf }
0x2fc0   :  { %17891 = vmax.xlane.f32.xlu0 %v17890_v39  ;;  %v17695_v9 = vpop.f32.mrf.mxu1 }
0x2fc1   :  { %v17884_v54 = vmul.f32 0.35355338, %v17695_v9  ;;  %v17899_v25 = vsel %vm140_vm0, %v17885_v0, -inf }
0x2fc2   :  { %17900 = vmax.xlane.f32.xlu1 %v17899_v25 }
0x2fc3   :  { %v17896_v14 = vsel %vm140_vm0, %v17884_v54, -inf }
0x2fc4   :  { %17897 = vmax.xlane.f32.xlu0 %v17896_v14 }
0x3047   :  { %v17895_v15 = vpop.xlane.xlu1 %17894 }
0x3048   :  { %v17915_v11 = vsub.f32 %v17883_v45, %v17895_v15 }
0x3049   :  { %v17892_v36 = vpop.xlane.xlu0 %17891 }
0x304a   :  { %v17924_v27 = vmul.f32 1.442695, %v17915_v11  ;;  %v17914_v13 = vsub.f32 %v17882_v60, %v17892_v36 }
0x304b   :  { %v17901_v55 = vpop.xlane.xlu1 %17900 }
0x304c   :  { %v17922_v21 = vmul.f32 1.442695, %v17914_v13  ;;  %v17917_v46 = vsub.f32 %v17885_v0, %v17901_v55  ;;  %26160 = vpow2.f32 %v17924_v27 }
0x304d   :  { %v17898_v62 = vpop.xlane.xlu0 %17897 }
0x304e   :  { %26162 = vpow2.f32 %v17922_v21  ;;  %v17916_v24 = vsub.f32 %v17884_v54, %v17898_v62  ;;  %v25334_v42 = vpop.f32.mrf.mxu0  ;;  %v17928_v43 = vmul.f32 1.442695, %v17917_v46 }
0x304f   :  { %v17887_v37 = vmul.f32 0.35355338, %v25334_v42 }
0x3050   :  { %v17926_v50 = vmul.f32 1.442695, %v17916_v24  ;;  %v17784_v32 = vpop.f32.mrf.mxu0 }
0x3051   :  { %v17886_v49 = vmul.f32 0.35355338, %v17784_v32  ;;  %v17905_v38 = vsel %vm140_vm0, %v17887_v37, -inf }
0x3052   :  { %26164 = vpow2.f32 %v17926_v50  ;;  %17906 = vmax.xlane.f32.xlu0 %v17905_v38  ;;  %v25341_v6 = vpop.f32.mrf.mxu1 }
0x3053   :  { %26166 = vpow2.f32 %v17928_v43  ;;  %v17889_v31 = vmul.f32 0.35355338, %v25341_v6  ;;  %v17902_v35 = vsel %vm140_vm0, %v17886_v49, -inf }
0x3054   :  { %v17873_v4 = vpop.f32.mrf.mxu1 }
0x3055   :  { %v17911_v51 = vsel %vm140_vm0, %v17889_v31, -inf  ;;  %v17888_v59 = vmul.f32 0.35355338, %v17873_v4 }
0x3056   :  { %17903 = vmax.xlane.f32.xlu0 %v17902_v35 }
0x3057   :  { %v17908_v34 = vsel %vm140_vm0, %v17888_v59, -inf }
0x3059   :  { %v29256_v56 = vpop.eup %26160 }
0x305a   :  { %17912 = vmax.xlane.f32.xlu0 %v17911_v51  ;;  %v17941_v30 = vsel %vm140_vm0, %v29256_v56, 0.0 }
0x305b   :  { %v29258_v48 = vpop.eup %26162 }
0x305c   :  { %v17938_v33 = vsel %vm140_vm0, %v29258_v48, 0.0 }
0x305d   :  { %17939 = vadd.xlane.f32.xlu1 %v17938_v33 }
0x305e   :  { %17942 = vadd.xlane.f32.xlu0 %v17941_v30 }
0x305f   :  { %v29264_v5 = vpop.eup %26164 }
0x3060   :  { %v17944_v52 = vsel %vm140_vm0, %v29264_v5, 0.0  ;;  %v29268_v57 = vpop.eup %26166 }
0x3061   :  { %17945 = vadd.xlane.f32.xlu1 %v17944_v52  ;;  %v17947_v19 = vsel %vm140_vm0, %v29268_v57, 0.0 }
0x3065   :  { %17948 = vadd.xlane.f32.xlu1 %v17947_v19 }
0x3069   :  { %17909 = vmax.xlane.f32.xlu1 %v17908_v34 }
0x3074   :  { %17978 = vrot.lane.b32.xlu0 %v29187_v12, %s26326_s19 }
0x3078   :  { %18065 = vrot.lane.b32.xlu0 %v29197_v17, %s26326_s19 }
0x307a   :  { %17980 = vrot.lane.b32.xlu1 %v29185_v22, %s26326_s19 }
0x307c   :  { %18241 = vrot.lane.b32.xlu0 %v29223_v28, %s26326_s19 }
0x307e   :  { %18067 = vrot.lane.b32.xlu1 %v29191_v58, %s26326_s19 }
0x3080   :  { %18239 = vrot.lane.b32.xlu0 %v29229_v26, %s26326_s19 }
0x3082   :  { %18154 = vrot.lane.b32.xlu1 %v29217_v53, %s26326_s19 }
0x3084   :  { %18423 = vrot.lane.b32.xlu0 %v29191_v58, %s26327_s20 }
0x3086   :  { %18152 = vrot.lane.b32.xlu1 %v29219_v10, %s26326_s19 }
0x3088   :  { %18328 = vrot.lane.b32.xlu0 %v29185_v22, %s26328_s21 }
0x308a   :  { %18332 = vrot.lane.b32.xlu1 %v29185_v22, %s26327_s20 }
0x308c   :  { %18514 = vrot.lane.b32.xlu0 %v29217_v53, %s26327_s20 }
0x308e   :  { %18330 = vrot.lane.b32.xlu1 %v29187_v12, %s26327_s20 }
0x3092   :  { %18326 = vrot.lane.b32.xlu1 %v29187_v12, %s26328_s21 }
0x3096   :  { %18421 = vrot.lane.b32.xlu1 %v29197_v17, %s26327_s20 }
0x309a   :  { %18417 = vrot.lane.b32.xlu1 %v29197_v17, %s26328_s21 }
0x309e   :  { %18512 = vrot.lane.b32.xlu1 %v29219_v10, %s26327_s20 }
0x30db   :  { %v17907_v1 = vpop.xlane.xlu0 %17906 }
0x30dc   :  { %v17919_v20 = vsub.f32 %v17887_v37, %v17907_v1 }
0x30de   :  { %v17932_v18 = vmul.f32 1.442695, %v17919_v20 }
0x30df   :  { %v17904_v41 = vpop.xlane.xlu0 %17903 }
0x30e0   :  { %26168 = vpow2.f32 %v17932_v18  ;;  %v17918_v7 = vsub.f32 %v17886_v49, %v17904_v41 }
0x30e2   :  { %v17930_v45 = vmul.f32 1.442695, %v17918_v7 }
0x30e3   :  { %v17913_v63 = vpop.xlane.xlu0 %17912 }
0x30e4   :  { %26170 = vpow2.f32 %v17930_v45  ;;  %v17921_v60 = vsub.f32 %v17889_v31, %v17913_v63 }
0x30e6   :  { %v17936_v23 = vmul.f32 1.442695, %v17921_v60  ;;  %v17940_v8 = vpop.xlane.xlu1 %17939 }
0x30e7   :  { %26172 = vrcp.f32 %v17940_v8  ;;  %v17943_v0 = vpop.xlane.xlu0 %17942 }
0x30e8   :  { %26174 = vpow2.f32 %v17936_v23 }
0x30e9   :  { %26176 = vrcp.f32 %v17943_v0 }
0x30ea   :  { %v17946_v39 = vpop.xlane.xlu1 %17945 }
0x30eb   :  { %26178 = vrcp.f32 %v17946_v39  ;;  %v17979_v9 = vpop.permute.xlu0 %17978 }
0x30ed   :  { %v29307_v54 = vpop.eup %26168 }
0x30ee   :  { %v17949_v25 = vpop.xlane.xlu1 %17948  ;;  %v17953_v14 = vsel %vm140_vm0, %v29307_v54, 0.0 }
0x30ef   :  { %26180 = vrcp.f32 %v17949_v25  ;;  %17954 = vadd.xlane.f32.xlu0 %v17953_v14  ;;  %v18066_v11 = vpop.permute.xlu0 %18065 }
0x30f1   :  { %v29311_v15 = vpop.eup %26170 }
0x30f2   :  { %v17910_v36 = vpop.xlane.xlu1 %17909  ;;  %v17950_v27 = vsel %vm140_vm0, %v29311_v15, 0.0 }
0x30f3   :  { %v17920_v13 = vsub.f32 %v17888_v59, %v17910_v36  ;;  %17951 = vadd.xlane.f32.xlu0 %v17950_v27  ;;  %v18242_v43 = vpop.permute.xlu0 %18241 }
0x30f4   :  { %v26173_v55 = vpop.eup %26172 }
0x30f5   :  { %v29315_v21 = vpop.eup %26174  ;;  %v17934_v46 = vmul.f32 1.442695, %v17920_v13  ;;  %v17970_v62 = vmul.f32 %v26173_v55, %v29258_v48 }
0x30f6   :  { %v26177_v24 = vpop.eup %26176  ;;  %v17981_v42 = vpop.permute.xlu1 %17980  ;;  %v17959_v37 = vsel %vm140_vm0, %v29315_v21, 0.0 }
0x30f7   :  { %26182 = vpow2.f32 %v17934_v46  ;;  %25342 = vmatprep.subr.mxu0 %v17981_v42  ;;  %25346 = vmatprep.mubr.msk.f32.mxu0 %vm140_vm0, %v17970_v62  ;;  %v17971_v32 = vmul.f32 %v26177_v24, %v29256_v56  ;;  %v18240_v35 = vpop.permute.xlu0 %18239 }
0x30f8   :  { %v26179_v50 = vpop.eup %26178  ;;  %17960 = vadd.xlane.f32.xlu0 %v17959_v37  ;;  %25343 = vmatpush3.msra.mxu0 %v17981_v42 }
0x30f9   :  { %25344 = vmatprep.subr.mxu0 %v17979_v9  ;;  %v17972_v49 = vmul.f32 %v26179_v50, %v29264_v5 }
0x30fa   :  { %25345 = vmatpush3.msra.mxu0 %v17979_v9  ;;  %v18068_v38 = vpop.permute.xlu1 %18067 }
0x30fb   :  { %25347 = vmatmul.mubr.msk.f32.vlgmr.msra.gmra.mxu0 %vm140_vm0, %v17971_v32  ;;  %25349 = vmatprep.subr.mxu0 %v18068_v38  ;;  %v18424_v48 = vpop.permute.xlu0 %18423 }
0x30fc   :  { %v26181_v6 = vpop.eup %26180  ;;  %25350 = vmatpush3.msra.mxu0 %v18068_v38  ;;  %25353 = vmatprep.mubr.msk.f32.mxu0 %vm140_vm0, %v17972_v49 }
0x30fd   :  { %v17973_v31 = vmul.f32 %v26181_v6, %v29268_v57  ;;  %25351 = vmatprep.subr.mxu0 %v18066_v11 }
0x30fe   :  { %25352 = vmatpush3.msra.mxu0 %v18066_v11  ;;  %v18155_v51 = vpop.permute.xlu1 %18154 }
0x30ff   :  { %25354 = vmatmul.mubr.msk.f32.vlgmr.msra.gmra.mxu0 %vm140_vm0, %v17973_v31  ;;  %25356 = vmatprep.subr.mxu1 %v18155_v51  ;;  %v18329_v52 = vpop.permute.xlu0 %18328 }
0x3100   :  { %25363 = vmatprep.subr.mxu0 %v18242_v43  ;;  %25357 = vmatpush3.msra.mxu1 %v18155_v51 }
0x3101   :  { %25364 = vmatpush3.msra.mxu0 %v18242_v43 }
0x3102   :  { %25365 = vmatprep.subr.mxu0 %v18240_v35  ;;  %v18153_v56 = vpop.permute.xlu1 %18152 }
0x3103   :  { %25366 = vmatpush3.msra.mxu0 %v18240_v35  ;;  %25358 = vmatprep.subr.mxu1 %v18153_v56  ;;  %v18515_v4 = vpop.permute.xlu0 %18514 }
0x3104   :  { %v26183_v33 = vpop.eup %26182  ;;  %25377 = vmatprep.subr.msk.mxu0 %vm418_vm3, %v18424_v48  ;;  %25359 = vmatpush3.msra.mxu1 %v18153_v56 }
0x3105   :  { %v17956_v30 = vsel %vm140_vm0, %v26183_v33, 0.0 }
0x3106   :  { %17957 = vadd.xlane.f32.xlu1 %v17956_v30  ;;  %v18333_v5 = vpop.permute.xlu1 %18332 }
0x3107   :  { %25370 = vmatprep.subr.msk.mxu1 %vm418_vm3, %v18333_v5 }
0x310a   :  { %v18331_v57 = vpop.permute.xlu1 %18330 }
0x310e   :  { %18419 = vrot.lane.b32.xlu0 %v29191_v58, %s26328_s21  ;;  %v18327_v19 = vpop.permute.xlu1 %18326 }
0x3112   :  { %18605 = vrot.lane.b32.xlu0 %v29223_v28, %s26327_s20  ;;  %v18422_v1 = vpop.permute.xlu1 %18421 }
0x3116   :  { %18510 = vrot.lane.b32.xlu0 %v29217_v53, %s26328_s21  ;;  %v18418_v20 = vpop.permute.xlu1 %18417 }
0x3117   :  { %18508 = vrot.lane.b32.xlu1 %v29219_v10, %s26328_s21 }
0x311a   :  { %18599 = vrot.lane.b32.xlu0 %v29229_v26, %s26328_s21  ;;  %v18513_v7 = vpop.permute.xlu1 %18512 }
0x311b   :  { %18603 = vrot.lane.b32.xlu1 %v29229_v26, %s26327_s20  ;;  %s26362_s20 = smov 30  }
0x311c   :  { %s22462_s28 = sld [smem:[%s30109_s0 + %s26362_s20]]  }
0x311f   :  { %18601 = vrot.lane.b32.xlu1 %v29223_v28, %s26328_s21  ;;  %s22454_s21 = sld [smem:[%s30109_s0 + %s26354_s18]]  }
0x3178   :  { %v17955_v59 = vpop.xlane.xlu0 %17954 }
0x3179   :  { %26184 = vrcp.f32 %v17955_v59 }
0x317c   :  { %v17952_v34 = vpop.xlane.xlu0 %17951 }
0x317d   :  { %26186 = vrcp.f32 %v17952_v34 }
0x3181   :  { %v17961_v45 = vpop.xlane.xlu0 %17960 }
0x3182   :  { %26188 = vrcp.f32 %v17961_v45 }
0x3185   :  { %v18420_v8 = vpop.permute.xlu0 %18419 }
0x3186   :  { %v26185_v18 = vpop.eup %26184 }
0x3187   :  { %v17975_v60 = vmul.f32 %v26185_v18, %v29307_v54 }
0x3189   :  { %v18606_v39 = vpop.permute.xlu0 %18605 }
0x318a   :  { %v26187_v41 = vpop.eup %26186 }
0x318b   :  { %v17974_v63 = vmul.f32 %v26187_v41, %v29311_v15 }
0x318d   :  { %25360 = vmatprep.mubr.msk.f32.mxu1 %vm140_vm0, %v17974_v63  ;;  %v18511_v25 = vpop.permute.xlu0 %18510 }
0x318e   :  { %25361 = vmatmul.mubr.msk.f32.vlgmr.msra.gmra.mxu1 %vm140_vm0, %v17975_v60 }
0x318f   :  { %25371 = vmatpush3.xpose.msk.msra.mxu1 %vm418_vm3, %v18333_v5  ;;  %v17958_v23 = vpop.xlane.xlu1 %17957  ;;  %25374 = vmatprep.mubr.msk.f32.mxu1 %vm418_vm3, %v18327_v19  ;;  %v26189_v9 = vpop.eup %26188 }
0x3190   :  { %26190 = vrcp.f32 %v17958_v23  ;;  %25372 = vmatprep.subr.msk.mxu1 %vm418_vm3, %v18331_v57  ;;  %v17977_v15 = vmul.f32 %v26189_v9, %v29315_v21 }
0x3191   :  { %v18600_v11 = vpop.permute.xlu0 %18599 }
0x3193   :  { %25373 = vmatpush3.xpose.msk.msra.mxu1 %vm418_vm3, %v18331_v57  ;;  %v18509_v0 = vpop.permute.xlu1 %18508 }
0x3194   :  { %25384 = vmatprep.subr.msk.mxu1 %vm418_vm3, %v18515_v4 }
0x3196   :  { %25375 = vmatmul.mubr.msk.f32.vlgmr.msra.gmra.mxu1 %vm418_vm3, %v18329_v52 }
0x3197   :  { %25385 = vmatpush3.xpose.msk.msra.mxu1 %vm418_vm3, %v18515_v4  ;;  %25388 = vmatprep.mubr.msk.f32.mxu1 %vm418_vm3, %v18509_v0  ;;  %v18604_v36 = vpop.permute.xlu1 %18603 }
0x3198   :  { %25386 = vmatprep.subr.msk.mxu1 %vm418_vm3, %v18513_v7 }
0x319b   :  { %25387 = vmatpush3.xpose.msk.msra.mxu1 %vm418_vm3, %v18513_v7  ;;  %v18602_v27 = vpop.permute.xlu1 %18601 }
0x319d   :  { %v26191_v54 = vpop.eup %26190 }
0x319e   :  { %25389 = vmatmul.mubr.msk.f32.vlgmr.msra.gmra.mxu1 %vm418_vm3, %v18511_v25  ;;  %v17976_v14 = vmul.f32 %v26191_v54, %v26183_v33 }
0x31a0   :  { %25367 = vmatprep.mubr.msk.f32.mxu0 %vm140_vm0, %v17976_v14 }
0x31a1   :  { %25368 = vmatmul.mubr.msk.f32.vlgmr.msra.gmra.mxu0 %vm140_vm0, %v17977_v15 }
0x31a2   :  { %25378 = vmatpush3.xpose.msk.msra.mxu0 %vm418_vm3, %v18424_v48  ;;  %25381 = vmatprep.mubr.msk.f32.mxu0 %vm418_vm3, %v18418_v20 }
0x31a3   :  { %25379 = vmatprep.subr.msk.mxu0 %vm418_vm3, %v18422_v1 }
0x31a6   :  { %25380 = vmatpush3.xpose.msk.msra.mxu0 %vm418_vm3, %v18422_v1 }
0x31a7   :  { %25391 = vmatprep.subr.msk.mxu0 %vm418_vm3, %v18606_v39 }
0x31a9   :  { %25382 = vmatmul.mubr.msk.f32.vlgmr.msra.gmra.mxu0 %vm418_vm3, %v18420_v8 }
0x31aa   :  { %25392 = vmatpush3.xpose.msk.msra.mxu0 %vm418_vm3, %v18606_v39  ;;  %25395 = vmatprep.mubr.msk.f32.mxu0 %vm418_vm3, %v18600_v11 }
0x31ab   :  { %25393 = vmatprep.subr.msk.mxu0 %vm418_vm3, %v18604_v36 }
0x31ae   :  { %25394 = vmatpush3.xpose.msk.msra.mxu0 %vm418_vm3, %v18604_v36 }
0x31b1   :  { %25396 = vmatmul.mubr.msk.f32.vlgmr.msra.gmra.mxu0 %vm418_vm3, %v18602_v27 }
0x31bb   :  { %v29377_v21 = vpop.f32.mrf.mxu0 }
0x31bd   :  { %v29379_v42 = vpop.f32.mrf.mxu0 }
0x31bf   :  { %v29383_v32 = vpop.f32.mrf.mxu0 }
0x31c1   :  { %v29385_v6 = vpop.f32.mrf.mxu0 }
0x324e   :  { %v29373_v13 = vpop.f32.mrf.mxu1 }
0x3250   :  { %v29375_v55 = vpop.f32.mrf.mxu1 }
0x3256   :  { %v25376_v46 = vpop.f32.mrf.mxu1 }
0x3257   :  { %v18691_v62 = vmul.f32 0.35355338, %v25376_v46 }
0x3258   :  { %v18408_v24 = vpop.f32.mrf.mxu1 }
0x3259   :  { %v18690_v37 = vmul.f32 0.35355338, %v18408_v24  ;;  %v18701_v43 = vsel %vm140_vm0, %v18691_v62, -inf }
0x325a   :  { %18702 = vmax.xlane.f32.xlu1 %v18701_v43 }
0x325b   :  { %v18698_v50 = vsel %vm140_vm0, %v18690_v37, -inf }
0x325c   :  { %18699 = vmax.xlane.f32.xlu0 %v18698_v50 }
0x325e   :  { %v25390_v49 = vpop.f32.mrf.mxu1 }
0x325f   :  { %v18695_v4 = vmul.f32 0.35355338, %v25390_v49 }
0x3260   :  { %v18590_v38 = vpop.f32.mrf.mxu1 }
0x3261   :  { %v18694_v31 = vmul.f32 0.35355338, %v18590_v38  ;;  %v29387_v35 = vpop.f32.mrf.mxu0  ;;  %v18713_v20 = vsel %vm140_vm0, %v18695_v4, -inf }
0x3263   :  { %v18710_v51 = vsel %vm140_vm0, %v18694_v31, -inf  ;;  %v29390_v56 = vpop.f32.mrf.mxu0 }
0x3264   :  { %18711 = vmax.xlane.f32.xlu1 %v18710_v51 }
0x3269   :  { %v25383_v48 = vpop.f32.mrf.mxu0 }
0x326a   :  { %v18693_v5 = vmul.f32 0.35355338, %v25383_v48 }
0x326b   :  { %v18499_v33 = vpop.f32.mrf.mxu0 }
0x326c   :  { %v18692_v30 = vmul.f32 0.35355338, %v18499_v33  ;;  %v18707_v59 = vsel %vm140_vm0, %v18693_v5, -inf }
0x326e   :  { %v18704_v52 = vsel %vm140_vm0, %v18692_v30, -inf }
0x326f   :  { %18705 = vmax.xlane.f32.xlu0 %v18704_v52 }
0x3271   :  { %v25397_v57 = vpop.f32.mrf.mxu0 }
0x3272   :  { %v18697_v1 = vmul.f32 0.35355338, %v25397_v57 }
0x3273   :  { %18708 = vmax.xlane.f32.xlu0 %v18707_v59  ;;  %v18681_v19 = vpop.f32.mrf.mxu0 }
0x3274   :  { %v18696_v34 = vmul.f32 0.35355338, %v18681_v19  ;;  %v18719_v41 = vsel %vm140_vm0, %v18697_v1, -inf }
0x3276   :  { %v18716_v18 = vsel %vm140_vm0, %v18696_v34, -inf }
0x3277   :  { %18714 = vmax.xlane.f32.xlu0 %v18713_v20  ;;  %18717 = vmax.xlane.f32.xlu1 %v18716_v18 }
0x327b   :  { %18720 = vmax.xlane.f32.xlu0 %v18719_v41 }
0x3288   :  { %18788 = vrot.lane.b32.xlu1 %v29185_v22, %s26329_s22 }
0x328c   :  { %18875 = vrot.lane.b32.xlu1 %v29191_v58, %s26329_s22 }
0x3290   :  { %18873 = vrot.lane.b32.xlu1 %v29197_v17, %s26329_s22 }
0x3291   :  { %18786 = vrot.lane.b32.xlu0 %v29187_v12, %s26329_s22 }
0x3294   :  { %18960 = vrot.lane.b32.xlu1 %v29219_v10, %s26329_s22 }
0x3295   :  { %18962 = vrot.lane.b32.xlu0 %v29217_v53, %s26329_s22 }
0x32e3   :  { %v18703_v7 = vpop.xlane.xlu1 %18702 }
0x32e4   :  { %v18723_v45 = vsub.f32 %v18691_v62, %v18703_v7 }
0x32e5   :  { %v18700_v63 = vpop.xlane.xlu0 %18699 }
0x32e6   :  { %v18732_v60 = vmul.f32 1.442695, %v18723_v45  ;;  %v18722_v23 = vsub.f32 %v18690_v37, %v18700_v63 }
0x32e8   :  { %26192 = vpow2.f32 %v18732_v60  ;;  %v18730_v8 = vmul.f32 1.442695, %v18722_v23 }
0x32ea   :  { %26194 = vpow2.f32 %v18730_v8 }
0x32ed   :  { %v18712_v0 = vpop.xlane.xlu1 %18711 }
0x32ee   :  { %v18726_v25 = vsub.f32 %v18694_v31, %v18712_v0 }
0x32f0   :  { %v18738_v36 = vmul.f32 1.442695, %v18726_v25 }
0x32f5   :  { %v29409_v39 = vpop.eup %26192 }
0x32f6   :  { %v18749_v9 = vsel %vm140_vm0, %v29409_v39, 0.0 }
0x32f7   :  { %v29413_v54 = vpop.eup %26194  ;;  %18750 = vadd.xlane.f32.xlu0 %v18749_v9 }
0x32f8   :  { %v18706_v14 = vpop.xlane.xlu0 %18705  ;;  %v18746_v15 = vsel %vm140_vm0, %v29413_v54, 0.0 }
0x32f9   :  { %v18724_v11 = vsub.f32 %v18692_v30, %v18706_v14  ;;  %18747 = vadd.xlane.f32.xlu1 %v18746_v15 }
0x32fb   :  { %v18734_v27 = vmul.f32 1.442695, %v18724_v11 }
0x32fc   :  { %v18709_v46 = vpop.xlane.xlu0 %18708 }
0x32fd   :  { %26196 = vpow2.f32 %v18734_v27  ;;  %v18725_v62 = vsub.f32 %v18693_v5, %v18709_v46  ;;  %v22983_v27 = vld [vmem:[%s27669_s8 + $0x28] sm:$0xff] }
0x32fe   :  { %26198 = vpow2.f32 %v18738_v36 }
0x32ff   :  { %v18736_v24 = vmul.f32 1.442695, %v18725_v62 }
0x3300   :  { %v18715_v37 = vpop.xlane.xlu0 %18714  ;;  %v18718_v43 = vpop.xlane.xlu1 %18717 }
0x3301   :  { %26200 = vpow2.f32 %v18736_v24  ;;  %v18727_v50 = vsub.f32 %v18695_v4, %v18715_v37  ;;  %v18728_v49 = vsub.f32 %v18696_v34, %v18718_v43 }
0x3303   :  { %v18740_v38 = vmul.f32 1.442695, %v18727_v50  ;;  %v18742_v31 = vmul.f32 1.442695, %v18728_v49 }
0x3304   :  { %v18721_v51 = vpop.xlane.xlu0 %18720  ;;  %v18789_v48 = vpop.permute.xlu1 %18788 }
0x3305   :  { %26202 = vpow2.f32 %v18740_v38  ;;  %v18729_v33 = vsub.f32 %v18697_v1, %v18721_v51  ;;  %25398 = vmatprep.subr.mxu1 %v18789_v48 }
0x3306   :  { %26204 = vpow2.f32 %v18742_v31  ;;  %25399 = vmatpush3.msra.mxu1 %v18789_v48 }
0x3307   :  { %v18744_v30 = vmul.f32 1.442695, %v18729_v33 }
0x3308   :  { %v18787_v52 = vpop.permute.xlu0 %18786  ;;  %v18876_v57 = vpop.permute.xlu1 %18875 }
0x3309   :  { %26206 = vpow2.f32 %v18744_v30  ;;  %25400 = vmatprep.subr.mxu1 %v18787_v52  ;;  %25405 = vmatprep.subr.mxu0 %v18876_v57 }
0x330a   :  { %v29417_v5 = vpop.eup %26196  ;;  %25401 = vmatpush3.msra.mxu1 %v18787_v52  ;;  %25406 = vmatpush3.msra.mxu0 %v18876_v57 }
0x330b   :  { %v18752_v4 = vsel %vm140_vm0, %v29417_v5, 0.0  ;;  %v29421_v59 = vpop.eup %26198 }
0x330c   :  { %v18963_v19 = vpop.permute.xlu0 %18962  ;;  %18753 = vadd.xlane.f32.xlu1 %v18752_v4  ;;  %v18874_v34 = vpop.permute.xlu1 %18873  ;;  %v18758_v18 = vsel %vm140_vm0, %v29421_v59, 0.0 }
0x330d   :  { %25407 = vmatprep.subr.mxu0 %v18874_v34  ;;  %25412 = vmatprep.subr.mxu1 %v18963_v19 }
0x330e   :  { %v29423_v1 = vpop.eup %26200  ;;  %25408 = vmatpush3.msra.mxu0 %v18874_v34 }
0x330f   :  { %v18755_v20 = vsel %vm140_vm0, %v29423_v1, 0.0 }
0x3310   :  { %18756 = vadd.xlane.f32.xlu0 %v18755_v20  ;;  %18759 = vadd.xlane.f32.xlu1 %v18758_v18  ;;  %v18961_v8 = vpop.permute.xlu1 %18960 }
0x3312   :  { %v29429_v41 = vpop.eup %26202 }
0x3313   :  { %v29431_v7 = vpop.eup %26204  ;;  %v18761_v45 = vsel %vm140_vm0, %v29429_v41, 0.0 }
0x3314   :  { %18762 = vadd.xlane.f32.xlu0 %v18761_v45  ;;  %v18764_v63 = vsel %vm140_vm0, %v29431_v7, 0.0 }
0x3315   :  { %18765 = vadd.xlane.f32.xlu1 %v18764_v63 }
0x3316   :  { %v29437_v60 = vpop.eup %26206 }
0x3317   :  { %v18767_v23 = vsel %vm140_vm0, %v29437_v60, 0.0 }
0x3318   :  { %18768 = vadd.xlane.f32.xlu0 %v18767_v23 }
0x3326   :  { %19047 = vrot.lane.b32.xlu1 %v29229_v26, %s26329_s22 }
0x332a   :  { %19396 = vrot.lane.b32.xlu1 %v29187_v12, %s30122_s17 }
0x332e   :  { %19392 = vrot.lane.b32.xlu1 %v29187_v12, %s30123_s24  ;;  %19049 = vrot.lane.b32.xlu0 %v29223_v28, %s26329_s22  ;;  %s26355_s22 = smov 24  }
0x332f   :  { %s30021_s6 = sld [smem:[%s30109_s0 + %s26355_s22]]  }
0x3332   :  { %19487 = vrot.lane.b32.xlu1 %v29197_v17, %s30122_s17  ;;  %19398 = vrot.lane.b32.xlu0 %v29185_v22, %s30122_s17 }
0x3336   :  { %19483 = vrot.lane.b32.xlu1 %v29197_v17, %s30123_s24  ;;  %19489 = vrot.lane.b32.xlu0 %v29191_v58, %s30122_s17 }
0x333a   :  { %19578 = vrot.lane.b32.xlu1 %v29219_v10, %s30122_s17  ;;  %19394 = vrot.lane.b32.xlu0 %v29185_v22, %s30123_s24 }
0x333e   :  { %19574 = vrot.lane.b32.xlu1 %v29219_v10, %s30123_s24  ;;  %19580 = vrot.lane.b32.xlu0 %v29217_v53, %s30122_s17 }
0x3342   :  { %19669 = vrot.lane.b32.xlu1 %v29229_v26, %s30122_s17  ;;  %19485 = vrot.lane.b32.xlu0 %v29191_v58, %s30123_s24 }
0x3346   :  { %19667 = vrot.lane.b32.xlu1 %v29223_v28, %s30123_s24  ;;  %19671 = vrot.lane.b32.xlu0 %v29223_v28, %s30122_s17  ;;  %s26360_s17 = smov 29  }
0x334a   :  { %19576 = vrot.lane.b32.xlu0 %v29217_v53, %s30123_s24 }
0x334e   :  { %19665 = vrot.lane.b32.xlu0 %v29229_v26, %s30123_s24 }
0x3380   :  { %v18751_v0 = vpop.xlane.xlu0 %18750 }
0x3381   :  { %26208 = vrcp.f32 %v18751_v0 }
0x3382   :  { %v18748_v9 = vpop.xlane.xlu1 %18747 }
0x3383   :  { %26210 = vrcp.f32 %v18748_v9 }
0x338e   :  { %v26209_v25 = vpop.eup %26208 }
0x338f   :  { %v18779_v11 = vmul.f32 %v26209_v25, %v29409_v39 }
0x3390   :  { %v26211_v14 = vpop.eup %26210 }
0x3391   :  { %v18778_v15 = vmul.f32 %v26211_v14, %v29413_v54 }
0x3393   :  { %25402 = vmatprep.mubr.msk.f32.mxu1 %vm140_vm0, %v18778_v15 }
0x3394   :  { %25403 = vmatmul.mubr.msk.f32.vlgmr.msra.gmra.mxu1 %vm140_vm0, %v18779_v11 }
0x3395   :  { %25413 = vmatpush3.msra.mxu1 %v18963_v19  ;;  %v18754_v36 = vpop.xlane.xlu1 %18753 }
0x3396   :  { %26212 = vrcp.f32 %v18754_v36  ;;  %25414 = vmatprep.subr.mxu1 %v18961_v8 }
0x3397   :  { %25415 = vmatpush3.msra.mxu1 %v18961_v8 }
0x3398   :  { %25426 = vmatprep.subr.mxu1 %v22983_v27 }
0x3399   :  { %v18757_v46 = vpop.xlane.xlu0 %18756  ;;  %v18760_v62 = vpop.xlane.xlu1 %18759 }
0x339a   :  { %26214 = vrcp.f32 %v18757_v46 }
0x339b   :  { %26216 = vrcp.f32 %v18760_v62 }
0x339d   :  { %v18763_v24 = vpop.xlane.xlu0 %18762 }
0x339e   :  { %26218 = vrcp.f32 %v18763_v24  ;;  %v18766_v54 = vpop.xlane.xlu1 %18765 }
0x339f   :  { %26220 = vrcp.f32 %v18766_v54 }
0x33a1   :  { %v18769_v39 = vpop.xlane.xlu0 %18768 }
0x33a2   :  { %26222 = vrcp.f32 %v18769_v39  ;;  %v19048_v37 = vpop.permute.xlu1 %19047 }
0x33a3   :  { %v26213_v43 = vpop.eup %26212 }
0x33a4   :  { %v18780_v50 = vmul.f32 %v26213_v43, %v29417_v5  ;;  %v22982_v5 = vld [vmem:[%s27669_s8 + $0x20] sm:$0xff] }
0x33a5   :  { %v19050_v49 = vpop.permute.xlu0 %19049 }
0x33a6   :  { %v29483_v38 = vpop.permute.xlu1 %19396  ;;  %25409 = vmatprep.mubr.msk.f32.mxu0 %vm140_vm0, %v18780_v50  ;;  %25419 = vmatprep.subr.mxu0 %v19050_v49 }
0x33a7   :  { %v26215_v31 = vpop.eup %26214 }
0x33a8   :  { %v26217_v51 = vpop.eup %26216  ;;  %v18781_v48 = vmul.f32 %v26215_v31, %v29423_v1 }
0x33a9   :  { %v19399_v33 = vpop.permute.xlu0 %19398  ;;  %v18782_v30 = vmul.f32 %v26217_v51, %v29421_v59 }
0x33aa   :  { %v29488_v52 = vpop.permute.xlu1 %19392  ;;  %25410 = vmatmul.mubr.msk.f32.vlgmr.msra.gmra.mxu0 %vm140_vm0, %v18781_v48 }
0x33ab   :  { %v26219_v57 = vpop.eup %26218  ;;  %25416 = vmatprep.mubr.msk.f32.mxu1 %vm140_vm0, %v18782_v30  ;;  %25420 = vmatpush3.msra.mxu0 %v19050_v49 }
0x33ac   :  { %v26221_v4 = vpop.eup %26220  ;;  %v18783_v19 = vmul.f32 %v26219_v57, %v29429_v41  ;;  %25421 = vmatprep.subr.mxu0 %v19048_v37 }
0x33ad   :  { %25422 = vmatpush3.msra.mxu0 %v19048_v37  ;;  %v19490_v34 = vpop.permute.xlu0 %19489  ;;  %v18784_v1 = vmul.f32 %v26221_v4, %v29431_v7 }
0x33ae   :  { %25417 = vmatmul.mubr.msk.f32.vlgmr.msra.gmra.mxu1 %vm140_vm0, %v18783_v19  ;;  %25440 = vmatprep.subr.mxu0 %v22982_v5  ;;  %v19488_v20 = vpop.permute.xlu1 %19487 }
0x33af   :  { %v26223_v59 = vpop.eup %26222  ;;  %25423 = vmatprep.mubr.msk.f32.mxu0 %vm140_vm0, %v18784_v1  ;;  %25427 = vmatpush3.msra.mxu1 %v22983_v27 }
0x33b0   :  { %v18785_v18 = vmul.f32 %v26223_v59, %v29437_v60  ;;  %25454 = vmatprep.subr.msk.mxu1 %vm418_vm3, %v19399_v33 }
0x33b1   :  { %v19395_v45 = vpop.permute.xlu0 %19394 }
0x33b2   :  { %25424 = vmatmul.mubr.msk.f32.vlgmr.msra.gmra.mxu0 %vm140_vm0, %v18785_v18  ;;  %v19484_v41 = vpop.permute.xlu1 %19483 }
0x33b3   :  { %25441 = vmatpush3.msra.mxu0 %v22982_v5  ;;  %25442 = vmatprep.mubr.msk.f32.mxu0 %vm418_vm3, %v29379_v42 }
0x33b4   :  { %25461 = vmatprep.subr.msk.mxu0 %vm418_vm3, %v19490_v34 }
0x33b5   :  { %v19581_v7 = vpop.permute.xlu0 %19580 }
0x33b6   :  { %25443 = vmatmul.mubr.msk.f32.vlgmr.msra.gmra.mxu0 %vm418_vm3, %v29377_v21  ;;  %v19579_v60 = vpop.permute.xlu1 %19578 }
0x33b7   :  { %25462 = vmatpush3.xpose.msk.msra.mxu0 %vm418_vm3, %v19490_v34  ;;  %25445 = vmatprep.mubr.msk.f32.mxu0 %vm418_vm3, %v29385_v6 }
0x33b8   :  { %25463 = vmatprep.subr.msk.mxu0 %vm418_vm3, %v19488_v20 }
0x33b9   :  { %v19486_v63 = vpop.permute.xlu0 %19485 }
0x33ba   :  { %25446 = vmatmul.mubr.msk.f32.gmra.mxu0 %vm418_vm3, %v29383_v32  ;;  %v19575_v21 = vpop.permute.xlu1 %19574 }
0x33bb   :  { %25464 = vmatpush3.xpose.msk.msra.mxu0 %vm418_vm3, %v19488_v20  ;;  %25448 = vmatprep.mubr.msk.f32.mxu0 %vm418_vm3, %v29375_v55 }
0x33bd   :  { %v19672_v42 = vpop.permute.xlu0 %19671 }
0x33be   :  { %25449 = vmatmul.mubr.msk.f32.gmra.mxu0 %vm418_vm3, %v29373_v13  ;;  %25475 = vmatprep.subr.msk.mxu0 %vm418_vm3, %v19672_v42  ;;  %v19670_v55 = vpop.permute.xlu1 %19669 }
0x33bf   :  { %25451 = vmatprep.mubr.msk.f32.mxu0 %vm418_vm3, %v29390_v56 }
0x33c1   :  { %v19577_v6 = vpop.permute.xlu0 %19576 }
0x33c2   :  { %25452 = vmatmul.mubr.msk.f32.gmra.mxu0 %vm418_vm3, %v29387_v35  ;;  %v19668_v13 = vpop.permute.xlu1 %19667 }
0x33c3   :  { %25465 = vmatprep.mubr.msk.f32.mxu0 %vm418_vm3, %v19484_v41 }
0x33c5   :  { %v19666_v32 = vpop.permute.xlu0 %19665 }
0x33c6   :  { %25466 = vmatmul.mubr.msk.f32.vlgmr.msra.gmra.mxu0 %vm418_vm3, %v19486_v63 }
0x33c7   :  { %25476 = vmatpush3.xpose.msk.msra.mxu0 %vm418_vm3, %v19672_v42  ;;  %25479 = vmatprep.mubr.msk.f32.mxu0 %vm418_vm3, %v19666_v32 }
0x33c8   :  { %25477 = vmatprep.subr.msk.mxu0 %vm418_vm3, %v19670_v55 }
0x33cb   :  { %25478 = vmatpush3.xpose.msk.msra.mxu0 %vm418_vm3, %v19670_v55 }
0x33ce   :  { %25480 = vmatmul.mubr.msk.f32.vlgmr.msra.gmra.mxu0 %vm418_vm3, %v19668_v13 }
0x3454   :  { %v25404_v56 = vpop.f32.mrf.mxu1 }
0x3456   :  { %v18864_v23 = vpop.f32.mrf.mxu1 }
0x3457   :  { %25428 = vmatprep.mubr.msk.f32.mxu1 %vm418_vm3, %v18864_v23 }
0x3458   :  { %25429 = vmatmul.mubr.msk.f32.vlgmr.msra.gmra.mxu1 %vm418_vm3, %v25404_v56 }
0x3459   :  { %25455 = vmatpush3.xpose.msk.msra.mxu1 %vm418_vm3, %v19399_v33 }
0x345a   :  { %25456 = vmatprep.subr.msk.mxu1 %vm418_vm3, %v29483_v38 }
0x345d   :  { %25457 = vmatpush3.xpose.msk.msra.mxu1 %vm418_vm3, %v29483_v38 }
0x345e   :  { %25468 = vmatprep.subr.msk.mxu1 %vm418_vm3, %v19581_v7 }
0x346a   :  { %v25411_v35 = vpop.f32.mrf.mxu0 }
0x346c   :  { %v18951_v8 = vpop.f32.mrf.mxu0 }
0x346d   :  { %25431 = vmatprep.mubr.msk.f32.mxu1 %vm418_vm3, %v18951_v8 }
0x346e   :  { %v25418_v0 = vpop.f32.mrf.mxu1  ;;  %25432 = vmatmul.mubr.msk.f32.gmra.mxu1 %vm418_vm3, %v25411_v35 }
0x3470   :  { %v19038_v9 = vpop.f32.mrf.mxu1 }
0x3471   :  { %25434 = vmatprep.mubr.msk.f32.mxu1 %vm418_vm3, %v19038_v9 }
0x3472   :  { %v25425_v25 = vpop.f32.mrf.mxu0  ;;  %25435 = vmatmul.mubr.msk.f32.gmra.mxu1 %vm418_vm3, %v25418_v0 }
0x3474   :  { %v19125_v14 = vpop.f32.mrf.mxu0 }
0x3475   :  { %25437 = vmatprep.mubr.msk.f32.mxu1 %vm418_vm3, %v19125_v14 }
0x3476   :  { %25438 = vmatmul.mubr.msk.f32.gmra.mxu1 %vm418_vm3, %v25425_v25  ;;  %v29542_v15 = vpop.f32.mrf.mxu0 }
0x3477   :  { %25458 = vmatprep.mubr.msk.f32.mxu1 %vm418_vm3, %v29488_v52 }
0x3478   :  { %v29546_v11 = vpop.f32.mrf.mxu0 }
0x347a   :  { %v29548_v36 = vpop.f32.mrf.mxu0  ;;  %25459 = vmatmul.mubr.msk.f32.vlgmr.msra.gmra.mxu1 %vm418_vm3, %v19395_v45 }
0x347b   :  { %25469 = vmatpush3.xpose.msk.msra.mxu1 %vm418_vm3, %v19581_v7  ;;  %25472 = vmatprep.mubr.msk.f32.mxu1 %vm418_vm3, %v19575_v21 }
0x347c   :  { %25470 = vmatprep.subr.msk.mxu1 %vm418_vm3, %v19579_v60  ;;  %v29554_v27 = vpop.f32.mrf.mxu0 }
0x347e   :  { %v29556_v46 = vpop.f32.mrf.mxu0 }
0x347f   :  { %25471 = vmatpush3.xpose.msk.msra.mxu1 %vm418_vm3, %v19579_v60 }
0x3480   :  { %v29559_v62 = vpop.f32.mrf.mxu0 }
0x3482   :  { %25473 = vmatmul.mubr.msk.f32.vlgmr.msra.gmra.mxu1 %vm418_vm3, %v19577_v6  ;;  %v29562_v24 = vpop.f32.mrf.mxu0 }
0x3484   :  { %v29564_v54 = vpop.f32.mrf.mxu0 }
0x3486   :  { %v25467_v39 = vpop.f32.mrf.mxu0 }
0x3487   :  { %v19759_v50 = vmul.f32 0.35355338, %v25467_v39 }
0x3488   :  { %v19565_v37 = vpop.f32.mrf.mxu0 }
0x3489   :  { %v19758_v43 = vmul.f32 0.35355338, %v19565_v37  ;;  %v19773_v38 = vsel %vm140_vm0, %v19759_v50, -inf }
0x348b   :  { %v19770_v49 = vsel %vm140_vm0, %v19758_v43, -inf }
0x348c   :  { %19771 = vmax.xlane.f32.xlu0 %v19770_v49 }
0x348e   :  { %v25481_v42 = vpop.f32.mrf.mxu0 }
0x348f   :  { %v19763_v13 = vmul.f32 0.35355338, %v25481_v42 }
0x3490   :  { %19774 = vmax.xlane.f32.xlu0 %v19773_v38  ;;  %v19747_v32 = vpop.f32.mrf.mxu0 }
0x3491   :  { %v19762_v35 = vmul.f32 0.35355338, %v19747_v32  ;;  %v19785_v0 = vsel %vm140_vm0, %v19763_v13, -inf }
0x3493   :  { %v19782_v25 = vsel %vm140_vm0, %v19762_v35, -inf }
0x3515   :  { %v19772_v51 = vpop.xlane.xlu0 %19771 }
0x3516   :  { %v19790_v34 = vsub.f32 %v19758_v43, %v19772_v51 }
0x3518   :  { %v29568_v31 = vpop.f32.mrf.mxu1  ;;  %v19800_v18 = vmul.f32 1.442695, %v19790_v34 }
0x3519   :  { %v19775_v52 = vpop.xlane.xlu0 %19774 }
0x351a   :  { %v29570_v48 = vpop.f32.mrf.mxu1  ;;  %v19791_v4 = vsub.f32 %v19759_v50, %v19775_v52 }
0x351c   :  { %v19802_v59 = vmul.f32 1.442695, %v19791_v4 }
0x351e   :  { %26224 = vpow2.f32 %v19802_v59 }
0x351f   :  { %26226 = vpow2.f32 %v19800_v18 }
0x352b   :  { %v29592_v9 = vpop.eup %26224 }
0x352c   :  { %v26227_v14 = vpop.eup %26226  ;;  %v19821_v39 = vsel %vm140_vm0, %v29592_v9, 0.0 }
0x352d   :  { %v19818_v37 = vsel %vm140_vm0, %v26227_v14, 0.0 }
0x352e   :  { %v29572_v33 = vpop.f32.mrf.mxu1 }
0x3530   :  { %v29574_v30 = vpop.f32.mrf.mxu1 }
0x3532   :  { %v29576_v57 = vpop.f32.mrf.mxu1 }
0x3534   :  { %v29578_v5 = vpop.f32.mrf.mxu1 }
0x3536   :  { %v29580_v19 = vpop.f32.mrf.mxu1 }
0x3538   :  { %v29582_v1 = vpop.f32.mrf.mxu1 }
0x353a   :  { %v25460_v20 = vpop.f32.mrf.mxu1 }
0x353b   :  { %v19757_v45 = vmul.f32 0.35355338, %v25460_v20 }
0x353c   :  { %v19474_v41 = vpop.f32.mrf.mxu1 }
0x353d   :  { %v19756_v7 = vmul.f32 0.35355338, %v19474_v41  ;;  %v19767_v63 = vsel %vm140_vm0, %v19757_v45, -inf }
0x353e   :  { %19768 = vmax.xlane.f32.xlu1 %v19767_v63 }
0x353f   :  { %v19764_v60 = vsel %vm140_vm0, %v19756_v7, -inf }
0x3540   :  { %19765 = vmax.xlane.f32.xlu0 %v19764_v60 }
0x3542   :  { %v25474_v21 = vpop.f32.mrf.mxu1 }
0x3543   :  { %v29586_v6 = vmul.f32 0.35355338, %v25474_v21 }
0x3544   :  { %v19656_v55 = vpop.f32.mrf.mxu1 }
0x3545   :  { %v19760_v56 = vmul.f32 0.35355338, %v19656_v55  ;;  %v19779_v23 = vsel %vm140_vm0, %v29586_v6, -inf }
0x3546   :  { %19780 = vmax.xlane.f32.xlu0 %v19779_v23 }
0x3547   :  { %v19776_v8 = vsel %vm140_vm0, %v19760_v56, -inf }
0x3548   :  { %19777 = vmax.xlane.f32.xlu1 %v19776_v8 }
0x354a   :  { %19786 = vmax.xlane.f32.xlu0 %v19785_v0 }
0x354c   :  { %19783 = vmax.xlane.f32.xlu1 %v19782_v25 }
0x354e   :  { %19822 = vadd.xlane.f32.xlu0 %v19821_v39 }
0x3550   :  { %19819 = vadd.xlane.f32.xlu1 %v19818_v37 }
0x35c7   :  { %v19769_v50 = vpop.xlane.xlu1 %19768 }
0x35c8   :  { %v19789_v55 = vsub.f32 %v19757_v45, %v19769_v50 }
0x35c9   :  { %v19766_v43 = vpop.xlane.xlu0 %19765 }
0x35ca   :  { %v19788_v23 = vsub.f32 %v19756_v7, %v19766_v43 }
0x35cf   :  { %v19781_v49 = vpop.xlane.xlu0 %19780 }
0x35d1   :  { %v19778_v38 = vpop.xlane.xlu1 %19777 }
0x35d2   :  { %v19792_v8 = vsub.f32 %v19760_v56, %v19778_v38  ;;  %v19793_v56 = vsub.f32 %v29586_v6, %v19781_v49 }
0x35d3   :  { %v19787_v51 = vpop.xlane.xlu0 %19786 }
0x35d4   :  { %v19795_v52 = vsub.f32 %v19763_v13, %v19787_v51  ;;  %v19798_v13 = vmul.f32 1.442695, %v19789_v55  ;;  %v19804_v25 = vmul.f32 1.442695, %v19792_v8  ;;  %v19806_v43 = vmul.f32 1.442695, %v19793_v56 }
0x35d5   :  { %v19784_v4 = vpop.xlane.xlu1 %19783 }
0x35d6   :  { %v19810_v34 = vmul.f32 1.442695, %v19795_v52  ;;  %v19794_v59 = vsub.f32 %v19762_v35, %v19784_v4  ;;  %v19796_v35 = vmul.f32 1.442695, %v19788_v23 }
0x35d7   :  { %v19823_v49 = vpop.xlane.xlu0 %19822 }
0x35d8   :  { %26228 = vpow2.f32 %v19810_v34  ;;  %v19808_v20 = vmul.f32 1.442695, %v19794_v59 }
0x35d9   :  { %v19820_v18 = vpop.xlane.xlu1 %19819 }
0x35da   :  { %26230 = vpow2.f32 %v19808_v20 }
0x35db   :  { %26232 = vrcp.f32 %v19820_v18 }
0x35dc   :  { %26234 = vpow2.f32 %v19798_v13 }
0x35dd   :  { %26236 = vpow2.f32 %v19796_v35 }
0x35de   :  { %26238 = vpow2.f32 %v19804_v25 }
0x35df   :  { %26240 = vpow2.f32 %v19806_v43 }
0x35e0   :  { %26242 = vrcp.f32 %v19823_v49 }
0x35e5   :  { %v29598_v41 = vpop.eup %26228 }
0x35e6   :  { %v19833_v63 = vsel %vm140_vm0, %v29598_v41, 0.0 }
0x35e7   :  { %v29602_v60 = vpop.eup %26230  ;;  %19834 = vadd.xlane.f32.xlu0 %v19833_v63 }
0x35e8   :  { %v26233_v42 = vpop.eup %26232  ;;  %v19830_v21 = vsel %vm140_vm0, %v29602_v60, 0.0 }
0x35e9   :  { %19831 = vadd.xlane.f32.xlu1 %v19830_v21  ;;  %v19846_v32 = vmul.f32 %v26233_v42, %v26227_v14  ;;  %v29617_v0 = vpop.eup %26234 }
0x35ea   :  { %v19815_v14 = vsel %vm140_vm0, %v29617_v0, 0.0  ;;  %v29621_v39 = vpop.eup %26236 }
0x35eb   :  { %25493 = vmatprep.mubr.msk.f32.mxu0 %vm140_vm0, %v19846_v32  ;;  %v19812_v45 = vsel %vm140_vm0, %v29621_v39, 0.0  ;;  %v29625_v37 = vpop.eup %26238 }
0x35ec   :  { %v19824_v7 = vsel %vm140_vm0, %v29625_v37, 0.0  ;;  %v29640_v50 = vpop.eup %26240 }
0x35ed   :  { %v19827_v6 = vsel %vm140_vm0, %v29640_v50, 0.0  ;;  %v26243_v59 = vpop.eup %26242 }
0x35ee   :  { %v19847_v18 = vmul.f32 %v26243_v59, %v29592_v9 }
0x35fa   :  { %19854 = vrot.lane.b32.xlu1 %v29185_v22, %s30124_s29 }
0x35fd   :  { %19852 = vrot.lane.b32.xlu0 %v29187_v12, %s30124_s29 }
0x35fe   :  { %19941 = vrot.lane.b32.xlu1 %v29191_v58, %s30124_s29 }
0x3602   :  { %19939 = vrot.lane.b32.xlu1 %v29197_v17, %s30124_s29 }
0x3606   :  { %20026 = vrot.lane.b32.xlu1 %v29219_v10, %s30124_s29 }
0x361c   :  { %19816 = vadd.xlane.f32.xlu0 %v19815_v14 }
0x362a   :  { %19813 = vadd.xlane.f32.xlu1 %v19812_v45  ;;  %v22984_v45 = vld [vmem:[%s27669_s8 + $0x30] sm:$0xff] }
0x362e   :  { %19825 = vadd.xlane.f32.xlu1 %v19824_v7 }
0x3632   :  { %20028 = vrot.lane.b32.xlu0 %v29217_v53, %s30124_s29 }
0x363f   :  { %20113 = vrot.lane.b32.xlu1 %v29229_v26, %s30124_s29 }
0x3643   :  { %20341 = vrot.lane.b32.xlu1 %v29187_v12, %s30126_s3 }
0x3647   :  { %20434 = vrot.lane.b32.xlu1 %v29191_v58, %s30126_s3 }
0x364b   :  { %20432 = vrot.lane.b32.xlu1 %v29197_v17, %s30126_s3 }
0x364f   :  { %20428 = vrot.lane.b32.xlu1 %v29197_v17, %s30125_s13 }
0x3651   :  { %19828 = vadd.xlane.f32.xlu0 %v19827_v6 }
0x3653   :  { %20523 = vrot.lane.b32.xlu1 %v29219_v10, %s30126_s3 }
0x3657   :  { %20519 = vrot.lane.b32.xlu1 %v29219_v10, %s30125_s13 }
0x365b   :  { %20614 = vrot.lane.b32.xlu1 %v29229_v26, %s30126_s3 }
0x365f   :  { %20612 = vrot.lane.b32.xlu1 %v29223_v28, %s30125_s13 }
0x3667   :  { %20115 = vrot.lane.b32.xlu0 %v29223_v28, %s30124_s29 }
0x366b   :  { %20343 = vrot.lane.b32.xlu0 %v29185_v22, %s30126_s3 }
0x366f   :  { %20337 = vrot.lane.b32.xlu0 %v29187_v12, %s30125_s13 }
0x3670   :  { %v19835_v38 = vpop.xlane.xlu0 %19834 }
0x3672   :  { %v19832_v51 = vpop.xlane.xlu1 %19831 }
0x3673   :  { %26244 = vrcp.f32 %v19832_v51  ;;  %20339 = vrot.lane.b32.xlu0 %v29185_v22, %s30125_s13 }
0x3674   :  { %v19853_v4 = vpop.permute.xlu0 %19852 }
0x3676   :  { %v19855_v52 = vpop.permute.xlu1 %19854 }
0x3677   :  { %20525 = vrot.lane.b32.xlu0 %v29217_v53, %s30126_s3  ;;  %25482 = vmatprep.subr.mxu1 %v19855_v52 }
0x3678   :  { %25483 = vmatpush3.msra.mxu1 %v19855_v52 }
0x3679   :  { %25484 = vmatprep.subr.mxu1 %v19853_v4 }
0x367a   :  { %25485 = vmatpush3.msra.mxu1 %v19853_v4  ;;  %v19942_v34 = vpop.permute.xlu1 %19941 }
0x367b   :  { %20430 = vrot.lane.b32.xlu0 %v29191_v58, %s30125_s13  ;;  %25489 = vmatprep.subr.mxu0 %v19942_v34 }
0x367c   :  { %25490 = vmatpush3.msra.mxu0 %v19942_v34 }
0x367e   :  { %v19940_v20 = vpop.permute.xlu1 %19939 }
0x367f   :  { %20616 = vrot.lane.b32.xlu0 %v29223_v28, %s30126_s3  ;;  %25491 = vmatprep.subr.mxu0 %v19940_v20  ;;  %s26361_s3 = smov 28  }
0x3680   :  { %v26245_v63 = vpop.eup %26244  ;;  %25492 = vmatpush3.msra.mxu0 %v19940_v20  ;;  %s22460_s19 = sld [smem:[%s30109_s0 + %s26361_s3]]  }
0x3681   :  { %25494 = vmatmul.mubr.msk.f32.vlgmr.msra.gmra.mxu0 %vm140_vm0, %v19847_v18  ;;  %v19850_v42 = vmul.f32 %v26245_v63, %v29602_v60 }
0x3682   :  { %v20027_v32 = vpop.permute.xlu1 %20026 }
0x3683   :  { %20521 = vrot.lane.b32.xlu0 %v29217_v53, %s30125_s13  ;;  %25507 = vmatprep.mubr.msk.f32.mxu0 %vm140_vm0, %v19850_v42 }
0x3687   :  { %20610 = vrot.lane.b32.xlu0 %v29229_v26, %s30125_s13  ;;  %s22461_s13 = sld [smem:[%s30109_s0 + %s26360_s17]]  }
0x36a5   :  { %v19817_v21 = vpop.xlane.xlu0 %19816 }
0x36a6   :  { %26246 = vrcp.f32 %v19817_v21 }
0x36a9   :  { %v20029_v9 = vpop.permute.xlu0 %20028 }
0x36aa   :  { %25496 = vmatprep.subr.mxu1 %v20029_v9 }
0x36b3   :  { %v19814_v55 = vpop.xlane.xlu1 %19813  ;;  %v26247_v23 = vpop.eup %26246 }
0x36b4   :  { %26248 = vrcp.f32 %v19814_v55  ;;  %v19845_v8 = vmul.f32 %v26247_v23, %v29617_v0 }
0x36b7   :  { %v19826_v13 = vpop.xlane.xlu1 %19825 }
0x36b8   :  { %26250 = vrcp.f32 %v19826_v13 }
0x36b9   :  { %26252 = vrcp.f32 %v19835_v38 }
0x36bb   :  { %v20114_v7 = vpop.permute.xlu1 %20113 }
0x36bf   :  { %v20342_v56 = vpop.permute.xlu1 %20341 }
0x36c1   :  { %v26249_v60 = vpop.eup %26248 }
0x36c2   :  { %v19844_v35 = vmul.f32 %v26249_v60, %v29621_v39 }
0x36c3   :  { %v20435_v39 = vpop.permute.xlu1 %20434 }
0x36c4   :  { %25486 = vmatprep.mubr.msk.f32.mxu1 %vm140_vm0, %v19844_v35 }
0x36c5   :  { %v26251_v25 = vpop.eup %26250  ;;  %25487 = vmatmul.mubr.msk.f32.vlgmr.msra.gmra.mxu1 %vm140_vm0, %v19845_v8 }
0x36c6   :  { %25497 = vmatpush3.msra.mxu1 %v20029_v9  ;;  %v19848_v14 = vmul.f32 %v26251_v25, %v29625_v37  ;;  %v26253_v0 = vpop.eup %26252 }
0x36c7   :  { %25498 = vmatprep.subr.mxu1 %v20027_v32  ;;  %v20433_v49 = vpop.permute.xlu1 %20432  ;;  %v19851_v51 = vmul.f32 %v26253_v0, %v29598_v41 }
0x36c8   :  { %25499 = vmatpush3.msra.mxu1 %v20027_v32  ;;  %25500 = vmatprep.mubr.msk.f32.mxu1 %vm140_vm0, %v19848_v14 }
0x36c9   :  { %25510 = vmatprep.subr.mxu1 %v22984_v45 }
0x36cb   :  { %v20429_v38 = vpop.permute.xlu1 %20428 }
0x36cf   :  { %v20524_v59 = vpop.permute.xlu1 %20523 }
0x36da   :  { %v19829_v43 = vpop.xlane.xlu0 %19828 }
0x36db   :  { %26254 = vrcp.f32 %v19829_v43 }
0x36de   :  { %v20116_v6 = vpop.permute.xlu0 %20115 }
0x36df   :  { %25503 = vmatprep.subr.mxu0 %v20116_v6 }
0x36e0   :  { %25504 = vmatpush3.msra.mxu0 %v20116_v6 }
0x36e1   :  { %25505 = vmatprep.subr.mxu0 %v20114_v7 }
0x36e2   :  { %v20344_v37 = vpop.permute.xlu0 %20343  ;;  %25506 = vmatpush3.msra.mxu0 %v20114_v7 }
0x36e3   :  { %25508 = vmatmul.mubr.msk.f32.vlgmr.msra.gmra.mxu0 %vm140_vm0, %v19851_v51  ;;  %25524 = vmatprep.subr.msk.mxu0 %vm418_vm3, %v20344_v37 }
0x36e4   :  { %25525 = vmatpush3.xpose.msk.msra.mxu0 %vm418_vm3, %v20344_v37 }
0x36e5   :  { %25526 = vmatprep.subr.msk.mxu0 %vm418_vm3, %v20342_v56 }
0x36e6   :  { %v20338_v52 = vpop.permute.xlu0 %20337 }
0x36e7   :  { %25528 = vmatprep.mubr.msk.f32.mxu0 %vm418_vm3, %v20338_v52 }
0x36e8   :  { %v26255_v4 = vpop.eup %26254  ;;  %25527 = vmatpush3.xpose.msk.msra.mxu0 %vm418_vm3, %v20342_v56 }
0x36e9   :  { %v19849_v41 = vmul.f32 %v26255_v4, %v29640_v50  ;;  %25531 = vmatprep.subr.msk.mxu0 %vm418_vm3, %v20435_v39  ;;  %v20520_v50 = vpop.permute.xlu1 %20519  ;;  %v19359_v4 = vadd.f32 %v29542_v15, %v29568_v31 }
0x36ea   :  { %v20340_v34 = vpop.permute.xlu0 %20339 }
0x36eb   :  { %25501 = vmatmul.mubr.msk.f32.vlgmr.msra.gmra.mxu1 %vm140_vm0, %v19849_v41  ;;  %25529 = vmatmul.mubr.msk.f32.vlgmr.msra.gmra.mxu0 %vm418_vm3, %v20340_v34  ;;  %v19354_v34 = vadd.f32 %v29546_v11, %v29570_v48 }
0x36ec   :  { %25532 = vmatpush3.xpose.msk.msra.mxu0 %vm418_vm3, %v20435_v39  ;;  %25535 = vmatprep.mubr.msk.f32.mxu0 %vm418_vm3, %v20429_v38 }
0x36ed   :  { %25533 = vmatprep.subr.msk.mxu0 %vm418_vm3, %v20433_v49  ;;  %25511 = vmatpush3.msra.mxu1 %v22984_v45  ;;  %v20615_v42 = vpop.permute.xlu1 %20614 }
0x36ee   :  { %v20526_v20 = vpop.permute.xlu0 %20525 }
0x36ef   :  { %25538 = vmatprep.subr.msk.mxu1 %vm418_vm3, %v20526_v20 }
0x36f0   :  { %25534 = vmatpush3.xpose.msk.msra.mxu0 %vm418_vm3, %v20433_v49 }
0x36f1   :  { %v20613_v32 = vpop.permute.xlu1 %20612 }
0x36f2   :  { %v20431_v18 = vpop.permute.xlu0 %20430 }
0x36f3   :  { %25536 = vmatmul.mubr.msk.f32.vlgmr.msra.gmra.mxu0 %vm418_vm3, %v20431_v18 }
0x36f6   :  { %v20617_v63 = vpop.permute.xlu0 %20616 }
0x36f7   :  { %25545 = vmatprep.subr.msk.mxu0 %vm418_vm3, %v20617_v63 }
0x36f8   :  { %25546 = vmatpush3.xpose.msk.msra.mxu0 %vm418_vm3, %v20617_v63 }
0x36f9   :  { %25547 = vmatprep.subr.msk.mxu0 %vm418_vm3, %v20615_v42 }
0x36fa   :  { %v20522_v21 = vpop.permute.xlu0 %20521 }
0x36fc   :  { %25548 = vmatpush3.xpose.msk.msra.mxu0 %vm418_vm3, %v20615_v42  ;;  %v19364_v42 = vadd.f32 %v29554_v27, %v29574_v30  ;;  %v19374_v27 = vadd.f32 %v29559_v62, %v29578_v5 }
0x36fe   :  { %v20611_v9 = vpop.permute.xlu0 %20610 }
0x36ff   :  { %25549 = vmatprep.mubr.msk.f32.mxu0 %vm418_vm3, %v20611_v9 }
0x3700   :  { %25550 = vmatmul.mubr.msk.f32.vlgmr.msra.gmra.mxu0 %vm418_vm3, %v20613_v32 }
0x3741   :  { %v25495_v55 = vpop.f32.mrf.mxu0 }
0x3743   :  { %v20017_v60 = vpop.f32.mrf.mxu0 }
0x3785   :  { %v25488_v13 = vpop.f32.mrf.mxu1 }
0x3787   :  { %v19930_v23 = vpop.f32.mrf.mxu1 }
0x3788   :  { %25512 = vmatprep.mubr.msk.f32.mxu1 %vm418_vm3, %v19930_v23 }
0x3789   :  { %25513 = vmatmul.mubr.msk.f32.vlgmr.msra.gmra.mxu1 %vm418_vm3, %v25488_v13 }
0x378a   :  { %25539 = vmatpush3.xpose.msk.msra.mxu1 %vm418_vm3, %v20526_v20  ;;  %25515 = vmatprep.mubr.msk.f32.mxu1 %vm418_vm3, %v20017_v60 }
0x378b   :  { %25540 = vmatprep.subr.msk.mxu1 %vm418_vm3, %v20524_v59 }
0x378d   :  { %25516 = vmatmul.mubr.msk.f32.gmra.mxu1 %vm418_vm3, %v25495_v55 }
0x378e   :  { %25541 = vmatpush3.xpose.msk.msra.mxu1 %vm418_vm3, %v20524_v59 }
0x37a3   :  { %v25509_v35 = vpop.f32.mrf.mxu0 }
0x37a5   :  { %v20191_v8 = vpop.f32.mrf.mxu0 }
0x37ab   :  { %v25502_v25 = vpop.f32.mrf.mxu1  ;;  %v25530_v14 = vpop.f32.mrf.mxu0 }
0x37ac   :  { %v20702_v45 = vmul.f32 0.35355338, %v25530_v14  ;;  %v19389_v14 = vadd.f32 %v29562_v24, %v29580_v19 }
0x37ad   :  { %v20104_v7 = vpop.f32.mrf.mxu1  ;;  %v20419_v56 = vpop.f32.mrf.mxu0 }
0x37ae   :  { %v20701_v39 = vmul.f32 0.35355338, %v20419_v56  ;;  %25518 = vmatprep.mubr.msk.f32.mxu1 %vm418_vm3, %v20104_v7  ;;  %v20712_v43 = vsel %vm140_vm0, %v20702_v45, -inf }
0x37af   :  { %25519 = vmatmul.mubr.msk.f32.gmra.mxu1 %vm418_vm3, %v25502_v25  ;;  %20713 = vmax.xlane.f32.xlu1 %v20712_v43 }
0x37b0   :  { %25521 = vmatprep.mubr.msk.f32.mxu1 %vm418_vm3, %v20191_v8  ;;  %v20709_v0 = vsel %vm140_vm0, %v20701_v39, -inf }
0x37b1   :  { %20710 = vmax.xlane.f32.xlu0 %v20709_v0 }
0x37b3   :  { %25522 = vmatmul.mubr.msk.f32.gmra.mxu1 %vm418_vm3, %v25509_v35  ;;  %v25537_v6 = vpop.f32.mrf.mxu0 }
0x37b4   :  { %25542 = vmatprep.mubr.msk.f32.mxu1 %vm418_vm3, %v20520_v50  ;;  %v20704_v37 = vmul.f32 0.35355338, %v25537_v6  ;;  %v19369_v50 = vadd.f32 %v29548_v36, %v29572_v33  ;;  %v19379_v36 = vadd.f32 %v29556_v46, %v29576_v57  ;;  %v19384_v46 = vadd.f32 %v29564_v54, %v29582_v1 }
0x37b5   :  { %v20510_v49 = vpop.f32.mrf.mxu0 }
0x37b6   :  { %v20703_v51 = vmul.f32 0.35355338, %v20510_v49  ;;  %v20718_v52 = vsel %vm140_vm0, %v20704_v37, -inf }
0x37b7   :  { %25543 = vmatmul.mubr.msk.f32.vlgmr.msra.gmra.mxu1 %vm418_vm3, %v20522_v21 }
0x37b8   :  { %v20715_v38 = vsel %vm140_vm0, %v20703_v51, -inf }
0x37b9   :  { %20716 = vmax.xlane.f32.xlu0 %v20715_v38 }
0x37bd   :  { %20719 = vmax.xlane.f32.xlu0 %v20718_v52 }
0x37c0   :  { %v25551_v62 = vpop.f32.mrf.mxu0 }
0x37c1   :  { %v20708_v49 = vmul.f32 0.35355338, %v25551_v62 }
0x37c2   :  { %v20692_v19 = vpop.f32.mrf.mxu0 }
0x37c3   :  { %v20707_v54 = vmul.f32 0.35355338, %v20692_v19  ;;  %v20730_v38 = vsel %vm140_vm0, %v20708_v49, -inf }
0x3838   :  { %v20714_v11 = vpop.xlane.xlu1 %20713 }
0x3839   :  { %v20734_v48 = vsub.f32 %v20702_v45, %v20714_v11 }
0x383a   :  { %v20711_v31 = vpop.xlane.xlu0 %20710 }
0x383b   :  { %v20733_v13 = vsub.f32 %v20701_v39, %v20711_v31  ;;  %v20743_v33 = vmul.f32 1.442695, %v20734_v48 }
0x383d   :  { %v20741_v30 = vmul.f32 1.442695, %v20733_v13  ;;  %26256 = vpow2.f32 %v20743_v33 }
0x383f   :  { %26258 = vpow2.f32 %v20741_v30 }
0x3842   :  { %v20717_v32 = vpop.xlane.xlu0 %20716 }
0x3843   :  { %v20735_v35 = vsub.f32 %v20703_v51, %v20717_v32 }
0x3845   :  { %v20745_v57 = vmul.f32 1.442695, %v20735_v35 }
0x3846   :  { %v20720_v55 = vpop.xlane.xlu0 %20719 }
0x3847   :  { %v20736_v23 = vsub.f32 %v20704_v37, %v20720_v55 }
0x3849   :  { %v25514_v41 = vpop.f32.mrf.mxu1  ;;  %v20747_v45 = vmul.f32 1.442695, %v20736_v23 }
0x384a   :  { %v29727_v59 = vadd.f32 %v25514_v41, %v19359_v4  ;;  %v29758_v52 = vpop.eup %26256  ;;  %v20727_v4 = vsel %vm140_vm0, %v20707_v54, -inf }
0x384b   :  { %v20290_v20 = vpop.f32.mrf.mxu1  ;;  %26260 = vpow2.f32 %v20747_v45 }
0x384c   :  { %v29731_v18 = vadd.f32 %v20290_v20, %v19354_v34  ;;  %26262 = vpow2.f32 %v20745_v57  ;;  %v26259_v41 = vpop.eup %26258  ;;  %v20760_v34 = vsel %vm140_vm0, %v29758_v52, 0.0 }
0x384d   :  { %v25517_v63 = vpop.f32.mrf.mxu1 }
0x384e   :  { %v29735_v21 = vadd.f32 %v25517_v63, %v19369_v50  ;;  %v20757_v50 = vsel %vm140_vm0, %v26259_v41, 0.0 }
0x384f   :  { %v20300_v9 = vpop.f32.mrf.mxu1 }
0x3850   :  { %v29737_v15 = vadd.f32 %v20300_v9, %v19364_v42 }
0x3858   :  { %v29763_v20 = vpop.eup %26260 }
0x3859   :  { %v29766_v63 = vpop.eup %26262  ;;  %v20766_v42 = vsel %vm140_vm0, %v29763_v20, 0.0 }
0x385a   :  { %v20763_v9 = vsel %vm140_vm0, %v29766_v63, 0.0 }
0x386f   :  { %v25520_v60 = vpop.f32.mrf.mxu1 }
0x3870   :  { %v29743_v8 = vadd.f32 %v25520_v60, %v19379_v36 }
0x3871   :  { %v20310_v25 = vpop.f32.mrf.mxu1 }
0x3872   :  { %v29747_v7 = vadd.f32 %v20310_v25, %v19374_v27 }
0x3873   :  { %v25523_v56 = vpop.f32.mrf.mxu1 }
0x3874   :  { %v29751_v39 = vadd.f32 %v25523_v56, %v19389_v14 }
0x3875   :  { %v20320_v5 = vpop.f32.mrf.mxu1 }
0x3876   :  { %v29753_v43 = vadd.f32 %v20320_v5, %v19384_v46 }
0x3877   :  { %v25544_v0 = vpop.f32.mrf.mxu1 }
0x3878   :  { %v20706_v24 = vmul.f32 0.35355338, %v25544_v0 }
0x3879   :  { %v20601_v6 = vpop.f32.mrf.mxu1 }
0x387a   :  { %v20705_v51 = vmul.f32 0.35355338, %v20601_v6  ;;  %v20724_v37 = vsel %vm140_vm0, %v20706_v24, -inf }
0x387b   :  { %20725 = vmax.xlane.f32.xlu0 %v20724_v37 }
0x387c   :  { %v20721_v1 = vsel %vm140_vm0, %v20705_v51, -inf }
0x387d   :  { %20722 = vmax.xlane.f32.xlu1 %v20721_v1 }
0x387f   :  { %20731 = vmax.xlane.f32.xlu0 %v20730_v38 }
0x3881   :  { %20728 = vmax.xlane.f32.xlu1 %v20727_v4 }
0x3883   :  { %20761 = vadd.xlane.f32.xlu0 %v20760_v34 }
0x3885   :  { %20758 = vadd.xlane.f32.xlu1 %v20757_v50 }
0x3887   :  { %20767 = vadd.xlane.f32.xlu0 %v20766_v42 }
0x3889   :  { %20764 = vadd.xlane.f32.xlu1 %v20763_v9 }
0x3904   :  { %v20726_v31 = vpop.xlane.xlu0 %20725 }
0x3905   :  { %v20738_v45 = vsub.f32 %v20706_v24, %v20726_v31  ;;  %v22985_v31 = vld [vmem:[%s27669_s8 + $0x38] sm:$0xff]  ;;  %s22459_s8 = sld [smem:[%s30109_s0 + %s26357_s7]]  }
0x3906   :  { %v20723_v32 = vpop.xlane.xlu1 %20722 }
0x3907   :  { %v20751_v56 = vmul.f32 1.442695, %v20738_v45  ;;  %v20737_v46 = vsub.f32 %v20705_v51, %v20723_v32 }
0x3908   :  { %v20732_v11 = vpop.xlane.xlu0 %20731 }
0x3909   :  { %v20740_v48 = vsub.f32 %v20708_v49, %v20732_v11 }
0x390a   :  { %v20729_v55 = vpop.xlane.xlu1 %20728 }
0x390b   :  { %v20755_v13 = vmul.f32 1.442695, %v20740_v48  ;;  %v20739_v36 = vsub.f32 %v20707_v54, %v20729_v55 }
0x390d   :  { %26264 = vpow2.f32 %v20755_v13  ;;  %v20753_v33 = vmul.f32 1.442695, %v20739_v36 }
0x390e   :  { %v20759_v23 = vpop.xlane.xlu1 %20758 }
0x390f   :  { %26266 = vpow2.f32 %v20753_v33 }
0x3910   :  { %26268 = vrcp.f32 %v20759_v23 }
0x3911   :  { %26270 = vpow2.f32 %v20751_v56 }
0x391a   :  { %v29772_v60 = vpop.eup %26264 }
0x391b   :  { %v20778_v27 = vsel %vm140_vm0, %v29772_v60, 0.0 }
0x391c   :  { %v26267_v30 = vpop.eup %26266  ;;  %20779 = vadd.xlane.f32.xlu0 %v20778_v27 }
0x391d   :  { %v26269_v35 = vpop.eup %26268  ;;  %v20775_v25 = vsel %vm140_vm0, %v26267_v30, 0.0 }
0x391e   :  { %20776 = vadd.xlane.f32.xlu1 %v20775_v25  ;;  %v20789_v14 = vmul.f32 %v26269_v35, %v26259_v41  ;;  %v29790_v57 = vpop.eup %26270 }
0x3920   :  { %25556 = vmatprep.mubr.msk.f32.mxu1 %vm140_vm0, %v20789_v14  ;;  %v23115_v14 = vld [vmem:[%s28009_s16 + $0x1] ss:$0 sm:$0xff]  ;;  %s26358_s16 = smov 23  }
0x392f   :  { %20799 = vrot.lane.b32.xlu1 %v29185_v22, %s30127_s9  ;;  %v20749_v22 = vmul.f32 1.442695, %v20737_v46 }
0x3931   :  { %26272 = vpow2.f32 %v20749_v22 }
0x3932   :  { %20797 = vrot.lane.b32.xlu0 %v29187_v12, %s30127_s9  ;;  %v20772_v12 = vsel %vm140_vm0, %v29790_v57, 0.0 }
0x3933   :  { %20886 = vrot.lane.b32.xlu1 %v29191_v58, %s30127_s9 }
0x3936   :  { %20973 = vrot.lane.b32.xlu0 %v29217_v53, %s30127_s9 }
0x3937   :  { %20884 = vrot.lane.b32.xlu1 %v29197_v17, %s30127_s9  ;;  %v20762_v17 = vpop.xlane.xlu0 %20761 }
0x3938   :  { %26274 = vrcp.f32 %v20762_v17 }
0x393b   :  { %20971 = vrot.lane.b32.xlu1 %v29219_v10, %s30127_s9  ;;  %v20765_v10 = vpop.xlane.xlu1 %20764  ;;  %v20768_v62 = vpop.xlane.xlu0 %20767 }
0x393c   :  { %26276 = vrcp.f32 %v20765_v10 }
0x393d   :  { %26278 = vrcp.f32 %v20768_v62 }
0x393e   :  { %v26273_v58 = vpop.eup %26272 }
0x393f   :  { %v20769_v53 = vsel %vm140_vm0, %v26273_v58, 0.0 }
0x3945   :  { %v26275_v19 = vpop.eup %26274 }
0x3949   :  { %v26277_v49 = vpop.eup %26276 }
0x394a   :  { %v20791_v37 = vmul.f32 %v26277_v49, %v29766_v63  ;;  %v26279_v54 = vpop.eup %26278 }
0x394b   :  { %v20792_v38 = vmul.f32 %v26279_v54, %v29763_v20 }
0x3955   :  { %20773 = vadd.xlane.f32.xlu0 %v20772_v12 }
0x395f   :  { %20770 = vadd.xlane.f32.xlu1 %v20769_v53 }
0x396b   :  { %21060 = vrot.lane.b32.xlu0 %v29223_v28, %s30127_s9  ;;  %v20790_v28 = vmul.f32 %v26275_v19, %v29758_v52 }
0x3970   :  { %21058 = vrot.lane.b32.xlu1 %v29229_v26, %s30127_s9 }
0x39a5   :  { %v20780_v5 = vpop.xlane.xlu0 %20779 }
0x39a7   :  { %v20777_v0 = vpop.xlane.xlu1 %20776 }
0x39a8   :  { %26280 = vrcp.f32 %v20777_v0 }
0x39a9   :  { %v20798_v24 = vpop.permute.xlu0 %20797  ;;  %26282 = vrcp.f32 %v20780_v5 }
0x39ab   :  { %v20800_v6 = vpop.permute.xlu1 %20799 }
0x39ac   :  { %25552 = vmatprep.subr.mxu1 %v20800_v6 }
0x39ad   :  { %v20974_v51 = vpop.permute.xlu0 %20973  ;;  %25553 = vmatpush3.msra.mxu1 %v20800_v6 }
0x39ae   :  { %25554 = vmatprep.subr.mxu1 %v20798_v24  ;;  %25566 = vmatprep.subr.mxu0 %v20974_v51 }
0x39af   :  { %25555 = vmatpush3.msra.mxu1 %v20798_v24  ;;  %25567 = vmatpush3.msra.mxu0 %v20974_v51  ;;  %v20887_v26 = vpop.permute.xlu1 %20886 }
0x39b0   :  { %25557 = vmatmul.mubr.msk.f32.vlgmr.msra.gmra.mxu1 %vm140_vm0, %v20790_v28  ;;  %25559 = vmatprep.subr.mxu1 %v20887_v26 }
0x39b1   :  { %25560 = vmatpush3.msra.mxu1 %v20887_v26  ;;  %25563 = vmatprep.mubr.msk.f32.mxu1 %vm140_vm0, %v20791_v37 }
0x39b3   :  { %v20885_v1 = vpop.permute.xlu1 %20884 }
0x39b4   :  { %25561 = vmatprep.subr.mxu1 %v20885_v1 }
0x39b5   :  { %v26281_v4 = vpop.eup %26280  ;;  %25562 = vmatpush3.msra.mxu1 %v20885_v1 }
0x39b6   :  { %25564 = vmatmul.mubr.msk.f32.vlgmr.msra.gmra.mxu1 %vm140_vm0, %v20792_v38  ;;  %v20795_v52 = vmul.f32 %v26281_v4, %v26267_v30  ;;  %v26283_v20 = vpop.eup %26282 }
0x39b7   :  { %v20972_v41 = vpop.permute.xlu1 %20971  ;;  %v20796_v9 = vmul.f32 %v26283_v20, %v29772_v60 }
0x39b8   :  { %25568 = vmatprep.subr.mxu0 %v20972_v41  ;;  %25577 = vmatprep.mubr.msk.f32.mxu1 %vm140_vm0, %v20795_v52 }
0x39b9   :  { %25569 = vmatpush3.msra.mxu0 %v20972_v41 }
0x39ba   :  { %25580 = vmatprep.subr.mxu0 %v22985_v31 }
0x39de   :  { %v20774_v34 = vpop.xlane.xlu0 %20773 }
0x39df   :  { %26284 = vrcp.f32 %v20774_v34 }
0x39e2   :  { %v21061_v50 = vpop.permute.xlu0 %21060 }
0x39e3   :  { %25573 = vmatprep.subr.mxu1 %v21061_v50 }
0x39e4   :  { %25574 = vmatpush3.msra.mxu1 %v21061_v50 }
0x39e8   :  { %v20771_v63 = vpop.xlane.xlu1 %20770 }
0x39e9   :  { %26286 = vrcp.f32 %v20771_v63 }
0x39ec   :  { %v21059_v42 = vpop.permute.xlu1 %21058  ;;  %v26285_v32 = vpop.eup %26284 }
0x39ed   :  { %25575 = vmatprep.subr.mxu1 %v21059_v42  ;;  %v20794_v55 = vmul.f32 %v26285_v32, %v29790_v57 }
0x39ee   :  { %25576 = vmatpush3.msra.mxu1 %v21059_v42 }
0x39ef   :  { %25578 = vmatmul.mubr.msk.f32.vlgmr.msra.gmra.mxu1 %vm140_vm0, %v20796_v9 }
0x39f6   :  { %v26287_v11 = vpop.eup %26286 }
0x39f7   :  { %v20793_v48 = vmul.f32 %v26287_v11, %v26273_v58 }
0x39f9   :  { %25570 = vmatprep.mubr.msk.f32.mxu0 %vm140_vm0, %v20793_v48 }
0x39fa   :  { %25571 = vmatmul.mubr.msk.f32.vlgmr.msra.gmra.mxu0 %vm140_vm0, %v20794_v55 }
0x39fb   :  { %25581 = vmatpush3.msra.mxu0 %v22985_v31 }
0x3a70   :  { %v25558_v13 = vpop.f32.mrf.mxu1 }
0x3a72   :  { %v20875_v36 = vpop.f32.mrf.mxu1 }
0x3a73   :  { %25582 = vmatprep.mubr.msk.f32.mxu0 %vm418_vm3, %v20875_v36 }
0x3a74   :  { %25583 = vmatmul.mubr.msk.f32.vlgmr.msra.gmra.mxu0 %vm418_vm3, %v25558_v13 }
0x3a76   :  { %v25565_v33 = vpop.f32.mrf.mxu1 }
0x3a78   :  { %v20962_v23 = vpop.f32.mrf.mxu1 }
0x3a79   :  { %25585 = vmatprep.mubr.msk.f32.mxu0 %vm418_vm3, %v20962_v23 }
0x3a7a   :  { %25586 = vmatmul.mubr.msk.f32.gmra.mxu0 %vm418_vm3, %v25565_v33 }
0x3aaf   :  { %v25579_v60 = vpop.f32.mrf.mxu1 }
0x3ab1   :  { %v21136_v35 = vpop.f32.mrf.mxu1 }
0x3aba   :  { %v25572_v27 = vpop.f32.mrf.mxu0 }
0x3abc   :  { %v21049_v30 = vpop.f32.mrf.mxu0 }
0x3abd   :  { %25588 = vmatprep.mubr.msk.f32.mxu0 %vm418_vm3, %v21049_v30  ;;  %v23122_v30 = vld [vmem:[%s28067_s5 + $0x30] sm:$0xff] }
0x3abe   :  { %25589 = vmatmul.mubr.msk.f32.gmra.mxu0 %vm418_vm3, %v25572_v27  ;;  %v23123_v27 = vld [vmem:[%s28067_s5 + $0x38] sm:$0xff] }
0x3abf   :  { %25591 = vmatprep.mubr.msk.f32.mxu0 %vm418_vm3, %v21136_v35  ;;  %25594 = vmatprep.subr.mxu1 %v23123_v27  ;;  %v23121_v35 = vld [vmem:[%s28067_s5 + $0x28] sm:$0xff] }
0x3ac0   :  { %25595 = vmatpush3.msra.mxu1 %v23123_v27 }
0x3ac1   :  { %25596 = vmatprep.subr.mxu1 %v23122_v30 }
0x3ac2   :  { %25592 = vmatmul.mubr.msk.f32.gmra.mxu0 %vm418_vm3, %v25579_v60  ;;  %25597 = vmatpush3.msra.mxu1 %v23122_v30 }
0x3ac3   :  { %25598 = vmatprep.subr.mxu1 %v23121_v35 }
0x3ac4   :  { %25599 = vmatpush3.msra.mxu1 %v23121_v35 }
0x3b34   :  { %v25584_v25 = vpop.f32.mrf.mxu0 }
0x3b35   :  { %v21275_v45 = vadd.f32 %v25584_v25, %v29727_v59  ;;  %v23120_v25 = vld [vmem:[%s28067_s5 + $0x20] sm:$0xff] }
0x3b36   :  { %v21235_v56 = vpop.f32.mrf.mxu0  ;;  %25600 = vmatprep.subr.mxu1 %v23120_v25 }
0x3b37   :  { %v21291_v46 = vadd.f32 %v23115_v14, %v21275_v45  ;;  %v21274_v22 = vadd.f32 %v21235_v56, %v29731_v18  ;;  %25601 = vmatpush3.msra.mxu1 %v23120_v25 }
0x3b39   :  { %v21290_v57 = vadd.f32 %v23115_v14, %v21274_v22  ;;  %v21299_v12 = vadd.f32 %v21291_v46, %v29148_v2 }
0x3b3a   :  { %v25587_v58 = vpop.f32.mrf.mxu0 }
0x3b3b   :  { %v21277_v53 = vadd.f32 %v25587_v58, %v29735_v21  ;;  %v21313_v17 = vsel %vm281_vm1, %v21299_v12, 0.0  ;;  %v21298_v10 = vadd.f32 %v21290_v57, %v29146_v16 }
0x3b3c   :  { %21314 = vadd.xlane.f32.xlu1 %v21313_v17  ;;  %v21245_v62 = vpop.f32.mrf.mxu0 }
0x3b3d   :  { %v21276_v5 = vadd.f32 %v21245_v62, %v29737_v15  ;;  %v21310_v59 = vsel %vm281_vm1, %v21298_v10, 0.0  ;;  %v21293_v0 = vadd.f32 %v23115_v14, %v21277_v53 }
0x3b3e   :  { %21311 = vadd.xlane.f32.xlu0 %v21310_v59 }
0x3b3f   :  { %v21292_v24 = vadd.f32 %v23115_v14, %v21276_v5  ;;  %v21301_v19 = vadd.f32 %v21293_v0, %v29158_v61 }
0x3b41   :  { %v21300_v18 = vadd.f32 %v21292_v24, %v29156_v44  ;;  %v21319_v21 = vsel %vm281_vm1, %v21301_v19, 0.0 }
0x3b43   :  { %v21316_v2 = vsel %vm281_vm1, %v21300_v18, 0.0 }
0x3b44   :  { %21317 = vadd.xlane.f32.xlu0 %v21316_v2 }
0x3b48   :  { %21320 = vadd.xlane.f32.xlu0 %v21319_v21 }
0x3b7e   :  { %v25590_v16 = vpop.f32.mrf.mxu0 }
0x3b7f   :  { %v21279_v6 = vadd.f32 %v25590_v16, %v29743_v8  ;;  %v23141_v16 = vld [vmem:[%s28096_s25 + $0x78] sm:$0xff] }
0x3b80   :  { %v21255_v49 = vpop.f32.mrf.mxu0  ;;  %25614 = vmatprep.subr.mxu0 %v23141_v16 }
0x3b81   :  { %v21295_v15 = vadd.f32 %v23115_v14, %v21279_v6  ;;  %v21278_v51 = vadd.f32 %v21255_v49, %v29747_v7  ;;  %v23140_v6 = vld [vmem:[%s28096_s25 + $0x70] sm:$0xff]  ;;  %25615 = vmatpush3.msra.mxu0 %v23141_v16  ;;  %v23139_v49 = vld [vmem:[%s28096_s25 + $0x68] sm:$0xff] }
0x3b82   :  { %v25593_v28 = vpop.f32.mrf.mxu0  ;;  %25616 = vmatprep.subr.mxu0 %v23140_v6 }
0x3b83   :  { %v21294_v26 = vadd.f32 %v23115_v14, %v21278_v51  ;;  %v21281_v37 = vadd.f32 %v25593_v28, %v29751_v39  ;;  %v21303_v44 = vadd.f32 %v21295_v15, %v29168_v3  ;;  %25617 = vmatpush3.msra.mxu0 %v23140_v6  ;;  %v23138_v15 = vld [vmem:[%s28096_s25 + $0x60] sm:$0xff] }
0x3b84   :  { %v21265_v54 = vpop.f32.mrf.mxu0  ;;  %25618 = vmatprep.subr.mxu0 %v23139_v49 }
0x3b85   :  { %v21297_v1 = vadd.f32 %v23115_v14, %v21281_v37  ;;  %v21280_v61 = vadd.f32 %v21265_v54, %v29753_v43  ;;  %v21325_v38 = vsel %vm281_vm1, %v21303_v44, 0.0  ;;  %v21302_v4 = vadd.f32 %v21294_v26, %v29166_v47  ;;  %25619 = vmatpush3.msra.mxu0 %v23139_v49 }
0x3b86   :  { %21326 = vadd.xlane.f32.xlu0 %v21325_v38  ;;  %25620 = vmatprep.subr.mxu0 %v23138_v15 }
0x3b87   :  { %v21296_v8 = vadd.f32 %v23115_v14, %v21280_v61  ;;  %v21322_v52 = vsel %vm281_vm1, %v21302_v4, 0.0  ;;  %v21305_v7 = vadd.f32 %v21297_v1, %v29178_v29  ;;  %25621 = vmatpush3.msra.mxu0 %v23138_v15 }
0x3b88   :  { %21323 = vadd.xlane.f32.xlu1 %v21322_v52 }
0x3b89   :  { %v21331_v41 = vsel %vm281_vm1, %v21305_v7, 0.0  ;;  %v21304_v39 = vadd.f32 %v21296_v8, %v29176_v40 }
0x3b8a   :  { %21332 = vadd.xlane.f32.xlu0 %v21331_v41  ;;  %v29894_v41 = vld [vmem:[%s28105_s11 + $0x1] ss:$0 sm:$0xff]  ;;  %s22455_s11 = sld [smem:[%s30109_s0 + %s26358_s16]]  }
0x3b8b   :  { %v21328_v3 = vsel %vm281_vm1, %v21304_v39, 0.0 }
0x3b8c   :  { %21329 = vadd.xlane.f32.xlu1 %v21328_v3 }
0x3bc5   :  { %v21315_v43 = vpop.xlane.xlu1 %21314 }
0x3bc6   :  { %v21335_v34 = vmul.f32 0.03125, %v21315_v43 }
0x3bc7   :  { %v21312_v50 = vpop.xlane.xlu0 %21311 }
0x3bc8   :  { %v29845_v63 = vsub.f32 %v21299_v12, %v21335_v34  ;;  %v21334_v47 = vmul.f32 0.03125, %v21312_v50  ;;  %v23119_v50 = vld [vmem:[%s28110_s30 + $0x1] ss:$0 sm:$0xff]  ;;  %s26363_s30 = smov 31  }
0x3bc9   :  { %s22463_s10 = sld [smem:[%s30109_s0 + %s26363_s30]]  }
0x3bca   :  { %v29847_v20 = vsub.f32 %v21298_v10, %v21334_v47  ;;  %v21351_v29 = vmul.f32 %v29845_v63, %v29845_v63 }
0x3bcc   :  { %v21361_v42 = vsel %vm281_vm1, %v21351_v29, 0.0  ;;  %v21350_v40 = vmul.f32 %v29847_v20, %v29847_v20 }
0x3bcd   :  { %v21318_v9 = vpop.xlane.xlu0 %21317  ;;  %21362 = vadd.xlane.f32.xlu0 %v21361_v42 }
0x3bce   :  { %v21336_v31 = vmul.f32 0.03125, %v21318_v9  ;;  %v21358_v32 = vsel %vm281_vm1, %v21350_v40, 0.0 }
0x3bcf   :  { %21359 = vadd.xlane.f32.xlu1 %v21358_v32 }
0x3bd0   :  { %v29855_v11 = vsub.f32 %v21300_v18, %v21336_v31 }
0x3bd1   :  { %v21321_v48 = vpop.xlane.xlu0 %21320 }
0x3bd2   :  { %v21337_v55 = vmul.f32 0.03125, %v21321_v48  ;;  %v21352_v13 = vmul.f32 %v29855_v11, %v29855_v11 }
0x3bd4   :  { %v29859_v36 = vsub.f32 %v21301_v19, %v21337_v55  ;;  %v21364_v33 = vsel %vm281_vm1, %v21352_v13, 0.0 }
0x3bd5   :  { %21365 = vadd.xlane.f32.xlu1 %v21364_v33 }
0x3bd6   :  { %v21353_v23 = vmul.f32 %v29859_v36, %v29859_v36 }
0x3bd8   :  { %v21367_v60 = vsel %vm281_vm1, %v21353_v23, 0.0 }
0x3bd9   :  { %21368 = vadd.xlane.f32.xlu0 %v21367_v60 }
0x3c0f   :  { %v21327_v14 = vpop.xlane.xlu0 %21326 }
0x3c10   :  { %v21339_v45 = vmul.f32 0.03125, %v21327_v14 }
0x3c11   :  { %v21324_v56 = vpop.xlane.xlu1 %21323 }
0x3c12   :  { %v29869_v46 = vsub.f32 %v21303_v44, %v21339_v45  ;;  %v21338_v22 = vmul.f32 0.03125, %v21324_v56 }
0x3c13   :  { %v21333_v57 = vpop.xlane.xlu0 %21332 }
0x3c14   :  { %v29871_v12 = vsub.f32 %v21302_v4, %v21338_v22  ;;  %v21341_v58 = vmul.f32 0.03125, %v21333_v57  ;;  %v21355_v53 = vmul.f32 %v29869_v46, %v29869_v46  ;;  %v23137_v22 = vld [vmem:[%s28096_s25 + $0x58] sm:$0xff] }
0x3c15   :  { %v21330_v17 = vpop.xlane.xlu1 %21329  ;;  %25622 = vmatprep.subr.mxu0 %v23137_v22 }
0x3c16   :  { %v29875_v10 = vsub.f32 %v21305_v7, %v21341_v58  ;;  %v21340_v62 = vmul.f32 0.03125, %v21330_v17  ;;  %v21373_v5 = vsel %vm281_vm1, %v21355_v53, 0.0  ;;  %v21354_v59 = vmul.f32 %v29871_v12, %v29871_v12  ;;  %25623 = vmatpush3.msra.mxu0 %v23137_v22  ;;  %v23136_v53 = vld [vmem:[%s28096_s25 + $0x50] sm:$0xff] }
0x3c17   :  { %21374 = vadd.xlane.f32.xlu0 %v21373_v5  ;;  %25624 = vmatprep.subr.mxu0 %v23136_v53 }
0x3c18   :  { %v29880_v0 = vsub.f32 %v21304_v39, %v21340_v62  ;;  %v21370_v24 = vsel %vm281_vm1, %v21354_v59, 0.0  ;;  %v21357_v18 = vmul.f32 %v29875_v10, %v29875_v10  ;;  %25625 = vmatpush3.msra.mxu0 %v23136_v53  ;;  %v23135_v59 = vld [vmem:[%s28096_s25 + $0x48] sm:$0xff] }
0x3c19   :  { %21371 = vadd.xlane.f32.xlu1 %v21370_v24  ;;  %25626 = vmatprep.subr.mxu0 %v23135_v59 }
0x3c1a   :  { %v21379_v2 = vsel %vm281_vm1, %v21357_v18, 0.0  ;;  %v21356_v19 = vmul.f32 %v29880_v0, %v29880_v0  ;;  %25627 = vmatpush3.msra.mxu0 %v23135_v59 }
0x3c1b   :  { %21380 = vadd.xlane.f32.xlu0 %v21379_v2  ;;  %v23134_v2 = vld [vmem:[%s28096_s25 + $0x40] sm:$0xff] }
0x3c1c   :  { %v21376_v21 = vsel %vm281_vm1, %v21356_v19, 0.0  ;;  %25628 = vmatprep.subr.mxu0 %v23134_v2 }
0x3c1d   :  { %21377 = vadd.xlane.f32.xlu1 %v21376_v21  ;;  %25629 = vmatpush3.msra.mxu0 %v23134_v2 }
0x3c56   :  { %v21363_v51 = vpop.xlane.xlu0 %21362 }
0x3c57   :  { %v21383_v28 = vmul.f32 0.03125, %v21363_v51 }
0x3c58   :  { %v21360_v26 = vpop.xlane.xlu1 %21359 }
0x3c59   :  { %v21391_v37 = vadd.f32 1e-05, %v21383_v28  ;;  %v21382_v44 = vmul.f32 0.03125, %v21360_v26 }
0x3c5b   :  { %26288 = vrsqrt.f32 %v21391_v37  ;;  %v21390_v54 = vadd.f32 1e-05, %v21382_v44 }
0x3c5d   :  { %26290 = vrsqrt.f32 %v21390_v54 }
0x3c5e   :  { %v21366_v1 = vpop.xlane.xlu1 %21365 }
0x3c5f   :  { %v21384_v61 = vmul.f32 0.03125, %v21366_v1 }
0x3c61   :  { %v21392_v38 = vadd.f32 1e-05, %v21384_v61 }
0x3c62   :  { %v21369_v4 = vpop.xlane.xlu0 %21368 }
0x3c63   :  { %26292 = vrsqrt.f32 %v21392_v38  ;;  %v21385_v8 = vmul.f32 0.03125, %v21369_v4 }
0x3c65   :  { %v21393_v52 = vadd.f32 1e-05, %v21385_v8 }
0x3c67   :  { %26294 = vrsqrt.f32 %v21393_v52 }
0x3c68   :  { %v26289_v7 = vpop.eup %26288 }
0x3c69   :  { %v21407_v39 = vmul.f32 %v26289_v7, %v29845_v63 }
0x3c6a   :  { %v26291_v3 = vpop.eup %26290 }
0x3c6b   :  { %v21406_v43 = vmul.f32 %v26291_v3, %v29847_v20  ;;  %v21421_v34 = vmul.f32 %v29894_v41, %v21407_v39 }
0x3c6d   :  { %v21420_v47 = vmul.f32 %v29894_v41, %v21406_v43  ;;  %v29903_v40 = vadd.f32 %v23119_v50, %v21421_v34 }
0x3c6f   :  { %v29901_v29 = vadd.f32 %v23119_v50, %v21420_v47 }
0x3c70   :  { %v26293_v42 = vpop.eup %26292 }
0x3c71   :  { %25602 = vmatprep.mubr.msk.f32.mxu1 %vm281_vm1, %v29901_v29  ;;  %v21408_v9 = vmul.f32 %v26293_v42, %v29855_v11 }
0x3c72   :  { %25603 = vmatmul.mubr.msk.f32.vlgmr.msra.gmra.mxu1 %vm281_vm1, %v29903_v40 }
0x3c73   :  { %v21422_v63 = vmul.f32 %v29894_v41, %v21408_v9 }
0x3c74   :  { %v26295_v20 = vpop.eup %26294 }
0x3c75   :  { %v21409_v31 = vmul.f32 %v26295_v20, %v29859_v36  ;;  %v29912_v32 = vadd.f32 %v23119_v50, %v21422_v63  ;;  %v23143_v20 = vld [vmem:[%s28188_s2 + $0x1] ss:$0 sm:$0xff] }
0x3c77   :  { %25605 = vmatprep.mubr.msk.f32.mxu1 %vm281_vm1, %v29912_v32  ;;  %v21423_v48 = vmul.f32 %v29894_v41, %v21409_v31 }
0x3c79   :  { %v29917_v55 = vadd.f32 %v23119_v50, %v21423_v48 }
0x3c7b   :  { %25606 = vmatmul.mubr.msk.f32.gmra.mxu1 %vm281_vm1, %v29917_v55 }
0x3ca0   :  { %v21375_v11 = vpop.xlane.xlu0 %21374 }
0x3ca1   :  { %v21387_v13 = vmul.f32 0.03125, %v21375_v11 }
0x3ca2   :  { %v21372_v33 = vpop.xlane.xlu1 %21371 }
0x3ca3   :  { %v21395_v23 = vadd.f32 1e-05, %v21387_v13  ;;  %v21386_v60 = vmul.f32 0.03125, %v21372_v33 }
0x3ca4   :  { %v21381_v27 = vpop.xlane.xlu0 %21380 }
0x3ca5   :  { %26296 = vrsqrt.f32 %v21395_v23  ;;  %v21394_v36 = vadd.f32 1e-05, %v21386_v60  ;;  %v21389_v30 = vmul.f32 0.03125, %v21381_v27 }
0x3ca6   :  { %v21378_v35 = vpop.xlane.xlu1 %21377 }
0x3ca7   :  { %26298 = vrsqrt.f32 %v21394_v36  ;;  %v21397_v25 = vadd.f32 1e-05, %v21389_v30  ;;  %v21388_v14 = vmul.f32 0.03125, %v21378_v35 }
0x3ca9   :  { %26300 = vrsqrt.f32 %v21397_v25  ;;  %v21396_v45 = vadd.f32 1e-05, %v21388_v14 }
0x3cab   :  { %26302 = vrsqrt.f32 %v21396_v45 }
0x3cb2   :  { %v26297_v56 = vpop.eup %26296 }
0x3cb3   :  { %v21411_v57 = vmul.f32 %v26297_v56, %v29869_v46 }
0x3cb4   :  { %v26299_v58 = vpop.eup %26298 }
0x3cb5   :  { %v21410_v17 = vmul.f32 %v26299_v58, %v29871_v12  ;;  %v21425_v5 = vmul.f32 %v29894_v41, %v21411_v57 }
0x3cb6   :  { %v26301_v62 = vpop.eup %26300 }
0x3cb7   :  { %v21413_v24 = vmul.f32 %v26301_v62, %v29875_v10  ;;  %v21424_v18 = vmul.f32 %v29894_v41, %v21410_v17  ;;  %v29933_v12 = vadd.f32 %v23119_v50, %v21425_v5 }
0x3cb8   :  { %v26303_v46 = vpop.eup %26302 }
0x3cb9   :  { %v29930_v19 = vadd.f32 %v23119_v50, %v21424_v18  ;;  %v21412_v21 = vmul.f32 %v26303_v46, %v29880_v0  ;;  %v21427_v16 = vmul.f32 %v29894_v41, %v21413_v24  ;;  %v23125_v0 = vld [vmem:[%s28172_s4 + $0x1] ss:$0 sm:$0xff]  ;;  %s26359_s4 = smov 25  }
0x3cba   :  { %s22457_s1 = sld [smem:[%s30109_s0 + %s26359_s4]]  }
0x3cbb   :  { %25608 = vmatprep.mubr.msk.f32.mxu1 %vm281_vm1, %v29930_v19  ;;  %v21426_v10 = vmul.f32 %v29894_v41, %v21412_v21  ;;  %v29943_v49 = vadd.f32 %v23119_v50, %v21427_v16 }
0x3cbc   :  { %25609 = vmatmul.mubr.msk.f32.gmra.mxu1 %vm281_vm1, %v29933_v12 }
0x3cbd   :  { %v29941_v6 = vadd.f32 %v23119_v50, %v21426_v10 }
0x3cbf   :  { %25611 = vmatprep.mubr.msk.f32.mxu1 %vm281_vm1, %v29941_v6 }
0x3cc0   :  { %25612 = vmatmul.mubr.msk.f32.gmra.mxu1 %vm281_vm1, %v29943_v49 }
0x3d32   :  { %v25604_v15 = vpop.f32.mrf.mxu1 }
0x3d33   :  { %v21551_v51 = vadd.f32 %v25604_v15, %v23125_v0 }
0x3d34   :  { %v21545_v28 = vpop.f32.mrf.mxu1 }
0x3d35   :  { %v21546_v26 = vadd.f32 %v23125_v0, %v21545_v28  ;;  %v21585_v44 = vmax.f32 %v21551_v51, 0.0 }
0x3d37   :  { %v21584_v37 = vmax.f32 %v21546_v26, 0.0 }
0x3d39   :  { %25630 = vmatprep.mubr.msk.f32.mxu0 %vm6423_vm4, %v21584_v37 }
0x3d3a   :  { %25631 = vmatmul.mubr.msk.f32.vlgmr.msra.gmra.mxu0 %vm6423_vm4, %v21585_v44 }
0x3d3b   :  { %v25607_v54 = vpop.f32.mrf.mxu1 }
0x3d3c   :  { %v21561_v1 = vadd.f32 %v25607_v54, %v23125_v0 }
0x3d3d   :  { %v21555_v61 = vpop.f32.mrf.mxu1 }
0x3d3e   :  { %v21556_v38 = vadd.f32 %v23125_v0, %v21555_v61  ;;  %v21587_v8 = vmax.f32 %v21561_v1, 0.0 }
0x3d40   :  { %v21586_v4 = vmax.f32 %v21556_v38, 0.0 }
0x3d42   :  { %25633 = vmatprep.mubr.msk.f32.mxu0 %vm6423_vm4, %v21586_v4 }
0x3d43   :  { %25634 = vmatmul.mubr.msk.f32.gmra.mxu0 %vm6423_vm4, %v21587_v8 }
0x3d7c   :  { %v25610_v52 = vpop.f32.mrf.mxu1 }
0x3d7d   :  { %v21571_v7 = vadd.f32 %v25610_v52, %v23125_v0 }
0x3d7e   :  { %v21565_v41 = vpop.f32.mrf.mxu1 }
0x3d7f   :  { %v21566_v39 = vadd.f32 %v23125_v0, %v21565_v41  ;;  %v21589_v34 = vmax.f32 %v21571_v7, 0.0  ;;  %v21885_v7 = vld [vmem:[%s22454_s21 + $0x18] sm:$0xff]  ;;  %v21884_v41 = vld [vmem:[%s22454_s21 + $0x10] sm:$0xff] }
0x3d80   :  { %v25613_v3 = vpop.f32.mrf.mxu1  ;;  %25642 = vmatprep.subr.mxu1 %v21885_v7 }
0x3d81   :  { %v21588_v43 = vmax.f32 %v21566_v39, 0.0  ;;  %v21581_v50 = vadd.f32 %v25613_v3, %v23125_v0  ;;  %25643 = vmatpush3.msra.mxu1 %v21885_v7  ;;  %v21883_v39 = vld [vmem:[%s22454_s21 + $0x8] sm:$0xff]  ;;  %v21882_v3 = vld [vmem:[%s22454_s21] sm:$0xff] }
0x3d82   :  { %v21575_v47 = vpop.f32.mrf.mxu1  ;;  %25644 = vmatprep.subr.mxu1 %v21884_v41 }
0x3d83   :  { %v21576_v42 = vadd.f32 %v23125_v0, %v21575_v47  ;;  %25636 = vmatprep.mubr.msk.f32.mxu0 %vm6423_vm4, %v21588_v43  ;;  %v21591_v63 = vmax.f32 %v21581_v50, 0.0  ;;  %25645 = vmatpush3.msra.mxu1 %v21884_v41 }
0x3d84   :  { %25637 = vmatmul.mubr.msk.f32.gmra.mxu0 %vm6423_vm4, %v21589_v34  ;;  %25646 = vmatprep.subr.mxu1 %v21883_v39 }
0x3d85   :  { %v21590_v9 = vmax.f32 %v21576_v42, 0.0  ;;  %25647 = vmatpush3.msra.mxu1 %v21883_v39 }
0x3d86   :  { %25648 = vmatprep.subr.mxu1 %v21882_v3 }
0x3d87   :  { %25639 = vmatprep.mubr.msk.f32.mxu0 %vm6423_vm4, %v21590_v9  ;;  %25649 = vmatpush3.msra.mxu1 %v21882_v3 }
0x3d88   :  { %25640 = vmatmul.mubr.msk.f32.gmra.mxu0 %vm6423_vm4, %v21591_v63 }
0x3dfa   :  { %v25632_v31 = vpop.f32.mrf.mxu0 }
0x3dfb   :  { %v21705_v48 = vadd.f32 %v25632_v31, %v23143_v20 }
0x3dfc   :  { %v21699_v11 = vpop.f32.mrf.mxu0 }
0x3dfd   :  { %v21739_v13 = vadd.f32 %v21705_v48, %v29903_v40  ;;  %v21700_v33 = vadd.f32 %v23143_v20, %v21699_v11 }
0x3dff   :  { %v21738_v23 = vadd.f32 %v21700_v33, %v29901_v29  ;;  %v21753_v60 = vsel %vm281_vm1, %v21739_v13, 0.0 }
0x3e00   :  { %21754 = vadd.xlane.f32.xlu0 %v21753_v60 }
0x3e01   :  { %v21750_v27 = vsel %vm281_vm1, %v21738_v23, 0.0 }
0x3e02   :  { %21751 = vadd.xlane.f32.xlu1 %v21750_v27 }
0x3e03   :  { %v25635_v36 = vpop.f32.mrf.mxu0 }
0x3e04   :  { %v21715_v30 = vadd.f32 %v25635_v36, %v23143_v20 }
0x3e05   :  { %v21709_v35 = vpop.f32.mrf.mxu0 }
0x3e06   :  { %v21741_v25 = vadd.f32 %v21715_v30, %v29917_v55  ;;  %v21710_v14 = vadd.f32 %v23143_v20, %v21709_v35 }
0x3e08   :  { %v21740_v45 = vadd.f32 %v21710_v14, %v29912_v32  ;;  %v21759_v56 = vsel %vm281_vm1, %v21741_v25, 0.0  ;;  %v21993_v14 = vld [vmem:[%s30021_s6 + $0x18] sm:$0xff] }
0x3e09   :  { %21760 = vadd.xlane.f32.xlu0 %v21759_v56  ;;  %25656 = vmatprep.subr.mxu1 %v21993_v14 }
0x3e0a   :  { %v21756_v40 = vsel %vm281_vm1, %v21740_v45, 0.0 }
0x3e0b   :  { %21757 = vadd.xlane.f32.xlu1 %v21756_v40 }
0x3e44   :  { %v25638_v29 = vpop.f32.mrf.mxu0 }
0x3e45   :  { %v21725_v22 = vadd.f32 %v25638_v29, %v23143_v20 }
0x3e46   :  { %v21719_v57 = vpop.f32.mrf.mxu0 }
0x3e47   :  { %v21743_v58 = vadd.f32 %v21725_v22, %v29933_v12  ;;  %v21720_v53 = vadd.f32 %v23143_v20, %v21719_v57 }
0x3e48   :  { %v25641_v17 = vpop.f32.mrf.mxu0 }
0x3e49   :  { %v21742_v62 = vadd.f32 %v21720_v53, %v29930_v19  ;;  %v21735_v5 = vadd.f32 %v25641_v17, %v23143_v20  ;;  %v21765_v55 = vsel %vm281_vm1, %v21743_v58, 0.0 }
0x3e4a   :  { %21766 = vadd.xlane.f32.xlu0 %v21765_v55  ;;  %v21729_v32 = vpop.f32.mrf.mxu0 }
0x3e4b   :  { %v21745_v59 = vadd.f32 %v21735_v5, %v29943_v49  ;;  %v21730_v24 = vadd.f32 %v23143_v20, %v21729_v32  ;;  %v21762_v18 = vsel %vm281_vm1, %v21742_v62, 0.0 }
0x3e4c   :  { %21763 = vadd.xlane.f32.xlu1 %v21762_v18 }
0x3e4d   :  { %v21744_v2 = vadd.f32 %v21730_v24, %v29941_v6  ;;  %v21771_v46 = vsel %vm281_vm1, %v21745_v59, 0.0 }
0x3e4e   :  { %21772 = vadd.xlane.f32.xlu0 %v21771_v46 }
0x3e4f   :  { %v21768_v21 = vsel %vm281_vm1, %v21744_v2, 0.0 }
0x3e50   :  { %21769 = vadd.xlane.f32.xlu1 %v21768_v21  ;;  %v30031_v21 = vld [vmem:[%s28260_s23 + $0x1] ss:$0 sm:$0xff]  ;;  %s26356_s23 = smov 26  }
0x3e51   :  { %s22458_s27 = sld [smem:[%s30109_s0 + %s26356_s23]]  }
0x3e89   :  { %v21755_v19 = vpop.xlane.xlu0 %21754 }
0x3e8a   :  { %v21775_v12 = vmul.f32 0.03125, %v21755_v19 }
0x3e8b   :  { %v21752_v16 = vpop.xlane.xlu1 %21751 }
0x3e8c   :  { %v29975_v10 = vsub.f32 %v21739_v13, %v21775_v12  ;;  %v21774_v0 = vmul.f32 0.03125, %v21752_v16 }
0x3e8e   :  { %v29977_v15 = vsub.f32 %v21738_v23, %v21774_v0  ;;  %v21791_v49 = vmul.f32 %v29975_v10, %v29975_v10 }
0x3e90   :  { %v21801_v51 = vsel %vm281_vm1, %v21791_v49, 0.0  ;;  %v21790_v6 = vmul.f32 %v29977_v15, %v29977_v15  ;;  %v21992_v49 = vld [vmem:[%s30021_s6 + $0x10] sm:$0xff] }
0x3e91   :  { %21802 = vadd.xlane.f32.xlu0 %v21801_v51  ;;  %v21991_v51 = vld [vmem:[%s30021_s6 + $0x8] sm:$0xff] }
0x3e92   :  { %v21761_v28 = vpop.xlane.xlu0 %21760  ;;  %v21798_v26 = vsel %vm281_vm1, %v21790_v6, 0.0 }
0x3e93   :  { %v21777_v37 = vmul.f32 0.03125, %v21761_v28  ;;  %21799 = vadd.xlane.f32.xlu1 %v21798_v26  ;;  %v21990_v26 = vld [vmem:[%s30021_s6] sm:$0xff] }
0x3e94   :  { %v21758_v44 = vpop.xlane.xlu1 %21757 }
0x3e95   :  { %v29985_v54 = vsub.f32 %v21741_v25, %v21777_v37  ;;  %v21776_v1 = vmul.f32 0.03125, %v21758_v44 }
0x3e97   :  { %v29987_v61 = vsub.f32 %v21740_v45, %v21776_v1  ;;  %v21793_v38 = vmul.f32 %v29985_v54, %v29985_v54 }
0x3e99   :  { %v21807_v4 = vsel %vm281_vm1, %v21793_v38, 0.0  ;;  %v21792_v8 = vmul.f32 %v29987_v61, %v29987_v61 }
0x3e9a   :  { %21808 = vadd.xlane.f32.xlu0 %v21807_v4 }
0x3e9b   :  { %v21804_v52 = vsel %vm281_vm1, %v21792_v8, 0.0 }
0x3e9c   :  { %21805 = vadd.xlane.f32.xlu1 %v21804_v52 }
0x3ed3   :  { %v21767_v43 = vpop.xlane.xlu0 %21766 }
0x3ed4   :  { %v21779_v34 = vmul.f32 0.03125, %v21767_v43 }
0x3ed5   :  { %v21764_v50 = vpop.xlane.xlu1 %21763 }
0x3ed6   :  { %v29998_v47 = vsub.f32 %v21743_v58, %v21779_v34  ;;  %v21778_v42 = vmul.f32 0.03125, %v21764_v50 }
0x3ed7   :  { %v21773_v9 = vpop.xlane.xlu0 %21772 }
0x3ed8   :  { %v30000_v63 = vsub.f32 %v21742_v62, %v21778_v42  ;;  %v21781_v20 = vmul.f32 0.03125, %v21773_v9  ;;  %v21795_v31 = vmul.f32 %v29998_v47, %v29998_v47 }
0x3ed9   :  { %v21770_v48 = vpop.xlane.xlu1 %21769 }
0x3eda   :  { %v30004_v11 = vsub.f32 %v21745_v59, %v21781_v20  ;;  %v21780_v13 = vmul.f32 0.03125, %v21770_v48  ;;  %v21813_v33 = vsel %vm281_vm1, %v21795_v31, 0.0  ;;  %v21794_v23 = vmul.f32 %v30000_v63, %v30000_v63  ;;  %v30025_v59 = vld [vmem:[%s28255_s14 + $0x1] ss:$0 sm:$0xff] }
0x3edb   :  { %21814 = vadd.xlane.f32.xlu0 %v21813_v33 }
0x3edc   :  { %v30009_v60 = vsub.f32 %v21744_v2, %v21780_v13  ;;  %v21810_v27 = vsel %vm281_vm1, %v21794_v23, 0.0  ;;  %v21797_v36 = vmul.f32 %v30004_v11, %v30004_v11  ;;  %v22098_v13 = vld [vmem:[%s22458_s27] sm:$0xf] }
0x3edd   :  { %21811 = vadd.xlane.f32.xlu1 %v21810_v27 }
0x3ede   :  { %v21819_v30 = vsel %vm281_vm1, %v21797_v36, 0.0  ;;  %v21796_v35 = vmul.f32 %v30009_v60, %v30009_v60 }
0x3edf   :  { %21820 = vadd.xlane.f32.xlu0 %v21819_v30 }
0x3ee0   :  { %v21816_v25 = vsel %vm281_vm1, %v21796_v35, 0.0 }
0x3ee1   :  { %21817 = vadd.xlane.f32.xlu1 %v21816_v25 }
0x3f1a   :  { %v21803_v45 = vpop.xlane.xlu0 %21802 }
0x3f1b   :  { %v21823_v56 = vmul.f32 0.03125, %v21803_v45  ;;  %v23156_v45 = vld [vmem:[%s22455_s11] ss:$0 sm:$0xff] }
0x3f1c   :  { %v21800_v40 = vpop.xlane.xlu1 %21799 }
0x3f1d   :  { %v21831_v29 = vadd.f32 1e-05, %v21823_v56  ;;  %v21822_v22 = vmul.f32 0.03125, %v21800_v40 }
0x3f1f   :  { %26304 = vrsqrt.f32 %v21831_v29  ;;  %v21830_v57 = vadd.f32 1e-05, %v21822_v22 }
0x3f21   :  { %26306 = vrsqrt.f32 %v21830_v57 }
0x3f23   :  { %v21809_v58 = vpop.xlane.xlu0 %21808 }
0x3f24   :  { %v21825_v53 = vmul.f32 0.03125, %v21809_v58 }
0x3f25   :  { %v21806_v17 = vpop.xlane.xlu1 %21805 }
0x3f26   :  { %v21833_v62 = vadd.f32 1e-05, %v21825_v53  ;;  %v21824_v5 = vmul.f32 0.03125, %v21806_v17 }
0x3f28   :  { %26308 = vrsqrt.f32 %v21833_v62  ;;  %v21832_v55 = vadd.f32 1e-05, %v21824_v5  ;;  %v23161_v62 = vld [vmem:[%s22457_s1] ss:$0 sm:$0xff] }
0x3f2a   :  { %26310 = vrsqrt.f32 %v21832_v55 }
0x3f2c   :  { %v26305_v32 = vpop.eup %26304 }
0x3f2d   :  { %v21847_v24 = vmul.f32 %v26305_v32, %v29975_v10 }
0x3f2e   :  { %v26307_v18 = vpop.eup %26306 }
0x3f2f   :  { %v21846_v2 = vmul.f32 %v26307_v18, %v29977_v15  ;;  %v21861_v46 = vmul.f32 %v30025_v59, %v21847_v24 }
0x3f31   :  { %v21860_v19 = vmul.f32 %v30025_v59, %v21846_v2  ;;  %v21875_v16 = vadd.f32 %v30031_v21, %v21861_v46  ;;  %v22320_v46 = vld [vmem:[%s22461_s13 + $0x18] sm:$0xff] }
0x3f33   :  { %v21874_v12 = vadd.f32 %v30031_v21, %v21860_v19  ;;  %v22318_v19 = vld [vmem:[%s22461_s13 + $0x8] sm:$0xff] }
0x3f35   :  { %v26309_v0 = vpop.eup %26308  ;;  %25650 = vmatprep.mubr.msk.f32.mxu1 %vm281_vm1, %v21874_v12  ;;  %v22317_v12 = vld [vmem:[%s22461_s13] sm:$0xff] }
0x3f36   :  { %v21849_v10 = vmul.f32 %v26309_v0, %v29985_v54  ;;  %25651 = vmatmul.mubr.msk.f32.vlgmr.msra.gmra.mxu1 %vm281_vm1, %v21875_v16 }
0x3f37   :  { %v26311_v15 = vpop.eup %26310  ;;  %25657 = vmatpush3.msra.mxu1 %v21993_v14 }
0x3f38   :  { %v21848_v6 = vmul.f32 %v26311_v15, %v29987_v61  ;;  %25658 = vmatprep.subr.mxu1 %v21992_v49  ;;  %v21863_v28 = vmul.f32 %v30025_v59, %v21849_v10  ;;  %v23176_v15 = vld [vmem:[%s22460_s19] ss:$0 sm:$0xff] }
0x3f39   :  { %25659 = vmatpush3.msra.mxu1 %v21992_v49 }
0x3f3a   :  { %v21862_v37 = vmul.f32 %v30025_v59, %v21848_v6  ;;  %25660 = vmatprep.subr.mxu1 %v21991_v51  ;;  %v21877_v54 = vadd.f32 %v30031_v21, %v21863_v28 }
0x3f3b   :  { %25661 = vmatpush3.msra.mxu1 %v21991_v51 }
0x3f3c   :  { %v21876_v44 = vadd.f32 %v30031_v21, %v21862_v37  ;;  %25662 = vmatprep.subr.mxu1 %v21990_v26 }
0x3f3d   :  { %25663 = vmatpush3.msra.mxu1 %v21990_v26 }
0x3f3e   :  { %25653 = vmatprep.mubr.msk.f32.mxu1 %vm281_vm1, %v21876_v44  ;;  %25678 = vmatprep.subr.msk.mxu1 %vm22113_vm5, %v22098_v13 }
0x3f3f   :  { %25654 = vmatmul.mubr.msk.f32.gmra.mxu1 %vm281_vm1, %v21877_v54 }
0x3f64   :  { %v21815_v1 = vpop.xlane.xlu0 %21814 }
0x3f65   :  { %v21827_v61 = vmul.f32 0.03125, %v21815_v1 }
0x3f66   :  { %v21812_v38 = vpop.xlane.xlu1 %21811 }
0x3f67   :  { %v21835_v4 = vadd.f32 1e-05, %v21827_v61  ;;  %v21826_v8 = vmul.f32 0.03125, %v21812_v38 }
0x3f68   :  { %v21821_v52 = vpop.xlane.xlu0 %21820 }
0x3f69   :  { %26312 = vrsqrt.f32 %v21835_v4  ;;  %v21834_v7 = vadd.f32 1e-05, %v21826_v8  ;;  %v21829_v41 = vmul.f32 0.03125, %v21821_v52 }
0x3f6a   :  { %v21818_v39 = vpop.xlane.xlu1 %21817 }
0x3f6b   :  { %26314 = vrsqrt.f32 %v21834_v7  ;;  %v21837_v3 = vadd.f32 1e-05, %v21829_v41  ;;  %v21828_v43 = vmul.f32 0.03125, %v21818_v39 }
0x3f6d   :  { %26316 = vrsqrt.f32 %v21837_v3  ;;  %v21836_v34 = vadd.f32 1e-05, %v21828_v43  ;;  %v23177_v3 = vld [vmem:[%s22462_s28] ss:$0 sm:$0xff] }
0x3f6f   :  { %26318 = vrsqrt.f32 %v21836_v34 }
0x3f76   :  { %v26313_v50 = vpop.eup %26312 }
0x3f77   :  { %v21851_v42 = vmul.f32 %v26313_v50, %v29998_v47 }
0x3f78   :  { %v26315_v9 = vpop.eup %26314 }
0x3f79   :  { %v21850_v20 = vmul.f32 %v26315_v9, %v30000_v63  ;;  %v21865_v48 = vmul.f32 %v30025_v59, %v21851_v42 }
0x3f7a   :  { %v26317_v31 = vpop.eup %26316 }
0x3f7b   :  { %v21853_v33 = vmul.f32 %v26317_v31, %v30004_v11  ;;  %v21864_v23 = vmul.f32 %v30025_v59, %v21850_v20  ;;  %v21879_v47 = vadd.f32 %v30031_v21, %v21865_v48 }
0x3f7c   :  { %v26319_v27 = vpop.eup %26318 }
0x3f7d   :  { %v21878_v36 = vadd.f32 %v30031_v21, %v21864_v23  ;;  %v21852_v30 = vmul.f32 %v26319_v27, %v30009_v60  ;;  %v21867_v63 = vmul.f32 %v30025_v59, %v21853_v33  ;;  %v22099_v60 = vld [vmem:[%s22459_s8] sm:$0xf] }
0x3f7e   :  { %25670 = vmatprep.subr.msk.mxu0 %vm22113_vm5, %v22099_v60 }
0x3f7f   :  { %25664 = vmatprep.mubr.msk.f32.mxu1 %vm281_vm1, %v21878_v36  ;;  %v21866_v35 = vmul.f32 %v30025_v59, %v21852_v30  ;;  %v21881_v25 = vadd.f32 %v30031_v21, %v21867_v63  ;;  %25671 = vmatpush3.msk.msra.mxu0 %vm22113_vm5, %v22099_v60 }
0x3f80   :  { %25665 = vmatmul.mubr.msk.f32.vlgmr.msra.gmra.mxu1 %vm281_vm1, %v21879_v47  ;;  %25686 = vmatprep.subr.mxu0 %v22320_v46 }
0x3f81   :  { %v21880_v11 = vadd.f32 %v30031_v21, %v21866_v35  ;;  %25679 = vmatpush3.msk.msra.mxu1 %vm22113_vm5, %v22098_v13  ;;  %v22319_v21 = vld [vmem:[%s22461_s13 + $0x10] sm:$0xff] }
0x3f83   :  { %25667 = vmatprep.mubr.msk.f32.mxu1 %vm281_vm1, %v21880_v11 }
0x3f84   :  { %25668 = vmatmul.mubr.msk.f32.gmra.mxu1 %vm281_vm1, %v21881_v25 }
0x3ff6   :  { %v25652_v14 = vpop.f32.mrf.mxu1 }
0x3ff7   :  { %v21977_v29 = vadd.f32 %v25652_v14, %v23156_v45 }
0x3ff8   :  { %v21971_v56 = vpop.f32.mrf.mxu1 }
0x3ff9   :  { %v21972_v40 = vadd.f32 %v23156_v45, %v21971_v56 }
0x3ffb   :  { %25680 = vmatprep.mubr.msk.f32.mxu1 %vm22100_vm6, %v21972_v40 }
0x3ffc   :  { %25681 = vmatmul.mubr.msk.f32.vlgmr.msra.gmra.mxu1 %vm22100_vm6, %v21977_v29 }
0x3fff   :  { %v25655_v22 = vpop.f32.mrf.mxu1 }
0x4000   :  { %v21987_v53 = vadd.f32 %v25655_v22, %v23156_v45 }
0x4001   :  { %v21981_v57 = vpop.f32.mrf.mxu1 }
0x4002   :  { %v21982_v58 = vadd.f32 %v23156_v45, %v21981_v57 }
0x4004   :  { %25683 = vmatprep.mubr.msk.f32.mxu1 %vm22100_vm6, %v21982_v58 }
0x4005   :  { %25684 = vmatmul.mubr.msk.f32.gmra.mxu1 %vm22100_vm6, %v21987_v53 }
0x4040   :  { %v25666_v17 = vpop.f32.mrf.mxu1 }
0x4041   :  { %v22085_v32 = vadd.f32 %v25666_v17, %v23161_v62 }
0x4042   :  { %v22079_v5 = vpop.f32.mrf.mxu1 }
0x4043   :  { %v22080_v55 = vadd.f32 %v23161_v62, %v22079_v5 }
0x4044   :  { %v25669_v59 = vpop.f32.mrf.mxu1 }
0x4045   :  { %25672 = vmatprep.mubr.msk.f32.mxu0 %vm22100_vm6, %v22080_v55  ;;  %v22095_v2 = vadd.f32 %v25669_v59, %v23161_v62 }
0x4046   :  { %v22089_v24 = vpop.f32.mrf.mxu1  ;;  %25673 = vmatmul.mubr.msk.f32.vlgmr.msra.gmra.mxu0 %vm22100_vm6, %v22085_v32 }
0x4047   :  { %v22090_v18 = vadd.f32 %v23161_v62, %v22089_v24  ;;  %25687 = vmatpush3.msra.mxu0 %v22320_v46 }
0x4048   :  { %25688 = vmatprep.subr.mxu0 %v22319_v21 }
0x4049   :  { %25675 = vmatprep.mubr.msk.f32.mxu0 %vm22100_vm6, %v22090_v18  ;;  %25689 = vmatpush3.msra.mxu0 %v22319_v21 }
0x404a   :  { %25676 = vmatmul.mubr.msk.f32.gmra.mxu0 %vm22100_vm6, %v22095_v2  ;;  %25690 = vmatprep.subr.mxu0 %v22318_v19 }
0x404b   :  { %25691 = vmatpush3.msra.mxu0 %v22318_v19 }
0x404c   :  { %25692 = vmatprep.subr.mxu0 %v22317_v12 }
0x404d   :  { %25693 = vmatpush3.msra.mxu0 %v22317_v12 }
0x40bc   :  { %v25682_v16 = vpop.f32.mrf.mxu1 }
0x40be   :  { %v22283_v0 = vpop.f32.mrf.mxu1 }
0x40c5   :  { %v25685_v51 = vpop.f32.mrf.mxu1 }
0x40c7   :  { %v22293_v1 = vpop.f32.mrf.mxu1 }
0x4106   :  { %v25674_v49 = vpop.f32.mrf.mxu0 }
0x4107   :  { %v22289_v10 = vadd.f32 %v25682_v16, %v25674_v49 }
0x4108   :  { %v22183_v6 = vpop.f32.mrf.mxu0 }
0x4109   :  { %v22284_v28 = vadd.f32 %v22283_v0, %v22183_v6  ;;  %v22310_v26 = vadd.f32 %v23176_v15, %v22289_v10 }
0x410a   :  { %v25677_v37 = vpop.f32.mrf.mxu0 }
0x410b   :  { %v22309_v44 = vadd.f32 %v23176_v15, %v22284_v28  ;;  %v22299_v54 = vadd.f32 %v25685_v51, %v25677_v37  ;;  %v22314_v8 = vmax.f32 %v22310_v26, 0.0 }
0x410c   :  { %v22193_v61 = vpop.f32.mrf.mxu0 }
0x410d   :  { %v22313_v38 = vmax.f32 %v22309_v44, 0.0  ;;  %v22294_v4 = vadd.f32 %v22293_v1, %v22193_v61  ;;  %v22312_v52 = vadd.f32 %v23176_v15, %v22299_v54 }
0x410f   :  { %v22311_v7 = vadd.f32 %v23176_v15, %v22294_v4  ;;  %25694 = vmatprep.mubr.msk.f32.mxu0 %vm281_vm1, %v22313_v38  ;;  %v22316_v39 = vmax.f32 %v22312_v52, 0.0 }
0x4110   :  { %25695 = vmatmul.mubr.msk.f32.vlgmr.msra.gmra.mxu0 %vm281_vm1, %v22314_v8 }
0x4111   :  { %v22315_v41 = vmax.f32 %v22311_v7, 0.0 }
0x4113   :  { %25697 = vmatprep.mubr.msk.f32.mxu0 %vm281_vm1, %v22315_v41 }
0x4114   :  { %25698 = vmatmul.mubr.msk.f32.gmra.mxu0 %vm281_vm1, %v22316_v39 }
0x41d0   :  { %v25696_v43 = vpop.f32.mrf.mxu0 }
0x41d1   :  { %v22412_v34 = vadd.f32 %v25696_v43, %v23177_v3 }
0x41d2   :  { %v22406_v50 = vpop.f32.mrf.mxu0 }
0x41d3   :  { %22426 = vst.msk [vmem:[%s22463_s10 + $0x8] sm:$0xff] %vm22100_vm6, %v22412_v34  ;;  %v22407_v42 = vadd.f32 %v23177_v3, %v22406_v50 }
0x41d4   :  { %v25699_v9 = vpop.f32.mrf.mxu0 }
0x41d5   :  { %22425 = vst.msk [vmem:[%s22463_s10] sm:$0xff] %vm22100_vm6, %v22407_v42  ;;  %v22422_v20 = vadd.f32 %v25699_v9, %v23177_v3 }
0x41d6   :  { %v22416_v31 = vpop.f32.mrf.mxu0 }
0x41d7   :  { %22428 = vst.msk [vmem:[%s22463_s10 + $0x18] sm:$0xff] %vm22100_vm6, %v22422_v20  ;;  %v22417_v48 = vadd.f32 %v23177_v3, %v22416_v31 }
0x41d9   :  { %22427 = vst.msk [vmem:[%s22463_s10 + $0x10] sm:$0xff] %vm22100_vm6, %v22417_v48 }

</bundles_post_ra>
